<compile_context>
chip_gen: v6e
topology: v6e:2x2x1
jax: 0.10.0
libtpu: 0.0.40
codegen_flags: <defaults>
</compile_context>

<pallas_src>
import functools

import jax
import jax.numpy as jnp
from jax import lax
from jax.experimental import pallas as pl
from jax.experimental.pallas import tpu as pltpu


def _attention_kernel(x_ref, g_ref, wq_ref, wk_ref, wv_ref, wout_ref, bout_ref,
                      o_ref, *, heads, dim_head, rms_scale):
    f32 = jnp.float32
    bf16 = jnp.bfloat16

    x = x_ref[0]                                  # (N, Cp) f32, channels zero-padded
    N, Cp = x.shape

    # ---- RMSNorm: F.normalize(x, dim=channel) * g * sqrt(C)  (eps = 1e-12) ----
    ssq = jnp.sum(x * x, axis=-1, keepdims=True)
    inv_norm = lax.rsqrt(jnp.maximum(ssq, 1e-24))          # == 1 / max(||x||, 1e-12)
    xn = x * inv_norm * (g_ref[0] * rms_scale)             # (N, Cp) f32

    # ---- q/k/v projections, produced directly in (heads, N, d) layout ----
    xn_b = jnp.broadcast_to(xn.astype(bf16)[None], (heads, N, Cp))
    q = jnp.einsum('hnc,hcd->hnd', xn_b, wq_ref[...], preferred_element_type=f32)
    k = jnp.einsum('hnc,hcd->hnd', xn_b, wk_ref[...], preferred_element_type=f32)
    v = jnp.einsum('hnc,hcd->hnd', xn_b, wv_ref[...], preferred_element_type=f32)

    # ---- scaled dot-product attention: bf16 matmuls, f32 softmax math ----
    # TODO(synk): for large H*W (N >~ 2k) tile this flash-style over query blocks
    # (mandatory on v7x's 64 MiB VMEM); full (heads, N, N) is fine at toy N.
    scale = jnp.float32(dim_head) ** -0.5
    sim = jnp.einsum('hnd,hmd->hnm', q.astype(bf16), k.astype(bf16),
                     preferred_element_type=f32) * scale           # (h, N, N)
    p = jnp.exp(sim - jnp.max(sim, axis=-1, keepdims=True))
    l = jnp.sum(p, axis=-1, keepdims=True)                         # (h, N, 1)
    o = jnp.einsum('hnm,hmd->hnd', p.astype(bf16), v.astype(bf16),
                   preferred_element_type=f32)                     # (h, N, d)
    o = o * pl.reciprocal(l, approx=True)                          # softmax denom

    # ---- to_out 1x1 conv; head-concat folded into the projection einsum ----
    out_h = jnp.einsum('hnd,hdc->hnc', o.astype(bf16), wout_ref[...],
                       preferred_element_type=f32)                 # (h, N, Cp)
    o_ref[0] = jnp.sum(out_h, axis=0) + bout_ref[0]


def attention_forward(x_nchw, params, *, heads, dim_head):
    """x_nchw: (B, C, H, W) float32. params = (g, wqkv, wout, bout) in PyTorch layout."""
    g, wqkv, wout, bout = params
    B, C, H, W = x_nchw.shape
    N = H * W
    hd = heads * dim_head
    Cp = ((C + 127) // 128) * 128          # lane-dense (multiple of 128) channel dim
    pad_c = Cp - C

    # channels-last sequence layout, zero-padded channels
    x = jnp.transpose(x_nchw, (0, 2, 3, 1)).reshape(B, N, C).astype(jnp.float32)
    x = jnp.pad(x, ((0, 0), (0, 0), (0, pad_c)))
    g_p = jnp.pad(g.reshape(1, C).astype(jnp.float32), ((0, 0), (0, pad_c)))
    bout_p = jnp.pad(bout.reshape(1, C).astype(jnp.float32), ((0, 0), (0, pad_c)))

    # to_qkv weight (3*hd, C), head-major rows: split q/k/v and reshape to per-head
    # (heads, Cp, d) bf16 so the kernel needs no transpose / slicing.
    def _head_weight(w):                     # (hd, C) -> (heads, Cp, d)
        w = w.reshape(heads, dim_head, C).transpose(0, 2, 1)        # (heads, C, d)
        return jnp.pad(w, ((0, 0), (0, pad_c), (0, 0))).astype(jnp.bfloat16)

    wq = _head_weight(wqkv[:hd])
    wk = _head_weight(wqkv[hd:2 * hd])
    wv = _head_weight(wqkv[2 * hd:])

    # to_out weight (C, hd) -> (heads, d, Cp) bf16 (head concat folded into einsum)
    wout_h = wout.T.reshape(heads, dim_head, C)
    wout_h = jnp.pad(wout_h, ((0, 0), (0, 0), (0, pad_c))).astype(jnp.bfloat16)

    kernel = functools.partial(_attention_kernel, heads=heads, dim_head=dim_head,
                               rms_scale=float(C) ** 0.5)
    out = pl.pallas_call(
        kernel,
        out_shape=jax.ShapeDtypeStruct((B, N, Cp), jnp.float32),
        grid=(B,),
        in_specs=[
            pl.BlockSpec((1, N, Cp), lambda b: (b, 0, 0)),             # x
            pl.BlockSpec((1, Cp), lambda b: (0, 0)),                   # g
            pl.BlockSpec((heads, Cp, dim_head), lambda b: (0, 0, 0)),  # Wq
            pl.BlockSpec((heads, Cp, dim_head), lambda b: (0, 0, 0)),  # Wk
            pl.BlockSpec((heads, Cp, dim_head), lambda b: (0, 0, 0)),  # Wv
            pl.BlockSpec((heads, dim_head, Cp), lambda b: (0, 0, 0)),  # Wout
            pl.BlockSpec((1, Cp), lambda b: (0, 0)),                   # bout
        ],
        out_specs=pl.BlockSpec((1, N, Cp), lambda b: (b, 0, 0)),
        compiler_params=pltpu.CompilerParams(
            dimension_semantics=("parallel",)),
    )(x, g_p, wq, wk, wv, wout_h, bout_p)

    out = out[..., :C]                          # drop padded channels
    return out.reshape(B, H, W, C).transpose(0, 3, 1, 2)


def init_params(key, dim, heads, dim_head):
    hd = heads * dim_head
    ks = jax.random.split(key, 3)
    g = jnp.ones((dim,), jnp.float32)                                   # RMSNorm g
    wqkv = 0.05 * jax.random.normal(ks[0], (3 * hd, dim), jnp.float32)  # to_qkv (no bias)
    wout = 0.05 * jax.random.normal(ks[1], (dim, hd), jnp.float32)      # to_out weight
    bout = 0.01 * jax.random.normal(ks[2], (dim,), jnp.float32)         # to_out bias
    return g, wqkv, wout, bout


def reference_forward(x_nchw, params, *, heads, dim_head):
    """Pure-JAX f32 reference mirroring the PyTorch Attention module."""
    g, wqkv, wout, bout = params
    B, C, H, W = x_nchw.shape
    N = H * W
    hd = heads * dim_head
    x = jnp.transpose(x_nchw, (0, 2, 3, 1)).reshape(B, N, C)
    l2 = jnp.sqrt(jnp.sum(x * x, axis=-1, keepdims=True))
    xn = x / jnp.maximum(l2, 1e-12) * g * (C ** 0.5)
    qkv = xn @ wqkv.T                                                   # (B, N, 3*hd)
    q, k, v = qkv[..., :hd], qkv[..., hd:2 * hd], qkv[..., 2 * hd:]

    def split(t):
        return t.reshape(B, N, heads, dim_head).transpose(0, 2, 1, 3)

    q, k, v = split(q), split(k), split(v)
    sim = jnp.einsum('bhnd,bhmd->bhnm', q, k) * (dim_head ** -0.5)
    attn = jax.nn.softmax(sim, axis=-1)
    o = jnp.einsum('bhnm,bhmd->bhnd', attn, v)
    o = o.transpose(0, 2, 1, 3).reshape(B, N, hd)
    out = o @ wout.T + bout
    return out.reshape(B, H, W, C).transpose(0, 3, 1, 2)


if __name__ == "__main__":
    # Attention(dim=32, heads=4, dim_head=32) on a (2, 32, 16, 16) input (N = 256).
    B, C, H, W = 2, 32, 16, 16
    heads, dim_head = 4, 32

    key = jax.random.PRNGKey(0)
    kx, kp = jax.random.split(key)
    x = jax.random.normal(kx, (B, C, H, W), jnp.float32)
    params = init_params(kp, C, heads, dim_head)

    out = attention_forward(x, params, heads=heads, dim_head=dim_head)
    out = jax.block_until_ready(out)

    ref = reference_forward(x, params, heads=heads, dim_head=dim_head)
    assert out.shape == (B, C, H, W)
    # bf16 MXU operands (f32 accumulate) + approx reciprocal -> loosened tolerance
    assert jnp.allclose(out, ref, atol=1e-2, rtol=1e-2), (
        f"mismatch vs JAX reference: max abs err {float(jnp.max(jnp.abs(out - ref)))}")

    print("KERNEL_OK")
</pallas_src>

<mosaic_0001>
module attributes {stable_mosaic.version = 11 : i64} {
  func.func @_attention_kernel(%arg0: i32, %arg1: memref<1x256x128xf32, #tpu.memory_space<vmem>>, %arg2: memref<1x128xf32, #tpu.memory_space<vmem>>, %arg3: memref<4x128x32xbf16, #tpu.memory_space<vmem>>, %arg4: memref<4x128x32xbf16, #tpu.memory_space<vmem>>, %arg5: memref<4x128x32xbf16, #tpu.memory_space<vmem>>, %arg6: memref<4x32x128xbf16, #tpu.memory_space<vmem>>, %arg7: memref<1x128xf32, #tpu.memory_space<vmem>>, %arg8: memref<1x256x128xf32, #tpu.memory_space<vmem>>) attributes {dimension_semantics = [#tpu.dimension_semantics<parallel>], iteration_bounds = array<i64: 2>, scalar_prefetch = 0 : i64, scratch_operands = 0 : i64, tpu.core_type = #tpu.core_type<tc>, window_params = [{transform_indices = @transform_0, window_bounds = array<i64: 1, 256, 128>}, {pipeline_mode = #tpu.pipeline_mode<synchronous>, transform_indices = @transform_1, window_bounds = array<i64: 1, 128>}, {pipeline_mode = #tpu.pipeline_mode<synchronous>, transform_indices = @transform_2, window_bounds = array<i64: 4, 128, 32>}, {pipeline_mode = #tpu.pipeline_mode<synchronous>, transform_indices = @transform_3, window_bounds = array<i64: 4, 128, 32>}, {pipeline_mode = #tpu.pipeline_mode<synchronous>, transform_indices = @transform_4, window_bounds = array<i64: 4, 128, 32>}, {pipeline_mode = #tpu.pipeline_mode<synchronous>, transform_indices = @transform_5, window_bounds = array<i64: 4, 32, 128>}, {pipeline_mode = #tpu.pipeline_mode<synchronous>, transform_indices = @transform_6, window_bounds = array<i64: 1, 128>}, {transform_indices = @transform_7, window_bounds = array<i64: 1, 256, 128>}]} {
    %c0 = arith.constant 0 : index
    %c0_0 = arith.constant 0 : index
    %c0_1 = arith.constant 0 : index
    %0 = vector.load %arg1[%c0, %c0_0, %c0_1] : memref<1x256x128xf32, #tpu.memory_space<vmem>>, vector<1x256x128xf32>
    %1 = vector.shape_cast %0 : vector<1x256x128xf32> to vector<256x128xf32>
    %2 = arith.mulf %1, %1 : vector<256x128xf32>
    %cst = arith.constant dense<0.000000e+00> : vector<256xf32>
    %3 = vector.multi_reduction <add>, %2, %cst [1] : vector<256x128xf32> to vector<256xf32>
    %4 = vector.shape_cast %3 : vector<256xf32> to vector<256x1xf32>
    %cst_2 = arith.constant 1.000000e-24 : f32
    %5 = vector.broadcast %cst_2 : f32 to vector<256x1xf32>
    %6 = arith.maximumf %4, %5 : vector<256x1xf32>
    %7 = math.rsqrt %6 : vector<256x1xf32>
    %8 = vector.broadcast %7 : vector<256x1xf32> to vector<256x128xf32>
    %9 = arith.mulf %1, %8 : vector<256x128xf32>
    %c0_3 = arith.constant 0 : index
    %c0_4 = arith.constant 0 : index
    %10 = vector.load %arg2[%c0_3, %c0_4] : memref<1x128xf32, #tpu.memory_space<vmem>>, vector<1x128xf32>
    %11 = vector.shape_cast %10 : vector<1x128xf32> to vector<128xf32>
    %cst_5 = arith.constant 5.65685415 : f32
    %12 = vector.broadcast %cst_5 : f32 to vector<128xf32>
    %13 = arith.mulf %11, %12 : vector<128xf32>
    %14 = vector.shape_cast %13 : vector<128xf32> to vector<1x128xf32>
    %15 = vector.broadcast %14 : vector<1x128xf32> to vector<256x128xf32>
    %16 = arith.mulf %9, %15 : vector<256x128xf32>
    %17 = arith.truncf %16 : vector<256x128xf32> to vector<256x128xbf16>
    %18 = vector.shape_cast %17 : vector<256x128xbf16> to vector<1x256x128xbf16>
    %19 = vector.shape_cast %18 : vector<1x256x128xbf16> to vector<1x256x128xbf16>
    %20 = vector.broadcast %19 : vector<1x256x128xbf16> to vector<4x256x128xbf16>
    %c0_6 = arith.constant 0 : index
    %c0_7 = arith.constant 0 : index
    %c0_8 = arith.constant 0 : index
    %21 = vector.load %arg3[%c0_6, %c0_7, %c0_8] : memref<4x128x32xbf16, #tpu.memory_space<vmem>>, vector<4x128x32xbf16>
    "tpu.trace_start"() <{level = 10 : i32, message = "hnc,hcd->hnd"}> : () -> ()
    %cst_9 = arith.constant dense<0.000000e+00> : vector<4x256x32xf32>
    %22 = tpu.matmul %20, %21, %cst_9 {dimension_numbers = #tpu.dot_dimension_numbers<[2], [1], [1], [2], [0, 0, 0, 1, 1, 2], [0], [0]>} : vector<4x256x128xbf16>, vector<4x128x32xbf16>, vector<4x256x32xf32> -> vector<4x256x32xf32>
    "tpu.trace_stop"() : () -> ()
    %c0_10 = arith.constant 0 : index
    %c0_11 = arith.constant 0 : index
    %c0_12 = arith.constant 0 : index
    %23 = vector.load %arg4[%c0_10, %c0_11, %c0_12] : memref<4x128x32xbf16, #tpu.memory_space<vmem>>, vector<4x128x32xbf16>
    "tpu.trace_start"() <{level = 10 : i32, message = "hnc,hcd->hnd"}> : () -> ()
    %cst_13 = arith.constant dense<0.000000e+00> : vector<4x256x32xf32>
    %24 = tpu.matmul %20, %23, %cst_13 {dimension_numbers = #tpu.dot_dimension_numbers<[2], [1], [1], [2], [0, 0, 0, 1, 1, 2], [0], [0]>} : vector<4x256x128xbf16>, vector<4x128x32xbf16>, vector<4x256x32xf32> -> vector<4x256x32xf32>
    "tpu.trace_stop"() : () -> ()
    %c0_14 = arith.constant 0 : index
    %c0_15 = arith.constant 0 : index
    %c0_16 = arith.constant 0 : index
    %25 = vector.load %arg5[%c0_14, %c0_15, %c0_16] : memref<4x128x32xbf16, #tpu.memory_space<vmem>>, vector<4x128x32xbf16>
    "tpu.trace_start"() <{level = 10 : i32, message = "hnc,hcd->hnd"}> : () -> ()
    %cst_17 = arith.constant dense<0.000000e+00> : vector<4x256x32xf32>
    %26 = tpu.matmul %20, %25, %cst_17 {dimension_numbers = #tpu.dot_dimension_numbers<[2], [1], [1], [2], [0, 0, 0, 1, 1, 2], [0], [0]>} : vector<4x256x128xbf16>, vector<4x128x32xbf16>, vector<4x256x32xf32> -> vector<4x256x32xf32>
    "tpu.trace_stop"() : () -> ()
    %cst_18 = arith.constant 3.200000e+01 : f32
    %cst_19 = arith.constant -5.000000e-01 : f32
    %27 = math.powf %cst_18, %cst_19 : f32
    %28 = arith.truncf %22 : vector<4x256x32xf32> to vector<4x256x32xbf16>
    %29 = arith.truncf %24 : vector<4x256x32xf32> to vector<4x256x32xbf16>
    "tpu.trace_start"() <{level = 10 : i32, message = "hnd,hmd->hnm"}> : () -> ()
    %cst_20 = arith.constant dense<0.000000e+00> : vector<4x256x256xf32>
    %30 = tpu.matmul %28, %29, %cst_20 {dimension_numbers = #tpu.dot_dimension_numbers<[2], [2], [1], [1], [0, 0, 0, 1, 1, 1], [0], [0]>} : vector<4x256x32xbf16>, vector<4x256x32xbf16>, vector<4x256x256xf32> -> vector<4x256x256xf32>
    "tpu.trace_stop"() : () -> ()
    %31 = vector.broadcast %27 : f32 to vector<4x256x256xf32>
    %32 = arith.mulf %30, %31 : vector<4x256x256xf32>
    %cst_21 = arith.constant dense<0xFF800000> : vector<4x256xf32>
    %33 = vector.multi_reduction <maximumf>, %32, %cst_21 [2] : vector<4x256x256xf32> to vector<4x256xf32>
    %34 = vector.shape_cast %33 : vector<4x256xf32> to vector<4x256x1xf32>
    %35 = vector.broadcast %34 : vector<4x256x1xf32> to vector<4x256x256xf32>
    %36 = arith.subf %32, %35 : vector<4x256x256xf32>
    %37 = math.exp %36 : vector<4x256x256xf32>
    %cst_22 = arith.constant dense<0.000000e+00> : vector<4x256xf32>
    %38 = vector.multi_reduction <add>, %37, %cst_22 [2] : vector<4x256x256xf32> to vector<4x256xf32>
    %39 = vector.shape_cast %38 : vector<4x256xf32> to vector<4x256x1xf32>
    %40 = arith.truncf %37 : vector<4x256x256xf32> to vector<4x256x256xbf16>
    %41 = arith.truncf %26 : vector<4x256x32xf32> to vector<4x256x32xbf16>
    "tpu.trace_start"() <{level = 10 : i32, message = "hnm,hmd->hnd"}> : () -> ()
    %cst_23 = arith.constant dense<0.000000e+00> : vector<4x256x32xf32>
    %42 = tpu.matmul %40, %41, %cst_23 {dimension_numbers = #tpu.dot_dimension_numbers<[2], [1], [1], [2], [0, 0, 0, 1, 1, 2], [0], [0]>} : vector<4x256x256xbf16>, vector<4x256x32xbf16>, vector<4x256x32xf32> -> vector<4x256x32xf32>
    "tpu.trace_stop"() : () -> ()
    %43 = tpu.reciprocal %39 {approx = true} : vector<4x256x1xf32> -> vector<4x256x1xf32>
    %44 = vector.broadcast %43 : vector<4x256x1xf32> to vector<4x256x32xf32>
    %45 = arith.mulf %42, %44 : vector<4x256x32xf32>
    %46 = arith.truncf %45 : vector<4x256x32xf32> to vector<4x256x32xbf16>
    %c0_24 = arith.constant 0 : index
    %c0_25 = arith.constant 0 : index
    %c0_26 = arith.constant 0 : index
    %47 = vector.load %arg6[%c0_24, %c0_25, %c0_26] : memref<4x32x128xbf16, #tpu.memory_space<vmem>>, vector<4x32x128xbf16>
    "tpu.trace_start"() <{level = 10 : i32, message = "hnd,hdc->hnc"}> : () -> ()
    %cst_27 = arith.constant dense<0.000000e+00> : vector<4x256x128xf32>
    %48 = tpu.matmul %46, %47, %cst_27 {dimension_numbers = #tpu.dot_dimension_numbers<[2], [1], [1], [2], [0, 0, 0, 1, 1, 2], [0], [0]>} : vector<4x256x32xbf16>, vector<4x32x128xbf16>, vector<4x256x128xf32> -> vector<4x256x128xf32>
    "tpu.trace_stop"() : () -> ()
    %cst_28 = arith.constant dense<0.000000e+00> : vector<256x128xf32>
    %49 = vector.multi_reduction <add>, %48, %cst_28 [0] : vector<4x256x128xf32> to vector<256x128xf32>
    %c0_29 = arith.constant 0 : index
    %c0_30 = arith.constant 0 : index
    %50 = vector.load %arg7[%c0_29, %c0_30] : memref<1x128xf32, #tpu.memory_space<vmem>>, vector<1x128xf32>
    %51 = vector.shape_cast %50 : vector<1x128xf32> to vector<128xf32>
    %52 = vector.shape_cast %51 : vector<128xf32> to vector<1x128xf32>
    %53 = vector.broadcast %52 : vector<1x128xf32> to vector<256x128xf32>
    %54 = arith.addf %49, %53 : vector<256x128xf32>
    %c0_31 = arith.constant 0 : index
    %c0_32 = arith.constant 0 : index
    %c0_33 = arith.constant 0 : index
    %55 = vector.load %arg8[%c0_31, %c0_32, %c0_33] : memref<1x256x128xf32, #tpu.memory_space<vmem>>, vector<1x256x128xf32>
    %56 = vector.shape_cast %55 : vector<1x256x128xf32> to vector<256x128xf32>
    %57 = vector.shape_cast %54 : vector<256x128xf32> to vector<1x256x128xf32>
    tpu.vector_store %arg8[%c0_31, %c0_32, %c0_33], %57 {strides = array<i32>} : memref<1x256x128xf32, #tpu.memory_space<vmem>>, vector<1x256x128xf32>,
    return
  }
  func.func @transform_0(%arg0: i32) -> (i32, i32, i32) {
    %c0_i32 = arith.constant 0 : i32
    %c0_i32_0 = arith.constant 0 : i32
    %c0_i32_1 = arith.constant 0 : i32
    return %arg0, %c0_i32, %c0_i32_0 : i32, i32, i32
  }
  func.func @transform_1(%arg0: i32) -> (i32, i32) {
    %c0_i32 = arith.constant 0 : i32
    %c0_i32_0 = arith.constant 0 : i32
    %c0_i32_1 = arith.constant 0 : i32
    return %c0_i32, %c0_i32_0 : i32, i32
  }
  func.func @transform_2(%arg0: i32) -> (i32, i32, i32) {
    %c0_i32 = arith.constant 0 : i32
    %c0_i32_0 = arith.constant 0 : i32
    %c0_i32_1 = arith.constant 0 : i32
    %c0_i32_2 = arith.constant 0 : i32
    return %c0_i32, %c0_i32_0, %c0_i32_1 : i32, i32, i32
  }
  func.func @transform_3(%arg0: i32) -> (i32, i32, i32) {
    %c0_i32 = arith.constant 0 : i32
    %c0_i32_0 = arith.constant 0 : i32
    %c0_i32_1 = arith.constant 0 : i32
    %c0_i32_2 = arith.constant 0 : i32
    return %c0_i32, %c0_i32_0, %c0_i32_1 : i32, i32, i32
  }
  func.func @transform_4(%arg0: i32) -> (i32, i32, i32) {
    %c0_i32 = arith.constant 0 : i32
    %c0_i32_0 = arith.constant 0 : i32
    %c0_i32_1 = arith.constant 0 : i32
    %c0_i32_2 = arith.constant 0 : i32
    return %c0_i32, %c0_i32_0, %c0_i32_1 : i32, i32, i32
  }
  func.func @transform_5(%arg0: i32) -> (i32, i32, i32) {
    %c0_i32 = arith.constant 0 : i32
    %c0_i32_0 = arith.constant 0 : i32
    %c0_i32_1 = arith.constant 0 : i32
    %c0_i32_2 = arith.constant 0 : i32
    return %c0_i32, %c0_i32_0, %c0_i32_1 : i32, i32, i32
  }
  func.func @transform_6(%arg0: i32) -> (i32, i32) {
    %c0_i32 = arith.constant 0 : i32
    %c0_i32_0 = arith.constant 0 : i32
    %c0_i32_1 = arith.constant 0 : i32
    return %c0_i32, %c0_i32_0 : i32, i32
  }
  func.func @transform_7(%arg0: i32) -> (i32, i32, i32) {
    %c0_i32 = arith.constant 0 : i32
    %c0_i32_0 = arith.constant 0 : i32
    %c0_i32_1 = arith.constant 0 : i32
    return %arg0, %c0_i32, %c0_i32_0 : i32, i32, i32
  }
}

</mosaic_0001>

<bundles_post_ra>
// kernel: tpu_custom_call.1
= control target key start
LH: loop header
LB: loop body
LE: loop exit
PB: predicated region body
PF: predicated region fallthrough
CT: control target
= control target key end

     0   :  { %12 = vsyncpa [#allocation3], 0  ;;  %s17530_s0 = inlined_call_operand.vmem [shape: f32[2,256,128], index: 0, kind: input, shape index: {}]   ;;  %s17531_s1 = inlined_call_operand.vmem [shape: f32[1,128], index: 1, kind: input, shape index: {}]   ;;  %s17532_s2 = inlined_call_operand.vmem [shape: bf16[4,128,32], index: 2, kind: input, shape index: {}]   ;;  %s17533_s3 = inlined_call_operand.vmem [shape: bf16[4,128,32], index: 3, kind: input, shape index: {}]   ;;  %s17534_s4 = inlined_call_operand.vmem [shape: bf16[4,128,32], index: 4, kind: input, shape index: {}]   ;;  %s17535_s5 = inlined_call_operand.vmem [shape: bf16[4,32,128], index: 5, kind: input, shape index: {}]   ;;  %s17536_s6 = inlined_call_operand.vmem [shape: f32[1,128], index: 6, kind: input, shape index: {}]   ;;  %s17537_s7 = inlined_call_operand.hbm [shape: f32[2,256,128], index: 7, kind: output, shape index: {}]  }
   0x1   :  { %14 = vsyncpa [#allocation3 + $0x1], 0  ;;  %s11715_s24 = smov 0   ;;  %s11717_s25 = smov 0  }
   0x2   :  { %s11719_s26 = smov 0   ;;  %s11721_s27 = smov 0  }
   0x3 LB: > { %s11736_s28 = sadd.s32 4294967295, %s11670_s27   ;;  %s8634_s29 = sadd.s32 4294967294, %s11670_s27   ;;  %s11670_s27 = sphi %s11721_s27, %s19455_s27   ;;  %s11666_s26 = sphi %s11719_s26, %s19454_s26   ;;  %s11662_s25 = sphi %s11717_s25, %s19453_s25   ;;  %s11658_s24 = sphi %s11715_s24, %s19452_s24  }
   0x4   : > { %s11740_s30 = sadd.s32 1, %s11670_s27   ;;  %s179_s8 = sadd.s32 1, %s11666_s26 }
   0x5   : > { %s176_s9 = ssub.s32 %s11670_s27, %s11740_s30  ;;  %p189_p0 = scmp.ne.s32.totalorder %s11666_s26, %s11662_s25 }
   0x6   : > { %p177_p1 = scmp.eq.s32.totalorder %s176_s9, 0  ;;  %p190_p2 = scmp.eq.s32.totalorder %s11736_s28, 1 }
   0x7   : > { %p195_p3 = scmp.ne.s32.totalorder %s11662_s25, %s11658_s24  ;;  %p196_p4 = scmp.eq.s32.totalorder %s8634_s29, 1 }
   0x8   : > { %s11751_s10 = scalar_select %p177_p1, %s11666_s26, %s179_s8  }
   0x9   : > { %p11753_p5 = por %p190_p2, %p189_p0  ;;  %p11757_p6 = por %p196_p4, %p195_p3 }
   0xa   : > { %p8637_p7 = scmp.ge.s32.totalorder %s11670_s27, 1  ;;  %p240_p8 = scmp.lt.s32.totalorder %s11670_s27, 3 }
   0xc   : > { %p241_p9 = pnand %p8637_p7, %p240_p8 }
   0xe   : > { %244 = sbr.rel (%p241_p9) target bundleno = 1785 (0x6f9), region = 48 }
  0x13   : > { %p272_p10 = scmp.lt.s32.totalorder %s11736_s28, 1  ;;  %v10674_v0 = vld [vmem:[%s17532_s2 + $0x38] sm:$0xff]   ;;  %v10676_v2 = vld [vmem:[%s17532_s2 + $0x30] sm:$0xff]   ;;  %v10678_v26 = vld [vmem:[%s17532_s2 + $0x28] sm:$0xff]   ;;  %vm3386_vm0 = vcmask 261120   ;;  %s269_s19 = sand.u32 1, %s11662_s25  }
  0x14   : > { %v10675_v1 = vld [vmem:[%s17532_s2 + $0x78] sm:$0xff]   ;;  %9881 = vmatprep.subr.bf16.mxu0 %v10674_v0  ;;  %v10677_v3 = vld [vmem:[%s17532_s2 + $0x70] sm:$0xff]   ;;  %v10679_v27 = vld [vmem:[%s17532_s2 + $0x68] sm:$0xff]   ;;  %s8638_s20 = sshll.u32 %s269_s19, 8  ;;  %s8880_s29 = sshll.u32 %s11736_s28, 12 }
  0x15   : > { %s273_s17 = scalar_select %p272_p10, %s11736_s28, 1  ;;  %9929 = vmatprep.subr.bf16.mxu1 %v10675_v1  ;;  %9882 = vmatpush3.bf16.msra.mxu0 %v10674_v0  ;;  %v10680_v32 = vld [vmem:[%s17532_s2 + $0x20] sm:$0xff]   ;;  %v10682_v38 = vld [vmem:[%s17532_s2 + $0x18] sm:$0xff]   ;;  %v10684_v44 = vld [vmem:[%s17532_s2 + $0x10] sm:$0xff]  }
  0x16   : > { %9930 = vmatpush3.bf16.msra.mxu1 %v10675_v1  ;;  %9883 = vmatprep.subr.bf16.mxu0 %v10676_v2  ;;  %v10681_v33 = vld [vmem:[%s17532_s2 + $0x60] sm:$0xff]   ;;  %v10683_v39 = vld [vmem:[%s17532_s2 + $0x58] sm:$0xff]   ;;  %v10685_v45 = vld [vmem:[%s17532_s2 + $0x50] sm:$0xff]   ;;  %s17386_s23 = scalar_lea.vmem [#allocation2], %s8638_s20  ;;  %s17481_s14 = scalar_lea.hbm %s17537_s7, %s8880_s29 }
  0x17   : > { %s8879_s22 = sshll.u32 %s273_s17, 8  ;;  %9931 = vmatprep.subr.bf16.mxu1 %v10677_v3  ;;  %v10686_v50 = vld [vmem:[%s17532_s2 + $0x8] sm:$0xff]   ;;  %v10688_v56 = vld [vmem:[%s17532_s2] sm:$0xff]   ;;  %s17490_s28 = scalar_lea.sflag [#allocation3], %s269_s19 }
  0x18   : > { %s11780_s8 = scalar_lea.vmem %s17530_s0, %s8879_s22  ;;  %v10687_v51 = vld [vmem:[%s17532_s2 + $0x48] sm:$0xff]   ;;  %v10689_v57 = vld [vmem:[%s17532_s2 + $0x40] sm:$0xff]   ;;  %s11672_s16 = smov [#allocation2]  }
  0x19   : > { %v11783_v4 = vld [vmem:[%s11780_s8 + $0x10] sm:$0xff]  ;;  %v11786_v5 = vld [vmem:[%s11780_s8] sm:$0xff]  ;;  %v11789_v6 = vld [vmem:[%s11780_s8 + $0x18] sm:$0xff]  ;;  %9884 = vmatpush3.bf16.msra.mxu0 %v10676_v2  ;;  %s11614_s17 = sshll.u32 %s11672_s16, 4  ;;  %s11615_s17 = int_to_ptr.vmem [resolvable:$false] %s11614_s17 }
  0x1a   : > { %v312_v7 = vmul.f32 %v11783_v4, %v11783_v4  ;;  %v310_v8 = vmul.f32 %v11786_v5, %v11786_v5  ;;  %v11796_v9 = vld [vmem:[%s11780_s8 + $0x8] sm:$0xff]  ;;  %9932 = vmatpush3.bf16.msra.mxu1 %v10677_v3  ;;  %v313_v10 = vmul.f32 %v11789_v6, %v11789_v6  ;;  %v11806_v13 = vld [vmem:[%s11780_s8 + $0x20] sm:$0xff]  ;;  %v11813_v16 = vld [vmem:[%s11780_s8 + $0x38] sm:$0xff]  ;;  %9885 = vmatprep.subr.bf16.mxu0 %v10678_v26  ;;  %s11616_s18 = scalar_lea.vmem %s11615_s17, 8192 }
  0x1b   : > { %v311_v11 = vmul.f32 %v11796_v9, %v11796_v9  ;;  %v11803_v12 = vld [vmem:[%s11780_s8 + $0x28] sm:$0xff]  ;;  %v314_v15 = vmul.f32 %v11806_v13, %v11806_v13  ;;  %v11816_v17 = vld [vmem:[%s11780_s8 + $0x30] sm:$0xff]  ;;  %v11822_v19 = vld [vmem:[%s11780_s8 + $0x40] sm:$0xff]  ;;  %v317_v20 = vmul.f32 %v11813_v16, %v11813_v16  ;;  %9933 = vmatprep.subr.bf16.mxu1 %v10679_v27 }
  0x1c   : > { %346 = vadd.xlane.f32.xlu1 %v312_v7  ;;  %342 = vadd.xlane.f32.xlu0 %v310_v8  ;;  %v315_v14 = vmul.f32 %v11803_v12, %v11803_v12  ;;  %v11819_v18 = vld [vmem:[%s11780_s8 + $0x48] sm:$0xff]  ;;  %v316_v21 = vmul.f32 %v11816_v17, %v11816_v17  ;;  %v11829_v22 = vld [vmem:[%s11780_s8 + $0x58] sm:$0xff]  ;;  %v11832_v23 = vld [vmem:[%s11780_s8 + $0x50] sm:$0xff]  ;;  %v318_v25 = vmul.f32 %v11822_v19, %v11822_v19 }
  0x1d   : > { %v319_v24 = vmul.f32 %v11819_v18, %v11819_v18  ;;  %v11845_v28 = vld [vmem:[%s11780_s8 + $0x68] sm:$0xff]  ;;  %v11848_v29 = vld [vmem:[%s11780_s8 + $0x60] sm:$0xff]  ;;  %9886 = vmatpush3.bf16.msra.mxu0 %v10678_v26  ;;  %v321_v30 = vmul.f32 %v11829_v22, %v11829_v22  ;;  %v320_v31 = vmul.f32 %v11832_v23, %v11832_v23  ;;  %v11861_v34 = vld [vmem:[%s11780_s8 + $0x78] sm:$0xff] }
  0x1e   : > { %9934 = vmatpush3.bf16.msra.mxu1 %v10679_v27  ;;  %9887 = vmatprep.subr.bf16.mxu0 %v10680_v32  ;;  %v11864_v35 = vld [vmem:[%s11780_s8 + $0x70] sm:$0xff]  ;;  %v323_v36 = vmul.f32 %v11845_v28, %v11845_v28  ;;  %v322_v37 = vmul.f32 %v11848_v29, %v11848_v29  ;;  %v11877_v40 = vld [vmem:[%s11780_s8 + $0x88] sm:$0xff]  ;;  %v11880_v41 = vld [vmem:[%s11780_s8 + $0x80] sm:$0xff]  ;;  %v325_v42 = vmul.f32 %v11861_v34, %v11861_v34 }
  0x1f   : > { %9935 = vmatprep.subr.bf16.mxu1 %v10681_v33  ;;  %v324_v43 = vmul.f32 %v11864_v35, %v11864_v35  ;;  %v11893_v46 = vld [vmem:[%s11780_s8 + $0x98] sm:$0xff]  ;;  %v11896_v47 = vld [vmem:[%s11780_s8 + $0x90] sm:$0xff]  ;;  %v327_v48 = vmul.f32 %v11877_v40, %v11877_v40  ;;  %v326_v49 = vmul.f32 %v11880_v41, %v11880_v41  ;;  %v11909_v52 = vld [vmem:[%s11780_s8 + $0xa8] sm:$0xff] }
  0x20   : > { %348 = vadd.xlane.f32.xlu1 %v313_v10  ;;  %344 = vadd.xlane.f32.xlu0 %v311_v11  ;;  %v11912_v53 = vld [vmem:[%s11780_s8 + $0xa0] sm:$0xff]  ;;  %v329_v54 = vmul.f32 %v11893_v46, %v11893_v46  ;;  %v328_v55 = vmul.f32 %v11896_v47, %v11896_v47  ;;  %v11925_v58 = vld [vmem:[%s11780_s8 + $0xb8] sm:$0xff]  ;;  %v11928_v59 = vld [vmem:[%s11780_s8 + $0xb0] sm:$0xff]  ;;  %v331_v60 = vmul.f32 %v11909_v52, %v11909_v52 }
  0x21   : > { %9888 = vmatpush3.bf16.msra.mxu0 %v10680_v32  ;;  %v330_v61 = vmul.f32 %v11912_v53, %v11912_v53  ;;  %v11935_v62 = vld [vmem:[%s11780_s8 + $0xc8] sm:$0xff]  ;;  %v11938_v63 = vld [vmem:[%s11780_s8 + $0xc0] sm:$0xff]  ;;  %v333_v0 = vmul.f32 %v11925_v58, %v11925_v58  ;;  %v332_v1 = vmul.f32 %v11928_v59, %v11928_v59  ;;  %v11945_v2 = vld [vmem:[%s11780_s8 + $0xd8] sm:$0xff] }
  0x22   : > { %9936 = vmatpush3.bf16.msra.mxu1 %v10681_v33  ;;  %9889 = vmatprep.subr.bf16.mxu0 %v10682_v38  ;;  %v11948_v3 = vld [vmem:[%s11780_s8 + $0xd0] sm:$0xff]  ;;  %v335_v7 = vmul.f32 %v11935_v62, %v11935_v62  ;;  %v334_v8 = vmul.f32 %v11938_v63, %v11938_v63  ;;  %v11955_v10 = vld [vmem:[%s11780_s8 + $0xe8] sm:$0xff]  ;;  %v11958_v11 = vld [vmem:[%s11780_s8 + $0xe0] sm:$0xff] }
  0x23   : > { %9937 = vmatprep.subr.bf16.mxu1 %v10683_v39  ;;  %v11977_v26 = vld [vmem:[%s17532_s2 + $0xb8] sm:$0xff]  }
  0x24   : > { %352 = vadd.xlane.f32.xlu1 %v315_v14  ;;  %350 = vadd.xlane.f32.xlu0 %v314_v15  ;;  %v337_v14 = vmul.f32 %v11945_v2, %v11945_v2  ;;  %v336_v15 = vmul.f32 %v11948_v3, %v11948_v3 }
  0x25   : > { %9890 = vmatpush3.bf16.msra.mxu0 %v10682_v38 }
  0x26   : > { %9938 = vmatpush3.bf16.msra.mxu1 %v10683_v39  ;;  %9891 = vmatprep.subr.bf16.mxu0 %v10684_v44 }
  0x27   : > { %9939 = vmatprep.subr.bf16.mxu1 %v10685_v45 }
  0x28   : > { %356 = vadd.xlane.f32.xlu1 %v317_v20  ;;  %354 = vadd.xlane.f32.xlu0 %v316_v21  ;;  %v11965_v20 = vld [vmem:[%s11780_s8 + $0xf8] sm:$0xff]  ;;  %v11968_v21 = vld [vmem:[%s11780_s8 + $0xf0] sm:$0xff]  ;;  %s8572_s8 = sshll.u32 %s17386_s23, 4  ;;  %s17483_s8 = int_to_ptr.vmem [resolvable:$true] %s8572_s8 }
  0x29   : > { %9892 = vmatpush3.bf16.msra.mxu0 %v10684_v44  ;;  %v341_v27 = vmul.f32 %v11965_v20, %v11965_v20  ;;  %v505_v44 = vlaneseq  ;;  %s11610_s15 = scalar_lea.vmem %s17483_s8, 4096  ;;  %p11617_p0 = scmp.lt.s32.totalorder %s17483_s8, %s11615_s17 }
  0x2a   : > { %9940 = vmatpush3.bf16.msra.mxu1 %v10685_v45  ;;  %9893 = vmatprep.subr.bf16.mxu0 %v10686_v50  ;;  %p11611_p11 = scmp.ne.s32.totalorder %s17483_s8, %s11610_s15  ;;  %p11618_p1 = scmp.lt.s32.totalorder %s11616_s18, %s11610_s15 }
  0x2b   : > { %9941 = vmatprep.subr.bf16.mxu1 %v10687_v51 }
  0x2c   : > { %360 = vadd.xlane.f32.xlu1 %v319_v24  ;;  %358 = vadd.xlane.f32.xlu0 %v318_v25  ;;  %v339_v24 = vmul.f32 %v11955_v10, %v11955_v10  ;;  %v338_v25 = vmul.f32 %v11958_v11, %v11958_v11  ;;  %p11612_p12 = pnand %p11611_p11, %p11753_p5  ;;  %p11619_p2 = por %p11618_p1, %p11617_p0 }
  0x2d   : > { %9894 = vmatpush3.bf16.msra.mxu0 %v10686_v50 }
  0x2e   : > { %9942 = vmatpush3.bf16.msra.mxu1 %v10687_v51  ;;  %9895 = vmatprep.subr.bf16.mxu0 %v10688_v56  ;;  %v506_v51 = vshrl.u32 %v505_v44, 7  ;;  %p11613_p13 = pneg %p11612_p12 }
  0x2f   : > { %9943 = vmatprep.subr.bf16.mxu1 %v10689_v57 }
  0x30   : > { %364 = vadd.xlane.f32.xlu1 %v321_v30  ;;  %362 = vadd.xlane.f32.xlu0 %v320_v31  ;;  %v340_v30 = vmul.f32 %v11968_v21, %v11968_v21  ;;  %v11987_v31 = vld [vmem:[%s17532_s2 + $0xf8] sm:$0xff]   ;;  %p11620_p3 = pnand %p11619_p2, %p11613_p13 }
  0x31   : > { %9896 = vmatpush3.bf16.msra.mxu0 %v10688_v56 }
  0x32   : > { %9944 = vmatpush3.bf16.msra.mxu1 %v10689_v57  ;;  %9977 = vmatprep.subr.bf16.mxu0 %v11977_v26 }
  0x33   : > { %10025 = vmatprep.subr.bf16.mxu1 %v11987_v31 }
  0x34   : > { %368 = vadd.xlane.f32.xlu1 %v323_v36  ;;  %366 = vadd.xlane.f32.xlu0 %v322_v37 }
  0x38   : > { %372 = vadd.xlane.f32.xlu1 %v325_v42  ;;  %370 = vadd.xlane.f32.xlu0 %v324_v43 }
  0x3c   : > { %376 = vadd.xlane.f32.xlu1 %v327_v48  ;;  %374 = vadd.xlane.f32.xlu0 %v326_v49 }
  0x40   : > { %380 = vadd.xlane.f32.xlu1 %v329_v54  ;;  %378 = vadd.xlane.f32.xlu0 %v328_v55  ;;  %v502_v54 = vld [vmem:[%s17531_s1] sm:$0x1] }
  0x44   : > { %384 = vadd.xlane.f32.xlu1 %v331_v60  ;;  %382 = vadd.xlane.f32.xlu0 %v330_v61  ;;  %v503_v61 = vmul.f32 5.656854, %v502_v54 }
  0x48   : > { %388 = vadd.xlane.f32.xlu1 %v333_v0  ;;  %386 = vadd.xlane.f32.xlu0 %v332_v1  ;;  %v507_v0 = vsub.s32 0, %v506_v51 }
  0x4c   : > { %392 = vadd.xlane.f32.xlu1 %v335_v7  ;;  %390 = vadd.xlane.f32.xlu0 %v334_v8 }
  0x50   : > { %396 = vadd.xlane.f32.xlu1 %v337_v14  ;;  %394 = vadd.xlane.f32.xlu0 %v336_v15 }
  0x54   : > { %400 = vadd.xlane.f32.xlu1 %v339_v24  ;;  %398 = vadd.xlane.f32.xlu0 %v338_v25  ;;  %v11993_v25 = vrot.slane %v503_v61, %v507_v0  ;;  %v10692_v61 = vld [vmem:[%s17532_s2 + $0xb0] sm:$0xff]  }
  0x55   : > { %v10693_v0 = vld [vmem:[%s17532_s2 + $0xf0] sm:$0xff]  }
  0x58   : > { %404 = vadd.xlane.f32.xlu1 %v341_v27  ;;  %402 = vadd.xlane.f32.xlu0 %v340_v30 }
  0xa5   : > { %v347_v32 = vpop.xlane.xlu1 %346  ;;  %v343_v33 = vpop.xlane.xlu0 %342 }
  0xa6   : > { %v408_v36 = vmax.f32 %v347_v32, 1e-24  ;;  %v406_v37 = vmax.f32 %v343_v33, 1e-24 }
  0xa8   : > { %10778 = vrsqrt.f32 %v408_v36 }
  0xa9   : > { %10780 = vrsqrt.f32 %v406_v37  ;;  %v349_v38 = vpop.xlane.xlu1 %348  ;;  %v345_v39 = vpop.xlane.xlu0 %344 }
  0xaa   : > { %v409_v42 = vmax.f32 %v349_v38, 1e-24  ;;  %v407_v43 = vmax.f32 %v345_v39, 1e-24 }
  0xac   : > { %10782 = vrsqrt.f32 %v409_v42 }
  0xad   : > { %10784 = vrsqrt.f32 %v407_v43  ;;  %v353_v45 = vpop.xlane.xlu1 %352  ;;  %v351_v48 = vpop.xlane.xlu0 %350 }
  0xae   : > { %v411_v49 = vmax.f32 %v353_v45, 1e-24  ;;  %v410_v50 = vmax.f32 %v351_v48, 1e-24 }
  0xb0   : > { %10786 = vrsqrt.f32 %v411_v49 }
  0xb1   : > { %10788 = vrsqrt.f32 %v410_v50  ;;  %v357_v55 = vpop.xlane.xlu1 %356  ;;  %v355_v56 = vpop.xlane.xlu0 %354 }
  0xb2   : > { %v413_v57 = vmax.f32 %v357_v55, 1e-24  ;;  %v412_v60 = vmax.f32 %v355_v56, 1e-24 }
  0xb4   : > { %10790 = vrsqrt.f32 %v413_v57 }
  0xb5   : > { %v10779_v1 = vpop.eup %10778  ;;  %10792 = vrsqrt.f32 %v412_v60  ;;  %v361_v7 = vpop.xlane.xlu1 %360 }
  0xb6   : > { %v359_v8 = vpop.xlane.xlu0 %358  ;;  %v10781_v14 = vpop.eup %10780  ;;  %v415_v15 = vmax.f32 %v361_v7, 1e-24  ;;  %v472_v27 = vmul.f32 %v10779_v1, %v11783_v4 }
  0xb7   : > { %v414_v24 = vmax.f32 %v359_v8, 1e-24  ;;  %v470_v32 = vmul.f32 %v10781_v14, %v11786_v5 }
  0xb8   : > { %10794 = vrsqrt.f32 %v415_v15  ;;  %v512_v44 = vmul.f32 %v11993_v25, %v472_v27 }
  0xb9   : > { %v10783_v30 = vpop.eup %10782  ;;  %10796 = vrsqrt.f32 %v414_v24  ;;  %v365_v33 = vpop.xlane.xlu1 %364  ;;  %v510_v48 = vmul.f32 %v11993_v25, %v470_v32 }
  0xba   : > { %v363_v36 = vpop.xlane.xlu0 %362  ;;  %v10785_v37 = vpop.eup %10784  ;;  %v473_v38 = vmul.f32 %v10783_v30, %v11789_v6  ;;  %v417_v39 = vmax.f32 %v365_v33, 1e-24  ;;  %v10695_v33 = vld [vmem:[%s17532_s2 + $0xe8] sm:$0xff]  }
  0xbb   : > { %v416_v42 = vmax.f32 %v363_v36, 1e-24  ;;  %v471_v43 = vmul.f32 %v10785_v37, %v11796_v9 }
  0xbc   : > { %v513_v45 = vmul.f32 %v11993_v25, %v473_v38  ;;  %10798 = vrsqrt.f32 %v417_v39 }
  0xbd   : > { %v10787_v4 = vpop.eup %10786  ;;  %v511_v5 = vmul.f32 %v11993_v25, %v471_v43  ;;  %10800 = vrsqrt.f32 %v416_v42  ;;  %v369_v49 = vpop.xlane.xlu1 %368 }
  0xbe   : > { %v367_v50 = vpop.xlane.xlu0 %366  ;;  %v10789_v51 = vpop.eup %10788  ;;  %v12003_v54 = vpack.c.bf16 %v513_v45, %v512_v44  ;;  %v475_v6 = vmul.f32 %v10787_v4, %v11803_v12  ;;  %v419_v55 = vmax.f32 %v369_v49, 1e-24  ;;  %v10696_v4 = vld [vmem:[%s17532_s2 + $0xa0] sm:$0xff]  }
  0xbf   : > { %v418_v9 = vmax.f32 %v367_v50, 1e-24  ;;  %v12006_v56 = vpack.c.bf16 %v511_v5, %v510_v48  ;;  %v474_v57 = vmul.f32 %v10789_v51, %v11806_v13 }
  0xc0   : > { %v515_v60 = vmul.f32 %v11993_v25, %v475_v6  ;;  %10802 = vrsqrt.f32 %v419_v55 }
  0xc1   : > { %v10791_v1 = vpop.eup %10790  ;;  %v514_v12 = vmul.f32 %v11993_v25, %v474_v57  ;;  %10804 = vrsqrt.f32 %v418_v9  ;;  %9897 = vmatprep.mubr.bf16.mxu0 %v12006_v56  ;;  %9945 = vmatprep.mubr.bf16.mxu1 %v12006_v56  ;;  %v373_v13 = vpop.xlane.xlu1 %372 }
  0xc2   : > { %v371_v7 = vpop.xlane.xlu0 %370  ;;  %v10793_v8 = vpop.eup %10792  ;;  %v477_v14 = vmul.f32 %v10791_v1, %v11813_v16  ;;  %9898 = vmatmul.mubr.bf16.vlgmr.msra.gmra.mxu0 %v12003_v54  ;;  %9946 = vmatmul.mubr.bf16.vlgmr.msra.gmra.mxu1 %v12003_v54  ;;  %v421_v15 = vmax.f32 %v373_v13, 1e-24  ;;  %v10694_v16 = vld [vmem:[%s17532_s2 + $0xa8] sm:$0xff]  }
  0xc3   : > { %v420_v24 = vmax.f32 %v371_v7, 1e-24  ;;  %v12022_v27 = vpack.c.bf16 %v515_v60, %v514_v12  ;;  %v476_v30 = vmul.f32 %v10793_v8, %v11816_v17  ;;  %9978 = vmatpush3.bf16.msra.mxu0 %v11977_v26  ;;  %10026 = vmatpush3.bf16.msra.mxu1 %v11987_v31 }
  0xc4   : > { %v517_v32 = vmul.f32 %v11993_v25, %v477_v14  ;;  %10806 = vrsqrt.f32 %v421_v15  ;;  %9979 = vmatprep.subr.bf16.mxu0 %v10692_v61  ;;  %10027 = vmatprep.subr.bf16.mxu1 %v10693_v0 }
  0xc5   : > { %v10795_v36 = vpop.eup %10794  ;;  %v516_v17 = vmul.f32 %v11993_v25, %v476_v30  ;;  %10808 = vrsqrt.f32 %v420_v24  ;;  %9901 = vmatprep.mubr.bf16.mxu0 %v12022_v27  ;;  %9949 = vmatprep.mubr.bf16.mxu1 %v12022_v27  ;;  %v377_v26 = vpop.xlane.xlu1 %376 }
  0xc6   : > { %v375_v31 = vpop.xlane.xlu0 %374  ;;  %v10797_v37 = vpop.eup %10796  ;;  %v479_v38 = vmul.f32 %v10795_v36, %v11819_v18  ;;  %v423_v39 = vmax.f32 %v377_v26, 1e-24  ;;  %v10697_v18 = vld [vmem:[%s17532_s2 + $0xe0] sm:$0xff]  }
  0xc7   : > { %v422_v42 = vmax.f32 %v375_v31, 1e-24  ;;  %v12038_v43 = vpack.c.bf16 %v517_v32, %v516_v17  ;;  %v478_v44 = vmul.f32 %v10797_v37, %v11822_v19  ;;  %9980 = vmatpush3.bf16.msra.mxu0 %v10692_v61  ;;  %10028 = vmatpush3.bf16.msra.mxu1 %v10693_v0  ;;  %v10699_v61 = vld [vmem:[%s17532_s2 + $0xd8] sm:$0xff]   ;;  %v10700_v32 = vld [vmem:[%s17532_s2 + $0x90] sm:$0xff]  }
  0xc8   : > { %v519_v45 = vmul.f32 %v11993_v25, %v479_v38  ;;  %10810 = vrsqrt.f32 %v423_v39  ;;  %9981 = vmatprep.subr.bf16.mxu0 %v10694_v16  ;;  %10029 = vmatprep.subr.bf16.mxu1 %v10695_v33 }
  0xc9   : > { %v10799_v48 = vpop.eup %10798  ;;  %v518_v5 = vmul.f32 %v11993_v25, %v478_v44  ;;  %10812 = vrsqrt.f32 %v422_v42  ;;  %v381_v19 = vpop.xlane.xlu1 %380  ;;  %v10703_v44 = vld [vmem:[%s17532_s2 + $0xc8] sm:$0xff]  }
  0xca   : > { %v379_v49 = vpop.xlane.xlu0 %378  ;;  %v10801_v50 = vpop.eup %10800  ;;  %v481_v51 = vmul.f32 %v10799_v48, %v11829_v22  ;;  %9902 = vmatmul.mubr.bf16.gmra.mxu0 %v12038_v43  ;;  %9950 = vmatmul.mubr.bf16.gmra.mxu1 %v12038_v43  ;;  %v425_v6 = vmax.f32 %v381_v19, 1e-24  ;;  %v10698_v22 = vld [vmem:[%s17532_s2 + $0x98] sm:$0xff]  }
  0xcb   : > { %v424_v55 = vmax.f32 %v379_v49, 1e-24  ;;  %v12052_v9 = vpack.c.bf16 %v519_v45, %v518_v5  ;;  %v480_v57 = vmul.f32 %v10801_v50, %v11832_v23  ;;  %9982 = vmatpush3.bf16.msra.mxu0 %v10694_v16  ;;  %10030 = vmatpush3.bf16.msra.mxu1 %v10695_v33 }
  0xcc   : > { %v521_v60 = vmul.f32 %v11993_v25, %v481_v51  ;;  %10814 = vrsqrt.f32 %v425_v6  ;;  %9983 = vmatprep.subr.bf16.mxu0 %v10696_v4  ;;  %10031 = vmatprep.subr.bf16.mxu1 %v10697_v18 }
  0xcd   : > { %v10803_v0 = vpop.eup %10802  ;;  %v520_v1 = vmul.f32 %v11993_v25, %v480_v57  ;;  %10816 = vrsqrt.f32 %v424_v55  ;;  %9905 = vmatprep.mubr.bf16.mxu0 %v12052_v9  ;;  %9953 = vmatprep.mubr.bf16.mxu1 %v12052_v9  ;;  %v385_v23 = vpop.xlane.xlu1 %384  ;;  %v10704_v55 = vld [vmem:[%s17532_s2 + $0x80] sm:$0xff]  }
  0xce   : > { %v383_v12 = vpop.xlane.xlu0 %382  ;;  %v10805_v13 = vpop.eup %10804  ;;  %v483_v7 = vmul.f32 %v10803_v0, %v11845_v28  ;;  %v427_v8 = vmax.f32 %v385_v23, 1e-24  ;;  %v10701_v28 = vld [vmem:[%s17532_s2 + $0xd0] sm:$0xff]  }
  0xcf   : > { %v426_v14 = vmax.f32 %v383_v12, 1e-24  ;;  %v12066_v15 = vpack.c.bf16 %v521_v60, %v520_v1  ;;  %v482_v24 = vmul.f32 %v10805_v13, %v11848_v29  ;;  %9984 = vmatpush3.bf16.msra.mxu0 %v10696_v4  ;;  %10032 = vmatpush3.bf16.msra.mxu1 %v10697_v18 }
  0xd0   : > { %v523_v30 = vmul.f32 %v11993_v25, %v483_v7  ;;  %10818 = vrsqrt.f32 %v427_v8  ;;  %9985 = vmatprep.subr.bf16.mxu0 %v10698_v22  ;;  %10033 = vmatprep.subr.bf16.mxu1 %v10699_v61  ;;  %v12120_v8 = vld [vmem:[%s17533_s3 + $0x78] sm:$0xff]  }
  0xd1   : > { %v10807_v16 = vpop.eup %10806  ;;  %v522_v33 = vmul.f32 %v11993_v25, %v482_v24  ;;  %10820 = vrsqrt.f32 %v426_v14  ;;  %v389_v29 = vpop.xlane.xlu1 %388 }
  0xd2   : > { %v387_v36 = vpop.xlane.xlu0 %386  ;;  %v10809_v17 = vpop.eup %10808  ;;  %v485_v26 = vmul.f32 %v10807_v16, %v11861_v34  ;;  %9906 = vmatmul.mubr.bf16.gmra.mxu0 %v12066_v15  ;;  %9954 = vmatmul.mubr.bf16.gmra.mxu1 %v12066_v15  ;;  %v429_v31 = vmax.f32 %v389_v29, 1e-24  ;;  %v10702_v34 = vld [vmem:[%s17532_s2 + $0x88] sm:$0xff]  }
  0xd3   : > { %v428_v37 = vmax.f32 %v387_v36, 1e-24  ;;  %v12080_v38 = vpack.c.bf16 %v523_v30, %v522_v33  ;;  %v484_v39 = vmul.f32 %v10809_v17, %v11864_v35  ;;  %9986 = vmatpush3.bf16.msra.mxu0 %v10698_v22  ;;  %10034 = vmatpush3.bf16.msra.mxu1 %v10699_v61 }
  0xd4   : > { %v525_v42 = vmul.f32 %v11993_v25, %v485_v26  ;;  %10822 = vrsqrt.f32 %v429_v31  ;;  %9987 = vmatprep.subr.bf16.mxu0 %v10700_v32  ;;  %10035 = vmatprep.subr.bf16.mxu1 %v10701_v28 }
  0xd5   : > { %v10811_v45 = vpop.eup %10810  ;;  %v524_v4 = vmul.f32 %v11993_v25, %v484_v39  ;;  %10824 = vrsqrt.f32 %v428_v37  ;;  %9909 = vmatprep.mubr.bf16.mxu0 %v12080_v38  ;;  %9957 = vmatprep.mubr.bf16.mxu1 %v12080_v38  ;;  %v393_v35 = vpop.xlane.xlu1 %392 }
  0xd6   : > { %v391_v18 = vpop.xlane.xlu0 %390  ;;  %v10813_v48 = vpop.eup %10812  ;;  %v487_v5 = vmul.f32 %v10811_v45, %v11877_v40  ;;  %v431_v19 = vmax.f32 %v393_v35, 1e-24  ;;  %v10705_v40 = vld [vmem:[%s17532_s2 + $0xc0] sm:$0xff]  }
  0xd7   : > { %v430_v49 = vmax.f32 %v391_v18, 1e-24  ;;  %v12094_v50 = vpack.c.bf16 %v525_v42, %v524_v4  ;;  %v486_v51 = vmul.f32 %v10813_v48, %v11880_v41  ;;  %9988 = vmatpush3.bf16.msra.mxu0 %v10700_v32  ;;  %10036 = vmatpush3.bf16.msra.mxu1 %v10701_v28 }
  0xd8   : > { %v527_v6 = vmul.f32 %v11993_v25, %v487_v5  ;;  %10826 = vrsqrt.f32 %v431_v19  ;;  %9989 = vmatprep.subr.bf16.mxu0 %v10702_v34  ;;  %10037 = vmatprep.subr.bf16.mxu1 %v10703_v44 }
  0xd9   : > { %v10815_v57 = vpop.eup %10814  ;;  %v526_v60 = vmul.f32 %v11993_v25, %v486_v51  ;;  %10828 = vrsqrt.f32 %v430_v49  ;;  %v397_v41 = vpop.xlane.xlu1 %396 }
  0xda   : > { %v395_v22 = vpop.xlane.xlu0 %394  ;;  %v10817_v61 = vpop.eup %10816  ;;  %v489_v0 = vmul.f32 %v10815_v57, %v11893_v46  ;;  %9910 = vmatmul.mubr.bf16.gmra.mxu0 %v12094_v50  ;;  %9958 = vmatmul.mubr.bf16.gmra.mxu1 %v12094_v50  ;;  %v433_v1 = vmax.f32 %v397_v41, 1e-24  ;;  %v12115_v46 = vld [vmem:[%s17533_s3 + $0x38] sm:$0xff]  }
  0xdb   : > { %v432_v23 = vmax.f32 %v395_v22, 1e-24  ;;  %v12108_v12 = vpack.c.bf16 %v527_v6, %v526_v60  ;;  %v488_v13 = vmul.f32 %v10817_v61, %v11896_v47  ;;  %9990 = vmatpush3.bf16.msra.mxu0 %v10702_v34  ;;  %10038 = vmatpush3.bf16.msra.mxu1 %v10703_v44 }
  0xdc   : > { %v529_v7 = vmul.f32 %v11993_v25, %v489_v0  ;;  %10830 = vrsqrt.f32 %v433_v1  ;;  %9991 = vmatprep.subr.bf16.mxu0 %v10704_v55  ;;  %10039 = vmatprep.subr.bf16.mxu1 %v10705_v40 }
  0xdd   : > { %v10819_v14 = vpop.eup %10818  ;;  %v528_v47 = vmul.f32 %v11993_v25, %v488_v13  ;;  %10832 = vrsqrt.f32 %v432_v23  ;;  %9913 = vmatprep.mubr.bf16.mxu0 %v12108_v12  ;;  %9961 = vmatprep.mubr.bf16.mxu1 %v12108_v12  ;;  %v401_v24 = vpop.xlane.xlu1 %400 }
  0xde   : > { %v399_v30 = vpop.xlane.xlu0 %398  ;;  %v10821_v32 = vpop.eup %10820  ;;  %v491_v28 = vmul.f32 %v10819_v14, %v11909_v52  ;;  %v435_v16 = vmax.f32 %v401_v24, 1e-24  ;;  %v10711_v24 = vld [vmem:[%s17533_s3 + $0x68] sm:$0xff]  }
  0xdf   : > { %v434_v33 = vmax.f32 %v399_v30, 1e-24  ;;  %v12126_v29 = vpack.c.bf16 %v529_v7, %v528_v47  ;;  %v490_v36 = vmul.f32 %v10821_v32, %v11912_v53  ;;  %9992 = vmatpush3.bf16.msra.mxu0 %v10704_v55  ;;  %10040 = vmatpush3.bf16.msra.mxu1 %v10705_v40  ;;  %v10714_v30 = vld [vmem:[%s17533_s3 + $0x18] sm:$0xff]  }
  0xe0   : > { %v531_v17 = vmul.f32 %v11993_v25, %v491_v28  ;;  %10834 = vrsqrt.f32 %v435_v16  ;;  %10073 = vmatprep.subr.bf16.mxu0 %v12115_v46  ;;  %10121 = vmatprep.subr.bf16.mxu1 %v12120_v8  ;;  %v10715_v32 = vld [vmem:[%s17533_s3 + $0x58] sm:$0xff]   ;;  %v10716_v28 = vld [vmem:[%s17533_s3 + $0x10] sm:$0xff]  }
  0xe1   : > { %v10823_v26 = vpop.eup %10822  ;;  %v530_v31 = vmul.f32 %v11993_v25, %v490_v36  ;;  %10836 = vrsqrt.f32 %v434_v33  ;;  %v405_v52 = vpop.xlane.xlu1 %404  ;;  %v10717_v16 = vld [vmem:[%s17533_s3 + $0x50] sm:$0xff]   ;;  %v10718_v33 = vld [vmem:[%s17533_s3 + $0x8] sm:$0xff]  }
  0xe2   : > { %v403_v37 = vpop.xlane.xlu0 %402  ;;  %v10825_v39 = vpop.eup %10824  ;;  %v493_v42 = vmul.f32 %v10823_v26, %v11925_v58  ;;  %9914 = vmatmul.mubr.bf16.gmra.mxu0 %v12126_v29  ;;  %9962 = vmatmul.mubr.bf16.gmra.mxu1 %v12126_v29  ;;  %v437_v53 = vmax.f32 %v405_v52, 1e-24  ;;  %v10719_v36 = vld [vmem:[%s17533_s3 + $0x48] sm:$0xff]   ;;  %v10721_v26 = vld [vmem:[%s17533_s3 + $0x40] sm:$0xff]   ;;  %v10723_v52 = vld [vmem:[%s17533_s3 + $0xf8] sm:$0xff]  }
  0xe3   : > { %v436_v34 = vmax.f32 %v403_v37, 1e-24  ;;  %v12136_v44 = vpack.c.bf16 %v531_v17, %v530_v31  ;;  %v492_v45 = vmul.f32 %v10825_v39, %v11928_v59  ;;  %v10720_v17 = vld [vmem:[%s17533_s3] sm:$0xff]   ;;  %v10722_v31 = vld [vmem:[%s17533_s3 + $0xb8] sm:$0xff]   ;;  %v10724_v37 = vld [vmem:[%s17533_s3 + $0xb0] sm:$0xff]  }
  0xe4   : > { %v533_v4 = vmul.f32 %v11993_v25, %v493_v42  ;;  %10838 = vrsqrt.f32 %v437_v53  ;;  %v10725_v39 = vld [vmem:[%s17533_s3 + $0xf0] sm:$0xff]   ;;  %v10726_v42 = vld [vmem:[%s17533_s3 + $0xa8] sm:$0xff]  }
  0xe5   : > { %v10827_v35 = vpop.eup %10826  ;;  %v532_v18 = vmul.f32 %v11993_v25, %v492_v45  ;;  %10840 = vrsqrt.f32 %v436_v34  ;;  %9917 = vmatprep.mubr.bf16.mxu0 %v12136_v44  ;;  %9965 = vmatprep.mubr.bf16.mxu1 %v12136_v44  ;;  %v10727_v53 = vld [vmem:[%s17533_s3 + $0xe8] sm:$0xff]   ;;  %v10728_v34 = vld [vmem:[%s17533_s3 + $0xa0] sm:$0xff]  }
  0xe6   : > { %v10829_v58 = vpop.eup %10828  ;;  %v495_v48 = vmul.f32 %v10827_v35, %v11935_v62  ;;  %v10729_v45 = vld [vmem:[%s17533_s3 + $0xe0] sm:$0xff]   ;;  %v10731_v35 = vld [vmem:[%s17533_s3 + $0xd8] sm:$0xff]  }
  0xe7   : > { %v12144_v5 = vpack.c.bf16 %v533_v4, %v532_v18  ;;  %v494_v19 = vmul.f32 %v10829_v58, %v11938_v63  ;;  %v10730_v4 = vld [vmem:[%s17533_s3 + $0x98] sm:$0xff]   ;;  %v10732_v18 = vld [vmem:[%s17533_s3 + $0x90] sm:$0xff]  }
  0xe8   : > { %v535_v59 = vmul.f32 %v11993_v25, %v495_v48  ;;  %v10733_v58 = vld [vmem:[%s17533_s3 + $0xd0] sm:$0xff]   ;;  %v10734_v48 = vld [vmem:[%s17533_s3 + $0x88] sm:$0xff]  }
  0xe9   : > { %v10831_v49 = vpop.eup %10830  ;;  %v534_v51 = vmul.f32 %v11993_v25, %v494_v19  ;;  %v10735_v19 = vld [vmem:[%s17533_s3 + $0xc8] sm:$0xff]  }
  0xea   : > { %v10833_v6 = vpop.eup %10832  ;;  %v497_v55 = vmul.f32 %v10831_v49, %v11945_v2  ;;  %9918 = vmatmul.mubr.bf16.gmra.mxu0 %v12144_v5  ;;  %9966 = vmatmul.mubr.bf16.gmra.mxu1 %v12144_v5  ;;  %v10737_v49 = vld [vmem:[%s17533_s3 + $0xc0] sm:$0xff]  }
  0xeb   : > { %v12152_v40 = vpack.c.bf16 %v535_v59, %v534_v51  ;;  %v496_v62 = vmul.f32 %v10833_v6, %v11948_v3  ;;  %v10736_v59 = vld [vmem:[%s17533_s3 + $0x80] sm:$0xff]   ;;  %v10738_v51 = vld [vmem:[%s17534_s4 + $0x38] sm:$0xff]  }
  0xec   : > { %v537_v57 = vmul.f32 %v11993_v25, %v497_v55  ;;  %v10739_v6 = vld [vmem:[%s17534_s4 + $0x78] sm:$0xff]   ;;  %v10740_v55 = vld [vmem:[%s17534_s4 + $0x30] sm:$0xff]  }
  0xed   : > { %v10835_v60 = vpop.eup %10834  ;;  %v536_v63 = vmul.f32 %v11993_v25, %v496_v62  ;;  %9921 = vmatprep.mubr.bf16.mxu0 %v12152_v40  ;;  %9969 = vmatprep.mubr.bf16.mxu1 %v12152_v40  ;;  %v10741_v62 = vld [vmem:[%s17534_s4 + $0x70] sm:$0xff]  }
  0xee   : > { %v10837_v41 = vpop.eup %10836  ;;  %v499_v2 = vmul.f32 %v10835_v60, %v11955_v10 }
  0xef   : > { %v12160_v22 = vpack.c.bf16 %v537_v57, %v536_v63  ;;  %v498_v61 = vmul.f32 %v10837_v41, %v11958_v11 }
  0xf0   : > { %v539_v0 = vmul.f32 %v11993_v25, %v499_v2  ;;  %v10742_v2 = vld [vmem:[%s17534_s4 + $0x28] sm:$0xff]  }
  0xf1   : > { %v10839_v1 = vpop.eup %10838  ;;  %v538_v3 = vmul.f32 %v11993_v25, %v498_v61  ;;  %v10743_v61 = vld [vmem:[%s17534_s4 + $0x68] sm:$0xff]  }
  0xf2   : > { %v10841_v23 = vpop.eup %10840  ;;  %v501_v13 = vmul.f32 %v10839_v1, %v11965_v20  ;;  %9922 = vmatmul.mubr.bf16.gmra.mxu0 %v12160_v22  ;;  %9970 = vmatmul.mubr.bf16.gmra.mxu1 %v12160_v22  ;;  %v10708_v20 = vld [vmem:[%s17533_s3 + $0x30] sm:$0xff]  }
  0xf3   : > { %v12168_v7 = vpack.c.bf16 %v539_v0, %v538_v3  ;;  %v500_v10 = vmul.f32 %v10841_v23, %v11968_v21  ;;  %v10709_v21 = vld [vmem:[%s17533_s3 + $0x70] sm:$0xff]  }
  0xf4   : > { %v541_v14 = vmul.f32 %v11993_v25, %v501_v13 }
  0xf5   : > { %v540_v11 = vmul.f32 %v11993_v25, %v500_v10  ;;  %9925 = vmatprep.mubr.bf16.mxu0 %v12168_v7  ;;  %9973 = vmatprep.mubr.bf16.mxu1 %v12168_v7  ;;  %v10710_v25 = vld [vmem:[%s17533_s3 + $0x28] sm:$0xff]  }
  0xf7   : > { %v12175_v47 = vpack.c.bf16 %v541_v14, %v540_v11 }
  0xfa   : > { %9926 = vmatmul.mubr.bf16.gmra.mxu0 %v12175_v47  ;;  %9974 = vmatmul.mubr.bf16.gmra.mxu1 %v12175_v47 }
  0xfb   : > { %9993 = vmatprep.mubr.bf16.mxu0 %v12006_v56  ;;  %10041 = vmatprep.mubr.bf16.mxu1 %v12006_v56 }
 0x102   : > { %9994 = vmatmul.mubr.bf16.vlgmr.msra.gmra.mxu0 %v12003_v54  ;;  %10042 = vmatmul.mubr.bf16.vlgmr.msra.gmra.mxu1 %v12003_v54 }
 0x103   : > { %9997 = vmatprep.mubr.bf16.mxu0 %v12022_v27  ;;  %10045 = vmatprep.mubr.bf16.mxu1 %v12022_v27 }
 0x104   : > { %10074 = vmatpush3.bf16.msra.mxu0 %v12115_v46  ;;  %10122 = vmatpush3.bf16.msra.mxu1 %v12120_v8  ;;  %v10712_v46 = vld [vmem:[%s17533_s3 + $0x20] sm:$0xff]  }
 0x105   : > { %10075 = vmatprep.subr.bf16.mxu0 %v10708_v20  ;;  %10123 = vmatprep.subr.bf16.mxu1 %v10709_v21  ;;  %v10713_v8 = vld [vmem:[%s17533_s3 + $0x60] sm:$0xff]  }
 0x108   : > { %10076 = vmatpush3.bf16.msra.mxu0 %v10708_v20  ;;  %10124 = vmatpush3.bf16.msra.mxu1 %v10709_v21  ;;  %v10744_v20 = vld [vmem:[%s17534_s4 + $0x20] sm:$0xff]  }
 0x109   : > { %10077 = vmatprep.subr.bf16.mxu0 %v10710_v25  ;;  %10125 = vmatprep.subr.bf16.mxu1 %v10711_v24  ;;  %v10745_v21 = vld [vmem:[%s17534_s4 + $0x60] sm:$0xff]  }
 0x10a   : > { %9998 = vmatmul.mubr.bf16.gmra.mxu0 %v12038_v43  ;;  %10046 = vmatmul.mubr.bf16.gmra.mxu1 %v12038_v43 }
 0x10b   : > { %10001 = vmatprep.mubr.bf16.mxu0 %v12052_v9  ;;  %10049 = vmatprep.mubr.bf16.mxu1 %v12052_v9 }
 0x10c   : > { %10078 = vmatpush3.bf16.msra.mxu0 %v10710_v25  ;;  %10126 = vmatpush3.bf16.msra.mxu1 %v10711_v24 }
 0x10d   : > { %10079 = vmatprep.subr.bf16.mxu0 %v10712_v46  ;;  %10127 = vmatprep.subr.bf16.mxu1 %v10713_v8 }
 0x110   : > { %10080 = vmatpush3.bf16.msra.mxu0 %v10712_v46  ;;  %10128 = vmatpush3.bf16.msra.mxu1 %v10713_v8 }
 0x111   : > { %10081 = vmatprep.subr.bf16.mxu0 %v10714_v30  ;;  %10129 = vmatprep.subr.bf16.mxu1 %v10715_v32 }
 0x112   : > { %10002 = vmatmul.mubr.bf16.gmra.mxu0 %v12066_v15  ;;  %10050 = vmatmul.mubr.bf16.gmra.mxu1 %v12066_v15 }
 0x113   : > { %10005 = vmatprep.mubr.bf16.mxu0 %v12080_v38  ;;  %10053 = vmatprep.mubr.bf16.mxu1 %v12080_v38 }
 0x114   : > { %10082 = vmatpush3.bf16.msra.mxu0 %v10714_v30  ;;  %10130 = vmatpush3.bf16.msra.mxu1 %v10715_v32  ;;  %v10746_v30 = vld [vmem:[%s17534_s4 + $0x18] sm:$0xff]  }
 0x115   : > { %10083 = vmatprep.subr.bf16.mxu0 %v10716_v28  ;;  %10131 = vmatprep.subr.bf16.mxu1 %v10717_v16  ;;  %v10747_v32 = vld [vmem:[%s17534_s4 + $0x58] sm:$0xff]  }
 0x118   : > { %10084 = vmatpush3.bf16.msra.mxu0 %v10716_v28  ;;  %10132 = vmatpush3.bf16.msra.mxu1 %v10717_v16 }
 0x119   : > { %10085 = vmatprep.subr.bf16.mxu0 %v10718_v33  ;;  %10133 = vmatprep.subr.bf16.mxu1 %v10719_v36 }
 0x11a   : > { %10006 = vmatmul.mubr.bf16.gmra.mxu0 %v12094_v50  ;;  %10054 = vmatmul.mubr.bf16.gmra.mxu1 %v12094_v50 }
 0x11b   : > { %10009 = vmatprep.mubr.bf16.mxu0 %v12108_v12  ;;  %10057 = vmatprep.mubr.bf16.mxu1 %v12108_v12 }
 0x11c   : > { %10086 = vmatpush3.bf16.msra.mxu0 %v10718_v33  ;;  %10134 = vmatpush3.bf16.msra.mxu1 %v10719_v36 }
 0x11d   : > { %10087 = vmatprep.subr.bf16.mxu0 %v10720_v17  ;;  %10135 = vmatprep.subr.bf16.mxu1 %v10721_v26 }
 0x120   : > { %10088 = vmatpush3.bf16.msra.mxu0 %v10720_v17  ;;  %10136 = vmatpush3.bf16.msra.mxu1 %v10721_v26 }
 0x121   : > { %10169 = vmatprep.subr.bf16.mxu0 %v10722_v31  ;;  %10217 = vmatprep.subr.bf16.mxu1 %v10723_v52 }
 0x122   : > { %10010 = vmatmul.mubr.bf16.gmra.mxu0 %v12126_v29  ;;  %10058 = vmatmul.mubr.bf16.gmra.mxu1 %v12126_v29 }
 0x123   : > { %10013 = vmatprep.mubr.bf16.mxu0 %v12136_v44  ;;  %10061 = vmatprep.mubr.bf16.mxu1 %v12136_v44 }
 0x12a   : > { %10014 = vmatmul.mubr.bf16.gmra.mxu0 %v12144_v5  ;;  %10062 = vmatmul.mubr.bf16.gmra.mxu1 %v12144_v5 }
 0x12b   : > { %10017 = vmatprep.mubr.bf16.mxu0 %v12152_v40  ;;  %10065 = vmatprep.mubr.bf16.mxu1 %v12152_v40 }
 0x132   : > { %10018 = vmatmul.mubr.bf16.gmra.mxu0 %v12160_v22  ;;  %10066 = vmatmul.mubr.bf16.gmra.mxu1 %v12160_v22 }
 0x133   : > { %10021 = vmatprep.mubr.bf16.mxu0 %v12168_v7  ;;  %10069 = vmatprep.mubr.bf16.mxu1 %v12168_v7 }
 0x13a   : > { %10022 = vmatmul.mubr.bf16.gmra.mxu0 %v12175_v47  ;;  %10070 = vmatmul.mubr.bf16.gmra.mxu1 %v12175_v47 }
 0x13b   : > { %10089 = vmatprep.mubr.bf16.mxu0 %v12006_v56  ;;  %10137 = vmatprep.mubr.bf16.mxu1 %v12006_v56 }
 0x142   : > { %10090 = vmatmul.mubr.bf16.vlgmr.msra.gmra.mxu0 %v12003_v54  ;;  %10138 = vmatmul.mubr.bf16.vlgmr.msra.gmra.mxu1 %v12003_v54 }
 0x143   : > { %10093 = vmatprep.mubr.bf16.mxu0 %v12022_v27  ;;  %10141 = vmatprep.mubr.bf16.mxu1 %v12022_v27 }
 0x144   : > { %10170 = vmatpush3.bf16.msra.mxu0 %v10722_v31  ;;  %10218 = vmatpush3.bf16.msra.mxu1 %v10723_v52 }
 0x145   : > { %10171 = vmatprep.subr.bf16.mxu0 %v10724_v37  ;;  %10219 = vmatprep.subr.bf16.mxu1 %v10725_v39 }
 0x148   : > { %10172 = vmatpush3.bf16.msra.mxu0 %v10724_v37  ;;  %10220 = vmatpush3.bf16.msra.mxu1 %v10725_v39  ;;  %v10748_v37 = vld [vmem:[%s17534_s4 + $0x10] sm:$0xff]  }
 0x149   : > { %10173 = vmatprep.subr.bf16.mxu0 %v10726_v42  ;;  %10221 = vmatprep.subr.bf16.mxu1 %v10727_v53  ;;  %v10749_v39 = vld [vmem:[%s17534_s4 + $0x50] sm:$0xff]  }
 0x14a   : > { %10094 = vmatmul.mubr.bf16.gmra.mxu0 %v12038_v43  ;;  %10142 = vmatmul.mubr.bf16.gmra.mxu1 %v12038_v43 }
 0x14b   : > { %10097 = vmatprep.mubr.bf16.mxu0 %v12052_v9  ;;  %10145 = vmatprep.mubr.bf16.mxu1 %v12052_v9 }
 0x14c   : > { %10174 = vmatpush3.bf16.msra.mxu0 %v10726_v42  ;;  %10222 = vmatpush3.bf16.msra.mxu1 %v10727_v53 }
 0x14d   : > { %10175 = vmatprep.subr.bf16.mxu0 %v10728_v34  ;;  %10223 = vmatprep.subr.bf16.mxu1 %v10729_v45 }
 0x150   : > { %10176 = vmatpush3.bf16.msra.mxu0 %v10728_v34  ;;  %10224 = vmatpush3.bf16.msra.mxu1 %v10729_v45 }
 0x151   : > { %10177 = vmatprep.subr.bf16.mxu0 %v10730_v4  ;;  %10225 = vmatprep.subr.bf16.mxu1 %v10731_v35 }
 0x152   : > { %10098 = vmatmul.mubr.bf16.gmra.mxu0 %v12066_v15  ;;  %10146 = vmatmul.mubr.bf16.gmra.mxu1 %v12066_v15 }
 0x153   : > { %10101 = vmatprep.mubr.bf16.mxu0 %v12080_v38  ;;  %10149 = vmatprep.mubr.bf16.mxu1 %v12080_v38 }
 0x154   : > { %10178 = vmatpush3.bf16.msra.mxu0 %v10730_v4  ;;  %10226 = vmatpush3.bf16.msra.mxu1 %v10731_v35  ;;  %v10750_v4 = vld [vmem:[%s17534_s4 + $0x8] sm:$0xff]  }
 0x155   : > { %10179 = vmatprep.subr.bf16.mxu0 %v10732_v18  ;;  %10227 = vmatprep.subr.bf16.mxu1 %v10733_v58  ;;  %v10751_v35 = vld [vmem:[%s17534_s4 + $0x48] sm:$0xff]  }
 0x158   : > { %10180 = vmatpush3.bf16.msra.mxu0 %v10732_v18  ;;  %10228 = vmatpush3.bf16.msra.mxu1 %v10733_v58 }
 0x159   : > { %10181 = vmatprep.subr.bf16.mxu0 %v10734_v48  ;;  %10229 = vmatprep.subr.bf16.mxu1 %v10735_v19 }
 0x15a   : > { %10102 = vmatmul.mubr.bf16.gmra.mxu0 %v12094_v50  ;;  %10150 = vmatmul.mubr.bf16.gmra.mxu1 %v12094_v50 }
 0x15b   : > { %10105 = vmatprep.mubr.bf16.mxu0 %v12108_v12  ;;  %10153 = vmatprep.mubr.bf16.mxu1 %v12108_v12 }
 0x15c   : > { %10182 = vmatpush3.bf16.msra.mxu0 %v10734_v48  ;;  %10230 = vmatpush3.bf16.msra.mxu1 %v10735_v19 }
 0x15d   : > { %10183 = vmatprep.subr.bf16.mxu0 %v10736_v59  ;;  %10231 = vmatprep.subr.bf16.mxu1 %v10737_v49 }
 0x160   : > { %10184 = vmatpush3.bf16.msra.mxu0 %v10736_v59  ;;  %10232 = vmatpush3.bf16.msra.mxu1 %v10737_v49 }
 0x161   : > { %10265 = vmatprep.subr.bf16.mxu0 %v10738_v51  ;;  %10313 = vmatprep.subr.bf16.mxu1 %v10739_v6 }
 0x162   : > { %10106 = vmatmul.mubr.bf16.gmra.mxu0 %v12126_v29  ;;  %10154 = vmatmul.mubr.bf16.gmra.mxu1 %v12126_v29 }
 0x163   : > { %10109 = vmatprep.mubr.bf16.mxu0 %v12136_v44  ;;  %10157 = vmatprep.mubr.bf16.mxu1 %v12136_v44 }
 0x16a   : > { %10110 = vmatmul.mubr.bf16.gmra.mxu0 %v12144_v5  ;;  %10158 = vmatmul.mubr.bf16.gmra.mxu1 %v12144_v5 }
 0x16b   : > { %10113 = vmatprep.mubr.bf16.mxu0 %v12152_v40  ;;  %10161 = vmatprep.mubr.bf16.mxu1 %v12152_v40 }
 0x172   : > { %10114 = vmatmul.mubr.bf16.gmra.mxu0 %v12160_v22  ;;  %10162 = vmatmul.mubr.bf16.gmra.mxu1 %v12160_v22 }
 0x173   : > { %10117 = vmatprep.mubr.bf16.mxu0 %v12168_v7  ;;  %10165 = vmatprep.mubr.bf16.mxu1 %v12168_v7 }
 0x17a   : > { %10118 = vmatmul.mubr.bf16.gmra.mxu0 %v12175_v47  ;;  %10166 = vmatmul.mubr.bf16.gmra.mxu1 %v12175_v47 }
 0x17b   : > { %10185 = vmatprep.mubr.bf16.mxu0 %v12006_v56  ;;  %10233 = vmatprep.mubr.bf16.mxu1 %v12006_v56 }
 0x182   : > { %v9899_v57 = vpop.f32.mrf.mxu0  ;;  %v9947_v60 = vpop.f32.mrf.mxu1  ;;  %10186 = vmatmul.mubr.bf16.vlgmr.msra.gmra.mxu0 %v12003_v54  ;;  %10234 = vmatmul.mubr.bf16.vlgmr.msra.gmra.mxu1 %v12003_v54 }
 0x183   : > { %10189 = vmatprep.mubr.bf16.mxu0 %v12022_v27  ;;  %10237 = vmatprep.mubr.bf16.mxu1 %v12022_v27 }
 0x184   : > { %v704_v63 = vpop.f32.mrf.mxu0  ;;  %v913_v41 = vpop.f32.mrf.mxu1  ;;  %10266 = vmatpush3.bf16.msra.mxu0 %v10738_v51  ;;  %10314 = vmatpush3.bf16.msra.mxu1 %v10739_v6 }
 0x185   : > { %10267 = vmatprep.subr.bf16.mxu0 %v10740_v55  ;;  %10315 = vmatprep.subr.bf16.mxu1 %v10741_v62 }
 0x186   : > { %v9900_v0 = vpop.f32.mrf.mxu0  ;;  %v9948_v1 = vpop.f32.mrf.mxu1 }
 0x187   : > { %v12359_v3 = vpack.c.bf16 %v9900_v0, %v9899_v57  ;;  %v12361_v23 = vpack.c.bf16 %v9948_v1, %v9947_v60 }
 0x188   : > { %v707_v13 = vpop.f32.mrf.mxu0  ;;  %v916_v10 = vpop.f32.mrf.mxu1  ;;  %10268 = vmatpush3.bf16.msra.mxu0 %v10740_v55  ;;  %10316 = vmatpush3.bf16.msra.mxu1 %v10741_v62  ;;  %v10752_v55 = vld [vmem:[%s17534_s4] sm:$0xff]  }
 0x189   : > { %18059 = vst [vmem:[#allocation5_spill] sm:$0xff] %v12359_v3  ;;  %18060 = vst [vmem:[#allocation6_spill] sm:$0xff] %v12361_v23  ;;  %v12363_v14 = vpack.c.bf16 %v707_v13, %v704_v63  ;;  %v12365_v11 = vpack.c.bf16 %v916_v10, %v913_v41  ;;  %10269 = vmatprep.subr.bf16.mxu0 %v10742_v2  ;;  %10317 = vmatprep.subr.bf16.mxu1 %v10743_v61  ;;  %v10753_v62 = vld [vmem:[%s17534_s4 + $0x40] sm:$0xff]  }
 0x18a   : > { %v9903_v25 = vpop.f32.mrf.mxu0  ;;  %v9951_v24 = vpop.f32.mrf.mxu1  ;;  %10190 = vmatmul.mubr.bf16.gmra.mxu0 %v12038_v43  ;;  %10238 = vmatmul.mubr.bf16.gmra.mxu1 %v12038_v43 }
 0x18b   : > { %18061 = vst [vmem:[#allocation7_spill] sm:$0xff] %v12363_v14  ;;  %18062 = vst [vmem:[#allocation8_spill] sm:$0xff] %v12365_v11  ;;  %10193 = vmatprep.mubr.bf16.mxu0 %v12052_v9  ;;  %10241 = vmatprep.mubr.bf16.mxu1 %v12052_v9 }
 0x18c   : > { %v720_v46 = vpop.f32.mrf.mxu0  ;;  %v929_v8 = vpop.f32.mrf.mxu1  ;;  %10270 = vmatpush3.bf16.msra.mxu0 %v10742_v2  ;;  %10318 = vmatpush3.bf16.msra.mxu1 %v10743_v61  ;;  %v12428_v2 = vld [vmem:[%s17534_s4 + $0xb8] sm:$0xff]  }
 0x18d   : > { %10271 = vmatprep.subr.bf16.mxu0 %v10744_v20  ;;  %10319 = vmatprep.subr.bf16.mxu1 %v10745_v21  ;;  %v12433_v61 = vld [vmem:[%s17534_s4 + $0xf8] sm:$0xff]  }
 0x18e   : > { %v9904_v28 = vpop.f32.mrf.mxu0  ;;  %v9952_v16 = vpop.f32.mrf.mxu1 }
 0x18f   : > { %v12383_v33 = vpack.c.bf16 %v9904_v28, %v9903_v25  ;;  %v12385_v36 = vpack.c.bf16 %v9952_v16, %v9951_v24 }
 0x190   : > { %v723_v17 = vpop.f32.mrf.mxu0  ;;  %v932_v26 = vpop.f32.mrf.mxu1  ;;  %10272 = vmatpush3.bf16.msra.mxu0 %v10744_v20  ;;  %10320 = vmatpush3.bf16.msra.mxu1 %v10745_v21 }
 0x191   : > { %18063 = vst [vmem:[#allocation9_spill] sm:$0xff] %v12383_v33  ;;  %18064 = vst [vmem:[#allocation10_spill] sm:$0xff] %v12385_v36  ;;  %v12387_v31 = vpack.c.bf16 %v723_v17, %v720_v46  ;;  %v12389_v52 = vpack.c.bf16 %v932_v26, %v929_v8  ;;  %10273 = vmatprep.subr.bf16.mxu0 %v10746_v30  ;;  %10321 = vmatprep.subr.bf16.mxu1 %v10747_v32 }
 0x192   : > { %v9907_v42 = vpop.f32.mrf.mxu0  ;;  %v9955_v53 = vpop.f32.mrf.mxu1  ;;  %10194 = vmatmul.mubr.bf16.gmra.mxu0 %v12066_v15  ;;  %10242 = vmatmul.mubr.bf16.gmra.mxu1 %v12066_v15 }
 0x193   : > { %18065 = vst [vmem:[#allocation11_spill] sm:$0xff] %v12387_v31  ;;  %18066 = vst [vmem:[#allocation12_spill] sm:$0xff] %v12389_v52  ;;  %10197 = vmatprep.mubr.bf16.mxu0 %v12080_v38  ;;  %10245 = vmatprep.mubr.bf16.mxu1 %v12080_v38 }
 0x194   : > { %v736_v34 = vpop.f32.mrf.mxu0  ;;  %v945_v45 = vpop.f32.mrf.mxu1  ;;  %10274 = vmatpush3.bf16.msra.mxu0 %v10746_v30  ;;  %10322 = vmatpush3.bf16.msra.mxu1 %v10747_v32 }
 0x195   : > { %10275 = vmatprep.subr.bf16.mxu0 %v10748_v37  ;;  %10323 = vmatprep.subr.bf16.mxu1 %v10749_v39 }
 0x196   : > { %v9908_v18 = vpop.f32.mrf.mxu0  ;;  %v9956_v58 = vpop.f32.mrf.mxu1 }
 0x197   : > { %v12407_v48 = vpack.c.bf16 %v9908_v18, %v9907_v42  ;;  %v12409_v19 = vpack.c.bf16 %v9956_v58, %v9955_v53 }
 0x198   : > { %v739_v59 = vpop.f32.mrf.mxu0  ;;  %v948_v49 = vpop.f32.mrf.mxu1  ;;  %10276 = vmatpush3.bf16.msra.mxu0 %v10748_v37  ;;  %10324 = vmatpush3.bf16.msra.mxu1 %v10749_v39 }
 0x199   : > { %18067 = vst [vmem:[#allocation13_spill] sm:$0xff] %v12407_v48  ;;  %18068 = vst [vmem:[#allocation14_spill] sm:$0xff] %v12409_v19  ;;  %v12411_v51 = vpack.c.bf16 %v739_v59, %v736_v34  ;;  %v12413_v6 = vpack.c.bf16 %v948_v49, %v945_v45  ;;  %10277 = vmatprep.subr.bf16.mxu0 %v10750_v4  ;;  %10325 = vmatprep.subr.bf16.mxu1 %v10751_v35 }
 0x19a   : > { %v9911_v57 = vpop.f32.mrf.mxu0  ;;  %v9959_v60 = vpop.f32.mrf.mxu1  ;;  %10198 = vmatmul.mubr.bf16.gmra.mxu0 %v12094_v50  ;;  %10246 = vmatmul.mubr.bf16.gmra.mxu1 %v12094_v50 }
 0x19b   : > { %18069 = vst [vmem:[#allocation15_spill] sm:$0xff] %v12411_v51  ;;  %18070 = vst [vmem:[#allocation16_spill] sm:$0xff] %v12413_v6  ;;  %10201 = vmatprep.mubr.bf16.mxu0 %v12108_v12  ;;  %10249 = vmatprep.mubr.bf16.mxu1 %v12108_v12 }
 0x19c   : > { %v752_v63 = vpop.f32.mrf.mxu0  ;;  %v961_v41 = vpop.f32.mrf.mxu1  ;;  %10278 = vmatpush3.bf16.msra.mxu0 %v10750_v4  ;;  %10326 = vmatpush3.bf16.msra.mxu1 %v10751_v35 }
 0x19d   : > { %10279 = vmatprep.subr.bf16.mxu0 %v10752_v55  ;;  %10327 = vmatprep.subr.bf16.mxu1 %v10753_v62 }
 0x19e   : > { %v9912_v0 = vpop.f32.mrf.mxu0  ;;  %v9960_v1 = vpop.f32.mrf.mxu1 }
 0x19f   : > { %v12435_v13 = vpack.c.bf16 %v9912_v0, %v9911_v57  ;;  %v12437_v10 = vpack.c.bf16 %v9960_v1, %v9959_v60 }
 0x1a0   : > { %v755_v20 = vpop.f32.mrf.mxu0  ;;  %v964_v21 = vpop.f32.mrf.mxu1  ;;  %10280 = vmatpush3.bf16.msra.mxu0 %v10752_v55  ;;  %10328 = vmatpush3.bf16.msra.mxu1 %v10753_v62 }
 0x1a1   : > { %18071 = vst [vmem:[#allocation17_spill] sm:$0xff] %v12435_v13  ;;  %18072 = vst [vmem:[#allocation18_spill] sm:$0xff] %v12437_v10  ;;  %v12439_v25 = vpack.c.bf16 %v755_v20, %v752_v63  ;;  %v12441_v24 = vpack.c.bf16 %v964_v21, %v961_v41  ;;  %10361 = vmatprep.subr.bf16.mxu0 %v12428_v2  ;;  %10409 = vmatprep.subr.bf16.mxu1 %v12433_v61 }
 0x1a2   : > { %v9915_v46 = vpop.f32.mrf.mxu0  ;;  %v9963_v8 = vpop.f32.mrf.mxu1  ;;  %10202 = vmatmul.mubr.bf16.gmra.mxu0 %v12126_v29  ;;  %10250 = vmatmul.mubr.bf16.gmra.mxu1 %v12126_v29 }
 0x1a3   : > { %18073 = vst [vmem:[#allocation19_spill] sm:$0xff] %v12439_v25  ;;  %18074 = vst [vmem:[#allocation20_spill] sm:$0xff] %v12441_v24  ;;  %10205 = vmatprep.mubr.bf16.mxu0 %v12136_v44  ;;  %10253 = vmatprep.mubr.bf16.mxu1 %v12136_v44 }
 0x1a4   : > { %v768_v30 = vpop.f32.mrf.mxu0  ;;  %v977_v32 = vpop.f32.mrf.mxu1 }
 0x1a6   : > { %v9916_v28 = vpop.f32.mrf.mxu0  ;;  %v9964_v16 = vpop.f32.mrf.mxu1 }
 0x1a7   : > { %v12449_v17 = vpack.c.bf16 %v9916_v28, %v9915_v46  ;;  %v12451_v26 = vpack.c.bf16 %v9964_v16, %v9963_v8 }
 0x1a8   : > { %v771_v37 = vpop.f32.mrf.mxu0  ;;  %v980_v39 = vpop.f32.mrf.mxu1 }
 0x1a9   : > { %18075 = vst [vmem:[#allocation21_spill] sm:$0xff] %v12449_v17  ;;  %18076 = vst [vmem:[#allocation22_spill] sm:$0xff] %v12451_v26  ;;  %v12453_v42 = vpack.c.bf16 %v771_v37, %v768_v30  ;;  %v12455_v53 = vpack.c.bf16 %v980_v39, %v977_v32 }
 0x1aa   : > { %v9919_v34 = vpop.f32.mrf.mxu0  ;;  %v9967_v45 = vpop.f32.mrf.mxu1  ;;  %10206 = vmatmul.mubr.bf16.gmra.mxu0 %v12144_v5  ;;  %10254 = vmatmul.mubr.bf16.gmra.mxu1 %v12144_v5 }
 0x1ab   : > { %18077 = vst [vmem:[#allocation23_spill] sm:$0xff] %v12453_v42  ;;  %18078 = vst [vmem:[#allocation24_spill] sm:$0xff] %v12455_v53  ;;  %10209 = vmatprep.mubr.bf16.mxu0 %v12152_v40  ;;  %10257 = vmatprep.mubr.bf16.mxu1 %v12152_v40 }
 0x1ac   : > { %v784_v4 = vpop.f32.mrf.mxu0  ;;  %v993_v35 = vpop.f32.mrf.mxu1 }
 0x1ae   : > { %v9920_v18 = vpop.f32.mrf.mxu0  ;;  %v9968_v58 = vpop.f32.mrf.mxu1 }
 0x1af   : > { %v12461_v59 = vpack.c.bf16 %v9920_v18, %v9919_v34  ;;  %v12463_v49 = vpack.c.bf16 %v9968_v58, %v9967_v45 }
 0x1b0   : > { %v787_v55 = vpop.f32.mrf.mxu0  ;;  %v996_v62 = vpop.f32.mrf.mxu1 }
 0x1b1   : > { %18079 = vst [vmem:[#allocation25_spill] sm:$0xff] %v12461_v59  ;;  %18080 = vst [vmem:[#allocation26_spill] sm:$0xff] %v12463_v49  ;;  %v12465_v57 = vpack.c.bf16 %v787_v55, %v784_v4  ;;  %v12467_v60 = vpack.c.bf16 %v996_v62, %v993_v35 }
 0x1b2   : > { %v9923_v63 = vpop.f32.mrf.mxu0  ;;  %v9971_v41 = vpop.f32.mrf.mxu1  ;;  %10210 = vmatmul.mubr.bf16.gmra.mxu0 %v12160_v22  ;;  %10258 = vmatmul.mubr.bf16.gmra.mxu1 %v12160_v22 }
 0x1b3   : > { %18081 = vst [vmem:[#allocation27_spill] sm:$0xff] %v12465_v57  ;;  %18082 = vst [vmem:[#allocation28_spill] sm:$0xff] %v12467_v60  ;;  %10213 = vmatprep.mubr.bf16.mxu0 %v12168_v7  ;;  %10261 = vmatprep.mubr.bf16.mxu1 %v12168_v7 }
 0x1b4   : > { %v800_v0 = vpop.f32.mrf.mxu0  ;;  %v1009_v1 = vpop.f32.mrf.mxu1 }
 0x1b6   : > { %v9924_v20 = vpop.f32.mrf.mxu0  ;;  %v9972_v21 = vpop.f32.mrf.mxu1 }
 0x1b7   : > { %v12473_v46 = vpack.c.bf16 %v9924_v20, %v9923_v63  ;;  %v12475_v8 = vpack.c.bf16 %v9972_v21, %v9971_v41 }
 0x1b8   : > { %v803_v30 = vpop.f32.mrf.mxu0  ;;  %v1012_v32 = vpop.f32.mrf.mxu1 }
 0x1b9   : > { %18083 = vst [vmem:[#allocation29_spill] sm:$0xff] %v12473_v46  ;;  %18084 = vst [vmem:[#allocation30_spill] sm:$0xff] %v12475_v8  ;;  %v12477_v28 = vpack.c.bf16 %v803_v30, %v800_v0  ;;  %v12479_v16 = vpack.c.bf16 %v1012_v32, %v1009_v1  ;;  %v10756_v0 = vld [vmem:[%s17534_s4 + $0xb0] sm:$0xff]  }
 0x1ba   : > { %v9927_v37 = vpop.f32.mrf.mxu0  ;;  %v9975_v39 = vpop.f32.mrf.mxu1  ;;  %10214 = vmatmul.mubr.bf16.gmra.mxu0 %v12175_v47  ;;  %10262 = vmatmul.mubr.bf16.gmra.mxu1 %v12175_v47  ;;  %v10757_v1 = vld [vmem:[%s17534_s4 + $0xf0] sm:$0xff]  }
 0x1bb   : > { %18085 = vst [vmem:[#allocation31_spill] sm:$0xff] %v12477_v28  ;;  %18086 = vst [vmem:[#allocation32_spill] sm:$0xff] %v12479_v16  ;;  %10281 = vmatprep.mubr.bf16.mxu0 %v12006_v56  ;;  %10329 = vmatprep.mubr.bf16.mxu1 %v12006_v56 }
 0x1bc   : > { %v816_v34 = vpop.f32.mrf.mxu0  ;;  %v1025_v45 = vpop.f32.mrf.mxu1 }
 0x1be   : > { %v9928_v4 = vpop.f32.mrf.mxu0  ;;  %v9976_v35 = vpop.f32.mrf.mxu1 }
 0x1bf   : > { %v12485_v18 = vpack.c.bf16 %v9928_v4, %v9927_v37  ;;  %v12487_v58 = vpack.c.bf16 %v9976_v35, %v9975_v39  ;;  %v10758_v37 = vld [vmem:[%s17534_s4 + $0xa8] sm:$0xff]  }
 0x1c0   : > { %v819_v55 = vpop.f32.mrf.mxu0  ;;  %v1028_v62 = vpop.f32.mrf.mxu1  ;;  %v10759_v39 = vld [vmem:[%s17534_s4 + $0xe8] sm:$0xff]  }
 0x1c1   : > { %18087 = vst [vmem:[#allocation33_spill] sm:$0xff] %v12485_v18  ;;  %18088 = vst [vmem:[#allocation34_spill] sm:$0xff] %v12487_v58  ;;  %v12489_v63 = vpack.c.bf16 %v819_v55, %v816_v34  ;;  %v12491_v41 = vpack.c.bf16 %v1028_v62, %v1025_v45  ;;  %v10760_v58 = vld [vmem:[%s17534_s4 + $0xa0] sm:$0xff]  }
 0x1c2   : > { %v9995_v20 = vpop.f32.mrf.mxu0  ;;  %v10043_v21 = vpop.f32.mrf.mxu1  ;;  %10282 = vmatmul.mubr.bf16.vlgmr.msra.gmra.mxu0 %v12003_v54  ;;  %10330 = vmatmul.mubr.bf16.vlgmr.msra.gmra.mxu1 %v12003_v54 }
 0x1c3   : > { %18089 = vst [vmem:[#allocation35_spill] sm:$0xff] %v12489_v63  ;;  %18090 = vst [vmem:[#allocation36_spill] sm:$0xff] %v12491_v41  ;;  %10285 = vmatprep.mubr.bf16.mxu0 %v12022_v27  ;;  %10333 = vmatprep.mubr.bf16.mxu1 %v12022_v27 }
 0x1c4   : > { %v1122_v30 = vpop.f32.mrf.mxu0  ;;  %v1331_v32 = vpop.f32.mrf.mxu1  ;;  %10362 = vmatpush3.bf16.msra.mxu0 %v12428_v2  ;;  %10410 = vmatpush3.bf16.msra.mxu1 %v12433_v61 }
 0x1c5   : > { %10363 = vmatprep.subr.bf16.mxu0 %v10756_v0  ;;  %10411 = vmatprep.subr.bf16.mxu1 %v10757_v1 }
 0x1c6   : > { %v9996_v34 = vpop.f32.mrf.mxu0  ;;  %v10044_v45 = vpop.f32.mrf.mxu1 }
 0x1c7   : > { %v12511_v4 = vpack.c.bf16 %v9996_v34, %v9995_v20  ;;  %v12513_v35 = vpack.c.bf16 %v10044_v45, %v10043_v21  ;;  %v10761_v20 = vld [vmem:[%s17534_s4 + $0xe0] sm:$0xff]  }
 0x1c8   : > { %v1125_v55 = vpop.f32.mrf.mxu0  ;;  %v1334_v2 = vpop.f32.mrf.mxu1  ;;  %10364 = vmatpush3.bf16.msra.mxu0 %v10756_v0  ;;  %10412 = vmatpush3.bf16.msra.mxu1 %v10757_v1 }
 0x1c9   : > { %18091 = vst [vmem:[#allocation37_spill] sm:$0xff] %v12511_v4  ;;  %18092 = vst [vmem:[#allocation38_spill] sm:$0xff] %v12513_v35  ;;  %v12515_v61 = vpack.c.bf16 %v1125_v55, %v1122_v30  ;;  %v12517_v62 = vpack.c.bf16 %v1334_v2, %v1331_v32  ;;  %10365 = vmatprep.subr.bf16.mxu0 %v10758_v37  ;;  %10413 = vmatprep.subr.bf16.mxu1 %v10759_v39  ;;  %v10762_v30 = vld [vmem:[%s17534_s4 + $0x98] sm:$0xff]  }
 0x1ca   : > { %v9999_v21 = vpop.f32.mrf.mxu0  ;;  %v10047_v34 = vpop.f32.mrf.mxu1  ;;  %10286 = vmatmul.mubr.bf16.gmra.mxu0 %v12038_v43  ;;  %10334 = vmatmul.mubr.bf16.gmra.mxu1 %v12038_v43  ;;  %v10763_v32 = vld [vmem:[%s17534_s4 + $0xd8] sm:$0xff]  }
 0x1cb   : > { %18093 = vst [vmem:[#allocation39_spill] sm:$0xff] %v12515_v61  ;;  %18094 = vst [vmem:[#allocation40_spill] sm:$0xff] %v12517_v62  ;;  %10289 = vmatprep.mubr.bf16.mxu0 %v12052_v9  ;;  %10337 = vmatprep.mubr.bf16.mxu1 %v12052_v9  ;;  %v10764_v61 = vld [vmem:[%s17534_s4 + $0x90] sm:$0xff]  }
 0x1cc   : > { %v1138_v0 = vpop.f32.mrf.mxu0  ;;  %v1347_v1 = vpop.f32.mrf.mxu1  ;;  %10366 = vmatpush3.bf16.msra.mxu0 %v10758_v37  ;;  %10414 = vmatpush3.bf16.msra.mxu1 %v10759_v39 }
 0x1cd   : > { %10367 = vmatprep.subr.bf16.mxu0 %v10760_v58  ;;  %10415 = vmatprep.subr.bf16.mxu1 %v10761_v20 }
 0x1ce   : > { %v10000_v45 = vpop.f32.mrf.mxu0  ;;  %v10048_v55 = vpop.f32.mrf.mxu1 }
 0x1cf   : > { %v12535_v2 = vpack.c.bf16 %v10000_v45, %v9999_v21  ;;  %v12537_v35 = vpack.c.bf16 %v10048_v55, %v10047_v34  ;;  %v10765_v21 = vld [vmem:[%s17534_s4 + $0xd0] sm:$0xff]  }
 0x1d0   : > { %v1141_v4 = vpop.f32.mrf.mxu0  ;;  %v1350_v62 = vpop.f32.mrf.mxu1  ;;  %10368 = vmatpush3.bf16.msra.mxu0 %v10760_v58  ;;  %10416 = vmatpush3.bf16.msra.mxu1 %v10761_v20  ;;  %v10767_v20 = vld [vmem:[%s17534_s4 + $0xc8] sm:$0xff]  }
 0x1d1   : > { %18095 = vst [vmem:[#allocation41_spill] sm:$0xff] %v12535_v2  ;;  %18096 = vst [vmem:[#allocation42_spill] sm:$0xff] %v12537_v35  ;;  %v12539_v37 = vpack.c.bf16 %v1141_v4, %v1138_v0  ;;  %v12541_v39 = vpack.c.bf16 %v1350_v62, %v1347_v1  ;;  %10369 = vmatprep.subr.bf16.mxu0 %v10762_v30  ;;  %10417 = vmatprep.subr.bf16.mxu1 %v10763_v32  ;;  %v10766_v62 = vld [vmem:[%s17534_s4 + $0x88] sm:$0xff]  }
 0x1d2   : > { %v10003_v34 = vpop.f32.mrf.mxu0  ;;  %v10051_v45 = vpop.f32.mrf.mxu1  ;;  %10290 = vmatmul.mubr.bf16.gmra.mxu0 %v12066_v15  ;;  %10338 = vmatmul.mubr.bf16.gmra.mxu1 %v12066_v15 }
 0x1d3   : > { %18097 = vst [vmem:[#allocation43_spill] sm:$0xff] %v12539_v37  ;;  %18098 = vst [vmem:[#allocation44_spill] sm:$0xff] %v12541_v39  ;;  %10293 = vmatprep.mubr.bf16.mxu0 %v12080_v38  ;;  %10341 = vmatprep.mubr.bf16.mxu1 %v12080_v38  ;;  %v10768_v37 = vld [vmem:[%s17534_s4 + $0x80] sm:$0xff]  }
 0x1d4   : > { %v1154_v58 = vpop.f32.mrf.mxu0  ;;  %v1363_v4 = vpop.f32.mrf.mxu1  ;;  %10370 = vmatpush3.bf16.msra.mxu0 %v10762_v30  ;;  %10418 = vmatpush3.bf16.msra.mxu1 %v10763_v32 }
 0x1d5   : > { %10371 = vmatprep.subr.bf16.mxu0 %v10764_v61  ;;  %10419 = vmatprep.subr.bf16.mxu1 %v10765_v21 }
 0x1d6   : > { %v10004_v0 = vpop.f32.mrf.mxu0  ;;  %v10052_v1 = vpop.f32.mrf.mxu1 }
 0x1d7   : > { %v12559_v55 = vpack.c.bf16 %v10004_v0, %v10003_v34  ;;  %v12561_v35 = vpack.c.bf16 %v10052_v1, %v10051_v45  ;;  %v10769_v34 = vld [vmem:[%s17534_s4 + $0xc0] sm:$0xff]  }
 0x1d8   : > { %v1157_v2 = vpop.f32.mrf.mxu0  ;;  %v1366_v39 = vpop.f32.mrf.mxu1  ;;  %10372 = vmatpush3.bf16.msra.mxu0 %v10764_v61  ;;  %10420 = vmatpush3.bf16.msra.mxu1 %v10765_v21 }
 0x1d9   : > { %18099 = vst [vmem:[#allocation45_spill] sm:$0xff] %v12559_v55  ;;  %18100 = vst [vmem:[#allocation46_spill] sm:$0xff] %v12561_v35  ;;  %v12563_v30 = vpack.c.bf16 %v1157_v2, %v1154_v58  ;;  %v12565_v32 = vpack.c.bf16 %v1366_v39, %v1363_v4  ;;  %10373 = vmatprep.subr.bf16.mxu0 %v10766_v62  ;;  %10421 = vmatprep.subr.bf16.mxu1 %v10767_v20 }
 0x1da   : > { %v10007_v45 = vpop.f32.mrf.mxu0  ;;  %v10055_v0 = vpop.f32.mrf.mxu1  ;;  %10294 = vmatmul.mubr.bf16.gmra.mxu0 %v12094_v50  ;;  %10342 = vmatmul.mubr.bf16.gmra.mxu1 %v12094_v50 }
 0x1db   : > { %18101 = vst [vmem:[#allocation47_spill] sm:$0xff] %v12563_v30  ;;  %18102 = vst [vmem:[#allocation48_spill] sm:$0xff] %v12565_v32  ;;  %10297 = vmatprep.mubr.bf16.mxu0 %v12108_v12  ;;  %10345 = vmatprep.mubr.bf16.mxu1 %v12108_v12 }
 0x1dc   : > { %v1170_v61 = vpop.f32.mrf.mxu0  ;;  %v1379_v2 = vpop.f32.mrf.mxu1  ;;  %10374 = vmatpush3.bf16.msra.mxu0 %v10766_v62  ;;  %10422 = vmatpush3.bf16.msra.mxu1 %v10767_v20 }
 0x1dd   : > { %10375 = vmatprep.subr.bf16.mxu0 %v10768_v37  ;;  %10423 = vmatprep.subr.bf16.mxu1 %v10769_v34 }
 0x1de   : > { %v10008_v39 = vpop.f32.mrf.mxu0  ;;  %v10056_v21 = vpop.f32.mrf.mxu1 }
 0x1df   : > { %v12577_v58 = vpack.c.bf16 %v10008_v39, %v10007_v45  ;;  %v12579_v4 = vpack.c.bf16 %v10056_v21, %v10055_v0 }
 0x1e0   : > { %v1173_v1 = vpop.f32.mrf.mxu0  ;;  %v1382_v35 = vpop.f32.mrf.mxu1  ;;  %10376 = vmatpush3.bf16.msra.mxu0 %v10768_v37  ;;  %10424 = vmatpush3.bf16.msra.mxu1 %v10769_v34 }
 0x1e1   : > { %18103 = vst [vmem:[#allocation49_spill] sm:$0xff] %v12577_v58  ;;  %18104 = vst [vmem:[#allocation50_spill] sm:$0xff] %v12579_v4  ;;  %v12581_v55 = vpack.c.bf16 %v1173_v1, %v1170_v61  ;;  %v12583_v32 = vpack.c.bf16 %v1382_v35, %v1379_v2 }
 0x1e2   : > { %v10011_v30 = vpop.f32.mrf.mxu0  ;;  %v10059_v18 = vpop.f32.mrf.mxu1  ;;  %10298 = vmatmul.mubr.bf16.gmra.mxu0 %v12126_v29  ;;  %10346 = vmatmul.mubr.bf16.gmra.mxu1 %v12126_v29 }
 0x1e3   : > { %18105 = vst [vmem:[#allocation51_spill] sm:$0xff] %v12581_v55  ;;  %18106 = vst [vmem:[#allocation52_spill] sm:$0xff] %v12583_v32  ;;  %10301 = vmatprep.mubr.bf16.mxu0 %v12136_v44  ;;  %10349 = vmatprep.mubr.bf16.mxu1 %v12136_v44 }
 0x1e4   : > { %v1186_v62 = vpop.f32.mrf.mxu0  ;;  %v1395_v20 = vpop.f32.mrf.mxu1 }
 0x1e6   : > { %v10012_v45 = vpop.f32.mrf.mxu0  ;;  %v10060_v0 = vpop.f32.mrf.mxu1 }
 0x1e7   : > { %v12589_v37 = vpack.c.bf16 %v10012_v45, %v10011_v30  ;;  %v12591_v34 = vpack.c.bf16 %v10060_v0, %v10059_v18 }
 0x1e8   : > { %v1189_v35 = vpop.f32.mrf.mxu0  ;;  %v1398_v61 = vpop.f32.mrf.mxu1 }
 0x1e9   : > { %18107 = vst [vmem:[#allocation53_spill] sm:$0xff] %v12589_v37  ;;  %18108 = vst [vmem:[#allocation54_spill] sm:$0xff] %v12591_v34  ;;  %v12593_v2 = vpack.c.bf16 %v1189_v35, %v1186_v62  ;;  %v12595_v39 = vpack.c.bf16 %v1398_v61, %v1395_v20 }
 0x1ea   : > { %v10015_v21 = vpop.f32.mrf.mxu0  ;;  %v10063_v1 = vpop.f32.mrf.mxu1  ;;  %10302 = vmatmul.mubr.bf16.gmra.mxu0 %v12144_v5  ;;  %10350 = vmatmul.mubr.bf16.gmra.mxu1 %v12144_v5 }
 0x1eb   : > { %18109 = vst [vmem:[#allocation55_spill] sm:$0xff] %v12593_v2  ;;  %18110 = vst [vmem:[#allocation56_spill] sm:$0xff] %v12595_v39  ;;  %10305 = vmatprep.mubr.bf16.mxu0 %v12152_v40  ;;  %10353 = vmatprep.mubr.bf16.mxu1 %v12152_v40 }
 0x1ec   : > { %v1202_v30 = vpop.f32.mrf.mxu0  ;;  %v1411_v45 = vpop.f32.mrf.mxu1 }
 0x1ee   : > { %v10016_v18 = vpop.f32.mrf.mxu0  ;;  %v10064_v0 = vpop.f32.mrf.mxu1 }
 0x1ef   : > { %v12601_v34 = vpack.c.bf16 %v10016_v18, %v10015_v21  ;;  %v12603_v62 = vpack.c.bf16 %v10064_v0, %v10063_v1 }
 0x1f0   : > { %v1205_v20 = vpop.f32.mrf.mxu0  ;;  %v1414_v35 = vpop.f32.mrf.mxu1 }
 0x1f1   : > { %18111 = vst [vmem:[#allocation57_spill] sm:$0xff] %v12601_v34  ;;  %18112 = vst [vmem:[#allocation58_spill] sm:$0xff] %v12603_v62  ;;  %v12605_v61 = vpack.c.bf16 %v1205_v20, %v1202_v30  ;;  %v12607_v37 = vpack.c.bf16 %v1414_v35, %v1411_v45 }
 0x1f2   : > { %v10019_v39 = vpop.f32.mrf.mxu0  ;;  %v10067_v2 = vpop.f32.mrf.mxu1  ;;  %10306 = vmatmul.mubr.bf16.gmra.mxu0 %v12160_v22  ;;  %10354 = vmatmul.mubr.bf16.gmra.mxu1 %v12160_v22 }
 0x1f3   : > { %18113 = vst [vmem:[#allocation59_spill] sm:$0xff] %v12605_v61  ;;  %18114 = vst [vmem:[#allocation60_spill] sm:$0xff] %v12607_v37  ;;  %10309 = vmatprep.mubr.bf16.mxu0 %v12168_v7  ;;  %10357 = vmatprep.mubr.bf16.mxu1 %v12168_v7 }
 0x1f4   : > { %v1218_v21 = vpop.f32.mrf.mxu0  ;;  %v1427_v18 = vpop.f32.mrf.mxu1 }
 0x1f6   : > { %v10020_v1 = vpop.f32.mrf.mxu0  ;;  %v10068_v0 = vpop.f32.mrf.mxu1 }
 0x1f7   : > { %v12613_v62 = vpack.c.bf16 %v10020_v1, %v10019_v39  ;;  %v12615_v30 = vpack.c.bf16 %v10068_v0, %v10067_v2 }
 0x1f8   : > { %v1221_v45 = vpop.f32.mrf.mxu0  ;;  %v1430_v20 = vpop.f32.mrf.mxu1 }
 0x1f9   : > { %18115 = vst [vmem:[#allocation61_spill] sm:$0xff] %v12613_v62  ;;  %18116 = vst [vmem:[#allocation62_spill] sm:$0xff] %v12615_v30  ;;  %v12617_v35 = vpack.c.bf16 %v1221_v45, %v1218_v21  ;;  %v12619_v34 = vpack.c.bf16 %v1430_v20, %v1427_v18 }
 0x1fa   : > { %v10023_v37 = vpop.f32.mrf.mxu0  ;;  %v10071_v61 = vpop.f32.mrf.mxu1  ;;  %10310 = vmatmul.mubr.bf16.gmra.mxu0 %v12175_v47  ;;  %10358 = vmatmul.mubr.bf16.gmra.mxu1 %v12175_v47 }
 0x1fb   : > { %18117 = vst [vmem:[#allocation63_spill] sm:$0xff] %v12617_v35  ;;  %18118 = vst [vmem:[#allocation64_spill] sm:$0xff] %v12619_v34  ;;  %10377 = vmatprep.mubr.bf16.mxu0 %v12006_v56  ;;  %10425 = vmatprep.mubr.bf16.mxu1 %v12006_v56 }
 0x1fc   : > { %v1234_v39 = vpop.f32.mrf.mxu0  ;;  %v1443_v1 = vpop.f32.mrf.mxu1 }
 0x1fe   : > { %v10024_v2 = vpop.f32.mrf.mxu0  ;;  %v10072_v0 = vpop.f32.mrf.mxu1 }
 0x1ff   : > { %v12625_v30 = vpack.c.bf16 %v10024_v2, %v10023_v37  ;;  %v12627_v21 = vpack.c.bf16 %v10072_v0, %v10071_v61 }
 0x200   : > { %v1237_v18 = vpop.f32.mrf.mxu0  ;;  %v1446_v45 = vpop.f32.mrf.mxu1 }
 0x201   : > { %18119 = vst [vmem:[#allocation65_spill] sm:$0xff] %v12625_v30  ;;  %18120 = vst [vmem:[#allocation66_spill] sm:$0xff] %v12627_v21  ;;  %v12629_v20 = vpack.c.bf16 %v1237_v18, %v1234_v39  ;;  %v12631_v62 = vpack.c.bf16 %v1446_v45, %v1443_v1 }
 0x202   : > { %v12633_v34 = vpop.f32.mrf.mxu0  ;;  %v12635_v35 = vpop.f32.mrf.mxu1  ;;  %10378 = vmatmul.mubr.bf16.vlgmr.msra.gmra.mxu0 %v12003_v54  ;;  %10426 = vmatmul.mubr.bf16.vlgmr.msra.gmra.mxu1 %v12003_v54 }
 0x203   : > { %18121 = vst [vmem:[#allocation67_spill] sm:$0xff] %v12629_v20  ;;  %18122 = vst [vmem:[#allocation68_spill] sm:$0xff] %v12631_v62  ;;  %10381 = vmatprep.mubr.bf16.mxu0 %v12022_v27  ;;  %10429 = vmatprep.mubr.bf16.mxu1 %v12022_v27 }
 0x204   : > { %18123 = vst [vmem:[#allocation69_spill] sm:$0xff] %v12635_v35  ;;  %v12641_v56 = vpop.f32.mrf.mxu0  ;;  %v12643_v37 = vpop.f32.mrf.mxu1 }
 0x205   : > { %18124 = vst [vmem:[#allocation70_spill] sm:$0xff] %v12641_v56  ;;  %18125 = vst [vmem:[#allocation71_spill] sm:$0xff] %v12643_v37 }
 0x206   : > { %v12645_v61 = vpop.f32.mrf.mxu0  ;;  %v12647_v39 = vpop.f32.mrf.mxu1 }
 0x208   : > { %v12653_v0 = vpop.f32.mrf.mxu0  ;;  %v12655_v54 = vpop.f32.mrf.mxu1 }
 0x209   : > { %18126 = vst [vmem:[#allocation72_spill] sm:$0xff] %v12653_v0  ;;  %18127 = vst [vmem:[#allocation73_spill] sm:$0xff] %v12655_v54 }
 0x20a   : > { %v12661_v45 = vpop.f32.mrf.mxu0  ;;  %v12663_v21 = vpop.f32.mrf.mxu1  ;;  %10382 = vmatmul.mubr.bf16.gmra.mxu0 %v12038_v43  ;;  %10430 = vmatmul.mubr.bf16.gmra.mxu1 %v12038_v43 }
 0x20b   : > { %10385 = vmatprep.mubr.bf16.mxu0 %v12052_v9  ;;  %10433 = vmatprep.mubr.bf16.mxu1 %v12052_v9 }
 0x20c   : > { %v12669_v2 = vpop.f32.mrf.mxu0  ;;  %v12671_v1 = vpop.f32.mrf.mxu1 }
 0x20e   : > { %v12673_v27 = vpop.f32.mrf.mxu0  ;;  %v12675_v30 = vpop.f32.mrf.mxu1 }
 0x210   : > { %v12681_v20 = vpop.f32.mrf.mxu0  ;;  %v12683_v43 = vpop.f32.mrf.mxu1 }
 0x212   : > { %v12689_v58 = vpop.f32.mrf.mxu0  ;;  %v12691_v32 = vpop.f32.mrf.mxu1  ;;  %10386 = vmatmul.mubr.bf16.gmra.mxu0 %v12066_v15  ;;  %10434 = vmatmul.mubr.bf16.gmra.mxu1 %v12066_v15 }
 0x213   : > { %10389 = vmatprep.mubr.bf16.mxu0 %v12080_v38  ;;  %10437 = vmatprep.mubr.bf16.mxu1 %v12080_v38 }
 0x214   : > { %v12697_v62 = vpop.f32.mrf.mxu0  ;;  %v12699_v18 = vpop.f32.mrf.mxu1 }
 0x216   : > { %v12701_v9 = vpop.f32.mrf.mxu0  ;;  %v12703_v55 = vpop.f32.mrf.mxu1 }
 0x218   : > { %v12705_v4 = vpop.f32.mrf.mxu0  ;;  %v12707_v41 = vpop.f32.mrf.mxu1 }
 0x21a   : > { %v12709_v63 = vpop.f32.mrf.mxu0  ;;  %v12711_v8 = vpop.f32.mrf.mxu1  ;;  %10390 = vmatmul.mubr.bf16.gmra.mxu0 %v12094_v50  ;;  %10438 = vmatmul.mubr.bf16.gmra.mxu1 %v12094_v50 }
 0x21b   : > { %10393 = vmatprep.mubr.bf16.mxu0 %v12108_v12  ;;  %10441 = vmatprep.mubr.bf16.mxu1 %v12108_v12 }
 0x21c   : > { %v12717_v15 = vpop.f32.mrf.mxu0  ;;  %v12719_v38 = vpop.f32.mrf.mxu1 }
 0x21e   : > { %v10104_v46 = vpop.f32.mrf.mxu0  ;;  %v10152_v16 = vpop.f32.mrf.mxu1 }
 0x21f   : > { %v3329_v3 = vpack.c.bf16 %v10104_v46, %v12709_v63  ;;  %v3345_v37 = vpack.c.bf16 %v10152_v16, %v12711_v8 }
 0x220   : > { %v12721_v28 = vpop.f32.mrf.mxu0  ;;  %v12723_v49 = vpop.f32.mrf.mxu1 }
 0x222   : > { %v12725_v59 = vpop.f32.mrf.mxu0  ;;  %v12727_v60 = vpop.f32.mrf.mxu1  ;;  %10394 = vmatmul.mubr.bf16.gmra.mxu0 %v12126_v29  ;;  %10442 = vmatmul.mubr.bf16.gmra.mxu1 %v12126_v29 }
 0x223   : > { %10397 = vmatprep.mubr.bf16.mxu0 %v12136_v44  ;;  %10445 = vmatprep.mubr.bf16.mxu1 %v12136_v44 }
 0x224   : > { %v12733_v50 = vpop.f32.mrf.mxu0  ;;  %v12735_v12 = vpop.f32.mrf.mxu1 }
 0x225   : > { %18128 = vst [vmem:[#allocation74_spill] sm:$0xff] %v12733_v50  ;;  %18129 = vst [vmem:[#allocation75_spill] sm:$0xff] %v12735_v12  ;;  %v3746_v50 = vsel %vm3386_vm0, %v3345_v37, 0 }
 0x226   : > { %v12737_v57 = vpop.f32.mrf.mxu0  ;;  %v12739_v26 = vpop.f32.mrf.mxu1 }
 0x228   : > { %v12745_v42 = vpop.f32.mrf.mxu0  ;;  %v12747_v29 = vpop.f32.mrf.mxu1 }
 0x229   : > { %18130 = vst [vmem:[#allocation76_spill] sm:$0xff] %v12745_v42  ;;  %18131 = vst [vmem:[#allocation77_spill] sm:$0xff] %v12747_v29 }
 0x22a   : > { %v12749_v10 = vpop.f32.mrf.mxu0  ;;  %v12751_v44 = vpop.f32.mrf.mxu1  ;;  %10398 = vmatmul.mubr.bf16.gmra.mxu0 %v12144_v5  ;;  %10446 = vmatmul.mubr.bf16.gmra.mxu1 %v12144_v5 }
 0x22b   : > { %10401 = vmatprep.mubr.bf16.mxu0 %v12152_v40  ;;  %10449 = vmatprep.mubr.bf16.mxu1 %v12152_v40 }
 0x22c   : > { %v12757_v17 = vpop.f32.mrf.mxu0  ;;  %v12759_v13 = vpop.f32.mrf.mxu1  ;;  %v18152_v63 = vld [vmem:[#allocation75_spill] sm:$0xff] }
 0x22e   : > { %v12761_v53 = vpop.f32.mrf.mxu0  ;;  %v12763_v24 = vpop.f32.mrf.mxu1 }
 0x230   : > { %v12765_v25 = vpop.f32.mrf.mxu0  ;;  %v12767_v19 = vpop.f32.mrf.mxu1 }
 0x232   : > { %v10115_v48 = vpop.f32.mrf.mxu0  ;;  %v10163_v6 = vpop.f32.mrf.mxu1  ;;  %10402 = vmatmul.mubr.bf16.gmra.mxu0 %v12160_v22  ;;  %10450 = vmatmul.mubr.bf16.gmra.mxu1 %v12160_v22 }
 0x233   : > { %10405 = vmatprep.mubr.bf16.mxu0 %v12168_v7  ;;  %10453 = vmatprep.mubr.bf16.mxu1 %v12168_v7 }
 0x234   : > { %v12773_v5 = vpop.f32.mrf.mxu0  ;;  %v12775_v40 = vpop.f32.mrf.mxu1 }
 0x236   : > { %v10116_v51 = vpop.f32.mrf.mxu0  ;;  %v10164_v36 = vpop.f32.mrf.mxu1 }
 0x237   : > { %v3335_v37 = vpack.c.bf16 %v10116_v51, %v10115_v48  ;;  %v3343_v48 = vpack.c.bf16 %v12703_v55, %v12691_v32 }
 0x238   : > { %v12777_v33 = vpop.f32.mrf.mxu0  ;;  %v12779_v52 = vpop.f32.mrf.mxu1 }
 0x239   : > { %v3334_v55 = vpack.c.bf16 %v12777_v33, %v12773_v5  ;;  %v3350_v32 = vpack.c.bf16 %v12779_v52, %v12775_v40  ;;  %v3326_v33 = vpack.c.bf16 %v12705_v4, %v12697_v62  ;;  %v3342_v52 = vpack.c.bf16 %v12707_v41, %v12699_v18 }
 0x23a   : > { %v10119_v31 = vpop.f32.mrf.mxu0  ;;  %v10167_v23 = vpop.f32.mrf.mxu1  ;;  %10406 = vmatmul.mubr.bf16.gmra.mxu0 %v12175_v47  ;;  %10454 = vmatmul.mubr.bf16.gmra.mxu1 %v12175_v47  ;;  %v3457_v47 = vsel %vm3386_vm0, %v3329_v3, 0 }
 0x23b   : > { %9185 = vmatprep.mubr.msk.bf16.mxu0 %vm3386_vm0, %v12363_v14  ;;  %9233 = vmatprep.mubr.msk.bf16.mxu1 %vm3386_vm0, %v12365_v11  ;;  %v3737_v4 = vsel %vm3386_vm0, %v3342_v52, 0  ;;  %v3332_v52 = vpack.c.bf16 %v12765_v25, %v12757_v17 }
 0x23c   : > { %v1716_v22 = vpop.f32.mrf.mxu0  ;;  %v1925_v7 = vpop.f32.mrf.mxu1 }
 0x23e   : > { %v10120_v54 = vpop.f32.mrf.mxu0  ;;  %v10168_v56 = vpop.f32.mrf.mxu1 }
 0x23f   : > { %v3337_v0 = vpack.c.bf16 %v10120_v54, %v10119_v31  ;;  %v3353_v29 = vpack.c.bf16 %v10168_v56, %v10167_v23  ;;  %v3328_v31 = vpack.c.bf16 %v12721_v28, %v12717_v15 }
 0x240   : > { %v1719_v12 = vpop.f32.mrf.mxu0  ;;  %v1928_v42 = vpop.f32.mrf.mxu1 }
 0x241   : > { %v3336_v14 = vpack.c.bf16 %v1719_v12, %v1716_v22  ;;  %v3352_v35 = vpack.c.bf16 %v1928_v42, %v1925_v7  ;;  %10601 = vmatprep.subr.msk.bf16.mxu0 %vm3386_vm0, %v3337_v0  ;;  %10609 = vmatprep.subr.msk.bf16.mxu1 %vm3386_vm0, %v3353_v29  ;;  %v3344_v42 = vpack.c.bf16 %v12723_v49, %v12719_v38  ;;  %v3454_v28 = vsel %vm3386_vm0, %v3328_v31, 0 }
 0x242   : > { %v12793_v11 = vpop.f32.mrf.mxu0  ;;  %v12795_v46 = vpop.f32.mrf.mxu1  ;;  %9170 = vmatpush3.bf16.xpose.msra.mxu0 %v3457_v47  ;;  %9218 = vmatpush3.bf16.xpose.msra.mxu1 %v3746_v50  ;;  %v3351_v0 = vpack.c.bf16 %v10164_v36, %v10163_v6  ;;  %v3327_v36 = vpack.c.bf16 %v12701_v9, %v12689_v58  ;;  %v3740_v58 = vsel %vm3386_vm0, %v3343_v48, 0  ;;  %v3448_v48 = vsel %vm3386_vm0, %v3326_v33, 0 }
 0x243   : > { %18132 = vst [vmem:[#allocation78_spill] sm:$0xff] %v12795_v46  ;;  %10602 = vmatprep.subr.msk.bf16.mxu0 %vm3386_vm0, %v3336_v14  ;;  %10610 = vmatprep.subr.msk.bf16.mxu1 %vm3386_vm0, %v3352_v35  ;;  %v3743_v49 = vsel %vm3386_vm0, %v3344_v42, 0  ;;  %v18160_v46 = vld [vmem:[#allocation7_spill] sm:$0xff] }
 0x244   : > { %v12799_v23 = vpop.f32.mrf.mxu0  ;;  %v12801_v3 = vpop.f32.mrf.mxu1  ;;  %v3451_v47 = vsel %vm3386_vm0, %v3327_v36, 0  ;;  %v3349_v36 = vpack.c.bf16 %v12763_v24, %v12751_v44 }
 0x245   : > { %18133 = vst [vmem:[#allocation79_spill] sm:$0xff] %v12799_v23  ;;  %18134 = vst [vmem:[#allocation80_spill] sm:$0xff] %v12801_v3 }
 0x246   : > { %v12807_v8 = vpop.f32.mrf.mxu0  ;;  %v12809_v16 = vpop.f32.mrf.mxu1 }
 0x248   : > { %v12815_v35 = vpop.f32.mrf.mxu0  ;;  %v12817_v56 = vpop.f32.mrf.mxu1 }
 0x249   : > { %18135 = vst [vmem:[#allocation81_spill] sm:$0xff] %v12815_v35  ;;  %18136 = vst [vmem:[#allocation82_spill] sm:$0xff] %v12817_v56 }
 0x24a   : > { %v12821_v54 = vpop.f32.mrf.mxu0  ;;  %v12823_v15 = vpop.f32.mrf.mxu1  ;;  %9172 = vmatpush3.bf16.xpose.msra.mxu0 %v3454_v28  ;;  %9220 = vmatpush3.bf16.xpose.msra.mxu1 %v3743_v49  ;;  %v3333_v49 = vpack.c.bf16 %v12761_v53, %v12749_v10 }
 0x24b   : > { %10603 = vmatprep.subr.msk.bf16.mxu0 %vm3386_vm0, %v3335_v37  ;;  %10611 = vmatprep.subr.msk.bf16.mxu1 %vm3386_vm0, %v3351_v0 }
 0x24c   : > { %v12827_v38 = vpop.f32.mrf.mxu0  ;;  %v12829_v50 = vpop.f32.mrf.mxu1 }
 0x24e   : > { %v12835_v51 = vpop.f32.mrf.mxu0  ;;  %v12837_v6 = vpop.f32.mrf.mxu1 }
 0x250   : > { %v12843_v22 = vpop.f32.mrf.mxu0  ;;  %v12845_v7 = vpop.f32.mrf.mxu1 }
 0x252   : > { %v12853_v9 = vpop.f32.mrf.mxu0  ;;  %v12855_v31 = vpop.f32.mrf.mxu1  ;;  %9174 = vmatpush3.bf16.xpose.msra.mxu0 %v3451_v47  ;;  %9222 = vmatpush3.bf16.xpose.msra.mxu1 %v3740_v58  ;;  %v18137_v58 = vpack.c.bf16 %v12673_v27, %v12661_v45 }
 0x253   : > { %10604 = vmatprep.subr.msk.bf16.mxu0 %vm3386_vm0, %v3334_v55  ;;  %10612 = vmatprep.subr.msk.bf16.mxu1 %vm3386_vm0, %v3350_v32  ;;  %v18138_v32 = vpack.c.bf16 %v12675_v30, %v12663_v21 }
 0x254   : > { %v12859_v42 = vpop.f32.mrf.mxu0  ;;  %v12861_v37 = vpop.f32.mrf.mxu1  ;;  %v3445_v55 = vsel %vm3386_vm0, %v18137_v58, 0 }
 0x255   : > { %v3734_v33 = vsel %vm3386_vm0, %v18138_v32, 0 }
 0x256   : > { %v12867_v5 = vpop.f32.mrf.mxu0  ;;  %v12869_v40 = vpop.f32.mrf.mxu1 }
 0x258   : > { %v12871_v0 = vpop.f32.mrf.mxu0  ;;  %v12873_v28 = vpop.f32.mrf.mxu1 }
 0x25a   : > { %v12881_v62 = vpop.f32.mrf.mxu0  ;;  %v12883_v41 = vpop.f32.mrf.mxu1  ;;  %9176 = vmatpush3.bf16.xpose.msra.mxu0 %v3448_v48  ;;  %9224 = vmatpush3.bf16.xpose.msra.mxu1 %v3737_v4  ;;  %v18143_v4 = vpack.c.bf16 %v12681_v20, %v12669_v2  ;;  %v18146_v20 = vpack.c.bf16 %v12739_v26, %v12727_v60  ;;  %v18148_v26 = vld [vmem:[#allocation69_spill] sm:$0xff] }
 0x25b   : > { %10605 = vmatprep.subr.msk.bf16.mxu0 %vm3386_vm0, %v3333_v49  ;;  %10613 = vmatprep.subr.msk.bf16.mxu1 %vm3386_vm0, %v3349_v36  ;;  %v3348_v49 = vpack.c.bf16 %v12767_v19, %v12759_v13  ;;  %v18149_v60 = vpack.c.bf16 %v12647_v39, %v18148_v26  ;;  %v18153_v13 = vld [vmem:[#allocation77_spill] sm:$0xff] }
 0x25c   : > { %v12887_v18 = vpop.f32.mrf.mxu0  ;;  %v12889_v10 = vpop.f32.mrf.mxu1  ;;  %v3442_v58 = vsel %vm3386_vm0, %v18143_v4, 0  ;;  %v3346_v19 = vpack.c.bf16 %v18153_v13, %v18152_v63  ;;  %v18154_v63 = vld [vmem:[#allocation72_spill] sm:$0xff]  ;;  %v18155_v13 = vld [vmem:[#allocation70_spill] sm:$0xff] }
 0x25e   : > { %v12891_v53 = vpop.f32.mrf.mxu0  ;;  %v12893_v24 = vpop.f32.mrf.mxu1 }
 0x260   : > { %v12895_v44 = vpop.f32.mrf.mxu0  ;;  %v12897_v47 = vpop.f32.mrf.mxu1 }
 0x262   : > { %v12911_v36 = vpop.f32.mrf.mxu0  ;;  %v12913_v48 = vpop.f32.mrf.mxu1  ;;  %9178 = vmatpush3.bf16.xpose.msra.mxu0 %v3445_v55  ;;  %9226 = vmatpush3.bf16.xpose.msra.mxu1 %v3734_v33  ;;  %v18144_v55 = vpack.c.bf16 %v12683_v43, %v12671_v1 }
 0x263   : > { %10606 = vmatprep.subr.msk.bf16.mxu0 %vm3386_vm0, %v3332_v52  ;;  %10614 = vmatprep.subr.msk.bf16.mxu1 %vm3386_vm0, %v3348_v49  ;;  %v18145_v49 = vpack.c.bf16 %v12737_v57, %v12725_v59  ;;  %v18147_v59 = vpack.c.bf16 %v12645_v61, %v12633_v34 }
 0x264   : > { %v12917_v27 = vpop.f32.mrf.mxu0  ;;  %v12919_v30 = vpop.f32.mrf.mxu1  ;;  %v3731_v32 = vsel %vm3386_vm0, %v18144_v55, 0 }
 0x265   : > { %18139 = vst [vmem:[#allocation83_spill] sm:$0xff] %v12917_v27  ;;  %18140 = vst [vmem:[#allocation84_spill] sm:$0xff] %v12919_v30  ;;  %v3439_v57 = vsel %vm3386_vm0, %v18147_v59, 0 }
 0x266   : > { %v12921_v21 = vpop.f32.mrf.mxu0  ;;  %v12923_v25 = vpop.f32.mrf.mxu1 }
 0x268   : > { %v12929_v17 = vpop.f32.mrf.mxu0  ;;  %v12931_v45 = vpop.f32.mrf.mxu1 }
 0x269   : > { %18141 = vst [vmem:[#allocation85_spill] sm:$0xff] %v12929_v17  ;;  %18142 = vst [vmem:[#allocation86_spill] sm:$0xff] %v12931_v45  ;;  %v3361_v17 = vpack.c.bf16 %v12891_v53, %v12881_v62 }
 0x26a   : > { %v12941_v33 = vpop.f32.mrf.mxu0  ;;  %v12943_v52 = vpop.f32.mrf.mxu1  ;;  %9180 = vmatpush3.bf16.xpose.msra.mxu0 %v3442_v58  ;;  %9228 = vmatpush3.bf16.xpose.msra.mxu1 %v3731_v32  ;;  %v3728_v32 = vsel %vm3386_vm0, %v18149_v60, 0 }
 0x26b   : > { %10607 = vmatprep.subr.msk.bf16.mxu0 %vm3386_vm0, %v18145_v49  ;;  %10615 = vmatprep.subr.msk.bf16.mxu1 %vm3386_vm0, %v18146_v20  ;;  %v18150_v49 = vld [vmem:[#allocation74_spill] sm:$0xff]  ;;  %v18151_v20 = vld [vmem:[#allocation76_spill] sm:$0xff] }
 0x26c   : > { %v12953_v2 = vpop.f32.mrf.mxu0  ;;  %v12955_v1 = vpop.f32.mrf.mxu1  ;;  %v3330_v14 = vpack.c.bf16 %v18151_v20, %v18150_v49  ;;  %v18156_v49 = vpack.c.bf16 %v18154_v63, %v18155_v13  ;;  %v18158_v20 = vld [vmem:[#allocation71_spill] sm:$0xff]  ;;  %v3377_v63 = vpack.c.bf16 %v12893_v24, %v12883_v41 }
 0x26e   : > { %v12957_v43 = vpop.f32.mrf.mxu0  ;;  %v12959_v4 = vpop.f32.mrf.mxu1 }
 0x270   : > { %v12961_v58 = vpop.f32.mrf.mxu0  ;;  %v12963_v55 = vpop.f32.mrf.mxu1 }
 0x272   : > { %v12977_v29 = vpop.f32.mrf.mxu0  ;;  %v12979_v12 = vpop.f32.mrf.mxu1  ;;  %9182 = vmatpush3.bf16.xpose.msra.mxu0 %v3439_v57  ;;  %9230 = vmatpush3.bf16.xpose.msra.mxu1 %v3728_v32  ;;  %v3436_v57 = vsel %vm3386_vm0, %v18156_v49, 0  ;;  %v18157_v32 = vld [vmem:[#allocation73_spill] sm:$0xff] }
 0x273   : > { %10608 = vmatprep.subr.msk.bf16.mxu0 %vm3386_vm0, %v3330_v14  ;;  %10616 = vmatprep.subr.msk.bf16.mxu1 %vm3386_vm0, %v3346_v19  ;;  %v18159_v14 = vpack.c.bf16 %v18157_v32, %v18158_v20 }
 0x274   : > { %v12983_v34 = vpop.f32.mrf.mxu0  ;;  %v12985_v61 = vpop.f32.mrf.mxu1 }
 0x275   : > { %v3725_v19 = vsel %vm3386_vm0, %v18159_v14, 0 }
 0x276   : > { %v10212_v39 = vpop.f32.mrf.mxu0  ;;  %v10260_v59 = vpop.f32.mrf.mxu1 }
 0x278   : > { %v12987_v26 = vpop.f32.mrf.mxu0  ;;  %v12989_v60 = vpop.f32.mrf.mxu1 }
 0x27a   : > { %v10215_v56 = vpop.f32.mrf.mxu0  ;;  %v10263_v3 = vpop.f32.mrf.mxu1  ;;  %9184 = vmatpush3.bf16.xpose.msra.mxu0 %v3436_v57  ;;  %9232 = vmatpush3.bf16.xpose.msra.mxu1 %v3725_v19  ;;  %v18161_v57 = vld [vmem:[#allocation8_spill] sm:$0xff] }
 0x27c   : > { %v2134_v35 = vpop.f32.mrf.mxu0  ;;  %v2343_v23 = vpop.f32.mrf.mxu1 }
 0x27e   : > { %v10216_v45 = vpop.f32.mrf.mxu0  ;;  %v10264_v30 = vpop.f32.mrf.mxu1 }
 0x27f   : > { %v3369_v13 = vpack.c.bf16 %v10216_v45, %v10215_v56  ;;  %v3385_v49 = vpack.c.bf16 %v10264_v30, %v10263_v3  ;;  %v4035_v3 = vsel %vm3386_vm0, %v3361_v17, 0  ;;  %v4324_v56 = vsel %vm3386_vm0, %v3377_v63, 0 }
 0x280   : > { %v2137_v27 = vpop.f32.mrf.mxu0  ;;  %v2346_v32 = vpop.f32.mrf.mxu1  ;;  %v3360_v30 = vpack.c.bf16 %v12895_v44, %v12887_v18  ;;  %v3376_v17 = vpack.c.bf16 %v12897_v47, %v12889_v10  ;;  %v18172_v10 = vld [vmem:[#allocation11_spill] sm:$0xff]  ;;  %v18173_v47 = vld [vmem:[#allocation12_spill] sm:$0xff] }
 0x281   : > { %v3368_v20 = vpack.c.bf16 %v2137_v27, %v2134_v35  ;;  %v3384_v14 = vpack.c.bf16 %v2346_v32, %v2343_v23  ;;  %9186 = vmatmul.mubr.msk.bf16.vlgmr.msra.gmra.mxu0 %vm3386_vm0, %v18160_v46  ;;  %9234 = vmatmul.mubr.msk.bf16.vlgmr.msra.gmra.mxu1 %vm3386_vm0, %v18161_v57  ;;  %v18164_v35 = vld [vmem:[#allocation5_spill] sm:$0xff]  ;;  %v18165_v23 = vld [vmem:[#allocation6_spill] sm:$0xff]  ;;  %v3383_v32 = vpack.c.bf16 %v10260_v59, %v12979_v12 }
 0x282   : > { %10617 = vmatprep.subr.msk.bf16.mxu0 %vm3386_vm0, %v3369_v13  ;;  %10625 = vmatprep.subr.msk.bf16.mxu1 %vm3386_vm0, %v3385_v49  ;;  %v13009_v62 = vpop.f32.mrf.mxu0  ;;  %v13011_v53 = vpop.f32.mrf.mxu1  ;;  %v3367_v49 = vpack.c.bf16 %v10212_v39, %v12977_v29  ;;  %v3359_v12 = vpack.c.bf16 %v12867_v5, %v12853_v9  ;;  %v3375_v29 = vpack.c.bf16 %v12869_v40, %v12855_v31  ;;  %v18174_v31 = vld [vmem:[#allocation9_spill] sm:$0xff]  ;;  %v18175_v40 = vld [vmem:[#allocation10_spill] sm:$0xff] }
 0x283   : > { %18162 = vst [vmem:[#allocation69_spill] sm:$0xff] %v13009_v62  ;;  %18163 = vst [vmem:[#allocation74_spill] sm:$0xff] %v13011_v53  ;;  %9187 = vmatprep.mubr.msk.bf16.mxu0 %vm3386_vm0, %v18164_v35  ;;  %9235 = vmatprep.mubr.msk.bf16.mxu1 %vm3386_vm0, %v18165_v23  ;;  %v3364_v39 = vpack.c.bf16 %v12961_v58, %v12953_v2  ;;  %v18192_v2 = vld [vmem:[#allocation83_spill] sm:$0xff] }
 0x284   : > { %9266 = vmatpush3.bf16.xpose.msra.mxu0 %v4035_v3  ;;  %9314 = vmatpush3.bf16.xpose.msra.mxu1 %v4324_v56  ;;  %v13019_v46 = vpop.f32.mrf.mxu0  ;;  %v13021_v41 = vpop.f32.mrf.mxu1 }
 0x285   : > { %18166 = vst [vmem:[#allocation76_spill] sm:$0xff] %v13019_v46  ;;  %18167 = vst [vmem:[#allocation75_spill] sm:$0xff] %v13021_v41  ;;  %10618 = vmatprep.subr.msk.bf16.mxu0 %vm3386_vm0, %v3368_v20  ;;  %10626 = vmatprep.subr.msk.bf16.mxu1 %vm3386_vm0, %v3384_v14  ;;  %v4032_v20 = vsel %vm3386_vm0, %v3360_v30, 0  ;;  %v4321_v14 = vsel %vm3386_vm0, %v3376_v17, 0  ;;  %v4029_v17 = vsel %vm3386_vm0, %v3359_v12, 0 }
 0x286   : > { %v13025_v24 = vpop.f32.mrf.mxu0  ;;  %v13027_v27 = vpop.f32.mrf.mxu1 }
 0x287   : > { %18168 = vst [vmem:[#allocation77_spill] sm:$0xff] %v13025_v24  ;;  %18169 = vst [vmem:[#allocation72_spill] sm:$0xff] %v13027_v27 }
 0x288   : > { %v13037_v63 = vpop.f32.mrf.mxu0  ;;  %v13039_v13 = vpop.f32.mrf.mxu1 }
 0x289   : > { %18170 = vst [vmem:[#allocation70_spill] sm:$0xff] %v13037_v63  ;;  %18171 = vst [vmem:[#allocation73_spill] sm:$0xff] %v13039_v13  ;;  %9188 = vmatmul.mubr.msk.bf16.gmra.mxu0 %vm3386_vm0, %v18164_v35  ;;  %9236 = vmatmul.mubr.msk.bf16.gmra.mxu1 %vm3386_vm0, %v18165_v23  ;;  %v18195_v13 = vld [vmem:[#allocation86_spill] sm:$0xff] }
 0x28a   : > { %v13045_v18 = vpop.f32.mrf.mxu0  ;;  %v13047_v44 = vpop.f32.mrf.mxu1  ;;  %9189 = vmatprep.mubr.msk.bf16.mxu0 %vm3386_vm0, %v18172_v10  ;;  %9237 = vmatprep.mubr.msk.bf16.mxu1 %vm3386_vm0, %v18173_v47 }
 0x28c   : > { %9268 = vmatpush3.bf16.xpose.msra.mxu0 %v4032_v20  ;;  %9316 = vmatpush3.bf16.xpose.msra.mxu1 %v4321_v14  ;;  %v13057_v57 = vpop.f32.mrf.mxu0  ;;  %v13059_v3 = vpop.f32.mrf.mxu1 }
 0x28d   : > { %10619 = vmatprep.subr.msk.bf16.mxu0 %vm3386_vm0, %v3367_v49  ;;  %10627 = vmatprep.subr.msk.bf16.mxu1 %vm3386_vm0, %v3383_v32  ;;  %v4318_v49 = vsel %vm3386_vm0, %v3375_v29, 0 }
 0x28e   : > { %v13063_v56 = vpop.f32.mrf.mxu0  ;;  %v13065_v35 = vpop.f32.mrf.mxu1 }
 0x290   : > { %v13075_v23 = vpop.f32.mrf.mxu0  ;;  %v13077_v30 = vpop.f32.mrf.mxu1 }
 0x291   : > { %9190 = vmatmul.mubr.msk.bf16.gmra.mxu0 %vm3386_vm0, %v18172_v10  ;;  %9238 = vmatmul.mubr.msk.bf16.gmra.mxu1 %vm3386_vm0, %v18173_v47  ;;  %v3366_v10 = vpack.c.bf16 %v12987_v26, %v12983_v34  ;;  %v3382_v47 = vpack.c.bf16 %v12989_v60, %v12985_v61  ;;  %v3358_v34 = vpack.c.bf16 %v12871_v0, %v12859_v42 }
 0x292   : > { %v13083_v9 = vpop.f32.mrf.mxu0  ;;  %v13085_v5 = vpop.f32.mrf.mxu1  ;;  %9191 = vmatprep.mubr.msk.bf16.mxu0 %vm3386_vm0, %v18174_v31  ;;  %9239 = vmatprep.mubr.msk.bf16.mxu1 %vm3386_vm0, %v18175_v40  ;;  %v3374_v61 = vpack.c.bf16 %v12873_v28, %v12861_v37  ;;  %v18176_v37 = vld [vmem:[#allocation15_spill] sm:$0xff]  ;;  %v18177_v28 = vld [vmem:[#allocation16_spill] sm:$0xff]  ;;  %v3380_v60 = vpack.c.bf16 %v12963_v55, %v12955_v1 }
 0x294   : > { %9270 = vmatpush3.bf16.xpose.msra.mxu0 %v4029_v17  ;;  %9318 = vmatpush3.bf16.xpose.msra.mxu1 %v4318_v49  ;;  %v13097_v32 = vpop.f32.mrf.mxu0  ;;  %v13099_v20 = vpop.f32.mrf.mxu1  ;;  %v3365_v49 = vpack.c.bf16 %v12957_v43, %v12941_v33 }
 0x295   : > { %10620 = vmatprep.subr.msk.bf16.mxu0 %vm3386_vm0, %v3366_v10  ;;  %10628 = vmatprep.subr.msk.bf16.mxu1 %vm3386_vm0, %v3382_v47  ;;  %v3381_v10 = vpack.c.bf16 %v12959_v4, %v12943_v52  ;;  %v18194_v52 = vld [vmem:[#allocation84_spill] sm:$0xff] }
 0x296   : > { %v13103_v14 = vpop.f32.mrf.mxu0  ;;  %v13105_v12 = vpop.f32.mrf.mxu1  ;;  %v3378_v41 = vpack.c.bf16 %v18195_v13, %v18194_v52 }
 0x298   : > { %v13115_v29 = vpop.f32.mrf.mxu0  ;;  %v13117_v17 = vpop.f32.mrf.mxu1 }
 0x299   : > { %9192 = vmatmul.mubr.msk.bf16.gmra.mxu0 %vm3386_vm0, %v18174_v31  ;;  %9240 = vmatmul.mubr.msk.bf16.gmra.mxu1 %vm3386_vm0, %v18175_v40  ;;  %v4026_v31 = vsel %vm3386_vm0, %v3358_v34, 0  ;;  %v4315_v40 = vsel %vm3386_vm0, %v3374_v61, 0 }
 0x29a   : > { %v13123_v42 = vpop.f32.mrf.mxu0  ;;  %v13125_v0 = vpop.f32.mrf.mxu1  ;;  %9193 = vmatprep.mubr.msk.bf16.mxu0 %vm3386_vm0, %v18176_v37  ;;  %9241 = vmatprep.mubr.msk.bf16.mxu1 %vm3386_vm0, %v18177_v28 }
 0x29c   : > { %9272 = vmatpush3.bf16.xpose.msra.mxu0 %v4026_v31  ;;  %9320 = vmatpush3.bf16.xpose.msra.mxu1 %v4315_v40  ;;  %v13137_v47 = vpop.f32.mrf.mxu0  ;;  %v13139_v19 = vpop.f32.mrf.mxu1  ;;  %v18179_v31 = vld [vmem:[#allocation14_spill] sm:$0xff]  ;;  %v18180_v40 = vpack.c.bf16 %v12835_v51, %v12821_v54  ;;  %v3356_v51 = vpack.c.bf16 %v12843_v22, %v12827_v38 }
 0x29d   : > { %10621 = vmatprep.subr.msk.bf16.mxu0 %vm3386_vm0, %v3365_v49  ;;  %10629 = vmatprep.subr.msk.bf16.mxu1 %vm3386_vm0, %v3381_v10  ;;  %v18178_v10 = vld [vmem:[#allocation13_spill] sm:$0xff] }
 0x29e   : > { %v13143_v45 = vpop.f32.mrf.mxu0  ;;  %v13145_v33 = vpop.f32.mrf.mxu1  ;;  %v4023_v59 = vsel %vm3386_vm0, %v18180_v40, 0  ;;  %v18186_v40 = vpack.c.bf16 %v12923_v25, %v12913_v48  ;;  %v18187_v25 = vld [vmem:[#allocation17_spill] sm:$0xff] }
 0x2a0   : > { %v13151_v4 = vpop.f32.mrf.mxu0  ;;  %v13153_v34 = vpop.f32.mrf.mxu1 }
 0x2a1   : > { %9194 = vmatmul.mubr.msk.bf16.gmra.mxu0 %vm3386_vm0, %v18176_v37  ;;  %9242 = vmatmul.mubr.msk.bf16.gmra.mxu1 %vm3386_vm0, %v18177_v28  ;;  %v18181_v37 = vpack.c.bf16 %v12837_v6, %v12823_v15  ;;  %v3372_v6 = vpack.c.bf16 %v12845_v7, %v12829_v50  ;;  %v18183_v50 = vld [vmem:[#allocation19_spill] sm:$0xff]  ;;  %v18184_v7 = vld [vmem:[#allocation20_spill] sm:$0xff] }
 0x2a2   : > { %v13159_v61 = vpop.f32.mrf.mxu0  ;;  %v13161_v49 = vpop.f32.mrf.mxu1  ;;  %9195 = vmatprep.mubr.msk.bf16.mxu0 %vm3386_vm0, %v18178_v10  ;;  %9243 = vmatprep.mubr.msk.bf16.mxu1 %vm3386_vm0, %v18179_v31 }
 0x2a3   : > { %v4312_v28 = vsel %vm3386_vm0, %v18181_v37, 0 }
 0x2a4   : > { %9274 = vmatpush3.bf16.xpose.msra.mxu0 %v4023_v59  ;;  %9322 = vmatpush3.bf16.xpose.msra.mxu1 %v4312_v28  ;;  %v13179_v26 = vpop.f32.mrf.mxu0  ;;  %v13181_v43 = vpop.f32.mrf.mxu1  ;;  %v4309_v59 = vsel %vm3386_vm0, %v3372_v6, 0  ;;  %v18193_v6 = vld [vmem:[#allocation85_spill] sm:$0xff] }
 0x2a5   : > { %10622 = vmatprep.subr.msk.bf16.mxu0 %vm3386_vm0, %v3364_v39  ;;  %10630 = vmatprep.subr.msk.bf16.mxu1 %vm3386_vm0, %v3380_v60  ;;  %v4020_v39 = vsel %vm3386_vm0, %v3356_v51, 0  ;;  %v3362_v51 = vpack.c.bf16 %v18193_v6, %v18192_v2  ;;  %v18198_v6 = vld [vmem:[#allocation80_spill] sm:$0xff] }
 0x2a6   : > { %v13185_v54 = vpop.f32.mrf.mxu0  ;;  %v13187_v15 = vpop.f32.mrf.mxu1 }
 0x2a8   : > { %v13197_v58 = vpop.f32.mrf.mxu0  ;;  %v13199_v55 = vpop.f32.mrf.mxu1 }
 0x2a9   : > { %18182 = vst [vmem:[#allocation71_spill] sm:$0xff] %v13199_v55  ;;  %9196 = vmatmul.mubr.msk.bf16.gmra.mxu0 %vm3386_vm0, %v18178_v10  ;;  %9244 = vmatmul.mubr.msk.bf16.gmra.mxu1 %vm3386_vm0, %v18179_v31  ;;  %v18185_v31 = vpack.c.bf16 %v12921_v21, %v12911_v36  ;;  %v18214_v55 = vld [vmem:[#allocation27_spill] sm:$0xff] }
 0x2aa   : > { %v13205_v38 = vpop.f32.mrf.mxu0  ;;  %v13207_v22 = vpop.f32.mrf.mxu1  ;;  %9197 = vmatprep.mubr.msk.bf16.mxu0 %vm3386_vm0, %v18183_v50  ;;  %9245 = vmatprep.mubr.msk.bf16.mxu1 %vm3386_vm0, %v18184_v7 }
 0x2ac   : > { %9276 = vmatpush3.bf16.xpose.msra.mxu0 %v4020_v39  ;;  %9324 = vmatpush3.bf16.xpose.msra.mxu1 %v4309_v59  ;;  %v13215_v60 = vpop.f32.mrf.mxu0  ;;  %v13217_v10 = vpop.f32.mrf.mxu1  ;;  %v18188_v59 = vld [vmem:[#allocation18_spill] sm:$0xff] }
 0x2ad   : > { %10623 = vmatprep.subr.msk.bf16.mxu0 %vm3386_vm0, %v18185_v31  ;;  %10631 = vmatprep.subr.msk.bf16.mxu1 %vm3386_vm0, %v18186_v40  ;;  %v18189_v31 = vpack.c.bf16 %v12807_v8, %v12793_v11 }
 0x2ae   : > { %v13227_v37 = vpop.f32.mrf.mxu0  ;;  %v13229_v28 = vpop.f32.mrf.mxu1 }
 0x2af   : > { %v4017_v40 = vsel %vm3386_vm0, %v18189_v31, 0  ;;  %v18199_v31 = vld [vmem:[#allocation82_spill] sm:$0xff] }
 0x2b0   : > { %v13235_v39 = vpop.f32.mrf.mxu0  ;;  %v13237_v36 = vpop.f32.mrf.mxu1  ;;  %v3370_v13 = vpack.c.bf16 %v18199_v31, %v18198_v6 }
 0x2b1   : > { %9198 = vmatmul.mubr.msk.bf16.gmra.mxu0 %vm3386_vm0, %v18183_v50  ;;  %9246 = vmatmul.mubr.msk.bf16.gmra.mxu1 %vm3386_vm0, %v18184_v7  ;;  %v18190_v50 = vld [vmem:[#allocation78_spill] sm:$0xff] }
 0x2b2   : > { %v13243_v48 = vpop.f32.mrf.mxu0  ;;  %v13245_v21 = vpop.f32.mrf.mxu1  ;;  %9199 = vmatprep.mubr.msk.bf16.mxu0 %vm3386_vm0, %v18187_v25  ;;  %9247 = vmatprep.mubr.msk.bf16.mxu1 %vm3386_vm0, %v18188_v59  ;;  %v18191_v1 = vpack.c.bf16 %v12809_v16, %v18190_v50  ;;  %v18196_v16 = vld [vmem:[#allocation79_spill] sm:$0xff]  ;;  %v4303_v31 = vsel %vm3386_vm0, %v3370_v13, 0 }
 0x2b4   : > { %v4306_v7 = vsel %vm3386_vm0, %v18191_v1, 0  ;;  %9278 = vmatpush3.bf16.xpose.msra.mxu0 %v4017_v40  ;;  %v13263_v63 = vpop.f32.mrf.mxu0  ;;  %v13265_v46 = vpop.f32.mrf.mxu1  ;;  %v18197_v1 = vld [vmem:[#allocation81_spill] sm:$0xff] }
 0x2b5   : > { %9326 = vmatpush3.bf16.xpose.msra.mxu1 %v4306_v7  ;;  %10624 = vmatprep.subr.msk.bf16.mxu0 %vm3386_vm0, %v3362_v51  ;;  %v3354_v2 = vpack.c.bf16 %v18197_v1, %v18196_v16  ;;  %v18200_v16 = vld [vmem:[#allocation23_spill] sm:$0xff]  ;;  %v18201_v1 = vld [vmem:[#allocation24_spill] sm:$0xff] }
 0x2b6   : > { %10632 = vmatprep.subr.msk.bf16.mxu1 %vm3386_vm0, %v3378_v41  ;;  %v13269_v11 = vpop.f32.mrf.mxu0  ;;  %v13271_v8 = vpop.f32.mrf.mxu1 }
 0x2b7   : > { %v4014_v6 = vsel %vm3386_vm0, %v3354_v2, 0 }
 0x2b8   : > { %v13281_v50 = vpop.f32.mrf.mxu0  ;;  %v13283_v51 = vpop.f32.mrf.mxu1 }
 0x2b9   : > { %9200 = vmatmul.mubr.msk.bf16.gmra.mxu0 %vm3386_vm0, %v18187_v25  ;;  %9248 = vmatmul.mubr.msk.bf16.gmra.mxu1 %vm3386_vm0, %v18188_v59 }
 0x2ba   : > { %v10311_v41 = vpop.f32.mrf.mxu0  ;;  %v10359_v7 = vpop.f32.mrf.mxu1  ;;  %9201 = vmatprep.mubr.msk.bf16.mxu0 %vm3386_vm0, %v18200_v16  ;;  %9249 = vmatprep.mubr.msk.bf16.mxu1 %vm3386_vm0, %v18201_v1 }
 0x2bc   : > { %9280 = vmatpush3.bf16.xpose.msra.mxu0 %v4014_v6  ;;  %v13295_v40 = vpop.f32.mrf.mxu0  ;;  %v13297_v25 = vpop.f32.mrf.mxu1  ;;  %v18204_v6 = vld [vmem:[#allocation21_spill] sm:$0xff] }
 0x2bd   : > { %9328 = vmatpush3.bf16.xpose.msra.mxu1 %v4303_v31 }
 0x2be   : > { %v10312_v52 = vpop.f32.mrf.mxu0  ;;  %v10360_v59 = vpop.f32.mrf.mxu1 }
 0x2bf   : > { %v6478_v53 = vpack.c.bf16 %v10312_v52, %v10311_v41  ;;  %v6494_v27 = vpack.c.bf16 %v10360_v59, %v10359_v7  ;;  %v18205_v52 = vld [vmem:[#allocation22_spill] sm:$0xff] }
 0x2c0   : > { %v13299_v62 = vpop.f32.mrf.mxu0  ;;  %v13301_v24 = vpop.f32.mrf.mxu1 }
 0x2c1   : > { %9202 = vmatmul.mubr.msk.bf16.gmra.mxu0 %vm3386_vm0, %v18200_v16  ;;  %9250 = vmatmul.mubr.msk.bf16.gmra.mxu1 %vm3386_vm0, %v18201_v1 }
 0x2c2   : > { %9361 = vmatprep.subr.bf16.mxu0 %v6478_v53  ;;  %9473 = vmatprep.subr.bf16.mxu1 %v6494_v27  ;;  %v13307_v2 = vpop.f32.mrf.mxu0  ;;  %v13309_v13 = vpop.f32.mrf.mxu1  ;;  %v18215_v53 = vld [vmem:[#allocation28_spill] sm:$0xff] }
 0x2c3   : > { %18202 = vst [vmem:[#allocation7_spill] sm:$0xff] %v13307_v2  ;;  %18203 = vst [vmem:[#allocation8_spill] sm:$0xff] %v13309_v13  ;;  %9203 = vmatprep.mubr.msk.bf16.mxu0 %vm3386_vm0, %v18204_v6  ;;  %9251 = vmatprep.mubr.msk.bf16.mxu1 %vm3386_vm0, %v18205_v52 }
 0x2c4   : > { %v13315_v41 = vpop.f32.mrf.mxu0  ;;  %v13317_v7 = vpop.f32.mrf.mxu1 }
 0x2c5   : > { %18206 = vst [vmem:[#allocation5_spill] sm:$0xff] %v13315_v41  ;;  %18207 = vst [vmem:[#allocation6_spill] sm:$0xff] %v13317_v7 }
 0x2c6   : > { %v13319_v16 = vpop.f32.mrf.mxu0  ;;  %v13321_v31 = vpop.f32.mrf.mxu1 }
 0x2c7   : > { %18208 = vst [vmem:[#allocation11_spill] sm:$0xff] %v13319_v16  ;;  %18209 = vst [vmem:[#allocation12_spill] sm:$0xff] %v13321_v31 }
 0x2c8   : > { %v13327_v1 = vpop.f32.mrf.mxu0  ;;  %v13329_v59 = vpop.f32.mrf.mxu1 }
 0x2c9   : > { %18210 = vst [vmem:[#allocation9_spill] sm:$0xff] %v13327_v1  ;;  %18211 = vst [vmem:[#allocation10_spill] sm:$0xff] %v13329_v59  ;;  %9204 = vmatmul.mubr.msk.bf16.gmra.mxu0 %vm3386_vm0, %v18204_v6  ;;  %9252 = vmatmul.mubr.msk.bf16.gmra.mxu1 %vm3386_vm0, %v18205_v52  ;;  %v18224_v1 = vld [vmem:[#allocation25_spill] sm:$0xff]  ;;  %v18225_v52 = vld [vmem:[#allocation26_spill] sm:$0xff] }
 0x2ca   : > { %v13335_v7 = vpop.f32.mrf.mxu0  ;;  %v13337_v41 = vpop.f32.mrf.mxu1  ;;  %9205 = vmatprep.mubr.msk.bf16.mxu0 %vm3386_vm0, %v18214_v55  ;;  %9253 = vmatprep.mubr.msk.bf16.mxu1 %vm3386_vm0, %v18215_v53 }
 0x2cb   : > { %18212 = vst [vmem:[#allocation15_spill] sm:$0xff] %v13335_v7  ;;  %18213 = vst [vmem:[#allocation16_spill] sm:$0xff] %v13337_v41 }
 0x2cc   : > { %v13343_v27 = vpop.f32.mrf.mxu0  ;;  %v13345_v13 = vpop.f32.mrf.mxu1 }
 0x2cd   : > { %18216 = vst [vmem:[#allocation13_spill] sm:$0xff] %v13343_v27  ;;  %18217 = vst [vmem:[#allocation14_spill] sm:$0xff] %v13345_v13 }
 0x2ce   : > { %v13347_v31 = vpop.f32.mrf.mxu0  ;;  %v13349_v6 = vpop.f32.mrf.mxu1 }
 0x2cf   : > { %18218 = vst [vmem:[#allocation19_spill] sm:$0xff] %v13347_v31  ;;  %18219 = vst [vmem:[#allocation20_spill] sm:$0xff] %v13349_v6 }
 0x2d0   : > { %v13355_v16 = vpop.f32.mrf.mxu0  ;;  %v13357_v59 = vpop.f32.mrf.mxu1 }
 0x2d1   : > { %18220 = vst [vmem:[#allocation17_spill] sm:$0xff] %v13355_v16  ;;  %18221 = vst [vmem:[#allocation18_spill] sm:$0xff] %v13357_v59  ;;  %9206 = vmatmul.mubr.msk.bf16.gmra.mxu0 %vm3386_vm0, %v18214_v55  ;;  %9254 = vmatmul.mubr.msk.bf16.gmra.mxu1 %vm3386_vm0, %v18215_v53  ;;  %v18234_v16 = vld [vmem:[#allocation31_spill] sm:$0xff]  ;;  %v18235_v53 = vld [vmem:[#allocation32_spill] sm:$0xff] }
 0x2d2   : > { %v13363_v13 = vpop.f32.mrf.mxu0  ;;  %v13365_v27 = vpop.f32.mrf.mxu1  ;;  %9207 = vmatprep.mubr.msk.bf16.mxu0 %vm3386_vm0, %v18224_v1  ;;  %9255 = vmatprep.mubr.msk.bf16.mxu1 %vm3386_vm0, %v18225_v52 }
 0x2d3   : > { %18222 = vst [vmem:[#allocation78_spill] sm:$0xff] %v13363_v13  ;;  %18223 = vst [vmem:[#allocation83_spill] sm:$0xff] %v13365_v27 }
 0x2d4   : > { %v13371_v2 = vpop.f32.mrf.mxu0  ;;  %v13373_v41 = vpop.f32.mrf.mxu1 }
 0x2d5   : > { %18226 = vst [vmem:[#allocation85_spill] sm:$0xff] %v13371_v2  ;;  %18227 = vst [vmem:[#allocation84_spill] sm:$0xff] %v13373_v41 }
 0x2d6   : > { %v13375_v6 = vpop.f32.mrf.mxu0  ;;  %v13377_v55 = vpop.f32.mrf.mxu1 }
 0x2d7   : > { %18228 = vst [vmem:[#allocation86_spill] sm:$0xff] %v13375_v6  ;;  %18229 = vst [vmem:[#allocation79_spill] sm:$0xff] %v13377_v55 }
 0x2d8   : > { %v13383_v31 = vpop.f32.mrf.mxu0  ;;  %v13385_v59 = vpop.f32.mrf.mxu1 }
 0x2d9   : > { %18230 = vst [vmem:[#allocation81_spill] sm:$0xff] %v13383_v31  ;;  %18231 = vst [vmem:[#allocation80_spill] sm:$0xff] %v13385_v59  ;;  %9208 = vmatmul.mubr.msk.bf16.gmra.mxu0 %vm3386_vm0, %v18224_v1  ;;  %9256 = vmatmul.mubr.msk.bf16.gmra.mxu1 %vm3386_vm0, %v18225_v52  ;;  %v18244_v31 = vld [vmem:[#allocation29_spill] sm:$0xff]  ;;  %v18245_v52 = vld [vmem:[#allocation30_spill] sm:$0xff] }
 0x2da   : > { %v13391_v41 = vpop.f32.mrf.mxu0  ;;  %v13393_v2 = vpop.f32.mrf.mxu1  ;;  %9209 = vmatprep.mubr.msk.bf16.mxu0 %vm3386_vm0, %v18234_v16  ;;  %9257 = vmatprep.mubr.msk.bf16.mxu1 %vm3386_vm0, %v18235_v53 }
 0x2db   : > { %18232 = vst [vmem:[#allocation82_spill] sm:$0xff] %v13391_v41  ;;  %18233 = vst [vmem:[#allocation23_spill] sm:$0xff] %v13393_v2 }
 0x2dc   : > { %v13399_v7 = vpop.f32.mrf.mxu0  ;;  %v13401_v27 = vpop.f32.mrf.mxu1 }
 0x2dd   : > { %18236 = vst [vmem:[#allocation24_spill] sm:$0xff] %v13399_v7  ;;  %18237 = vst [vmem:[#allocation21_spill] sm:$0xff] %v13401_v27 }
 0x2de   : > { %v13403_v55 = vpop.f32.mrf.mxu0  ;;  %v13405_v1 = vpop.f32.mrf.mxu1 }
 0x2df   : > { %18238 = vst [vmem:[#allocation22_spill] sm:$0xff] %v13403_v55  ;;  %18239 = vst [vmem:[#allocation27_spill] sm:$0xff] %v13405_v1 }
 0x2e0   : > { %v13411_v6 = vpop.f32.mrf.mxu0  ;;  %v13413_v59 = vpop.f32.mrf.mxu1 }
 0x2e1   : > { %18240 = vst [vmem:[#allocation28_spill] sm:$0xff] %v13411_v6  ;;  %18241 = vst [vmem:[#allocation25_spill] sm:$0xff] %v13413_v59  ;;  %9210 = vmatmul.mubr.msk.bf16.gmra.mxu0 %vm3386_vm0, %v18234_v16  ;;  %9258 = vmatmul.mubr.msk.bf16.gmra.mxu1 %vm3386_vm0, %v18235_v53  ;;  %v18254_v6 = vld [vmem:[#allocation35_spill] sm:$0xff]  ;;  %v18255_v53 = vld [vmem:[#allocation36_spill] sm:$0xff] }
 0x2e2   : > { %v13419_v27 = vpop.f32.mrf.mxu0  ;;  %v13421_v7 = vpop.f32.mrf.mxu1  ;;  %9211 = vmatprep.mubr.msk.bf16.mxu0 %vm3386_vm0, %v18244_v31  ;;  %9259 = vmatprep.mubr.msk.bf16.mxu1 %vm3386_vm0, %v18245_v52 }
 0x2e3   : > { %18242 = vst [vmem:[#allocation26_spill] sm:$0xff] %v13419_v27  ;;  %18243 = vst [vmem:[#allocation31_spill] sm:$0xff] %v13421_v7 }
 0x2e4   : > { %v13427_v13 = vpop.f32.mrf.mxu0  ;;  %v13429_v2 = vpop.f32.mrf.mxu1 }
 0x2e5   : > { %18246 = vst [vmem:[#allocation32_spill] sm:$0xff] %v13427_v13  ;;  %18247 = vst [vmem:[#allocation29_spill] sm:$0xff] %v13429_v2 }
 0x2e6   : > { %v13431_v1 = vpop.f32.mrf.mxu0  ;;  %v13433_v16 = vpop.f32.mrf.mxu1 }
 0x2e7   : > { %18248 = vst [vmem:[#allocation30_spill] sm:$0xff] %v13431_v1  ;;  %18249 = vst [vmem:[#allocation87_spill] sm:$0xff] %v13433_v16 }
 0x2e8   : > { %v13439_v55 = vpop.f32.mrf.mxu0  ;;  %v13441_v59 = vpop.f32.mrf.mxu1 }
 0x2e9   : > { %18250 = vst [vmem:[#allocation88_spill] sm:$0xff] %v13439_v55  ;;  %18251 = vst [vmem:[#allocation89_spill] sm:$0xff] %v13441_v59  ;;  %9212 = vmatmul.mubr.msk.bf16.gmra.mxu0 %vm3386_vm0, %v18244_v31  ;;  %9260 = vmatmul.mubr.msk.bf16.gmra.mxu1 %vm3386_vm0, %v18245_v52  ;;  %v18263_v55 = vld [vmem:[#allocation33_spill] sm:$0xff]  ;;  %v18264_v52 = vld [vmem:[#allocation34_spill] sm:$0xff] }
 0x2ea   : > { %v13447_v2 = vpop.f32.mrf.mxu0  ;;  %v13449_v13 = vpop.f32.mrf.mxu1  ;;  %9213 = vmatprep.mubr.msk.bf16.mxu0 %vm3386_vm0, %v18254_v6  ;;  %9261 = vmatprep.mubr.msk.bf16.mxu1 %vm3386_vm0, %v18255_v53 }
 0x2eb   : > { %18252 = vst [vmem:[#allocation90_spill] sm:$0xff] %v13447_v2  ;;  %18253 = vst [vmem:[#allocation91_spill] sm:$0xff] %v13449_v13  ;;  %v6477_v2 = vpack.c.bf16 %v13299_v62, %v13295_v40  ;;  %v6469_v62 = vpack.c.bf16 %v13151_v4, %v13137_v47  ;;  %v18276_v47 = vpack.c.bf16 %v13103_v14, %v13083_v9  ;;  %v18278_v4 = vld [vmem:[#allocation43_spill] sm:$0xff]  ;;  %v18300_v40 = vld [vmem:[#allocation73_spill] sm:$0xff] }
 0x2ec   : > { %v13455_v41 = vpop.f32.mrf.mxu0  ;;  %v13457_v7 = vpop.f32.mrf.mxu1 }
 0x2ed   : > { %18256 = vst [vmem:[#allocation35_spill] sm:$0xff] %v13455_v41  ;;  %18257 = vst [vmem:[#allocation36_spill] sm:$0xff] %v13457_v7 }
 0x2ee   : > { %v13459_v16 = vpop.f32.mrf.mxu0  ;;  %v13461_v31 = vpop.f32.mrf.mxu1 }
 0x2ef   : > { %18258 = vst [vmem:[#allocation92_spill] sm:$0xff] %v13459_v16  ;;  %18259 = vst [vmem:[#allocation93_spill] sm:$0xff] %v13461_v31  ;;  %v18268_v16 = vld [vmem:[#allocation39_spill] sm:$0xff] }
 0x2f0   : > { %v13467_v1 = vpop.f32.mrf.mxu0  ;;  %v13469_v59 = vpop.f32.mrf.mxu1 }
 0x2f1   : > { %18260 = vst [vmem:[#allocation94_spill] sm:$0xff] %v13469_v59  ;;  %9214 = vmatmul.mubr.msk.bf16.gmra.mxu0 %vm3386_vm0, %v18254_v6  ;;  %9262 = vmatmul.mubr.msk.bf16.gmra.mxu1 %vm3386_vm0, %v18255_v53  ;;  %v18271_v53 = vpack.c.bf16 %v13145_v33, %v13125_v0  ;;  %v6491_v0 = vpack.c.bf16 %v13283_v51, %v13265_v46 }
 0x2f2   : > { %v13475_v7 = vpop.f32.mrf.mxu0  ;;  %v13477_v41 = vpop.f32.mrf.mxu1  ;;  %9215 = vmatprep.mubr.msk.bf16.mxu0 %vm3386_vm0, %v18263_v55  ;;  %9263 = vmatprep.mubr.msk.bf16.mxu1 %vm3386_vm0, %v18264_v52  ;;  %v18277_v33 = vpack.c.bf16 %v13105_v12, %v13085_v5  ;;  %v6483_v46 = vpack.c.bf16 %v13117_v17, %v13099_v20  ;;  %v18280_v5 = vpack.c.bf16 %v13227_v37, %v13205_v38  ;;  %v18284_v37 = vld [vmem:[#allocation41_spill] sm:$0xff] }
 0x2f3   : > { %18261 = vst [vmem:[#allocation95_spill] sm:$0xff] %v13475_v7  ;;  %18262 = vst [vmem:[#allocation96_spill] sm:$0xff] %v13477_v41  ;;  %v18272_v41 = vld [vmem:[#allocation37_spill] sm:$0xff]  ;;  %v18281_v12 = vpack.c.bf16 %v13229_v28, %v13207_v22  ;;  %v6489_v20 = vpack.c.bf16 %v13237_v36, %v13217_v10  ;;  %v18282_v38 = vpack.c.bf16 %v13063_v56, %v13045_v18  ;;  %v18285_v28 = vld [vmem:[#allocation42_spill] sm:$0xff] }
 0x2f4   : > { %v13483_v27 = vpop.f32.mrf.mxu0  ;;  %v13485_v13 = vpop.f32.mrf.mxu1  ;;  %v18283_v22 = vpack.c.bf16 %v13065_v35, %v13047_v44  ;;  %v6481_v10 = vpack.c.bf16 %v13077_v30, %v13059_v3  ;;  %v18286_v44 = vpack.c.bf16 %v13185_v54, %v13159_v61  ;;  %v18287_v35 = vpack.c.bf16 %v13187_v15, %v13161_v49  ;;  %v18288_v3 = vld [vmem:[#allocation71_spill] sm:$0xff]  ;;  %v18289_v61 = vld [vmem:[#allocation77_spill] sm:$0xff]  ;;  %v18292_v49 = vld [vmem:[#allocation72_spill] sm:$0xff] }
 0x2f5   : > { %18265 = vst [vmem:[#allocation33_spill] sm:$0xff] %v13485_v13  ;;  %v18269_v13 = vld [vmem:[#allocation40_spill] sm:$0xff]  ;;  %v18290_v54 = vld [vmem:[#allocation69_spill] sm:$0xff]  ;;  %v18293_v15 = vld [vmem:[#allocation74_spill] sm:$0xff] }
 0x2f6   : > { %v13487_v31 = vpop.f32.mrf.mxu0  ;;  %v13489_v6 = vpop.f32.mrf.mxu1  ;;  %v18291_v36 = vpack.c.bf16 %v18289_v61, %v18290_v54 }
 0x2f7   : > { %18266 = vst [vmem:[#allocation34_spill] sm:$0xff] %v13487_v31  ;;  %18267 = vst [vmem:[#allocation97_spill] sm:$0xff] %v13489_v6  ;;  %v18453_v31 = vld [vmem:[#allocation28_spill] sm:$0xff] }
 0x2f8   : > { %v13553_v9 = vpop.f32.mrf.mxu0  ;;  %v13555_v14 = vpop.f32.mrf.mxu1 }
 0x2f9   : > { %9216 = vmatmul.mubr.msk.bf16.gmra.mxu0 %vm3386_vm0, %v18263_v55  ;;  %9264 = vmatmul.mubr.msk.bf16.gmra.mxu1 %vm3386_vm0, %v18264_v52  ;;  %v6493_v55 = vpack.c.bf16 %v13301_v24, %v13297_v25  ;;  %v18270_v52 = vpack.c.bf16 %v13143_v45, %v13123_v42  ;;  %v6485_v24 = vpack.c.bf16 %v13153_v34, %v13139_v19  ;;  %v18279_v34 = vld [vmem:[#allocation44_spill] sm:$0xff] }
 0x2fa   : > { %9281 = vmatprep.mubr.msk.bf16.mxu0 %vm3386_vm0, %v18268_v16  ;;  %9329 = vmatprep.mubr.msk.bf16.mxu1 %vm3386_vm0, %v18269_v13  ;;  %v18274_v45 = vpack.c.bf16 %v13269_v11, %v13243_v48  ;;  %v18275_v42 = vpack.c.bf16 %v13271_v8, %v13245_v21  ;;  %v6475_v19 = vpack.c.bf16 %v13281_v50, %v13263_v63  ;;  %v10455_v17 = vpop.f32.mrf.mxu1  ;;  %v18295_v21 = vld [vmem:[#allocation47_spill] sm:$0xff]  ;;  %v18296_v11 = vld [vmem:[#allocation48_spill] sm:$0xff] }
 0x2fb   : > { %v6467_v63 = vpack.c.bf16 %v13115_v29, %v13097_v32  ;;  %v6473_v32 = vpack.c.bf16 %v13235_v39, %v13215_v60  ;;  %v10407_v29 = vpop.f32.mrf.mxu0  ;;  %v6465_v60 = vpack.c.bf16 %v13075_v23, %v13057_v57  ;;  %v6471_v57 = vpack.c.bf16 %v13197_v58, %v13179_v26  ;;  %v18297_v26 = vld [vmem:[#allocation76_spill] sm:$0xff]  ;;  %v18298_v58 = vld [vmem:[#allocation70_spill] sm:$0xff] }
 0x2fc   : > { %v13587_v56 = vpop.f32.mrf.mxu1  ;;  %v6487_v23 = vpack.c.bf16 %v18288_v3, %v13181_v43  ;;  %v18294_v48 = vpack.c.bf16 %v18292_v49, %v18293_v15  ;;  %v6463_v8 = vpack.c.bf16 %v18298_v58, %v18297_v26  ;;  %v18299_v43 = vld [vmem:[#allocation75_spill] sm:$0xff] }
 0x2fd   : > { %v13585_v18 = vpop.f32.mrf.mxu0  ;;  %v6479_v50 = vpack.c.bf16 %v18300_v40, %v18299_v43 }
 0x2fe   : > { %v10456_v39 = vpop.f32.mrf.mxu1 }
 0x2ff   : > { %v10408_v30 = vpop.f32.mrf.mxu0  ;;  %v6526_v25 = vpack.c.bf16 %v10456_v39, %v10455_v17 }
 0x300   : > { %v6510_v51 = vpack.c.bf16 %v10408_v30, %v10407_v29 }
 0x301   : > { %9282 = vmatmul.mubr.msk.bf16.vlgmr.msra.gmra.mxu0 %vm3386_vm0, %v18268_v16  ;;  %9330 = vmatmul.mubr.msk.bf16.vlgmr.msra.gmra.mxu1 %vm3386_vm0, %v18269_v13  ;;  %v18273_v16 = vld [vmem:[#allocation38_spill] sm:$0xff] }
 0x302   : > { %9362 = vmatpush3.bf16.msra.mxu0 %v18270_v52  ;;  %9474 = vmatpush3.bf16.msra.mxu1 %v18271_v53  ;;  %v18302_v13 = vld [vmem:[#allocation46_spill] sm:$0xff]  ;;  %v18304_v53 = vld [vmem:[#allocation52_spill] sm:$0xff] }
 0x303   : > { %9283 = vmatprep.mubr.msk.bf16.mxu0 %vm3386_vm0, %v18272_v41  ;;  %9331 = vmatprep.mubr.msk.bf16.mxu1 %vm3386_vm0, %v18273_v16  ;;  %v18306_v52 = vld [vmem:[#allocation50_spill] sm:$0xff] }
 0x304   : > { %9363 = vmatprep.subr.bf16.mxu0 %v6477_v2  ;;  %9475 = vmatprep.subr.bf16.mxu1 %v6493_v55  ;;  %v18301_v2 = vld [vmem:[#allocation45_spill] sm:$0xff] }
 0x305   : > { %v18305_v55 = vld [vmem:[#allocation49_spill] sm:$0xff] }
 0x306   : > { %9364 = vmatpush3.bf16.msra.mxu0 %v6469_v62  ;;  %9476 = vmatpush3.bf16.msra.mxu1 %v6485_v24  ;;  %v18308_v62 = vld [vmem:[#allocation56_spill] sm:$0xff]  ;;  %v13649_v24 = vpop.f32.mrf.mxu0 }
 0x307   : > { %9365 = vmatprep.subr.bf16.mxu0 %v18274_v45  ;;  %9477 = vmatprep.subr.bf16.mxu1 %v18275_v42  ;;  %v13651_v45 = vpop.f32.mrf.mxu1 }
 0x309   : > { %9284 = vmatmul.mubr.msk.bf16.gmra.mxu0 %vm3386_vm0, %v18272_v41  ;;  %9332 = vmatmul.mubr.msk.bf16.gmra.mxu1 %vm3386_vm0, %v18273_v16  ;;  %v18303_v41 = vld [vmem:[#allocation51_spill] sm:$0xff] }
 0x30a   : > { %9366 = vmatpush3.bf16.msra.mxu0 %v18276_v47  ;;  %9478 = vmatpush3.bf16.msra.mxu1 %v18277_v33  ;;  %v18307_v16 = vld [vmem:[#allocation55_spill] sm:$0xff]  ;;  %v18310_v47 = vld [vmem:[#allocation54_spill] sm:$0xff] }
 0x30b   : > { %9285 = vmatprep.mubr.msk.bf16.mxu0 %vm3386_vm0, %v18278_v4  ;;  %9333 = vmatprep.mubr.msk.bf16.mxu1 %vm3386_vm0, %v18279_v34 }
 0x30c   : > { %9367 = vmatprep.subr.bf16.mxu0 %v6475_v19  ;;  %9479 = vmatprep.subr.bf16.mxu1 %v6491_v0  ;;  %v18309_v0 = vld [vmem:[#allocation53_spill] sm:$0xff] }
 0x30e   : > { %9368 = vmatpush3.bf16.msra.mxu0 %v6467_v63  ;;  %9480 = vmatpush3.bf16.msra.mxu1 %v6483_v46 }
 0x30f   : > { %9369 = vmatprep.subr.bf16.mxu0 %v18280_v5  ;;  %9481 = vmatprep.subr.bf16.mxu1 %v18281_v12 }
 0x311   : > { %9286 = vmatmul.mubr.msk.bf16.gmra.mxu0 %vm3386_vm0, %v18278_v4  ;;  %9334 = vmatmul.mubr.msk.bf16.gmra.mxu1 %vm3386_vm0, %v18279_v34 }
 0x312   : > { %9370 = vmatpush3.bf16.msra.mxu0 %v18282_v38  ;;  %9482 = vmatpush3.bf16.msra.mxu1 %v18283_v22 }
 0x313   : > { %9287 = vmatprep.mubr.msk.bf16.mxu0 %vm3386_vm0, %v18284_v37  ;;  %9335 = vmatprep.mubr.msk.bf16.mxu1 %vm3386_vm0, %v18285_v28 }
 0x314   : > { %9371 = vmatprep.subr.bf16.mxu0 %v6473_v32  ;;  %9483 = vmatprep.subr.bf16.mxu1 %v6489_v20 }
 0x316   : > { %9372 = vmatpush3.bf16.msra.mxu0 %v6465_v60  ;;  %9484 = vmatpush3.bf16.msra.mxu1 %v6481_v10  ;;  %v18311_v10 = vld [vmem:[#allocation59_spill] sm:$0xff] }
 0x317   : > { %9373 = vmatprep.subr.bf16.mxu0 %v18286_v44  ;;  %9485 = vmatprep.subr.bf16.mxu1 %v18287_v35  ;;  %v18312_v44 = vld [vmem:[#allocation60_spill] sm:$0xff] }
 0x319   : > { %9288 = vmatmul.mubr.msk.bf16.gmra.mxu0 %vm3386_vm0, %v18284_v37  ;;  %9336 = vmatmul.mubr.msk.bf16.gmra.mxu1 %vm3386_vm0, %v18285_v28 }
 0x31a   : > { %9374 = vmatpush3.bf16.msra.mxu0 %v18291_v36  ;;  %9486 = vmatpush3.bf16.msra.mxu1 %v18294_v48 }
 0x31b   : > { %9289 = vmatprep.mubr.msk.bf16.mxu0 %vm3386_vm0, %v18295_v21  ;;  %9337 = vmatprep.mubr.msk.bf16.mxu1 %vm3386_vm0, %v18296_v11 }
 0x31c   : > { %9375 = vmatprep.subr.bf16.mxu0 %v6471_v57  ;;  %9487 = vmatprep.subr.bf16.mxu1 %v6487_v23 }
 0x31e   : > { %9376 = vmatpush3.bf16.msra.mxu0 %v6463_v8  ;;  %9488 = vmatpush3.bf16.msra.mxu1 %v6479_v50 }
 0x31f   : > { %9585 = vmatprep.subr.bf16.mxu0 %v6510_v51  ;;  %9697 = vmatprep.subr.bf16.mxu1 %v6526_v25  ;;  %v18313_v51 = vld [vmem:[#allocation57_spill] sm:$0xff]  ;;  %v18314_v25 = vld [vmem:[#allocation58_spill] sm:$0xff] }
 0x321   : > { %9290 = vmatmul.mubr.msk.bf16.gmra.mxu0 %vm3386_vm0, %v18295_v21  ;;  %9338 = vmatmul.mubr.msk.bf16.gmra.mxu1 %vm3386_vm0, %v18296_v11 }
 0x322   : > { %9291 = vmatprep.mubr.msk.bf16.mxu0 %vm3386_vm0, %v18301_v2  ;;  %9339 = vmatprep.mubr.msk.bf16.mxu1 %vm3386_vm0, %v18302_v13 }
 0x329   : > { %9292 = vmatmul.mubr.msk.bf16.gmra.mxu0 %vm3386_vm0, %v18301_v2  ;;  %9340 = vmatmul.mubr.msk.bf16.gmra.mxu1 %vm3386_vm0, %v18302_v13 }
 0x32a   : > { %9293 = vmatprep.mubr.msk.bf16.mxu0 %vm3386_vm0, %v18303_v41  ;;  %9341 = vmatprep.mubr.msk.bf16.mxu1 %vm3386_vm0, %v18304_v53 }
 0x331   : > { %9294 = vmatmul.mubr.msk.bf16.gmra.mxu0 %vm3386_vm0, %v18303_v41  ;;  %9342 = vmatmul.mubr.msk.bf16.gmra.mxu1 %vm3386_vm0, %v18304_v53 }
 0x332   : > { %9295 = vmatprep.mubr.msk.bf16.mxu0 %vm3386_vm0, %v18305_v55  ;;  %9343 = vmatprep.mubr.msk.bf16.mxu1 %vm3386_vm0, %v18306_v52 }
 0x339   : > { %9296 = vmatmul.mubr.msk.bf16.gmra.mxu0 %vm3386_vm0, %v18305_v55  ;;  %9344 = vmatmul.mubr.msk.bf16.gmra.mxu1 %vm3386_vm0, %v18306_v52 }
 0x33a   : > { %9297 = vmatprep.mubr.msk.bf16.mxu0 %vm3386_vm0, %v18307_v16  ;;  %9345 = vmatprep.mubr.msk.bf16.mxu1 %vm3386_vm0, %v18308_v62 }
 0x341   : > { %v3517_v42 = vpop.f32.mrf.mxu0  ;;  %v3806_v19 = vpop.f32.mrf.mxu1  ;;  %9298 = vmatmul.mubr.msk.bf16.gmra.mxu0 %vm3386_vm0, %v18307_v16  ;;  %9346 = vmatmul.mubr.msk.bf16.gmra.mxu1 %vm3386_vm0, %v18308_v62 }
 0x342   : > { %9299 = vmatprep.mubr.msk.bf16.mxu0 %vm3386_vm0, %v18309_v0  ;;  %9347 = vmatprep.mubr.msk.bf16.mxu1 %vm3386_vm0, %v18310_v47  ;;  %v13661_v34 = vmul.f32 0.17677669, %v3517_v42  ;;  %v13669_v17 = vmul.f32 0.17677669, %v3806_v19 }
 0x343   : > { %v3519_v33 = vpop.f32.mrf.mxu0  ;;  %v3808_v4 = vpop.f32.mrf.mxu1 }
 0x344   : > { %v13663_v63 = vmul.f32 0.17677669, %v3519_v33  ;;  %v13665_v12 = vmul.f32 0.17677669, %v3808_v4 }
 0x345   : > { %v3521_v46 = vpop.f32.mrf.mxu0  ;;  %v3810_v5 = vpop.f32.mrf.mxu1 }
 0x346   : > { %v4799_v32 = vmax.f32 %v13661_v34, %v13663_v63  ;;  %v13671_v38 = vmul.f32 0.17677669, %v3521_v46  ;;  %v4895_v35 = vmax.f32 %v13669_v17, %v13665_v12  ;;  %v13689_v30 = vmul.f32 0.17677669, %v3810_v5 }
 0x347   : > { %v3523_v20 = vpop.f32.mrf.mxu0  ;;  %v3812_v29 = vpop.f32.mrf.mxu1 }
 0x348   : > { %v13673_v22 = vmul.f32 0.17677669, %v3523_v20  ;;  %4800 = vmax.xlane.f32.xlu0 %v4799_v32  ;;  %v13679_v60 = vmul.f32 0.17677669, %v3812_v29 }
 0x349   : > { %v3527_v37 = vpop.f32.mrf.mxu0  ;;  %v3816_v28 = vpop.f32.mrf.mxu1  ;;  %9300 = vmatmul.mubr.msk.bf16.gmra.mxu0 %vm3386_vm0, %v18309_v0  ;;  %9348 = vmatmul.mubr.msk.bf16.gmra.mxu1 %vm3386_vm0, %v18310_v47 }
 0x34a   : > { %9301 = vmatprep.mubr.msk.bf16.mxu0 %vm3386_vm0, %v18311_v10  ;;  %9349 = vmatprep.mubr.msk.bf16.mxu1 %vm3386_vm0, %v18312_v44  ;;  %v4802_v57 = vmax.f32 %v13671_v38, %v13673_v22  ;;  %v13691_v39 = vmul.f32 0.17677669, %v3527_v37  ;;  %v4898_v15 = vmax.f32 %v13689_v30, %v13679_v60  ;;  %v13701_v26 = vmul.f32 0.17677669, %v3816_v28  ;;  %v18315_v28 = vld [vmem:[#allocation63_spill] sm:$0xff] }
 0x34b   : > { %v3529_v3 = vpop.f32.mrf.mxu0  ;;  %v3818_v23 = vpop.f32.mrf.mxu1 }
 0x34c   : > { %v13693_v61 = vmul.f32 0.17677669, %v3529_v3  ;;  %4896 = vmax.xlane.f32.xlu0 %v4895_v35  ;;  %4803 = vmax.xlane.f32.xlu1 %v4802_v57  ;;  %v13695_v49 = vmul.f32 0.17677669, %v3818_v23 }
 0x34d   : > { %v3531_v54 = vpop.f32.mrf.mxu0  ;;  %v3820_v36 = vpop.f32.mrf.mxu1 }
 0x34e   : > { %v4805_v48 = vmax.f32 %v13691_v39, %v13693_v61  ;;  %v13703_v58 = vmul.f32 0.17677669, %v3531_v54  ;;  %v4901_v2 = vmax.f32 %v13701_v26, %v13695_v49  ;;  %v13721_v55 = vmul.f32 0.17677669, %v3820_v36 }
 0x34f   : > { %v3533_v21 = vpop.f32.mrf.mxu0  ;;  %v3822_v11 = vpop.f32.mrf.mxu1 }
 0x350   : > { %v13705_v8 = vmul.f32 0.17677669, %v3533_v21  ;;  %4899 = vmax.xlane.f32.xlu1 %v4898_v15  ;;  %4806 = vmax.xlane.f32.xlu0 %v4805_v48  ;;  %v13711_v50 = vmul.f32 0.17677669, %v3822_v11 }
 0x351   : > { %v3537_v43 = vpop.f32.mrf.mxu0  ;;  %v3826_v40 = vpop.f32.mrf.mxu1  ;;  %9302 = vmatmul.mubr.msk.bf16.gmra.mxu0 %vm3386_vm0, %v18311_v10  ;;  %9350 = vmatmul.mubr.msk.bf16.gmra.mxu1 %vm3386_vm0, %v18312_v44  ;;  %v18316_v10 = vld [vmem:[#allocation64_spill] sm:$0xff] }
 0x352   : > { %9303 = vmatprep.mubr.msk.bf16.mxu0 %vm3386_vm0, %v18313_v51  ;;  %9351 = vmatprep.mubr.msk.bf16.mxu1 %vm3386_vm0, %v18314_v25  ;;  %v4808_v13 = vmax.f32 %v13703_v58, %v13705_v8  ;;  %v13723_v52 = vmul.f32 0.17677669, %v3537_v43  ;;  %v4904_v0 = vmax.f32 %v13721_v55, %v13711_v50  ;;  %v13733_v46 = vmul.f32 0.17677669, %v3826_v40 }
 0x353   : > { %v3539_v41 = vpop.f32.mrf.mxu0  ;;  %v3828_v53 = vpop.f32.mrf.mxu1 }
 0x354   : > { %v13725_v16 = vmul.f32 0.17677669, %v3539_v41  ;;  %4902 = vmax.xlane.f32.xlu0 %v4901_v2  ;;  %4809 = vmax.xlane.f32.xlu1 %v4808_v13  ;;  %v13727_v19 = vmul.f32 0.17677669, %v3828_v53 }
 0x355   : > { %v3541_v62 = vpop.f32.mrf.mxu0  ;;  %v3830_v42 = vpop.f32.mrf.mxu1 }
 0x356   : > { %v4811_v47 = vmax.f32 %v13723_v52, %v13725_v16  ;;  %v13735_v5 = vmul.f32 0.17677669, %v3541_v62  ;;  %v4907_v44 = vmax.f32 %v13733_v46, %v13727_v19  ;;  %v13753_v23 = vmul.f32 0.17677669, %v3830_v42  ;;  %v18318_v42 = vld [vmem:[#allocation61_spill] sm:$0xff] }
 0x357   : > { %v3543_v33 = vpop.f32.mrf.mxu0  ;;  %v3832_v4 = vpop.f32.mrf.mxu1 }
 0x358   : > { %v13737_v32 = vmul.f32 0.17677669, %v3543_v33  ;;  %4905 = vmax.xlane.f32.xlu1 %v4904_v0  ;;  %4812 = vmax.xlane.f32.xlu0 %v4811_v47  ;;  %v13743_v37 = vmul.f32 0.17677669, %v3832_v4  ;;  %v18319_v0 = vld [vmem:[#allocation62_spill] sm:$0xff] }
 0x359   : > { %v3547_v20 = vpop.f32.mrf.mxu0  ;;  %v3836_v29 = vpop.f32.mrf.mxu1  ;;  %9304 = vmatmul.mubr.msk.bf16.gmra.mxu0 %vm3386_vm0, %v18313_v51  ;;  %9352 = vmatmul.mubr.msk.bf16.gmra.mxu1 %vm3386_vm0, %v18314_v25 }
 0x35a   : > { %9305 = vmatprep.mubr.msk.bf16.mxu0 %vm3386_vm0, %v18315_v28  ;;  %9353 = vmatprep.mubr.msk.bf16.mxu1 %vm3386_vm0, %v18316_v10  ;;  %v4814_v35 = vmax.f32 %v13735_v5, %v13737_v32  ;;  %v13755_v54 = vmul.f32 0.17677669, %v3547_v20  ;;  %v4910_v11 = vmax.f32 %v13753_v23, %v13743_v37  ;;  %v13765_v25 = vmul.f32 0.17677669, %v3836_v29 }
 0x35b   : > { %v3549_v57 = vpop.f32.mrf.mxu0  ;;  %v3838_v3 = vpop.f32.mrf.mxu1 }
 0x35c   : > { %v13757_v36 = vmul.f32 0.17677669, %v3549_v57  ;;  %4908 = vmax.xlane.f32.xlu0 %v4907_v44  ;;  %4815 = vmax.xlane.f32.xlu1 %v4814_v35  ;;  %v13759_v21 = vmul.f32 0.17677669, %v3838_v3 }
 0x35d   : > { %v3551_v15 = vpop.f32.mrf.mxu0  ;;  %v3840_v48 = vpop.f32.mrf.mxu1 }
 0x35e   : > { %v4817_v43 = vmax.f32 %v13755_v54, %v13757_v36  ;;  %v13767_v2 = vmul.f32 0.17677669, %v3551_v15  ;;  %v4913_v47 = vmax.f32 %v13765_v25, %v13759_v21  ;;  %v13785_v29 = vmul.f32 0.17677669, %v3840_v48 }
 0x35f   : > { %v3553_v40 = vpop.f32.mrf.mxu0  ;;  %v3842_v51 = vpop.f32.mrf.mxu1 }
 0x360   : > { %v13769_v13 = vmul.f32 0.17677669, %v3553_v40  ;;  %4911 = vmax.xlane.f32.xlu1 %v4910_v11  ;;  %4818 = vmax.xlane.f32.xlu0 %v4817_v43  ;;  %v13775_v62 = vmul.f32 0.17677669, %v3842_v51  ;;  %18320 = vst [vmem:[#allocation40_spill] sm:$0xff] %v13785_v29 }
 0x361   : > { %v3557_v41 = vpop.f32.mrf.mxu0  ;;  %v3846_v53 = vpop.f32.mrf.mxu1  ;;  %9306 = vmatmul.mubr.msk.bf16.gmra.mxu0 %vm3386_vm0, %v18315_v28  ;;  %9354 = vmatmul.mubr.msk.bf16.gmra.mxu1 %vm3386_vm0, %v18316_v10 }
 0x362   : > { %18317 = vst [vmem:[#allocation39_spill] sm:$0xff] %v13775_v62  ;;  %9307 = vmatprep.mubr.msk.bf16.mxu0 %vm3386_vm0, %v18318_v42  ;;  %9355 = vmatprep.mubr.msk.bf16.mxu1 %vm3386_vm0, %v18319_v0  ;;  %v4820_v33 = vmax.f32 %v13767_v2, %v13769_v13  ;;  %v13787_v28 = vmul.f32 0.17677669, %v3557_v41  ;;  %v4916_v3 = vmax.f32 %v13785_v29, %v13775_v62  ;;  %v13797_v48 = vmul.f32 0.17677669, %v3846_v53  ;;  %v18329_v53 = vld [vmem:[#allocation68_spill] sm:$0xff] }
 0x363   : > { %v3559_v4 = vpop.f32.mrf.mxu0  ;;  %v3848_v20 = vpop.f32.mrf.mxu1 }
 0x364   : > { %18321 = vst [vmem:[#allocation37_spill] sm:$0xff] %v13787_v28  ;;  %v13789_v10 = vmul.f32 0.17677669, %v3559_v4  ;;  %4914 = vmax.xlane.f32.xlu0 %v4913_v47  ;;  %4821 = vmax.xlane.f32.xlu1 %v4820_v33  ;;  %v13791_v57 = vmul.f32 0.17677669, %v3848_v20  ;;  %18324 = vst [vmem:[#allocation44_spill] sm:$0xff] %v13797_v48 }
 0x365   : > { %v3561_v44 = vpop.f32.mrf.mxu0  ;;  %v3850_v35 = vpop.f32.mrf.mxu1  ;;  %v18328_v4 = vld [vmem:[#allocation67_spill] sm:$0xff] }
 0x366   : > { %18322 = vst [vmem:[#allocation38_spill] sm:$0xff] %v13789_v10  ;;  %18323 = vst [vmem:[#allocation43_spill] sm:$0xff] %v13791_v57  ;;  %v4823_v15 = vmax.f32 %v13787_v28, %v13789_v10  ;;  %v13799_v40 = vmul.f32 0.17677669, %v3561_v44  ;;  %v4919_v20 = vmax.f32 %v13797_v48, %v13791_v57 }
 0x367   : > { %v3563_v11 = vpop.f32.mrf.mxu0  ;;  %v3852_v43 = vpop.f32.mrf.mxu1 }
 0x368   : > { %18325 = vst [vmem:[#allocation41_spill] sm:$0xff] %v13799_v40  ;;  %v13801_v51 = vmul.f32 0.17677669, %v3563_v11  ;;  %4917 = vmax.xlane.f32.xlu1 %v4916_v3  ;;  %4824 = vmax.xlane.f32.xlu0 %v4823_v15  ;;  %v13807_v33 = vmul.f32 0.17677669, %v3852_v43 }
 0x369   : > { %v3567_v41 = vpop.f32.mrf.mxu0  ;;  %v3856_v47 = vpop.f32.mrf.mxu1  ;;  %9308 = vmatmul.mubr.msk.bf16.gmra.mxu0 %vm3386_vm0, %v18318_v42  ;;  %9356 = vmatmul.mubr.msk.bf16.gmra.mxu1 %vm3386_vm0, %v18319_v0  ;;  %v13817_v42 = vmul.f32 0.17677669, %v3850_v35 }
 0x36a   : > { %18326 = vst [vmem:[#allocation42_spill] sm:$0xff] %v13801_v51  ;;  %18327 = vst [vmem:[#allocation71_spill] sm:$0xff] %v13807_v33  ;;  %9309 = vmatprep.mubr.msk.bf16.mxu0 %vm3386_vm0, %v18328_v4  ;;  %9357 = vmatprep.mubr.msk.bf16.mxu1 %vm3386_vm0, %v18329_v53  ;;  %v4826_v44 = vmax.f32 %v13799_v40, %v13801_v51  ;;  %v13819_v11 = vmul.f32 0.17677669, %v3567_v41  ;;  %v13829_v35 = vmul.f32 0.17677669, %v3856_v47 }
 0x36b   : > { %v3569_v3 = vpop.f32.mrf.mxu0  ;;  %v3858_v15 = vpop.f32.mrf.mxu1  ;;  %18330 = vst [vmem:[#allocation77_spill] sm:$0xff] %v13817_v42  ;;  %v4922_v57 = vmax.f32 %v13817_v42, %v13807_v33  ;;  %v18339_v47 = vld [vmem:[#allocation66_spill] sm:$0xff] }
 0x36c   : > { %18331 = vst [vmem:[#allocation69_spill] sm:$0xff] %v13819_v11  ;;  %v13821_v0 = vmul.f32 0.17677669, %v3569_v3  ;;  %4920 = vmax.xlane.f32.xlu0 %v4919_v20  ;;  %4827 = vmax.xlane.f32.xlu1 %v4826_v44  ;;  %v13823_v10 = vmul.f32 0.17677669, %v3858_v15  ;;  %18334 = vst [vmem:[#allocation47_spill] sm:$0xff] %v13829_v35 }
 0x36d   : > { %v3571_v43 = vpop.f32.mrf.mxu0  ;;  %v3860_v6 = vpop.f32.mrf.mxu1 }
 0x36e   : > { %18332 = vst [vmem:[#allocation72_spill] sm:$0xff] %v13821_v0  ;;  %18333 = vst [vmem:[#allocation74_spill] sm:$0xff] %v13823_v10  ;;  %v4829_v51 = vmax.f32 %v13819_v11, %v13821_v0  ;;  %v13831_v41 = vmul.f32 0.17677669, %v3571_v43  ;;  %v18338_v0 = vld [vmem:[#allocation65_spill] sm:$0xff] }
 0x36f   : > { %v3573_v40 = vpop.f32.mrf.mxu0  ;;  %v3862_v48 = vpop.f32.mrf.mxu1 }
 0x370   : > { %18335 = vst [vmem:[#allocation48_spill] sm:$0xff] %v13831_v41  ;;  %v13833_v3 = vmul.f32 0.17677669, %v3573_v40  ;;  %4923 = vmax.xlane.f32.xlu1 %v4922_v57  ;;  %4830 = vmax.xlane.f32.xlu0 %v4829_v51  ;;  %v13839_v15 = vmul.f32 0.17677669, %v3862_v48  ;;  %v4925_v57 = vmax.f32 %v13829_v35, %v13823_v10 }
 0x371   : > { %v3577_v20 = vpop.f32.mrf.mxu0  ;;  %v3866_v44 = vpop.f32.mrf.mxu1  ;;  %9310 = vmatmul.mubr.msk.bf16.gmra.mxu0 %vm3386_vm0, %v18328_v4  ;;  %9358 = vmatmul.mubr.msk.bf16.gmra.mxu1 %vm3386_vm0, %v18329_v53  ;;  %v13849_v4 = vmul.f32 0.17677669, %v3860_v6 }
 0x372   : > { %18336 = vst [vmem:[#allocation76_spill] sm:$0xff] %v13833_v3  ;;  %18337 = vst [vmem:[#allocation70_spill] sm:$0xff] %v13839_v15  ;;  %9311 = vmatprep.mubr.msk.bf16.mxu0 %vm3386_vm0, %v18338_v0  ;;  %9359 = vmatprep.mubr.msk.bf16.mxu1 %vm3386_vm0, %v18339_v47  ;;  %v4832_v40 = vmax.f32 %v13831_v41, %v13833_v3  ;;  %v13851_v11 = vmul.f32 0.17677669, %v3577_v20  ;;  %v13861_v6 = vmul.f32 0.17677669, %v3866_v44 }
 0x373   : > { %v3579_v51 = vpop.f32.mrf.mxu0  ;;  %v3868_v43 = vpop.f32.mrf.mxu1  ;;  %18340 = vst [vmem:[#allocation75_spill] sm:$0xff] %v13849_v4  ;;  %v4928_v10 = vmax.f32 %v13849_v4, %v13839_v15 }
 0x374   : > { %18341 = vst [vmem:[#allocation73_spill] sm:$0xff] %v13851_v11  ;;  %v13853_v48 = vmul.f32 0.17677669, %v3579_v51  ;;  %4926 = vmax.xlane.f32.xlu0 %v4925_v57  ;;  %4833 = vmax.xlane.f32.xlu1 %v4832_v40  ;;  %v13855_v42 = vmul.f32 0.17677669, %v3868_v43  ;;  %18344 = vst [vmem:[#allocation51_spill] sm:$0xff] %v13861_v6 }
 0x375   : > { %v3581_v53 = vpop.f32.mrf.mxu0  ;;  %v3870_v33 = vpop.f32.mrf.mxu1 }
 0x376   : > { %18342 = vst [vmem:[#allocation45_spill] sm:$0xff] %v13853_v48  ;;  %18343 = vst [vmem:[#allocation46_spill] sm:$0xff] %v13855_v42  ;;  %v4835_v3 = vmax.f32 %v13851_v11, %v13853_v48  ;;  %v13863_v20 = vmul.f32 0.17677669, %v3581_v53  ;;  %v4931_v44 = vmax.f32 %v13861_v6, %v13855_v42 }
 0x377   : > { %v3583_v41 = vpop.f32.mrf.mxu0  ;;  %v3872_v35 = vpop.f32.mrf.mxu1 }
 0x378   : > { %18345 = vst [vmem:[#allocation52_spill] sm:$0xff] %v13863_v20  ;;  %v13865_v51 = vmul.f32 0.17677669, %v3583_v41  ;;  %4929 = vmax.xlane.f32.xlu1 %v4928_v10  ;;  %4836 = vmax.xlane.f32.xlu0 %v4835_v3  ;;  %v13871_v43 = vmul.f32 0.17677669, %v3872_v35 }
 0x379   : > { %v3587_v57 = vpop.f32.mrf.mxu0  ;;  %v3876_v40 = vpop.f32.mrf.mxu1  ;;  %9312 = vmatmul.mubr.msk.bf16.gmra.mxu0 %vm3386_vm0, %v18338_v0  ;;  %9360 = vmatmul.mubr.msk.bf16.gmra.mxu1 %vm3386_vm0, %v18339_v47  ;;  %v13877_v10 = vmul.f32 0.17677669, %v3870_v33 }
 0x37a   : > { %18346 = vst [vmem:[#allocation49_spill] sm:$0xff] %v13865_v51  ;;  %18347 = vst [vmem:[#allocation50_spill] sm:$0xff] %v13871_v43  ;;  %v4838_v53 = vmax.f32 %v13863_v20, %v13865_v51  ;;  %v13879_v3 = vmul.f32 0.17677669, %v3587_v57  ;;  %v13889_v33 = vmul.f32 0.17677669, %v3876_v40 }
 0x37b   : > { %v3589_v41 = vpop.f32.mrf.mxu0  ;;  %v3878_v48 = vpop.f32.mrf.mxu1  ;;  %18348 = vst [vmem:[#allocation55_spill] sm:$0xff] %v13877_v10  ;;  %v4934_v42 = vmax.f32 %v13877_v10, %v13871_v43 }
 0x37c   : > { %18349 = vst [vmem:[#allocation56_spill] sm:$0xff] %v13879_v3  ;;  %v13881_v11 = vmul.f32 0.17677669, %v3589_v41  ;;  %4932 = vmax.xlane.f32.xlu0 %v4931_v44  ;;  %4839 = vmax.xlane.f32.xlu1 %v4838_v53  ;;  %v13883_v35 = vmul.f32 0.17677669, %v3878_v48  ;;  %18352 = vst [vmem:[#allocation59_spill] sm:$0xff] %v13889_v33 }
 0x37d   : > { %v3591_v0 = vpop.f32.mrf.mxu0  ;;  %v3880_v47 = vpop.f32.mrf.mxu1 }
 0x37e   : > { %18350 = vst [vmem:[#allocation53_spill] sm:$0xff] %v13881_v11  ;;  %18351 = vst [vmem:[#allocation54_spill] sm:$0xff] %v13883_v35  ;;  %v4841_v51 = vmax.f32 %v13879_v3, %v13881_v11  ;;  %v13891_v57 = vmul.f32 0.17677669, %v3591_v0  ;;  %v4937_v43 = vmax.f32 %v13889_v33, %v13883_v35  ;;  %v13901_v40 = vmul.f32 0.17677669, %v3880_v47 }
 0x37f   : > { %v3593_v20 = vpop.f32.mrf.mxu0  ;;  %v3882_v6 = vpop.f32.mrf.mxu1 }
 0x380   : > { %18353 = vst [vmem:[#allocation60_spill] sm:$0xff] %v13891_v57  ;;  %v13893_v41 = vmul.f32 0.17677669, %v3593_v20  ;;  %4935 = vmax.xlane.f32.xlu1 %v4934_v42  ;;  %4842 = vmax.xlane.f32.xlu0 %v4841_v51  ;;  %v13895_v48 = vmul.f32 0.17677669, %v3882_v6  ;;  %18356 = vst [vmem:[#allocation63_spill] sm:$0xff] %v13901_v40 }
 0x381   : > { %v3597_v44 = vpop.f32.mrf.mxu0  ;;  %v3886_v53 = vpop.f32.mrf.mxu1 }
 0x382   : > { %18354 = vst [vmem:[#allocation57_spill] sm:$0xff] %v13893_v41  ;;  %18355 = vst [vmem:[#allocation58_spill] sm:$0xff] %v13895_v48  ;;  %v4844_v11 = vmax.f32 %v13891_v57, %v13893_v41  ;;  %v13903_v0 = vmul.f32 0.17677669, %v3597_v44  ;;  %v4940_v35 = vmax.f32 %v13901_v40, %v13895_v48  ;;  %v13913_v47 = vmul.f32 0.17677669, %v3886_v53 }
 0x383   : > { %v3599_v3 = vpop.f32.mrf.mxu0  ;;  %v3888_v10 = vpop.f32.mrf.mxu1 }
 0x384   : > { %18357 = vst [vmem:[#allocation64_spill] sm:$0xff] %v13903_v0  ;;  %v13905_v20 = vmul.f32 0.17677669, %v3599_v3  ;;  %4938 = vmax.xlane.f32.xlu0 %v4937_v43  ;;  %4845 = vmax.xlane.f32.xlu1 %v4844_v11  ;;  %v13907_v6 = vmul.f32 0.17677669, %v3888_v10  ;;  %18360 = vst [vmem:[#allocation67_spill] sm:$0xff] %v13913_v47 }
 0x385   : > { %v3601_v42 = vpop.f32.mrf.mxu0  ;;  %v3890_v51 = vpop.f32.mrf.mxu1 }
 0x386   : > { %18358 = vst [vmem:[#allocation61_spill] sm:$0xff] %v13905_v20  ;;  %18359 = vst [vmem:[#allocation62_spill] sm:$0xff] %v13907_v6  ;;  %v4847_v41 = vmax.f32 %v13903_v0, %v13905_v20  ;;  %v13915_v44 = vmul.f32 0.17677669, %v3601_v42  ;;  %v4943_v48 = vmax.f32 %v13913_v47, %v13907_v6  ;;  %v13925_v53 = vmul.f32 0.17677669, %v3890_v51 }
 0x387   : > { %v3603_v57 = vpop.f32.mrf.mxu0  ;;  %v3892_v33 = vpop.f32.mrf.mxu1 }
 0x388   : > { %18361 = vst [vmem:[#allocation68_spill] sm:$0xff] %v13915_v44  ;;  %v13917_v3 = vmul.f32 0.17677669, %v3603_v57  ;;  %4941 = vmax.xlane.f32.xlu1 %v4940_v35  ;;  %4848 = vmax.xlane.f32.xlu0 %v4847_v41  ;;  %v13919_v10 = vmul.f32 0.17677669, %v3892_v33  ;;  %18364 = vst [vmem:[#allocation98_spill] sm:$0xff] %v13925_v53 }
 0x389   : > { %v3607_v11 = vpop.f32.mrf.mxu0  ;;  %v3896_v43 = vpop.f32.mrf.mxu1 }
 0x38a   : > { %18362 = vst [vmem:[#allocation65_spill] sm:$0xff] %v13917_v3  ;;  %18363 = vst [vmem:[#allocation66_spill] sm:$0xff] %v13919_v10  ;;  %v4850_v20 = vmax.f32 %v13915_v44, %v13917_v3  ;;  %v13927_v42 = vmul.f32 0.17677669, %v3607_v11  ;;  %v4946_v6 = vmax.f32 %v13925_v53, %v13919_v10  ;;  %v13937_v51 = vmul.f32 0.17677669, %v3896_v43 }
 0x38b   : > { %v3609_v0 = vpop.f32.mrf.mxu0  ;;  %v3898_v40 = vpop.f32.mrf.mxu1 }
 0x38c   : > { %18365 = vst [vmem:[#allocation99_spill] sm:$0xff] %v13927_v42  ;;  %v13929_v57 = vmul.f32 0.17677669, %v3609_v0  ;;  %4944 = vmax.xlane.f32.xlu0 %v4943_v48  ;;  %4851 = vmax.xlane.f32.xlu1 %v4850_v20  ;;  %v13931_v33 = vmul.f32 0.17677669, %v3898_v40  ;;  %18368 = vst [vmem:[#allocation102_spill] sm:$0xff] %v13937_v51 }
 0x38d   : > { %v3611_v35 = vpop.f32.mrf.mxu0  ;;  %v3900_v41 = vpop.f32.mrf.mxu1 }
 0x38e   : > { %18366 = vst [vmem:[#allocation100_spill] sm:$0xff] %v13929_v57  ;;  %18367 = vst [vmem:[#allocation101_spill] sm:$0xff] %v13931_v33  ;;  %v4853_v3 = vmax.f32 %v13927_v42, %v13929_v57  ;;  %v13939_v11 = vmul.f32 0.17677669, %v3611_v35  ;;  %v4949_v10 = vmax.f32 %v13937_v51, %v13931_v33  ;;  %v13949_v43 = vmul.f32 0.17677669, %v3900_v41 }
 0x38f   : > { %v3613_v44 = vpop.f32.mrf.mxu0  ;;  %v3902_v47 = vpop.f32.mrf.mxu1 }
 0x390   : > { %18369 = vst [vmem:[#allocation103_spill] sm:$0xff] %v13939_v11  ;;  %v13941_v0 = vmul.f32 0.17677669, %v3613_v44  ;;  %4947 = vmax.xlane.f32.xlu1 %v4946_v6  ;;  %4854 = vmax.xlane.f32.xlu0 %v4853_v3  ;;  %v13943_v40 = vmul.f32 0.17677669, %v3902_v47  ;;  %18372 = vst [vmem:[#allocation106_spill] sm:$0xff] %v13949_v43 }
 0x391   : > { %v3617_v48 = vpop.f32.mrf.mxu0  ;;  %v3906_v20 = vpop.f32.mrf.mxu1 }
 0x392   : > { %18370 = vst [vmem:[#allocation104_spill] sm:$0xff] %v13941_v0  ;;  %18371 = vst [vmem:[#allocation105_spill] sm:$0xff] %v13943_v40  ;;  %v4856_v57 = vmax.f32 %v13939_v11, %v13941_v0  ;;  %v13951_v35 = vmul.f32 0.17677669, %v3617_v48  ;;  %v4952_v33 = vmax.f32 %v13949_v43, %v13943_v40  ;;  %v13961_v41 = vmul.f32 0.17677669, %v3906_v20 }
 0x393   : > { %v3619_v42 = vpop.f32.mrf.mxu0  ;;  %v3908_v53 = vpop.f32.mrf.mxu1 }
 0x394   : > { %18373 = vst [vmem:[#allocation107_spill] sm:$0xff] %v13951_v35  ;;  %v13953_v44 = vmul.f32 0.17677669, %v3619_v42  ;;  %4950 = vmax.xlane.f32.xlu0 %v4949_v10  ;;  %4857 = vmax.xlane.f32.xlu1 %v4856_v57  ;;  %v13955_v47 = vmul.f32 0.17677669, %v3908_v53  ;;  %18376 = vst [vmem:[#allocation110_spill] sm:$0xff] %v13961_v41 }
 0x395   : > { %v3621_v6 = vpop.f32.mrf.mxu0  ;;  %v3910_v3 = vpop.f32.mrf.mxu1 }
 0x396   : > { %18374 = vst [vmem:[#allocation108_spill] sm:$0xff] %v13953_v44  ;;  %18375 = vst [vmem:[#allocation109_spill] sm:$0xff] %v13955_v47  ;;  %v4859_v0 = vmax.f32 %v13951_v35, %v13953_v44  ;;  %v13963_v48 = vmul.f32 0.17677669, %v3621_v6  ;;  %v4955_v40 = vmax.f32 %v13961_v41, %v13955_v47  ;;  %v13973_v20 = vmul.f32 0.17677669, %v3910_v3 }
 0x397   : > { %v3623_v11 = vpop.f32.mrf.mxu0  ;;  %v3912_v51 = vpop.f32.mrf.mxu1 }
 0x398   : > { %18377 = vst [vmem:[#allocation111_spill] sm:$0xff] %v13963_v48  ;;  %v13965_v42 = vmul.f32 0.17677669, %v3623_v11  ;;  %4953 = vmax.xlane.f32.xlu1 %v4952_v33  ;;  %4860 = vmax.xlane.f32.xlu0 %v4859_v0  ;;  %v13967_v53 = vmul.f32 0.17677669, %v3912_v51  ;;  %18380 = vst [vmem:[#allocation114_spill] sm:$0xff] %v13973_v20 }
 0x399   : > { %v3627_v10 = vpop.f32.mrf.mxu0  ;;  %v3916_v57 = vpop.f32.mrf.mxu1 }
 0x39a   : > { %18378 = vst [vmem:[#allocation112_spill] sm:$0xff] %v13965_v42  ;;  %18379 = vst [vmem:[#allocation113_spill] sm:$0xff] %v13967_v53  ;;  %v4862_v44 = vmax.f32 %v13963_v48, %v13965_v42  ;;  %v13975_v6 = vmul.f32 0.17677669, %v3627_v10  ;;  %v4958_v47 = vmax.f32 %v13973_v20, %v13967_v53  ;;  %v13985_v3 = vmul.f32 0.17677669, %v3916_v57 }
 0x39b   : > { %v3629_v35 = vpop.f32.mrf.mxu0  ;;  %v3918_v43 = vpop.f32.mrf.mxu1 }
 0x39c   : > { %18381 = vst [vmem:[#allocation115_spill] sm:$0xff] %v13975_v6  ;;  %v13977_v11 = vmul.f32 0.17677669, %v3629_v35  ;;  %4956 = vmax.xlane.f32.xlu0 %v4955_v40  ;;  %4863 = vmax.xlane.f32.xlu1 %v4862_v44  ;;  %v13979_v51 = vmul.f32 0.17677669, %v3918_v43  ;;  %18384 = vst [vmem:[#allocation118_spill] sm:$0xff] %v13985_v3 }
 0x39d   : > { %v3631_v33 = vpop.f32.mrf.mxu0  ;;  %v3920_v0 = vpop.f32.mrf.mxu1 }
 0x39e   : > { %18382 = vst [vmem:[#allocation116_spill] sm:$0xff] %v13977_v11  ;;  %18383 = vst [vmem:[#allocation117_spill] sm:$0xff] %v13979_v51  ;;  %v4865_v42 = vmax.f32 %v13975_v6, %v13977_v11  ;;  %v13987_v10 = vmul.f32 0.17677669, %v3631_v33  ;;  %v4961_v53 = vmax.f32 %v13985_v3, %v13979_v51  ;;  %v13997_v57 = vmul.f32 0.17677669, %v3920_v0 }
 0x39f   : > { %v3633_v48 = vpop.f32.mrf.mxu0  ;;  %v3922_v41 = vpop.f32.mrf.mxu1 }
 0x3a0   : > { %18385 = vst [vmem:[#allocation119_spill] sm:$0xff] %v13987_v10  ;;  %v13989_v35 = vmul.f32 0.17677669, %v3633_v48  ;;  %4959 = vmax.xlane.f32.xlu1 %v4958_v47  ;;  %4866 = vmax.xlane.f32.xlu0 %v4865_v42  ;;  %v13991_v43 = vmul.f32 0.17677669, %v3922_v41  ;;  %18388 = vst [vmem:[#allocation122_spill] sm:$0xff] %v13997_v57 }
 0x3a1   : > { %v3637_v40 = vpop.f32.mrf.mxu0  ;;  %v3926_v44 = vpop.f32.mrf.mxu1 }
 0x3a2   : > { %18386 = vst [vmem:[#allocation120_spill] sm:$0xff] %v13989_v35  ;;  %18387 = vst [vmem:[#allocation121_spill] sm:$0xff] %v13991_v43  ;;  %v4868_v11 = vmax.f32 %v13987_v10, %v13989_v35  ;;  %v13999_v33 = vmul.f32 0.17677669, %v3637_v40  ;;  %v4964_v51 = vmax.f32 %v13997_v57, %v13991_v43  ;;  %v14009_v0 = vmul.f32 0.17677669, %v3926_v44 }
 0x3a3   : > { %v3639_v6 = vpop.f32.mrf.mxu0  ;;  %v3928_v20 = vpop.f32.mrf.mxu1 }
 0x3a4   : > { %18389 = vst [vmem:[#allocation123_spill] sm:$0xff] %v13999_v33  ;;  %v14001_v48 = vmul.f32 0.17677669, %v3639_v6  ;;  %4962 = vmax.xlane.f32.xlu0 %v4961_v53  ;;  %4869 = vmax.xlane.f32.xlu1 %v4868_v11  ;;  %v14003_v41 = vmul.f32 0.17677669, %v3928_v20  ;;  %18392 = vst [vmem:[#allocation126_spill] sm:$0xff] %v14009_v0 }
 0x3a5   : > { %v3641_v47 = vpop.f32.mrf.mxu0  ;;  %v3930_v42 = vpop.f32.mrf.mxu1 }
 0x3a6   : > { %18390 = vst [vmem:[#allocation124_spill] sm:$0xff] %v14001_v48  ;;  %18391 = vst [vmem:[#allocation125_spill] sm:$0xff] %v14003_v41  ;;  %v4871_v10 = vmax.f32 %v13999_v33, %v14001_v48  ;;  %v14011_v40 = vmul.f32 0.17677669, %v3641_v47  ;;  %v4967_v43 = vmax.f32 %v14009_v0, %v14003_v41  ;;  %v14021_v44 = vmul.f32 0.17677669, %v3930_v42 }
 0x3a7   : > { %v3643_v35 = vpop.f32.mrf.mxu0  ;;  %v3932_v3 = vpop.f32.mrf.mxu1 }
 0x3a8   : > { %18393 = vst [vmem:[#allocation127_spill] sm:$0xff] %v14011_v40  ;;  %v14013_v6 = vmul.f32 0.17677669, %v3643_v35  ;;  %4965 = vmax.xlane.f32.xlu1 %v4964_v51  ;;  %4872 = vmax.xlane.f32.xlu0 %v4871_v10  ;;  %v14015_v20 = vmul.f32 0.17677669, %v3932_v3  ;;  %18396 = vst [vmem:[#allocation130_spill] sm:$0xff] %v14021_v44 }
 0x3a9   : > { %v3647_v53 = vpop.f32.mrf.mxu0  ;;  %v3936_v11 = vpop.f32.mrf.mxu1 }
 0x3aa   : > { %18394 = vst [vmem:[#allocation128_spill] sm:$0xff] %v14013_v6  ;;  %18395 = vst [vmem:[#allocation129_spill] sm:$0xff] %v14015_v20  ;;  %v4874_v48 = vmax.f32 %v14011_v40, %v14013_v6  ;;  %v14023_v47 = vmul.f32 0.17677669, %v3647_v53  ;;  %v4970_v41 = vmax.f32 %v14021_v44, %v14015_v20  ;;  %v14033_v42 = vmul.f32 0.17677669, %v3936_v11 }
 0x3ab   : > { %v3649_v33 = vpop.f32.mrf.mxu0  ;;  %v3938_v57 = vpop.f32.mrf.mxu1 }
 0x3ac   : > { %18397 = vst [vmem:[#allocation131_spill] sm:$0xff] %v14023_v47  ;;  %v14025_v35 = vmul.f32 0.17677669, %v3649_v33  ;;  %4968 = vmax.xlane.f32.xlu0 %v4967_v43  ;;  %4875 = vmax.xlane.f32.xlu1 %v4874_v48  ;;  %v14027_v3 = vmul.f32 0.17677669, %v3938_v57  ;;  %18400 = vst [vmem:[#allocation134_spill] sm:$0xff] %v14033_v42 }
 0x3ad   : > { %v3651_v51 = vpop.f32.mrf.mxu0  ;;  %v3940_v10 = vpop.f32.mrf.mxu1 }
 0x3ae   : > { %18398 = vst [vmem:[#allocation132_spill] sm:$0xff] %v14025_v35  ;;  %18399 = vst [vmem:[#allocation133_spill] sm:$0xff] %v14027_v3  ;;  %v4877_v6 = vmax.f32 %v14023_v47, %v14025_v35  ;;  %v14035_v53 = vmul.f32 0.17677669, %v3651_v51  ;;  %v4973_v20 = vmax.f32 %v14033_v42, %v14027_v3  ;;  %v14045_v11 = vmul.f32 0.17677669, %v3940_v10 }
 0x3af   : > { %v3653_v0 = vpop.f32.mrf.mxu0  ;;  %v3942_v40 = vpop.f32.mrf.mxu1 }
 0x3b0   : > { %18401 = vst [vmem:[#allocation135_spill] sm:$0xff] %v14035_v53  ;;  %v14037_v33 = vmul.f32 0.17677669, %v3653_v0  ;;  %4971 = vmax.xlane.f32.xlu1 %v4970_v41  ;;  %4878 = vmax.xlane.f32.xlu0 %v4877_v6  ;;  %v14039_v57 = vmul.f32 0.17677669, %v3942_v40  ;;  %18404 = vst [vmem:[#allocation138_spill] sm:$0xff] %v14045_v11 }
 0x3b1   : > { %v3657_v43 = vpop.f32.mrf.mxu0  ;;  %v3946_v48 = vpop.f32.mrf.mxu1 }
 0x3b2   : > { %18402 = vst [vmem:[#allocation136_spill] sm:$0xff] %v14037_v33  ;;  %18403 = vst [vmem:[#allocation137_spill] sm:$0xff] %v14039_v57  ;;  %v4880_v35 = vmax.f32 %v14035_v53, %v14037_v33  ;;  %v14047_v51 = vmul.f32 0.17677669, %v3657_v43  ;;  %v4976_v3 = vmax.f32 %v14045_v11, %v14039_v57  ;;  %v14057_v10 = vmul.f32 0.17677669, %v3946_v48 }
 0x3b3   : > { %v3659_v47 = vpop.f32.mrf.mxu0  ;;  %v3948_v44 = vpop.f32.mrf.mxu1 }
 0x3b4   : > { %18405 = vst [vmem:[#allocation139_spill] sm:$0xff] %v14047_v51  ;;  %v14049_v0 = vmul.f32 0.17677669, %v3659_v47  ;;  %4974 = vmax.xlane.f32.xlu0 %v4973_v20  ;;  %4881 = vmax.xlane.f32.xlu1 %v4880_v35  ;;  %v14051_v40 = vmul.f32 0.17677669, %v3948_v44  ;;  %18408 = vst [vmem:[#allocation142_spill] sm:$0xff] %v14057_v10 }
 0x3b5   : > { %v3661_v41 = vpop.f32.mrf.mxu0  ;;  %v3950_v6 = vpop.f32.mrf.mxu1 }
 0x3b6   : > { %18406 = vst [vmem:[#allocation140_spill] sm:$0xff] %v14049_v0  ;;  %18407 = vst [vmem:[#allocation141_spill] sm:$0xff] %v14051_v40  ;;  %v4883_v33 = vmax.f32 %v14047_v51, %v14049_v0  ;;  %v14059_v43 = vmul.f32 0.17677669, %v3661_v41  ;;  %v4979_v57 = vmax.f32 %v14057_v10, %v14051_v40  ;;  %v14069_v48 = vmul.f32 0.17677669, %v3950_v6 }
 0x3b7   : > { %v3663_v53 = vpop.f32.mrf.mxu0  ;;  %v3952_v42 = vpop.f32.mrf.mxu1 }
 0x3b8   : > { %18409 = vst [vmem:[#allocation143_spill] sm:$0xff] %v14059_v43  ;;  %v14061_v47 = vmul.f32 0.17677669, %v3663_v53  ;;  %4977 = vmax.xlane.f32.xlu1 %v4976_v3  ;;  %4884 = vmax.xlane.f32.xlu0 %v4883_v33  ;;  %v14063_v44 = vmul.f32 0.17677669, %v3952_v42  ;;  %18412 = vst [vmem:[#allocation146_spill] sm:$0xff] %v14069_v48 }
 0x3b9   : > { %v3667_v20 = vpop.f32.mrf.mxu0  ;;  %v3956_v35 = vpop.f32.mrf.mxu1 }
 0x3ba   : > { %18410 = vst [vmem:[#allocation144_spill] sm:$0xff] %v14061_v47  ;;  %18411 = vst [vmem:[#allocation145_spill] sm:$0xff] %v14063_v44  ;;  %v4886_v0 = vmax.f32 %v14059_v43, %v14061_v47  ;;  %v14071_v41 = vmul.f32 0.17677669, %v3667_v20  ;;  %v4982_v40 = vmax.f32 %v14069_v48, %v14063_v44  ;;  %v14081_v6 = vmul.f32 0.17677669, %v3956_v35 }
 0x3bb   : > { %v3669_v51 = vpop.f32.mrf.mxu0  ;;  %v3958_v11 = vpop.f32.mrf.mxu1 }
 0x3bc   : > { %18413 = vst [vmem:[#allocation147_spill] sm:$0xff] %v14071_v41  ;;  %v14073_v53 = vmul.f32 0.17677669, %v3669_v51  ;;  %4980 = vmax.xlane.f32.xlu0 %v4979_v57  ;;  %4887 = vmax.xlane.f32.xlu1 %v4886_v0  ;;  %v14075_v42 = vmul.f32 0.17677669, %v3958_v11  ;;  %18416 = vst [vmem:[#allocation150_spill] sm:$0xff] %v14081_v6 }
 0x3bd   : > { %v3671_v3 = vpop.f32.mrf.mxu0  ;;  %v3960_v33 = vpop.f32.mrf.mxu1 }
 0x3be   : > { %18414 = vst [vmem:[#allocation148_spill] sm:$0xff] %v14073_v53  ;;  %18415 = vst [vmem:[#allocation149_spill] sm:$0xff] %v14075_v42  ;;  %v4889_v47 = vmax.f32 %v14071_v41, %v14073_v53  ;;  %v14083_v20 = vmul.f32 0.17677669, %v3671_v3  ;;  %v4985_v44 = vmax.f32 %v14081_v6, %v14075_v42  ;;  %v14093_v35 = vmul.f32 0.17677669, %v3960_v33 }
 0x3bf   : > { %v3673_v43 = vpop.f32.mrf.mxu0  ;;  %v3962_v10 = vpop.f32.mrf.mxu1 }
 0x3c0   : > { %18417 = vst [vmem:[#allocation151_spill] sm:$0xff] %v14083_v20  ;;  %v14085_v51 = vmul.f32 0.17677669, %v3673_v43  ;;  %4983 = vmax.xlane.f32.xlu1 %v4982_v40  ;;  %4890 = vmax.xlane.f32.xlu0 %v4889_v47  ;;  %v14087_v11 = vmul.f32 0.17677669, %v3962_v10  ;;  %18420 = vst [vmem:[#allocation154_spill] sm:$0xff] %v14093_v35 }
 0x3c1   : > { %v4095_v57 = vpop.f32.mrf.mxu0  ;;  %v4384_v0 = vpop.f32.mrf.mxu1 }
 0x3c2   : > { %18418 = vst [vmem:[#allocation152_spill] sm:$0xff] %v14085_v51  ;;  %18419 = vst [vmem:[#allocation153_spill] sm:$0xff] %v14087_v11  ;;  %v4892_v53 = vmax.f32 %v14083_v20, %v14085_v51  ;;  %v14095_v3 = vmul.f32 0.17677669, %v4095_v57  ;;  %v4988_v42 = vmax.f32 %v14093_v35, %v14087_v11  ;;  %v14105_v33 = vmul.f32 0.17677669, %v4384_v0 }
 0x3c3   : > { %v4097_v41 = vpop.f32.mrf.mxu0  ;;  %v4386_v48 = vpop.f32.mrf.mxu1 }
 0x3c4   : > { %18421 = vst [vmem:[#allocation155_spill] sm:$0xff] %v14095_v3  ;;  %v14097_v43 = vmul.f32 0.17677669, %v4097_v41  ;;  %4986 = vmax.xlane.f32.xlu0 %v4985_v44  ;;  %4893 = vmax.xlane.f32.xlu1 %v4892_v53  ;;  %v14099_v10 = vmul.f32 0.17677669, %v4386_v48  ;;  %18424 = vst [vmem:[#allocation158_spill] sm:$0xff] %v14105_v33 }
 0x3c5   : > { %v4099_v40 = vpop.f32.mrf.mxu0  ;;  %v4388_v47 = vpop.f32.mrf.mxu1 }
 0x3c6   : > { %18422 = vst [vmem:[#allocation156_spill] sm:$0xff] %v14097_v43  ;;  %18423 = vst [vmem:[#allocation157_spill] sm:$0xff] %v14099_v10  ;;  %v4991_v51 = vmax.f32 %v14095_v3, %v14097_v43  ;;  %v14107_v57 = vmul.f32 0.17677669, %v4099_v40  ;;  %v5087_v48 = vmax.f32 %v14105_v33, %v14099_v10  ;;  %v14117_v0 = vmul.f32 0.17677669, %v4388_v47 }
 0x3c7   : > { %v4101_v20 = vpop.f32.mrf.mxu0  ;;  %v4390_v6 = vpop.f32.mrf.mxu1 }
 0x3c8   : > { %18425 = vst [vmem:[#allocation159_spill] sm:$0xff] %v14107_v57  ;;  %v14109_v41 = vmul.f32 0.17677669, %v4101_v20  ;;  %4989 = vmax.xlane.f32.xlu1 %v4988_v42  ;;  %4992 = vmax.xlane.f32.xlu0 %v4991_v51  ;;  %v14113_v15 = vmul.f32 0.17677669, %v4390_v6  ;;  %18428 = vst [vmem:[#allocation162_spill] sm:$0xff] %v14117_v0 }
 0x3c9   : > { %v4105_v44 = vpop.f32.mrf.mxu0  ;;  %v4394_v53 = vpop.f32.mrf.mxu1 }
 0x3ca   : > { %18426 = vst [vmem:[#allocation160_spill] sm:$0xff] %v14109_v41  ;;  %18427 = vst [vmem:[#allocation161_spill] sm:$0xff] %v14113_v15  ;;  %v4994_v43 = vmax.f32 %v14107_v57, %v14109_v41  ;;  %v14119_v40 = vmul.f32 0.17677669, %v4105_v44  ;;  %v5090_v10 = vmax.f32 %v14117_v0, %v14113_v15  ;;  %v14129_v47 = vmul.f32 0.17677669, %v4394_v53 }
 0x3cb   : > { %v4107_v3 = vpop.f32.mrf.mxu0  ;;  %v4396_v11 = vpop.f32.mrf.mxu1 }
 0x3cc   : > { %18429 = vst [vmem:[#allocation163_spill] sm:$0xff] %v14119_v40  ;;  %v14121_v20 = vmul.f32 0.17677669, %v4107_v3  ;;  %5088 = vmax.xlane.f32.xlu0 %v5087_v48  ;;  %4995 = vmax.xlane.f32.xlu1 %v4994_v43  ;;  %v14127_v33 = vmul.f32 0.17677669, %v4396_v11  ;;  %18432 = vst [vmem:[#allocation166_spill] sm:$0xff] %v14129_v47 }
 0x3cd   : > { %v4109_v42 = vpop.f32.mrf.mxu0  ;;  %v4398_v51 = vpop.f32.mrf.mxu1 }
 0x3ce   : > { %18430 = vst [vmem:[#allocation164_spill] sm:$0xff] %v14121_v20  ;;  %v4997_v6 = vmax.f32 %v14119_v40, %v14121_v20  ;;  %18431 = vst [vmem:[#allocation165_spill] sm:$0xff] %v14127_v33  ;;  %v14131_v44 = vmul.f32 0.17677669, %v4109_v42  ;;  %v5093_v15 = vmax.f32 %v14129_v47, %v14127_v33 }
 0x3cf   : > { %v4111_v41 = vpop.f32.mrf.mxu0  ;;  %v4400_v57 = vpop.f32.mrf.mxu1 }
 0x3d0   : > { %18433 = vst [vmem:[#allocation167_spill] sm:$0xff] %v14131_v44  ;;  %v14133_v3 = vmul.f32 0.17677669, %v4111_v41  ;;  %5091 = vmax.xlane.f32.xlu1 %v5090_v10  ;;  %4998 = vmax.xlane.f32.xlu0 %v4997_v6  ;;  %v14139_v11 = vmul.f32 0.17677669, %v4400_v57 }
 0x3d1   : > { %v4404_v43 = vpop.f32.mrf.mxu1  ;;  %v4801_v48 = vpop.xlane.xlu0 %4800  ;;  %v14151_v57 = vmul.f32 0.17677669, %v4398_v51 }
 0x3d2   : > { %18434 = vst [vmem:[#allocation168_spill] sm:$0xff] %v14133_v3  ;;  %v5000_v20 = vmax.f32 %v14131_v44, %v14133_v3  ;;  %18435 = vst [vmem:[#allocation169_spill] sm:$0xff] %v14139_v11  ;;  %v5183_v40 = vsub.f32 %v13661_v34, %v4801_v48  ;;  %v4115_v53 = vpop.f32.mrf.mxu0  ;;  %v5184_v41 = vsub.f32 %v13663_v63, %v4801_v48  ;;  %v14171_v0 = vmul.f32 0.17677669, %v4404_v43  ;;  %v18456_v63 = vld [vmem:[#allocation25_spill] sm:$0xff] }
 0x3d3   : > { %v4406_v10 = vpop.f32.mrf.mxu1  ;;  %18444 = vst [vmem:[#allocation170_spill] sm:$0xff] %v14151_v57  ;;  %v14157_v42 = vmul.f32 0.17677669, %v4115_v53  ;;  %v5096_v3 = vmax.f32 %v14151_v57, %v14139_v11  ;;  %v18455_v57 = vld [vmem:[#allocation21_spill] sm:$0xff] }
 0x3d4   : > { %v4117_v44 = vpop.f32.mrf.mxu0  ;;  %5094 = vmax.xlane.f32.xlu0 %v5093_v15  ;;  %5001 = vmax.xlane.f32.xlu1 %v5000_v20  ;;  %v5439_v51 = vmul.f32 1.442695, %v5183_v40  ;;  %v14163_v4 = vmul.f32 0.17677669, %v4406_v10  ;;  %v5441_v48 = vmul.f32 1.442695, %v5184_v41 }
 0x3d5   : > { %18449 = vst [vmem:[#allocation171_spill] sm:$0xff] %v14157_v42  ;;  %v14159_v28 = vmul.f32 0.17677669, %v4117_v44  ;;  %v4408_v6 = vpop.f32.mrf.mxu1  ;;  %v4897_v33 = vpop.xlane.xlu0 %4896  ;;  %18454 = vst [vmem:[#allocation28_spill] sm:$0xff] %v14171_v0 }
 0x3d6   : > { %18451 = vst [vmem:[#allocation173_spill] sm:$0xff] %v14163_v4  ;;  %v5247_v15 = vsub.f32 %v13669_v17, %v4897_v33  ;;  %v4804_v20 = vpop.xlane.xlu1 %4803  ;;  %v4119_v47 = vpop.f32.mrf.mxu0  ;;  %v5248_v53 = vsub.f32 %v13665_v12, %v4897_v33  ;;  %10842 = vpow2.f32 %v5439_v51  ;;  %v14191_v29 = vmul.f32 0.17677669, %v4408_v6 }
 0x3d7   : > { %18450 = vst [vmem:[#allocation172_spill] sm:$0xff] %v14159_v28  ;;  %v5003_v44 = vmax.f32 %v14157_v42, %v14159_v28  ;;  %v4410_v7 = vpop.f32.mrf.mxu1  ;;  %v5185_v40 = vsub.f32 %v13671_v38, %v4804_v20  ;;  %v5186_v10 = vsub.f32 %v13673_v22, %v4804_v20  ;;  %v14179_v35 = vmul.f32 0.17677669, %v4119_v47 }
 0x3d8   : > { %v5567_v11 = vmul.f32 1.442695, %v5247_v15  ;;  %v4121_v17 = vpop.f32.mrf.mxu0  ;;  %5097 = vmax.xlane.f32.xlu1 %v5096_v3  ;;  %v5099_v38 = vmax.f32 %v14171_v0, %v14163_v4  ;;  %v5569_v22 = vmul.f32 1.442695, %v5248_v53  ;;  %v14185_v43 = vmul.f32 0.17677669, %v4410_v7 }
 0x3d9   : > { %18459 = vst [vmem:[#allocation21_spill] sm:$0xff] %v14179_v35  ;;  %v14181_v28 = vmul.f32 0.17677669, %v4121_v17  ;;  %5004 = vmax.xlane.f32.xlu0 %v5003_v44  ;;  %v4414_v12 = vpop.f32.mrf.mxu1  ;;  %v4807_v33 = vpop.xlane.xlu0 %4806  ;;  %10844 = vpow2.f32 %v5441_v48  ;;  %18462 = vst [vmem:[#allocation175_spill] sm:$0xff] %v14191_v29  ;;  %v5443_v51 = vmul.f32 1.442695, %v5185_v40 }
 0x3da   : > { %18461 = vst [vmem:[#allocation174_spill] sm:$0xff] %v14185_v43  ;;  %v4900_v3 = vpop.xlane.xlu1 %4899  ;;  %v4125_v15 = vpop.f32.mrf.mxu0  ;;  %10846 = vpow2.f32 %v5567_v11  ;;  %v5445_v34 = vmul.f32 1.442695, %v5186_v10  ;;  %v5187_v7 = vsub.f32 %v13691_v39, %v4807_v33  ;;  %v5188_v53 = vsub.f32 %v13693_v61, %v4807_v33 }
 0x3db   : > { %18460 = vst [vmem:[#allocation25_spill] sm:$0xff] %v14181_v28  ;;  %v5006_v20 = vmax.f32 %v14179_v35, %v14181_v28  ;;  %v5249_v47 = vsub.f32 %v13689_v30, %v4900_v3  ;;  %v5250_v17 = vsub.f32 %v13679_v60, %v4900_v3  ;;  %v4416_v44 = vpop.f32.mrf.mxu1  ;;  %v14195_v0 = vmul.f32 0.17677669, %v4125_v15  ;;  %v18468_v15 = vld [vmem:[#allocation35_spill] sm:$0xff] }
 0x3dc   : > { %v4127_v4 = vpop.f32.mrf.mxu0  ;;  %10848 = vpow2.f32 %v5569_v22  ;;  %v5102_v11 = vmax.f32 %v14191_v29, %v14185_v43  ;;  %v14210_v22 = vmul.f32 0.17677669, %v4414_v12  ;;  %v5447_v43 = vmul.f32 1.442695, %v5187_v7 }
 0x3dd   : > { %18463 = vst [vmem:[#allocation176_spill] sm:$0xff] %v14195_v0  ;;  %v14197_v48 = vmul.f32 0.17677669, %v4127_v4  ;;  %5100 = vmax.xlane.f32.xlu0 %v5099_v38  ;;  %5007 = vmax.xlane.f32.xlu1 %v5006_v20  ;;  %v4418_v30 = vpop.f32.mrf.mxu1  ;;  %v4903_v28 = vpop.xlane.xlu0 %4902  ;;  %v5571_v40 = vmul.f32 1.442695, %v5249_v47  ;;  %10850 = vpow2.f32 %v5445_v34 }
 0x3de   : > { %v4810_v10 = vpop.xlane.xlu1 %4809  ;;  %v4129_v39 = vpop.f32.mrf.mxu0  ;;  %v5573_v35 = vmul.f32 1.442695, %v5250_v17  ;;  %v14205_v4 = vmul.f32 0.17677669, %v4416_v44  ;;  %v5251_v33 = vsub.f32 %v13701_v26, %v4903_v28  ;;  %18469 = vst [vmem:[#allocation35_spill] sm:$0xff] %v14210_v22  ;;  %v5252_v6 = vsub.f32 %v13695_v49, %v4903_v28 }
 0x3df   : > { %18464 = vst [vmem:[#allocation177_spill] sm:$0xff] %v14197_v48  ;;  %v5009_v61 = vmax.f32 %v14195_v0, %v14197_v48  ;;  %v4420_v38 = vpop.f32.mrf.mxu1  ;;  %10852 = vpow2.f32 %v5443_v51  ;;  %v5449_v17 = vmul.f32 1.442695, %v5188_v53  ;;  %v5189_v29 = vsub.f32 %v13703_v58, %v4810_v10 }
 0x3e0   : > { %18467 = vst [vmem:[#allocation178_spill] sm:$0xff] %v14205_v4  ;;  %v4131_v47 = vpop.f32.mrf.mxu0  ;;  %10854 = vpow2.f32 %v5571_v40  ;;  %v5190_v48 = vsub.f32 %v13705_v8, %v4810_v10  ;;  %v14217_v20 = vmul.f32 0.17677669, %v4129_v39  ;;  %v5105_v28 = vmax.f32 %v14210_v22, %v14205_v4 }
 0x3e1   : > { %5103 = vmax.xlane.f32.xlu1 %v5102_v11  ;;  %5010 = vmax.xlane.f32.xlu0 %v5009_v61  ;;  %v14214_v44 = vpop.f32.mrf.mxu1  ;;  %v4813_v26 = vpop.xlane.xlu0 %4812  ;;  %v14219_v34 = vmul.f32 0.17677669, %v4131_v47  ;;  %10856 = vpow2.f32 %v5573_v35  ;;  %v5575_v51 = vmul.f32 1.442695, %v5251_v33  ;;  %v5577_v53 = vmul.f32 1.442695, %v5252_v6 }
 0x3e2   : > { %18470 = vst [vmem:[#allocation179_spill] sm:$0xff] %v14217_v20  ;;  %v4906_v12 = vpop.xlane.xlu1 %4905  ;;  %v4135_v49 = vpop.f32.mrf.mxu0  ;;  %v14226_v40 = vmul.f32 0.17677669, %v4420_v38  ;;  %10858 = vpow2.f32 %v5447_v43  ;;  %v5451_v35 = vmul.f32 1.442695, %v5189_v29  ;;  %v5191_v47 = vsub.f32 %v13723_v52, %v4813_v26  ;;  %v18475_v29 = vld [vmem:[#allocation33_spill] sm:$0xff] }
 0x3e3   : > { %18471 = vst [vmem:[#allocation180_spill] sm:$0xff] %v14219_v34  ;;  %v5253_v58 = vsub.f32 %v13721_v55, %v4906_v12  ;;  %v4426_v7 = vpop.f32.mrf.mxu1  ;;  %v5012_v11 = vmax.f32 %v14217_v20, %v14219_v34  ;;  %v5254_v8 = vsub.f32 %v13711_v50, %v4906_v12  ;;  %10860 = vpow2.f32 %v5449_v17  ;;  %v14235_v12 = vpop.eup %10842 }
 0x3e4   : > { %18472 = vst [vmem:[#allocation181_spill] sm:$0xff] %v14226_v40  ;;  %v4137_v10 = vpop.f32.mrf.mxu0  ;;  %v14232_v6 = vmul.f32 0.17677669, %v4418_v30  ;;  %v5453_v4 = vmul.f32 1.442695, %v5190_v48  ;;  %v5192_v38 = vsub.f32 %v13725_v16, %v4813_v26  ;;  %10862 = vpow2.f32 %v5575_v51 }
 0x3e5   : > { %5106 = vmax.xlane.f32.xlu0 %v5105_v28  ;;  %v4428_v33 = vpop.f32.mrf.mxu1  ;;  %v4909_v55 = vpop.xlane.xlu0 %4908  ;;  %5013 = vmax.xlane.f32.xlu1 %v5012_v11  ;;  %v5579_v28 = vmul.f32 1.442695, %v5253_v58  ;;  %10864 = vpow2.f32 %v5577_v53  ;;  %v5581_v30 = vmul.f32 1.442695, %v5254_v8  ;;  %v5455_v43 = vmul.f32 1.442695, %v5191_v47 }
 0x3e6   : > { %18474 = vst [vmem:[#allocation182_spill] sm:$0xff] %v14232_v6  ;;  %v4816_v34 = vpop.xlane.xlu1 %4815  ;;  %v4139_v50 = vpop.f32.mrf.mxu0  ;;  %v5108_v16 = vmax.f32 %v14232_v6, %v14226_v40  ;;  %10866 = vpow2.f32 %v5451_v35  ;;  %v14249_v20 = vmul.f32 0.17677669, %v4137_v10  ;;  %v5255_v51 = vsub.f32 %v13733_v46, %v4909_v55 }
 0x3e7   : > { %v4430_v61 = vpop.f32.mrf.mxu1  ;;  %v14241_v17 = vpop.eup %10844  ;;  %10868 = vpow2.f32 %v5453_v4  ;;  %v5457_v22 = vmul.f32 1.442695, %v5192_v38  ;;  %v14254_v48 = vmul.f32 0.17677669, %v4426_v7  ;;  %v5256_v53 = vsub.f32 %v13727_v19, %v4909_v55 }
 0x3e8   : > { %v4141_v26 = vpop.f32.mrf.mxu0  ;;  %v14247_v11 = vpop.eup %10846  ;;  %18476 = vst [vmem:[#allocation33_spill] sm:$0xff] %v14249_v20  ;;  %10870 = vpow2.f32 %v5579_v28  ;;  %v14261_v10 = vmul.f32 0.17677669, %v4135_v49  ;;  %v5193_v46 = vsub.f32 %v13735_v5, %v4816_v34  ;;  %v5951_v35 = vadd.f32 %v14241_v17, %v14235_v12 }
 0x3e9   : > { %v4434_v58 = vpop.f32.mrf.mxu1  ;;  %v14252_v52 = vpop.xlane.xlu0 %4818  ;;  %18477 = vst [vmem:[#allocation183_spill] sm:$0xff] %v14254_v48  ;;  %5109 = vmax.xlane.f32.xlu1 %v5108_v16  ;;  %v14271_v19 = vmul.f32 0.17677669, %v14214_v44  ;;  %10872 = vpow2.f32 %v5581_v30  ;;  %v5194_v47 = vsub.f32 %v13737_v32, %v4816_v34  ;;  %v14276_v49 = vmul.f32 0.17677669, %v4428_v33 }
 0x3ea   : > { %v4912_v8 = vpop.xlane.xlu1 %4911  ;;  %v14257_v40 = vpop.f32.mrf.mxu0  ;;  %18478 = vst [vmem:[#allocation184_spill] sm:$0xff] %v14261_v10  ;;  %10874 = vpow2.f32 %v5455_v43  ;;  %v5583_v28 = vmul.f32 1.442695, %v5255_v51  ;;  %5952 = vadd.xlane.f32.xlu0 %v5951_v35  ;;  %v5585_v32 = vmul.f32 1.442695, %v5256_v53 }
 0x3eb   : > { %v14259_v6 = vpop.eup %10848  ;;  %v14266_v4 = vpop.f32.mrf.mxu1  ;;  %18479 = vst [vmem:[#allocation185_spill] sm:$0xff] %v14271_v19  ;;  %18480 = vst [vmem:[#allocation186_spill] sm:$0xff] %v14276_v49  ;;  %10876 = vpow2.f32 %v5457_v22  ;;  %v5257_v34 = vsub.f32 %v13753_v23, %v4912_v8  ;;  %v5459_v51 = vmul.f32 1.442695, %v5193_v46  ;;  %v14291_v35 = vmul.f32 0.17677669, %v4139_v50 }
 0x3ec   : > { %v4147_v55 = vpop.f32.mrf.mxu0  ;;  %v10851_v38 = vpop.eup %10850  ;;  %v14293_v5 = vmul.f32 0.17677669, %v4141_v26  ;;  %v5258_v42 = vsub.f32 %v13743_v37, %v4912_v8  ;;  %v5461_v53 = vmul.f32 1.442695, %v5194_v47  ;;  %v14300_v44 = vmul.f32 0.17677669, %v4430_v61 }
 0x3ed   : > { %v14278_v16 = vpop.f32.mrf.mxu1  ;;  %v14280_v0 = vpop.xlane.xlu0 %4914  ;;  %18481 = vst [vmem:[#allocation187_spill] sm:$0xff] %v14291_v35  ;;  %v5195_v23 = vsub.f32 %v13755_v54, %v14252_v52  ;;  %v6336_v3 = vpack.c.bf16 %v10851_v38, %v14241_v17  ;;  %10878 = vpow2.f32 %v5583_v28  ;;  %v5196_v50 = vsub.f32 %v13757_v36, %v14252_v52 }
 0x3ee   : > { %v10853_v7 = vpop.eup %10852  ;;  %v14285_v43 = vpop.xlane.xlu1 %4821  ;;  %18482 = vst [vmem:[#allocation188_spill] sm:$0xff] %v14293_v5  ;;  %18483 = vst [vmem:[#allocation189_spill] sm:$0xff] %v14300_v44  ;;  %v6047_v26 = vadd.f32 %v14259_v6, %v14247_v11  ;;  %10880 = vpow2.f32 %v5585_v32  ;;  %v14318_v54 = vmul.f32 0.17677669, %v4434_v58  ;;  %v5587_v17 = vmul.f32 1.442695, %v5257_v34 }
 0x3ef   : > { %v14287_v30 = vpop.f32.mrf.mxu0  ;;  %v14289_v33 = vpop.eup %10854  ;;  %v6335_v37 = vpack.c.bf16 %v10853_v7, %v14235_v12  ;;  %6559 = vmatprep.mubr.bf16.mxu0 %v6336_v3  ;;  %v5954_v47 = vadd.f32 %v10853_v7, %v10851_v38  ;;  %10882 = vpow2.f32 %v5459_v51  ;;  %v5589_v41 = vmul.f32 1.442695, %v5258_v42  ;;  %v18486_v38 = vld [vmem:[#allocation22_spill] sm:$0xff] }
 0x3f0   : > { %v14296_v22 = vpop.f32.mrf.mxu1  ;;  %v14298_v60 = vpop.eup %10856  ;;  %18484 = vst [vmem:[#allocation190_spill] sm:$0xff] %v14318_v54  ;;  %v14328_v39 = vmul.f32 0.17677669, %v4147_v55  ;;  %6048 = vadd.xlane.f32.xlu0 %v6047_v26  ;;  %10884 = vpow2.f32 %v5461_v53  ;;  %v5463_v7 = vmul.f32 1.442695, %v5195_v23  ;;  %v18487_v34 = vld [vmem:[#allocation82_spill] sm:$0xff]  ;;  %v5259_v42 = vsub.f32 %v13765_v25, %v14280_v0 }
 0x3f1   : > { %v14305_v62 = vpop.f32.mrf.mxu0  ;;  %v14314_v61 = vpop.xlane.xlu0 %4824  ;;  %6560 = vmatmul.mubr.bf16.vlgmr.msra.gmra.mxu0 %v6335_v37  ;;  %v18488_v51 = vpack.c.bf16 %v18486_v38, %v18487_v34  ;;  %5955 = vadd.xlane.f32.xlu1 %v5954_v47  ;;  %v5465_v26 = vmul.f32 1.442695, %v5196_v50  ;;  %v14346_v52 = vmul.f32 0.17677669, %v14257_v40  ;;  %v18490_v53 = vpack.c.bf16 %v13649_v24, %v13585_v18 }
 0x3f2   : > { %v14312_v8 = vpop.f32.mrf.mxu1  ;;  %v14316_v46 = vpop.eup %10858  ;;  %18485 = vst [vmem:[#allocation191_spill] sm:$0xff] %v14328_v39  ;;  %v5260_v23 = vsub.f32 %v13759_v21, %v14280_v0  ;;  %v6368_v47 = vpack.c.bf16 %v14298_v60, %v14259_v6  ;;  %10886 = vpow2.f32 %v5587_v17  ;;  %v14362_v40 = vmul.f32 0.17677669, %v14266_v4  ;;  %v18512_v39 = vld [vmem:[#allocation78_spill] sm:$0xff] }
 0x3f3   : > { %v14320_v28 = vpop.xlane.xlu1 %4917  ;;  %v14322_v36 = vpop.f32.mrf.mxu0  ;;  %9586 = vmatpush3.bf16.msra.mxu0 %v18488_v51  ;;  %18489 = vst [vmem:[#allocation22_spill] sm:$0xff] %v14346_v52  ;;  %v5197_v18 = vsub.f32 %v13767_v2, %v14285_v43  ;;  %v6367_v24 = vpack.c.bf16 %v14289_v33, %v14247_v11  ;;  %10888 = vpow2.f32 %v5589_v41  ;;  %v14377_v17 = vmul.f32 0.17677669, %v14278_v16 }
 0x3f4   : > { %v14324_v12 = vpop.eup %10860  ;;  %v14330_v58 = vpop.f32.mrf.mxu1  ;;  %9587 = vmatprep.subr.bf16.mxu0 %v18490_v53  ;;  %18491 = vst [vmem:[#allocation82_spill] sm:$0xff] %v14362_v40  ;;  %v5198_v4 = vsub.f32 %v13769_v13, %v14285_v43  ;;  %6720 = vmatprep.mubr.bf16.mxu1 %v6368_v47  ;;  %v18493_v2 = vmax.f32 %v14261_v10, %v14249_v20  ;;  %10890 = vpow2.f32 %v5463_v7  ;;  %v5591_v41 = vmul.f32 1.442695, %v5259_v42  ;;  %v18494_v53 = vld [vmem:[#allocation24_spill] sm:$0xff]  ;;  %v18498_v42 = vld [vmem:[#allocation27_spill] sm:$0xff] }
 0x3f5   : > { %v14332_v32 = vpop.eup %10862  ;;  %v14341_v55 = vpop.f32.mrf.mxu0  ;;  %18492 = vst [vmem:[#allocation192_spill] sm:$0xff] %v14377_v17  ;;  %6721 = vmatmul.mubr.bf16.vlgmr.msra.gmra.mxu1 %v6367_v24  ;;  %v18495_v50 = vpack.c.bf16 %v18453_v31, %v18494_v53  ;;  %v6050_v16 = vadd.f32 %v14298_v60, %v14289_v33  ;;  %v18496_v13 = vld [vmem:[#allocation40_spill] sm:$0xff]  ;;  %10892 = vpow2.f32 %v5465_v26  ;;  %v5593_v3 = vmul.f32 1.442695, %v5260_v23  ;;  %v18499_v24 = vld [vmem:[#allocation23_spill] sm:$0xff]  ;;  %v18501_v31 = vld [vmem:[#allocation34_spill] sm:$0xff] }
 0x3f6   : > { %v14343_v37 = vpop.eup %10864  ;;  %v14355_v38 = vpop.f32.mrf.mxu1  ;;  %5016 = vmax.xlane.f32.xlu0 %v18493_v2  ;;  %v5261_v43 = vsub.f32 %v18496_v13, %v14320_v28  ;;  %v14400_v7 = vmul.f32 0.17677669, %v14305_v62  ;;  %v18500_v20 = vpack.c.bf16 %v18498_v42, %v18499_v24  ;;  %v18504_v60 = vld [vmem:[#allocation39_spill] sm:$0xff]  ;;  %v5467_v23 = vmul.f32 1.442695, %v5197_v18  ;;  %v18507_v42 = vld [vmem:[#allocation37_spill] sm:$0xff] }
 0x3f7   : > { %v14357_v25 = vpop.xlane.xlu0 %4920  ;;  %v14359_v34 = vpop.eup %10866  ;;  %9588 = vmatpush3.bf16.msra.mxu0 %v18495_v50  ;;  %v18502_v50 = vld [vmem:[#allocation95_spill] sm:$0xff]  ;;  %v5262_v33 = vsub.f32 %v18504_v60, %v14320_v28  ;;  %v14417_v62 = vmul.f32 0.17677669, %v14296_v22  ;;  %6051 = vadd.xlane.f32.xlu1 %v6050_v16  ;;  %v5199_v24 = vsub.f32 %v18507_v42, %v14314_v61  ;;  %v5469_v18 = vmul.f32 1.442695, %v5198_v4 }
 0x3f8   : > { %v14368_v21 = vpop.xlane.xlu1 %4827  ;;  %v14370_v0 = vpop.f32.mrf.mxu0  ;;  %18497 = vst [vmem:[#allocation24_spill] sm:$0xff] %v14400_v7  ;;  %9698 = vmatpush3.bf16.msra.mxu1 %v18500_v20  ;;  %v18503_v53 = vpack.c.bf16 %v18501_v31, %v18502_v50  ;;  %v18506_v20 = vpack.c.bf16 %v13651_v45, %v13587_v56  ;;  %v14433_v22 = vmul.f32 0.17677669, %v14287_v30  ;;  %v18509_v56 = vld [vmem:[#allocation38_spill] sm:$0xff]  ;;  %v6337_v16 = vpack.c.bf16 %v14359_v34, %v14316_v46 }
 0x3f9   : > { %v14372_v6 = vpop.eup %10868  ;;  %v14384_v11 = vpop.f32.mrf.mxu1  ;;  %18505 = vst [vmem:[#allocation40_spill] sm:$0xff] %v14417_v62  ;;  %v5200_v45 = vsub.f32 %v18509_v56, %v14314_v61  ;;  %v18510_v60 = vmax.f32 %v14271_v19, %v14254_v48  ;;  %10894 = vpow2.f32 %v5591_v41  ;;  %v5595_v4 = vmul.f32 1.442695, %v5261_v43  ;;  %v18511_v30 = vld [vmem:[#allocation86_spill] sm:$0xff]  ;;  %v18514_v61 = vld [vmem:[#allocation44_spill] sm:$0xff] }
 0x3fa   : > { %v14386_v51 = vpop.eup %10870  ;;  %v14395_v47 = vpop.f32.mrf.mxu0  ;;  %9589 = vmatprep.subr.bf16.mxu0 %v18503_v53  ;;  %9699 = vmatprep.subr.bf16.mxu1 %v18506_v20  ;;  %v6338_v28 = vpack.c.bf16 %v14372_v6, %v14324_v12  ;;  %18508 = vst [vmem:[#allocation27_spill] sm:$0xff] %v14433_v22  ;;  %v18513_v52 = vpack.c.bf16 %v18511_v30, %v18512_v39  ;;  %10896 = vpow2.f32 %v5593_v3  ;;  %v14456_v48 = vmul.f32 0.17677669, %v14312_v8  ;;  %v18533_v19 = vld [vmem:[#allocation92_spill] sm:$0xff]  ;;  %v18534_v62 = vld [vmem:[#allocation90_spill] sm:$0xff] }
 0x3fb   : > { %v14397_v2 = vpop.eup %10872  ;;  %v14410_v13 = vpop.f32.mrf.mxu1  ;;  %5112 = vmax.xlane.f32.xlu0 %v18510_v60  ;;  %v5263_v56 = vsub.f32 %v18514_v61, %v14357_v25  ;;  %v5597_v42 = vmul.f32 1.442695, %v5262_v33  ;;  %v18516_v41 = vpack.c.bf16 %v18456_v63, %v18455_v57  ;;  %10898 = vpow2.f32 %v5467_v23  ;;  %v18518_v33 = vld [vmem:[#allocation97_spill] sm:$0xff]  ;;  %v18521_v57 = vld [vmem:[#allocation43_spill] sm:$0xff] }
 0x3fc   : > { %v14412_v10 = vpop.xlane.xlu0 %4830  ;;  %v14414_v26 = vpop.eup %10874  ;;  %6567 = vmatprep.mubr.bf16.mxu0 %v6338_v28  ;;  %9590 = vmatpush3.bf16.msra.mxu0 %v18513_v52  ;;  %18515 = vst [vmem:[#allocation23_spill] sm:$0xff] %v14456_v48  ;;  %v5471_v28 = vmul.f32 1.442695, %v5199_v24  ;;  %v18517_v8 = vpack.c.bf16 %v13553_v9, %v13483_v27  ;;  %v5264_v63 = vsub.f32 %v18521_v57, %v14357_v25  ;;  %10900 = vpow2.f32 %v5469_v18  ;;  %v18524_v9 = vld [vmem:[#allocation41_spill] sm:$0xff] }
 0x3fd   : > { %v14426_v31 = vpop.xlane.xlu1 %4923  ;;  %v14428_v50 = vpop.f32.mrf.mxu0  ;;  %6568 = vmatmul.mubr.bf16.gmra.mxu0 %v6337_v16  ;;  %9700 = vmatpush3.bf16.msra.mxu1 %v18516_v41  ;;  %v18519_v16 = vld [vmem:[#allocation96_spill] sm:$0xff]  ;;  %v5473_v3 = vmul.f32 1.442695, %v5200_v45  ;;  %v14484_v24 = vmul.f32 0.17677669, %v14341_v55  ;;  %v18523_v27 = vmax.f32 %v14291_v35, %v14293_v5  ;;  %10902 = vpow2.f32 %v5595_v4  ;;  %v18526_v45 = vld [vmem:[#allocation81_spill] sm:$0xff] }
 0x3fe   : > { %v14430_v53 = vpop.eup %10876  ;;  %v14442_v20 = vpop.f32.mrf.mxu1  ;;  %9591 = vmatprep.subr.bf16.mxu0 %v18517_v8  ;;  %v18520_v30 = vpack.c.bf16 %v18518_v33, %v18519_v16  ;;  %v5201_v8 = vsub.f32 %v18524_v9, %v14368_v21  ;;  %v14496_v16 = vmul.f32 0.17677669, %v14322_v36  ;;  %v5599_v18 = vmul.f32 1.442695, %v5263_v56  ;;  %v18529_v9 = vld [vmem:[#allocation42_spill] sm:$0xff]  ;;  %v18530_v4 = vld [vmem:[#allocation79_spill] sm:$0xff] }
 0x3ff   : > { %v14451_v59 = vpop.f32.mrf.mxu0  ;;  %v14465_v43 = vpop.eup %10878  ;;  %18522 = vst [vmem:[#allocation34_spill] sm:$0xff] %v14484_v24  ;;  %5019 = vmax.xlane.f32.xlu1 %v18523_v27  ;;  %v6370_v55 = vpack.c.bf16 %v14397_v2, %v14343_v37  ;;  %10904 = vpow2.f32 %v5597_v42  ;;  %v5202_v5 = vsub.f32 %v18529_v9, %v14368_v21  ;;  %v6369_v36 = vpack.c.bf16 %v14386_v51, %v14332_v32  ;;  %v18531_v56 = vld [vmem:[#allocation83_spill] sm:$0xff] }
 0x400   : > { %v14461_v39 = vpop.f32.mrf.mxu1  ;;  %v14463_v52 = vpop.xlane.xlu0 %4926  ;;  %9701 = vmatprep.subr.bf16.mxu1 %v18520_v30  ;;  %18525 = vst [vmem:[#allocation95_spill] sm:$0xff] %v14496_v16  ;;  %v18527_v30 = vld [vmem:[#allocation85_spill] sm:$0xff]  ;;  %v18532_v35 = vpack.c.bf16 %v18530_v4, %v18531_v56  ;;  %v18535_v17 = vpack.c.bf16 %v18533_v19, %v18534_v62  ;;  %10906 = vpow2.f32 %v5471_v28  ;;  %v14524_v21 = vmul.f32 0.17677669, %v14330_v58  ;;  %v18546_v4 = vld [vmem:[#allocation15_spill] sm:$0xff]  ;;  %v18551_v58 = vld [vmem:[#allocation84_spill] sm:$0xff] }
 0x401   : > { %v14477_v61 = vpop.xlane.xlu1 %4833  ;;  %v14479_v41 = vpop.f32.mrf.mxu0  ;;  %v18528_v57 = vpack.c.bf16 %v18526_v45, %v18527_v30  ;;  %v5957_v45 = vadd.f32 %v14324_v12, %v14316_v46  ;;  %v5601_v9 = vmul.f32 1.442695, %v5264_v63  ;;  %6728 = vmatprep.mubr.bf16.mxu1 %v6370_v55  ;;  %v18538_v19 = vpack.c.bf16 %v13555_v14, %v18475_v29  ;;  %v18544_v63 = vld [vmem:[#allocation71_spill] sm:$0xff] }
 0x402   : > { %v14481_v23 = vpop.eup %10880  ;;  %v14491_v33 = vpop.f32.mrf.mxu1  ;;  %9702 = vmatpush3.bf16.msra.mxu1 %v18532_v35  ;;  %18536 = vst [vmem:[#allocation39_spill] sm:$0xff] %v14524_v21  ;;  %10908 = vpow2.f32 %v5473_v3  ;;  %v14547_v29 = vmul.f32 0.17677669, %v14395_v47  ;;  %v18543_v3 = vmax.f32 %v14276_v49, %v14300_v44  ;;  %v5477_v47 = vmul.f32 1.442695, %v5202_v5 }
 0x403   : > { %v14493_v25 = vpop.eup %10882  ;;  %9592 = vmatpush3.bf16.msra.mxu0 %v18528_v57  ;;  %v14503_v27 = vpop.f32.mrf.mxu0  ;;  %v14527_v57 = vmul.f32 0.17677669, %v14355_v38  ;;  %9703 = vmatprep.subr.bf16.mxu1 %v18538_v19  ;;  %v18540_v38 = vld [vmem:[#allocation77_spill] sm:$0xff]  ;;  %10910 = vpow2.f32 %v5599_v18  ;;  %v14564_v19 = vmul.f32 0.17677669, %v14384_v11 }
 0x404   : > { %v14505_v60 = vpop.eup %10884  ;;  %9593 = vmatprep.subr.bf16.mxu0 %v18535_v17  ;;  %v14519_v30 = vpop.f32.mrf.mxu1  ;;  %v5475_v17 = vmul.f32 1.442695, %v5201_v8  ;;  %6729 = vmatmul.mubr.bf16.gmra.mxu1 %v6369_v36  ;;  %v5265_v62 = vsub.f32 %v18540_v38, %v14426_v31  ;;  %18542 = vst [vmem:[#allocation78_spill] sm:$0xff] %v14547_v29  ;;  %v5266_v8 = vsub.f32 %v18544_v63, %v14426_v31  ;;  %v18545_v36 = vld [vmem:[#allocation19_spill] sm:$0xff]  ;;  %v18549_v38 = vld [vmem:[#allocation69_spill] sm:$0xff]  ;;  %v18550_v63 = vld [vmem:[#allocation80_spill] sm:$0xff]  ;;  %10912 = vpow2.f32 %v5601_v9 }
 0x405   : > { %v14521_v42 = vpop.xlane.xlu0 %4836  ;;  %18537 = vst [vmem:[#allocation37_spill] sm:$0xff] %v14527_v57  ;;  %v14532_v35 = vpop.xlane.xlu1 %4929  ;;  %5958 = vadd.xlane.f32.xlu0 %v5957_v45  ;;  %5115 = vmax.xlane.f32.xlu1 %v18543_v3  ;;  %v6340_v55 = vpack.c.bf16 %v14505_v60, %v14430_v53  ;;  %v18547_v56 = vpack.c.bf16 %v18545_v36, %v18546_v4  ;;  %18548 = vst [vmem:[#allocation44_spill] sm:$0xff] %v14564_v19  ;;  %v18571_v19 = vld [vmem:[#allocation26_spill] sm:$0xff] }
 0x406   : > { %v14534_v46 = vpop.f32.mrf.mxu0  ;;  %v14536_v12 = vpop.eup %10886  ;;  %v5203_v3 = vsub.f32 %v18549_v38, %v14412_v10  ;;  %v6339_v31 = vpack.c.bf16 %v14493_v25, %v14414_v26  ;;  %v18552_v44 = vpack.c.bf16 %v18550_v63, %v18551_v58  ;;  %v18553_v36 = vpack.c.bf16 %v13467_v1, %v18468_v15  ;;  %v18555_v38 = vld [vmem:[#allocation72_spill] sm:$0xff]  ;;  %v18556_v58 = vld [vmem:[#allocation93_spill] sm:$0xff] }
 0x407   : > { %18539 = vst [vmem:[#allocation38_spill] sm:$0xff] %v14536_v12  ;;  %v14542_v28 = vpop.f32.mrf.mxu1  ;;  %v14544_v14 = vpop.eup %10888  ;;  %9594 = vmatpush3.bf16.msra.mxu0 %v18547_v56  ;;  %v14583_v56 = vmul.f32 0.17677669, %v14370_v0  ;;  %v5204_v49 = vsub.f32 %v18555_v38, %v14412_v10  ;;  %6575 = vmatprep.mubr.bf16.mxu0 %v6340_v55  ;;  %v6053_v1 = vadd.f32 %v14343_v37, %v14332_v32  ;;  %10914 = vpow2.f32 %v5475_v17  ;;  %v18562_v17 = vld [vmem:[#allocation13_spill] sm:$0xff]  ;;  %v18566_v38 = vld [vmem:[#allocation16_spill] sm:$0xff] }
 0x408   : > { %18541 = vst [vmem:[#allocation86_spill] sm:$0xff] %v14544_v14  ;;  %v14559_v45 = vpop.f32.mrf.mxu0  ;;  %v14561_v18 = vpop.eup %10890  ;;  %9704 = vmatpush3.bf16.msra.mxu1 %v18552_v44  ;;  %9595 = vmatprep.subr.bf16.mxu0 %v18553_v36  ;;  %v18557_v44 = vld [vmem:[#allocation91_spill] sm:$0xff]  ;;  %v5603_v0 = vmul.f32 1.442695, %v5265_v62  ;;  %v5960_v10 = vadd.f32 %v14372_v6, %v14359_v34  ;;  %v14605_v32 = vmul.f32 0.17677669, %v14410_v13  ;;  %10916 = vpow2.f32 %v5477_v47 }
 0x409   : > { %v14576_v4 = vpop.f32.mrf.mxu1  ;;  %v14578_v5 = vpop.xlane.xlu0 %4932  ;;  %18554 = vst [vmem:[#allocation97_spill] sm:$0xff] %v14583_v56  ;;  %v18558_v63 = vpack.c.bf16 %v18556_v58, %v18557_v44  ;;  %6576 = vmatmul.mubr.bf16.gmra.mxu0 %v6339_v31  ;;  %v5605_v37 = vmul.f32 1.442695, %v5266_v8  ;;  %v14608_v58 = vmul.f32 0.17677669, %v14451_v59  ;;  %6054 = vadd.xlane.f32.xlu0 %v6053_v1  ;;  %v18561_v44 = vld [vmem:[#allocation17_spill] sm:$0xff] }
 0x40a   : > { %v14580_v11 = vpop.eup %10892  ;;  %v14592_v15 = vpop.xlane.xlu1 %4839  ;;  %18559 = vst [vmem:[#allocation96_spill] sm:$0xff] %v14605_v32  ;;  %v18563_v62 = vpack.c.bf16 %v18561_v44, %v18562_v17  ;;  %5961 = vadd.xlane.f32.xlu1 %v5960_v10  ;;  %v18564_v13 = vld [vmem:[#allocation47_spill] sm:$0xff]  ;;  %v18565_v59 = vld [vmem:[#allocation20_spill] sm:$0xff]  ;;  %v14631_v47 = vmul.f32 0.17677669, %v14428_v50  ;;  %v18570_v6 = vld [vmem:[#allocation30_spill] sm:$0xff]  ;;  %10918 = vpow2.f32 %v5603_v0 }
 0x40b   : > { %9705 = vmatprep.subr.bf16.mxu1 %v18558_v63  ;;  %v14594_v36 = vpop.f32.mrf.mxu0  ;;  %v14600_v55 = vpop.f32.mrf.mxu1  ;;  %18560 = vst [vmem:[#allocation43_spill] sm:$0xff] %v14608_v58  ;;  %v5479_v63 = vmul.f32 1.442695, %v5203_v3  ;;  %v5267_v8 = vsub.f32 %v18564_v13, %v14463_v52  ;;  %v18567_v1 = vpack.c.bf16 %v18565_v59, %v18566_v38  ;;  %v18569_v3 = vld [vmem:[#allocation74_spill] sm:$0xff]  ;;  %v6372_v13 = vpack.c.bf16 %v14544_v14, %v14481_v23  ;;  %v18587_v58 = vld [vmem:[#allocation7_spill] sm:$0xff] }
 0x40c   : > { %9596 = vmatpush3.bf16.msra.mxu0 %v18563_v62  ;;  %v14615_v34 = vpop.eup %10894  ;;  %v5481_v62 = vmul.f32 1.442695, %v5204_v49  ;;  %18568 = vst [vmem:[#allocation41_spill] sm:$0xff] %v14631_v47  ;;  %v5268_v10 = vsub.f32 %v18569_v3, %v14463_v52  ;;  %v18572_v38 = vpack.c.bf16 %v18570_v6, %v18571_v19  ;;  %v18573_v59 = vld [vmem:[#allocation94_spill] sm:$0xff]  ;;  %v14650_v52 = vmul.f32 0.17677669, %v14442_v20 }
 0x40d   : > { %v14613_v31 = vpop.f32.mrf.mxu0  ;;  %9706 = vmatpush3.bf16.msra.mxu1 %v18567_v1  ;;  %v14624_v9 = vpop.f32.mrf.mxu1  ;;  %v18574_v1 = vld [vmem:[#allocation36_spill] sm:$0xff]  ;;  %v6371_v19 = vpack.c.bf16 %v14536_v12, %v14465_v43  ;;  %10920 = vpow2.f32 %v5605_v37  ;;  %6736 = vmatprep.mubr.bf16.mxu1 %v6372_v13  ;;  %v6056_v20 = vadd.f32 %v14397_v2, %v14386_v51  ;;  %v14674_v37 = vmul.f32 0.17677669, %v14461_v39 }
 0x40e   : > { %v14626_v44 = vpop.xlane.xlu0 %4842  ;;  %v14628_v17 = vpop.eup %10896  ;;  %9597 = vmatprep.subr.bf16.mxu0 %v18572_v38  ;;  %v18575_v57 = vpack.c.bf16 %v18573_v59, %v18574_v1  ;;  %18577 = vst [vmem:[#allocation85_spill] sm:$0xff] %v14650_v52  ;;  %v18578_v3 = vld [vmem:[#allocation48_spill] sm:$0xff]  ;;  %v18581_v1 = vld [vmem:[#allocation22_spill] sm:$0xff]  ;;  %10922 = vpow2.f32 %v5479_v63  ;;  %v5609_v63 = vmul.f32 1.442695, %v5268_v10 }
 0x40f   : > { %v14643_v29 = vpop.xlane.xlu1 %4935  ;;  %v14645_v49 = vpop.f32.mrf.mxu0  ;;  %v5205_v56 = vsub.f32 %v18578_v3, %v14477_v61  ;;  %v18580_v59 = vld [vmem:[#allocation76_spill] sm:$0xff]  ;;  %v18582_v3 = vld [vmem:[#allocation191_spill] sm:$0xff]  ;;  %18584 = vst [vmem:[#allocation79_spill] sm:$0xff] %v14674_v37  ;;  %6737 = vmatmul.mubr.bf16.gmra.mxu1 %v6371_v19  ;;  %10924 = vpow2.f32 %v5481_v62  ;;  %v14688_v39 = vmul.f32 0.17677669, %v14503_v27  ;;  %6057 = vadd.xlane.f32.xlu1 %v6056_v20  ;;  %v18597_v27 = vld [vmem:[#allocation73_spill] sm:$0xff] }
 0x410   : > { %9707 = vmatprep.subr.bf16.mxu1 %v18575_v57  ;;  %v14647_v50 = vpop.eup %10898  ;;  %v14656_v6 = vpop.f32.mrf.mxu1  ;;  %v5206_v0 = vsub.f32 %v18580_v59, %v14477_v61  ;;  %v18583_v21 = vmax.f32 %v18581_v1, %v18582_v3  ;;  %v5607_v57 = vmul.f32 1.442695, %v5267_v8  ;;  %v18585_v61 = vld [vmem:[#allocation75_spill] sm:$0xff]  ;;  %v18591_v8 = vld [vmem:[#allocation70_spill] sm:$0xff]  ;;  %v14702_v62 = vmul.f32 0.17677669, %v14491_v33 }
 0x411   : > { %18576 = vst [vmem:[#allocation81_spill] sm:$0xff] %v14647_v50  ;;  %v14658_v38 = vpop.eup %10900  ;;  %v14669_v48 = vpop.f32.mrf.mxu0  ;;  %v5269_v13 = vsub.f32 %v18585_v61, %v14532_v35  ;;  %v18586_v59 = vld [vmem:[#allocation11_spill] sm:$0xff]  ;;  %18590 = vst [vmem:[#allocation92_spill] sm:$0xff] %v14688_v39  ;;  %v5270_v19 = vsub.f32 %v18591_v8, %v14532_v35  ;;  %v18592_v61 = vld [vmem:[#allocation18_spill] sm:$0xff]  ;;  %v5207_v10 = vsub.f32 %v18597_v27, %v14521_v42  ;;  %v14719_v14 = vmul.f32 0.17677669, %v14479_v41 }
 0x412   : > { %18579 = vst [vmem:[#allocation42_spill] sm:$0xff] %v14658_v38  ;;  %5022 = vmax.xlane.f32.xlu0 %v18583_v21  ;;  %v14671_v24 = vpop.eup %10902  ;;  %v18588_v51 = vpack.c.bf16 %v18586_v59, %v18587_v58  ;;  %v14681_v2 = vpop.f32.mrf.mxu1  ;;  %v18593_v1 = vld [vmem:[#allocation14_spill] sm:$0xff]  ;;  %18596 = vst [vmem:[#allocation77_spill] sm:$0xff] %v14702_v62  ;;  %v6342_v35 = vpack.c.bf16 %v14658_v38, %v14580_v11  ;;  %v18598_v20 = vld [vmem:[#allocation88_spill] sm:$0xff]  ;;  %v5485_v33 = vmul.f32 1.442695, %v5206_v0  ;;  %10926 = vpow2.f32 %v5607_v57 }
 0x413   : > { %18589 = vst [vmem:[#allocation83_spill] sm:$0xff] %v14681_v2  ;;  %v14683_v21 = vpop.xlane.xlu0 %4938  ;;  %v14685_v3 = vpop.eup %10904  ;;  %v18594_v47 = vpack.c.bf16 %v18592_v61, %v18593_v1  ;;  %v5483_v2 = vmul.f32 1.442695, %v5205_v56  ;;  %v18599_v8 = vld [vmem:[#allocation32_spill] sm:$0xff]  ;;  %v18602_v61 = vld [vmem:[#allocation31_spill] sm:$0xff]  ;;  %18604 = vst [vmem:[#allocation71_spill] sm:$0xff] %v14719_v14  ;;  %v6341_v38 = vpack.c.bf16 %v14647_v50, %v14561_v18  ;;  %10928 = vpow2.f32 %v5609_v63 }
 0x414   : > { %9598 = vmatpush3.bf16.msra.mxu0 %v18588_v51  ;;  %v14695_v58 = vpop.xlane.xlu1 %4845  ;;  %v14697_v59 = vpop.f32.mrf.mxu0  ;;  %v18600_v1 = vpack.c.bf16 %v18598_v20, %v18599_v8  ;;  %v18605_v27 = vld [vmem:[#allocation45_spill] sm:$0xff]  ;;  %v18606_v20 = vmax.f32 %v14318_v54, %v14362_v40  ;;  %v5611_v41 = vmul.f32 1.442695, %v5269_v13  ;;  %6583 = vmatprep.mubr.bf16.mxu0 %v6342_v35  ;;  %v14746_v0 = vmul.f32 0.17677669, %v14519_v30  ;;  %v18615_v30 = vld [vmem:[#allocation46_spill] sm:$0xff] }
 0x415   : > { %9708 = vmatpush3.bf16.msra.mxu1 %v18594_v47  ;;  %18595 = vst [vmem:[#allocation90_spill] sm:$0xff] %v14697_v59  ;;  %v14699_v51 = vpop.eup %10906  ;;  %v18601_v47 = vld [vmem:[#allocation87_spill] sm:$0xff]  ;;  %v14714_v59 = vpop.f32.mrf.mxu1  ;;  %v5208_v12 = vsub.f32 %v18605_v27, %v14521_v42  ;;  %v5613_v57 = vmul.f32 1.442695, %v5270_v19  ;;  %6584 = vmatmul.mubr.bf16.gmra.mxu0 %v6341_v38  ;;  %v18613_v13 = vmax.f32 %v14433_v22, %v14400_v7  ;;  %10930 = vpow2.f32 %v5483_v2  ;;  %v18616_v19 = vld [vmem:[#allocation12_spill] sm:$0xff]  ;;  %v18623_v62 = vld [vmem:[#allocation29_spill] sm:$0xff] }
 0x416   : > { %9599 = vmatprep.subr.bf16.mxu0 %v18600_v1  ;;  %v18603_v16 = vpack.c.bf16 %v18601_v47, %v18602_v61  ;;  %v14716_v56 = vpop.eup %10908  ;;  %5118 = vmax.xlane.f32.xlu0 %v18606_v20  ;;  %v14728_v8 = vpop.f32.mrf.mxu0  ;;  %v18608_v1 = vld [vmem:[#allocation51_spill] sm:$0xff]  ;;  %v18609_v47 = vld [vmem:[#allocation9_spill] sm:$0xff]  ;;  %18612 = vst [vmem:[#allocation15_spill] sm:$0xff] %v14746_v0  ;;  %v18617_v38 = vld [vmem:[#allocation8_spill] sm:$0xff]  ;;  %10932 = vpow2.f32 %v5485_v33  ;;  %v14769_v54 = vmul.f32 0.17677669, %v14559_v45 }
 0x417   : > { %v5271_v42 = vsub.f32 %v18608_v1, %v14578_v5  ;;  %v18610_v61 = vld [vmem:[#allocation5_spill] sm:$0xff]  ;;  %v14739_v50 = vpop.f32.mrf.mxu1  ;;  %v14741_v20 = vpop.xlane.xlu0 %4848  ;;  %5025 = vmax.xlane.f32.xlu1 %v18613_v13  ;;  %v18618_v40 = vpack.c.bf16 %v18616_v19, %v18617_v38  ;;  %v5489_v22 = vmul.f32 1.442695, %v5208_v12  ;;  %v18621_v2 = vld [vmem:[#allocation52_spill] sm:$0xff]  ;;  %10934 = vpow2.f32 %v5611_v41  ;;  %v18633_v14 = vld [vmem:[#allocation10_spill] sm:$0xff] }
 0x418   : > { %9709 = vmatprep.subr.bf16.mxu1 %v18603_v16  ;;  %v14730_v16 = vpop.eup %10910  ;;  %v18611_v27 = vpack.c.bf16 %v18609_v47, %v18610_v61  ;;  %v14751_v35 = vpop.xlane.xlu1 %4941  ;;  %v5487_v61 = vmul.f32 1.442695, %v5207_v10  ;;  %18620 = vst [vmem:[#allocation84_spill] sm:$0xff] %v14769_v54  ;;  %v5209_v63 = vsub.f32 %v18621_v2, %v14592_v15  ;;  %v18622_v10 = vld [vmem:[#allocation89_spill] sm:$0xff]  ;;  %v6374_v12 = vpack.c.bf16 %v14685_v3, %v14628_v17  ;;  %v18629_v38 = vld [vmem:[#allocation40_spill] sm:$0xff]  ;;  %v18634_v52 = vld [vmem:[#allocation6_spill] sm:$0xff] }
 0x419   : > { %18607 = vst [vmem:[#allocation19_spill] sm:$0xff] %v14730_v16  ;;  %v14753_v1 = vpop.f32.mrf.mxu0  ;;  %v14755_v47 = vpop.eup %10912  ;;  %9710 = vmatpush3.bf16.msra.mxu1 %v18618_v40  ;;  %v18624_v37 = vpack.c.bf16 %v18622_v10, %v18623_v62  ;;  %v14779_v40 = vmul.f32 0.17677669, %v14534_v46  ;;  %10936 = vpow2.f32 %v5613_v57  ;;  %v18627_v62 = vld [vmem:[#allocation49_spill] sm:$0xff]  ;;  %v6373_v41 = vpack.c.bf16 %v14671_v24, %v14615_v34 }
 0x41a   : > { %9600 = vmatpush3.bf16.msra.mxu0 %v18611_v27  ;;  %18614 = vst [vmem:[#allocation69_spill] sm:$0xff] %v14755_v47  ;;  %v5272_v27 = vsub.f32 %v18615_v30, %v14578_v5  ;;  %v14764_v7 = vpop.f32.mrf.mxu1  ;;  %v14766_v13 = vpop.eup %10914  ;;  %v5615_v30 = vmul.f32 1.442695, %v5271_v42  ;;  %v5963_v46 = vadd.f32 %v14430_v53, %v14414_v26  ;;  %v18628_v42 = vld [vmem:[#allocation192_spill] sm:$0xff]  ;;  %10938 = vpow2.f32 %v5487_v61  ;;  %6744 = vmatprep.mubr.bf16.mxu1 %v6374_v12 }
 0x41b   : > { %18619 = vst [vmem:[#allocation80_spill] sm:$0xff] %v14766_v13  ;;  %9711 = vmatprep.subr.bf16.mxu1 %v18624_v37  ;;  %v14776_v5 = vpop.f32.mrf.mxu0  ;;  %18625 = vst [vmem:[#allocation72_spill] sm:$0xff] %v14779_v40  ;;  %v14785_v45 = vpop.xlane.xlu0 %4944  ;;  %v5210_v37 = vsub.f32 %v18627_v62, %v14592_v15  ;;  %v18630_v2 = vmax.f32 %v18628_v42, %v18629_v38  ;;  %v14803_v57 = vmul.f32 0.17677669, %v14542_v28  ;;  %v14806_v15 = vmul.f32 0.17677669, %v14576_v4 }
 0x41c   : > { %v14783_v33 = vpop.f32.mrf.mxu1  ;;  %v14787_v19 = vpop.eup %10916  ;;  %v5617_v62 = vmul.f32 1.442695, %v5272_v27  ;;  %v18635_v26 = vpack.c.bf16 %v18633_v14, %v18634_v52  ;;  %10940 = vpow2.f32 %v5489_v22  ;;  %v5491_v38 = vmul.f32 1.442695, %v5209_v63  ;;  %6745 = vmatmul.mubr.bf16.gmra.mxu1 %v6373_v41  ;;  %5964 = vadd.xlane.f32.xlu0 %v5963_v46  ;;  %v18637_v28 = vld [vmem:[#allocation55_spill] sm:$0xff]  ;;  %v18640_v14 = vld [vmem:[#allocation50_spill] sm:$0xff] }
 0x41d   : > { %18626 = vst [vmem:[#allocation93_spill] sm:$0xff] %v14787_v19  ;;  %5121 = vmax.xlane.f32.xlu1 %v18630_v2  ;;  %v14798_v10 = vpop.xlane.xlu1 %4851  ;;  %v14800_v39 = vpop.f32.mrf.mxu0  ;;  %18631 = vst [vmem:[#allocation91_spill] sm:$0xff] %v14803_v57  ;;  %v5273_v61 = vsub.f32 %v18637_v28, %v14643_v29  ;;  %10942 = vpow2.f32 %v5615_v30  ;;  %v14820_v27 = vmul.f32 0.17677669, %v14613_v31  ;;  %v5274_v52 = vsub.f32 %v18640_v14, %v14643_v29  ;;  %v18642_v30 = vld [vmem:[#allocation56_spill] sm:$0xff] }
 0x41e   : > { %18632 = vst [vmem:[#allocation17_spill] sm:$0xff] %v14806_v15  ;;  %9712 = vmatpush3.bf16.msra.mxu1 %v18635_v26  ;;  %v14811_v53 = vpop.eup %10918  ;;  %v6344_v22 = vpack.c.bf16 %v14787_v19, %v14716_v56  ;;  %v5493_v46 = vmul.f32 1.442695, %v5210_v37  ;;  %v14833_v26 = vmul.f32 0.17677669, %v14600_v55  ;;  %v5211_v31 = vsub.f32 %v18642_v30, %v14626_v44  ;;  %v14839_v29 = vpop.f32.mrf.mxu1  ;;  %v18645_v37 = vld [vmem:[#allocation53_spill] sm:$0xff] }
 0x41f   : > { %18636 = vst [vmem:[#allocation13_spill] sm:$0xff] %v14811_v53  ;;  %v14817_v4 = vpop.eup %10920  ;;  %18639 = vst [vmem:[#allocation20_spill] sm:$0xff] %v14820_v27  ;;  %v14826_v12 = vpop.f32.mrf.mxu0  ;;  %v6343_v28 = vpack.c.bf16 %v14766_v13, %v14699_v51  ;;  %10944 = vpow2.f32 %v5617_v62  ;;  %v14846_v42 = vmul.f32 0.17677669, %v14594_v36  ;;  %v5212_v55 = vsub.f32 %v18645_v37, %v14626_v44  ;;  %v18657_v15 = vld [vmem:[#allocation86_spill] sm:$0xff]  ;;  %v18658_v27 = vld [vmem:[#allocation95_spill] sm:$0xff] }
 0x420   : > { %18638 = vst [vmem:[#allocation47_spill] sm:$0xff] %v14817_v4  ;;  %v14828_v63 = vpop.xlane.xlu0 %4854  ;;  %v14830_v41 = vpop.eup %10922  ;;  %18641 = vst [vmem:[#allocation16_spill] sm:$0xff] %v14833_v26  ;;  %6591 = vmatprep.mubr.bf16.mxu0 %v6344_v22  ;;  %v6059_v30 = vadd.f32 %v14481_v23, %v14465_v43  ;;  %10946 = vpow2.f32 %v5491_v38  ;;  %v5619_v40 = vmul.f32 1.442695, %v5273_v61  ;;  %v5966_v19 = vadd.f32 %v14505_v60, %v14493_v25  ;;  %v18653_v60 = vld [vmem:[#allocation60_spill] sm:$0xff]  ;;  %v18674_v13 = vld [vmem:[#allocation39_spill] sm:$0xff] }
 0x421   : > { %v14841_v14 = vpop.xlane.xlu1 %4947  ;;  %v14843_v2 = vpop.eup %10924  ;;  %18644 = vst [vmem:[#allocation30_spill] sm:$0xff] %v14846_v42  ;;  %6592 = vmatmul.mubr.bf16.gmra.mxu0 %v6343_v28  ;;  %v14859_v62 = vmul.f32 0.17677669, %v14624_v9  ;;  %v5621_v44 = vmul.f32 1.442695, %v5274_v52  ;;  %10948 = vpow2.f32 %v5493_v46  ;;  %v18648_v9 = vld [vmem:[#allocation59_spill] sm:$0xff]  ;;  %v5213_v54 = vsub.f32 %v18653_v60, %v14695_v58 }
 0x422   : > { %18643 = vst [vmem:[#allocation74_spill] sm:$0xff] %v14843_v2  ;;  %v14862_v22 = vmul.f32 0.17677669, %v14669_v48  ;;  %6060 = vadd.xlane.f32.xlu0 %v6059_v30  ;;  %v14864_v43 = vpop.f32.mrf.mxu0  ;;  %v14868_v38 = vpop.eup %10926  ;;  %v5495_v25 = vmul.f32 1.442695, %v5211_v31  ;;  %5967 = vadd.xlane.f32.xlu1 %v5966_v19  ;;  %v5275_v61 = vsub.f32 %v18648_v9, %v14683_v21  ;;  %v18650_v46 = vld [vmem:[#allocation54_spill] sm:$0xff]  ;;  %v6376_v31 = vpack.c.bf16 %v14817_v4, %v14755_v47 }
 0x423   : > { %18646 = vst [vmem:[#allocation26_spill] sm:$0xff] %v14859_v62  ;;  %v14874_v52 = vpop.f32.mrf.mxu1  ;;  %v14878_v28 = vpop.eup %10928  ;;  %v5497_v37 = vmul.f32 1.442695, %v5212_v55  ;;  %v14881_v30 = vmul.f32 0.17677669, %v14645_v49  ;;  %v5276_v36 = vsub.f32 %v18650_v46, %v14683_v21  ;;  %10950 = vpow2.f32 %v5619_v40  ;;  %v18655_v46 = vld [vmem:[#allocation57_spill] sm:$0xff] }
 0x424   : > { %18647 = vst [vmem:[#allocation94_spill] sm:$0xff] %v14862_v22  ;;  %v14866_v23 = vpop.xlane.xlu0 %4950  ;;  %v14887_v19 = vpop.eup %10930  ;;  %v14890_v9 = vmul.f32 0.17677669, %v14656_v6  ;;  %v6375_v55 = vpack.c.bf16 %v14811_v53, %v14730_v16  ;;  %10952 = vpow2.f32 %v5621_v44  ;;  %v5214_v26 = vsub.f32 %v18655_v46, %v14695_v58  ;;  %6752 = vmatprep.mubr.bf16.mxu1 %v6376_v31  ;;  %v18656_v40 = vld [vmem:[#allocation38_spill] sm:$0xff]  ;;  %v18661_v44 = vld [vmem:[#allocation83_spill] sm:$0xff] }
 0x425   : > { %v14876_v48 = vpop.xlane.xlu1 %4857  ;;  %18649 = vst [vmem:[#allocation36_spill] sm:$0xff] %v14881_v30  ;;  %18651 = vst [vmem:[#allocation48_spill] sm:$0xff] %v14887_v19  ;;  %v14896_v49 = vpop.eup %10932  ;;  %v6062_v6 = vadd.f32 %v18657_v15, %v18656_v40  ;;  %v18659_v42 = vld [vmem:[#allocation34_spill] sm:$0xff]  ;;  %10954 = vpow2.f32 %v5495_v25  ;;  %v14914_v21 = vmul.f32 0.17677669, %v18661_v44  ;;  %v18663_v58 = vld [vmem:[#allocation63_spill] sm:$0xff] }
 0x426   : > { %18652 = vst [vmem:[#allocation76_spill] sm:$0xff] %v14890_v9  ;;  %18654 = vst [vmem:[#allocation75_spill] sm:$0xff] %v14896_v49  ;;  %v18660_v57 = vmax.f32 %v18658_v27, %v18659_v42  ;;  %v14907_v60 = vpop.f32.mrf.mxu0  ;;  %v14911_v4 = vpop.eup %10934  ;;  %v5623_v22 = vmul.f32 1.442695, %v5275_v61  ;;  %6753 = vmatmul.mubr.bf16.gmra.mxu1 %v6375_v55  ;;  %v5277_v31 = vsub.f32 %v18663_v58, %v14751_v35  ;;  %10956 = vpow2.f32 %v5497_v37  ;;  %v18665_v25 = vld [vmem:[#allocation58_spill] sm:$0xff]  ;;  %v18668_v27 = vld [vmem:[#allocation64_spill] sm:$0xff] }
 0x427   : > { %18662 = vst [vmem:[#allocation11_spill] sm:$0xff] %v14914_v21  ;;  %v14918_v15 = vpop.f32.mrf.mxu1  ;;  %v5625_v40 = vmul.f32 1.442695, %v5276_v36  ;;  %v14925_v42 = vmul.f32 0.17677669, %v14728_v8  ;;  %6063 = vadd.xlane.f32.xlu1 %v6062_v6  ;;  %v5278_v44 = vsub.f32 %v18665_v25, %v14751_v35  ;;  %v5215_v30 = vsub.f32 %v18668_v27, %v14741_v20  ;;  %v18670_v53 = vld [vmem:[#allocation90_spill] sm:$0xff] }
 0x428   : > { %5028 = vmax.xlane.f32.xlu0 %v18660_v57  ;;  %v14909_v0 = vpop.xlane.xlu0 %4860  ;;  %v14922_v57 = vpop.eup %10936  ;;  %v5499_v55 = vmul.f32 1.442695, %v5213_v54  ;;  %v14932_v58 = vmul.f32 0.17677669, %v14714_v59  ;;  %v6346_v37 = vpack.c.bf16 %v14896_v49, %v14843_v2  ;;  %v5501_v8 = vmul.f32 1.442695, %v5214_v26 }
 0x429   : > { %v14920_v46 = vpop.xlane.xlu1 %4953  ;;  %18664 = vst [vmem:[#allocation7_spill] sm:$0xff] %v14925_v42  ;;  %v14929_v61 = vpop.eup %10938  ;;  %v14941_v6 = vmul.f32 0.17677669, %v18670_v53  ;;  %v18672_v35 = vld [vmem:[#allocation61_spill] sm:$0xff]  ;;  %v6345_v54 = vpack.c.bf16 %v14887_v19, %v14830_v41  ;;  %v18673_v59 = vld [vmem:[#allocation23_spill] sm:$0xff]  ;;  %10958 = vpow2.f32 %v5623_v22  ;;  %v18680_v22 = vld [vmem:[#allocation78_spill] sm:$0xff] }
 0x42a   : > { %18666 = vst [vmem:[#allocation70_spill] sm:$0xff] %v14929_v61  ;;  %18667 = vst [vmem:[#allocation18_spill] sm:$0xff] %v14932_v58  ;;  %v14938_v36 = vpop.eup %10940  ;;  %v5216_v25 = vsub.f32 %v18672_v35, %v14741_v20  ;;  %v18675_v47 = vmax.f32 %v18673_v59, %v18674_v13  ;;  %v14950_v27 = vpop.f32.mrf.mxu0  ;;  %v5627_v26 = vmul.f32 1.442695, %v5277_v31  ;;  %6599 = vmatprep.mubr.bf16.mxu0 %v6346_v37  ;;  %v18677_v20 = vld [vmem:[#allocation67_spill] sm:$0xff]  ;;  %10960 = vpow2.f32 %v5625_v40  ;;  %v18679_v53 = vld [vmem:[#allocation97_spill] sm:$0xff] }
 0x42b   : > { %18669 = vst [vmem:[#allocation14_spill] sm:$0xff] %v14938_v36  ;;  %18671 = vst [vmem:[#allocation73_spill] sm:$0xff] %v14941_v6  ;;  %v14954_v49 = vpop.eup %10942  ;;  %v5279_v35 = vsub.f32 %v18677_v20, %v14785_v45  ;;  %v14960_v19 = vpop.f32.mrf.mxu1  ;;  %v14967_v13 = vmul.f32 0.17677669, %v14739_v50  ;;  %v5629_v59 = vmul.f32 1.442695, %v5278_v44  ;;  %6600 = vmatmul.mubr.bf16.gmra.mxu0 %v6345_v54  ;;  %v18681_v31 = vmax.f32 %v18679_v53, %v18680_v22 }
 0x42c   : > { %5124 = vmax.xlane.f32.xlu0 %v18675_v47  ;;  %v14952_v16 = vpop.xlane.xlu0 %4956  ;;  %18676 = vst [vmem:[#allocation88_spill] sm:$0xff] %v14954_v49  ;;  %v14972_v37 = vpop.eup %10944  ;;  %10962 = vpow2.f32 %v5499_v55  ;;  %v5503_v9 = vmul.f32 1.442695, %v5215_v30  ;;  %v18683_v40 = vld [vmem:[#allocation62_spill] sm:$0xff]  ;;  %v5505_v50 = vmul.f32 1.442695, %v5216_v25 }
 0x42d   : > { %v14962_v2 = vpop.xlane.xlu1 %4863  ;;  %18678 = vst [vmem:[#allocation32_spill] sm:$0xff] %v14967_v13  ;;  %5031 = vmax.xlane.f32.xlu1 %v18681_v31  ;;  %18682 = vst [vmem:[#allocation87_spill] sm:$0xff] %v14972_v37  ;;  %v5280_v62 = vsub.f32 %v18683_v40, %v14785_v45  ;;  %v14978_v47 = vpop.eup %10946  ;;  %10964 = vpow2.f32 %v5501_v8  ;;  %v14981_v44 = vmul.f32 0.17677669, %v14776_v5  ;;  %v18686_v54 = vld [vmem:[#allocation68_spill] sm:$0xff]  ;;  %v6378_v45 = vpack.c.bf16 %v14922_v57, %v14878_v28  ;;  %v18689_v40 = vld [vmem:[#allocation65_spill] sm:$0xff] }
 0x42e   : > { %18684 = vst [vmem:[#allocation31_spill] sm:$0xff] %v14978_v47  ;;  %v5217_v31 = vsub.f32 %v18686_v54, %v14798_v10  ;;  %v14985_v22 = vpop.f32.mrf.mxu0  ;;  %10966 = vpow2.f32 %v5627_v26  ;;  %v14990_v30 = vmul.f32 0.17677669, %v14753_v1  ;;  %v5631_v20 = vmul.f32 1.442695, %v5279_v35  ;;  %v14994_v8 = vpop.f32.mrf.mxu1  ;;  %v18690_v35 = vld [vmem:[#allocation37_spill] sm:$0xff] }
 0x42f   : > { %18685 = vst [vmem:[#allocation45_spill] sm:$0xff] %v14981_v44  ;;  %v14998_v5 = vpop.eup %10948  ;;  %10968 = vpow2.f32 %v5629_v59  ;;  %v5218_v54 = vsub.f32 %v18689_v40, %v14798_v10  ;;  %v6377_v26 = vpack.c.bf16 %v14911_v4, %v14868_v38  ;;  %v5969_v1 = vadd.f32 %v14580_v11, %v14561_v18  ;;  %v18691_v53 = vld [vmem:[#allocation44_spill] sm:$0xff]  ;;  %6760 = vmatprep.mubr.bf16.mxu1 %v6378_v45  ;;  %v18696_v11 = vld [vmem:[#allocation98_spill] sm:$0xff] }
 0x430   : > { %v14987_v55 = vpop.xlane.xlu0 %4866  ;;  %18687 = vst [vmem:[#allocation51_spill] sm:$0xff] %v14990_v30  ;;  %18688 = vst [vmem:[#allocation9_spill] sm:$0xff] %v14998_v5  ;;  %v18692_v58 = vmax.f32 %v18690_v35, %v18691_v53  ;;  %10970 = vpow2.f32 %v5503_v9  ;;  %v15010_v21 = vmul.f32 0.17677669, %v14764_v7  ;;  %v15013_v42 = vmul.f32 0.17677669, %v14783_v33  ;;  %v15015_v10 = vpop.eup %10950 }
 0x431   : > { %v14996_v25 = vpop.xlane.xlu1 %4959  ;;  %v5633_v59 = vmul.f32 1.442695, %v5280_v62  ;;  %18695 = vst [vmem:[#allocation12_spill] sm:$0xff] %v15015_v10  ;;  %10972 = vpow2.f32 %v5505_v50  ;;  %v5507_v18 = vmul.f32 1.442695, %v5217_v31  ;;  %6761 = vmatmul.mubr.bf16.gmra.mxu1 %v6377_v26  ;;  %5970 = vadd.xlane.f32.xlu0 %v5969_v1  ;;  %v5281_v9 = vsub.f32 %v18696_v11, %v14841_v14  ;;  %v15025_v33 = vpop.eup %10952  ;;  %v18699_v50 = vld [vmem:[#allocation66_spill] sm:$0xff] }
 0x432   : > { %5127 = vmax.xlane.f32.xlu1 %v18692_v58  ;;  %18693 = vst [vmem:[#allocation5_spill] sm:$0xff] %v15010_v21  ;;  %18694 = vst [vmem:[#allocation46_spill] sm:$0xff] %v15013_v42  ;;  %v15021_v58 = vpop.f32.mrf.mxu0  ;;  %10974 = vpow2.f32 %v5631_v20  ;;  %v15028_v62 = vmul.f32 0.17677669, %v14826_v12  ;;  %v5282_v45 = vsub.f32 %v18699_v50, %v14841_v14  ;;  %v6348_v31 = vpack.c.bf16 %v14998_v5, %v14938_v36  ;;  %v15034_v26 = vpop.f32.mrf.mxu1  ;;  %v18702_v20 = vld [vmem:[#allocation99_spill] sm:$0xff]  ;;  %v18705_v5 = vld [vmem:[#allocation100_spill] sm:$0xff] }
 0x433   : > { %18697 = vst [vmem:[#allocation8_spill] sm:$0xff] %v15025_v33  ;;  %v15038_v11 = vpop.eup %10954  ;;  %v5509_v40 = vmul.f32 1.442695, %v5218_v54  ;;  %v15041_v53 = vmul.f32 0.17677669, %v14839_v29  ;;  %v5219_v12 = vsub.f32 %v18702_v20, %v14828_v63  ;;  %v6347_v35 = vpack.c.bf16 %v14978_v47, %v14929_v61  ;;  %v18706_v47 = vld [vmem:[#allocation81_spill] sm:$0xff] }
 0x434   : > { %v15023_v7 = vpop.xlane.xlu0 %4962  ;;  %18698 = vst [vmem:[#allocation52_spill] sm:$0xff] %v15028_v62  ;;  %18700 = vst [vmem:[#allocation89_spill] sm:$0xff] %v15038_v11  ;;  %v15047_v14 = vpop.eup %10956  ;;  %10976 = vpow2.f32 %v5633_v59  ;;  %v15050_v50 = vmul.f32 0.17677669, %v14800_v39  ;;  %v5220_v36 = vsub.f32 %v18705_v5, %v14828_v63  ;;  %6607 = vmatprep.mubr.bf16.mxu0 %v6348_v31  ;;  %v6065_v29 = vadd.f32 %v14628_v17, %v14615_v34  ;;  %v18707_v61 = vld [vmem:[#allocation42_spill] sm:$0xff]  ;;  %v18714_v63 = vld [vmem:[#allocation101_spill] sm:$0xff] }
 0x435   : > { %v15036_v1 = vpop.xlane.xlu1 %4869  ;;  %18701 = vst [vmem:[#allocation29_spill] sm:$0xff] %v15041_v53  ;;  %18703 = vst [vmem:[#allocation49_spill] sm:$0xff] %v15047_v14  ;;  %10978 = vpow2.f32 %v5507_v18  ;;  %v5635_v20 = vmul.f32 1.442695, %v5281_v9  ;;  %6608 = vmatmul.mubr.bf16.gmra.mxu0 %v6347_v35  ;;  %v5972_v44 = vadd.f32 %v18707_v61, %v18706_v47  ;;  %v15060_v59 = vpop.f32.mrf.mxu0  ;;  %v15067_v5 = vmul.f32 0.17677669, %v14874_v52 }
 0x436   : > { %18704 = vst [vmem:[#allocation10_spill] sm:$0xff] %v15050_v50  ;;  %v5637_v34 = vmul.f32 1.442695, %v5282_v45  ;;  %v15070_v17 = vmul.f32 0.17677669, %v14907_v60  ;;  %6066 = vadd.xlane.f32.xlu0 %v6065_v29  ;;  %v15072_v18 = vpop.f32.mrf.mxu1  ;;  %v15076_v61 = vpop.eup %10958  ;;  %10980 = vpow2.f32 %v5509_v40  ;;  %v18711_v52 = vld [vmem:[#allocation102_spill] sm:$0xff]  ;;  %v5284_v54 = vsub.f32 %v18714_v63, %v14866_v23 }
 0x437   : > { %18708 = vst [vmem:[#allocation6_spill] sm:$0xff] %v15067_v5  ;;  %18710 = vst [vmem:[#allocation50_spill] sm:$0xff] %v15076_v61  ;;  %v5511_v9 = vmul.f32 1.442695, %v5219_v12  ;;  %5973 = vadd.xlane.f32.xlu1 %v5972_v44  ;;  %v5283_v31 = vsub.f32 %v18711_v52, %v14866_v23  ;;  %v15082_v45 = vpop.eup %10960  ;;  %v5513_v60 = vmul.f32 1.442695, %v5220_v36  ;;  %v6380_v40 = vpack.c.bf16 %v15025_v33, %v14972_v37 }
 0x438   : > { %v15062_v39 = vpop.xlane.xlu0 %4872  ;;  %18709 = vst [vmem:[#allocation55_spill] sm:$0xff] %v15070_v17  ;;  %18712 = vst [vmem:[#allocation56_spill] sm:$0xff] %v15082_v45  ;;  %v15085_v29 = vmul.f32 0.17677669, %v14864_v43  ;;  %10982 = vpow2.f32 %v5635_v20  ;;  %v15094_v44 = vmul.f32 0.17677669, %v14918_v15  ;;  %v6379_v36 = vpack.c.bf16 %v15015_v10, %v14954_v49  ;;  %v15100_v43 = vpop.f32.mrf.mxu0 }
 0x439   : > { %v15074_v35 = vpop.xlane.xlu1 %4965  ;;  %v15091_v62 = vpop.eup %10962  ;;  %v18717_v12 = vld [vmem:[#allocation103_spill] sm:$0xff]  ;;  %10984 = vpow2.f32 %v5637_v34  ;;  %v18719_v20 = vld [vmem:[#allocation104_spill] sm:$0xff]  ;;  %6768 = vmatprep.mubr.bf16.mxu1 %v6380_v40  ;;  %v18720_v33 = vld [vmem:[#allocation41_spill] sm:$0xff]  ;;  %v15122_v34 = vmul.f32 0.17677669, %v14960_v19 }
 0x43a   : > { %18713 = vst [vmem:[#allocation53_spill] sm:$0xff] %v15085_v29  ;;  %18715 = vst [vmem:[#allocation59_spill] sm:$0xff] %v15091_v62  ;;  %v5221_v52 = vsub.f32 %v18717_v12, %v14876_v48  ;;  %v15104_v23 = vpop.eup %10964  ;;  %v5222_v15 = vsub.f32 %v18719_v20, %v14876_v48  ;;  %v6068_v12 = vadd.f32 %v14685_v3, %v14671_v24  ;;  %v18721_v37 = vld [vmem:[#allocation43_spill] sm:$0xff]  ;;  %v15115_v49 = vpop.f32.mrf.mxu1  ;;  %10986 = vpow2.f32 %v5511_v9  ;;  %v18725_v48 = vld [vmem:[#allocation106_spill] sm:$0xff] }
 0x43b   : > { %18716 = vst [vmem:[#allocation54_spill] sm:$0xff] %v15094_v44  ;;  %18718 = vst [vmem:[#allocation60_spill] sm:$0xff] %v15104_v23  ;;  %v18722_v10 = vmax.f32 %v18720_v33, %v18721_v37  ;;  %v15119_v42 = vpop.eup %10966  ;;  %v5639_v63 = vmul.f32 1.442695, %v5283_v31  ;;  %6769 = vmatmul.mubr.bf16.gmra.mxu1 %v6379_v36  ;;  %v5285_v40 = vsub.f32 %v18725_v48, %v14920_v46  ;;  %10988 = vpow2.f32 %v5513_v60  ;;  %v18728_v20 = vld [vmem:[#allocation105_spill] sm:$0xff]  ;;  %v18731_v36 = vld [vmem:[#allocation107_spill] sm:$0xff] }
 0x43c   : > { %v15102_v47 = vpop.xlane.xlu0 %4968  ;;  %18723 = vst [vmem:[#allocation57_spill] sm:$0xff] %v15119_v42  ;;  %18724 = vst [vmem:[#allocation38_spill] sm:$0xff] %v15122_v34  ;;  %v15126_v24 = vpop.eup %10968  ;;  %v5641_v3 = vmul.f32 1.442695, %v5284_v54  ;;  %6069 = vadd.xlane.f32.xlu1 %v6068_v12  ;;  %v5286_v37 = vsub.f32 %v18728_v20, %v14920_v46  ;;  %v5515_v19 = vmul.f32 1.442695, %v5221_v52  ;;  %v5223_v48 = vsub.f32 %v18731_v36, %v14909_v0 }
 0x43d   : > { %5034 = vmax.xlane.f32.xlu0 %v18722_v10  ;;  %v15117_v53 = vpop.xlane.xlu1 %4875  ;;  %18726 = vst [vmem:[#allocation86_spill] sm:$0xff] %v15126_v24  ;;  %v15129_v10 = vmul.f32 0.17677669, %v14985_v22  ;;  %v15133_v9 = vpop.eup %10970  ;;  %v15136_v31 = vmul.f32 0.17677669, %v14994_v8  ;;  %v6350_v60 = vpack.c.bf16 %v15104_v23, %v15047_v14  ;;  %v18734_v52 = vld [vmem:[#allocation108_spill] sm:$0xff]  ;;  %v6349_v20 = vpack.c.bf16 %v15091_v62, %v15038_v11 }
 0x43e   : > { %18729 = vst [vmem:[#allocation63_spill] sm:$0xff] %v15133_v9  ;;  %v15142_v54 = vpop.f32.mrf.mxu0  ;;  %v15146_v12 = vpop.eup %10972  ;;  %v5517_v33 = vmul.f32 1.442695, %v5222_v15  ;;  %v15149_v46 = vmul.f32 0.17677669, %v14950_v27  ;;  %v5224_v8 = vsub.f32 %v18734_v52, %v14909_v0  ;;  %v18735_v36 = vld [vmem:[#allocation85_spill] sm:$0xff]  ;;  %10990 = vpow2.f32 %v5639_v63 }
 0x43f   : > { %18727 = vst [vmem:[#allocation83_spill] sm:$0xff] %v15129_v10  ;;  %18730 = vst [vmem:[#allocation58_spill] sm:$0xff] %v15136_v31  ;;  %v18736_v17 = vmax.f32 %v14605_v32, %v18735_v36  ;;  %v4510_v23 = vpop.f32.mrf.mxu1  ;;  %v15160_v29 = vpop.eup %10974  ;;  %v5643_v27 = vmul.f32 1.442695, %v5285_v40  ;;  %6615 = vmatprep.mubr.bf16.mxu0 %v6350_v60  ;;  %v18738_v0 = vld [vmem:[#allocation110_spill] sm:$0xff]  ;;  %10992 = vpow2.f32 %v5641_v3  ;;  %v18740_v32 = vld [vmem:[#allocation71_spill] sm:$0xff] }
 0x440   : > { %v15144_v22 = vpop.xlane.xlu0 %4878  ;;  %18732 = vst [vmem:[#allocation64_spill] sm:$0xff] %v15146_v12  ;;  %18733 = vst [vmem:[#allocation90_spill] sm:$0xff] %v15149_v46  ;;  %v5287_v52 = vsub.f32 %v18738_v0, %v14952_v16  ;;  %v5645_v36 = vmul.f32 1.442695, %v5286_v37  ;;  %6616 = vmatmul.mubr.bf16.gmra.mxu0 %v6349_v20  ;;  %v18741_v11 = vld [vmem:[#allocation92_spill] sm:$0xff]  ;;  %10994 = vpow2.f32 %v5515_v19  ;;  %v18744_v3 = vld [vmem:[#allocation109_spill] sm:$0xff]  ;;  %v15180_v0 = vpop.f32.mrf.mxu0 }
 0x441   : > { %5130 = vmax.xlane.f32.xlu0 %v18736_v17  ;;  %v15158_v14 = vpop.xlane.xlu1 %4971  ;;  %18737 = vst [vmem:[#allocation61_spill] sm:$0xff] %v15160_v29  ;;  %v15169_v17 = vmul.f32 0.17677669, %v15034_v26  ;;  %v18742_v50 = vmax.f32 %v18740_v32, %v18741_v11  ;;  %v15174_v15 = vpop.eup %10976  ;;  %v5519_v40 = vmul.f32 1.442695, %v5223_v48  ;;  %v5288_v60 = vsub.f32 %v18744_v3, %v14952_v16  ;;  %v18747_v19 = vld [vmem:[#allocation111_spill] sm:$0xff] }
 0x442   : > { %18743 = vst [vmem:[#allocation62_spill] sm:$0xff] %v15174_v15  ;;  %v15184_v37 = vpop.eup %10978  ;;  %10996 = vpow2.f32 %v5517_v33  ;;  %v5521_v20 = vmul.f32 1.442695, %v5224_v8  ;;  %v5225_v62 = vsub.f32 %v18747_v19, %v14962_v2  ;;  %v4514_v11 = vpop.f32.mrf.mxu1  ;;  %v15194_v16 = vmul.f32 0.17677669, %v15021_v58  ;;  %v18750_v33 = vld [vmem:[#allocation112_spill] sm:$0xff] }
 0x443   : > { %18739 = vst [vmem:[#allocation67_spill] sm:$0xff] %v15169_v17  ;;  %5037 = vmax.xlane.f32.xlu1 %v18742_v50  ;;  %18745 = vst [vmem:[#allocation68_spill] sm:$0xff] %v15184_v37  ;;  %v15187_v50 = vmul.f32 0.17677669, %v15060_v59  ;;  %10998 = vpow2.f32 %v5643_v27  ;;  %v5647_v48 = vmul.f32 1.442695, %v5287_v52  ;;  %v6382_v3 = vpack.c.bf16 %v15126_v24, %v15082_v45  ;;  %v15198_v32 = vpop.eup %10980 }
 0x444   : > { %v15182_v26 = vpop.xlane.xlu0 %4974  ;;  %18748 = vst [vmem:[#allocation98_spill] sm:$0xff] %v15194_v16  ;;  %18749 = vst [vmem:[#allocation66_spill] sm:$0xff] %v15198_v32  ;;  %11000 = vpow2.f32 %v5645_v36  ;;  %v5226_v59 = vsub.f32 %v18750_v33, %v14962_v2  ;;  %v6381_v8 = vpack.c.bf16 %v15119_v42, %v15076_v61  ;;  %v5975_v19 = vadd.f32 %v14716_v56, %v14699_v51  ;;  %v18751_v27 = vld [vmem:[#allocation79_spill] sm:$0xff]  ;;  %v18752_v31 = vld [vmem:[#allocation77_spill] sm:$0xff]  ;;  %v4227_v2 = vpop.f32.mrf.mxu0 }
 0x445   : > { %18746 = vst [vmem:[#allocation65_spill] sm:$0xff] %v15187_v50  ;;  %v15191_v63 = vpop.xlane.xlu1 %4881  ;;  %v18753_v58 = vmax.f32 %v18751_v27, %v18752_v31  ;;  %11002 = vpow2.f32 %v5519_v40  ;;  %v15210_v52 = vmul.f32 0.17677669, %v15072_v18  ;;  %v15213_v24 = vmul.f32 0.17677669, %v15115_v49  ;;  %6776 = vmatprep.mubr.bf16.mxu1 %v6382_v3  ;;  %v15217_v42 = vpop.eup %10982  ;;  %v18757_v18 = vld [vmem:[#allocation114_spill] sm:$0xff] }
 0x446   : > { %v5649_v36 = vmul.f32 1.442695, %v5288_v60  ;;  %18756 = vst [vmem:[#allocation81_spill] sm:$0xff] %v15217_v42  ;;  %11004 = vpow2.f32 %v5521_v20  ;;  %v5523_v56 = vmul.f32 1.442695, %v5225_v62  ;;  %6777 = vmatmul.mubr.bf16.gmra.mxu1 %v6381_v8  ;;  %5976 = vadd.xlane.f32.xlu0 %v5975_v19  ;;  %v5289_v40 = vsub.f32 %v18757_v18, %v14996_v25  ;;  %v15225_v60 = vpop.eup %10984  ;;  %v18760_v20 = vld [vmem:[#allocation113_spill] sm:$0xff] }
 0x447   : > { %5133 = vmax.xlane.f32.xlu1 %v18753_v58  ;;  %18754 = vst [vmem:[#allocation99_spill] sm:$0xff] %v15210_v52  ;;  %18755 = vst [vmem:[#allocation100_spill] sm:$0xff] %v15213_v24  ;;  %v4516_v58 = vpop.f32.mrf.mxu1  ;;  %11006 = vpow2.f32 %v5647_v48  ;;  %v15228_v3 = vmul.f32 0.17677669, %v15142_v54  ;;  %v5290_v31 = vsub.f32 %v18760_v20, %v14996_v25  ;;  %v6352_v62 = vpack.c.bf16 %v15198_v32, %v15146_v12  ;;  %v15234_v8 = vpop.eup %10986  ;;  %v18763_v18 = vld [vmem:[#allocation115_spill] sm:$0xff]  ;;  %v18766_v25 = vld [vmem:[#allocation116_spill] sm:$0xff] }
 0x448   : > { %v15215_v33 = vpop.xlane.xlu0 %4884  ;;  %18758 = vst [vmem:[#allocation42_spill] sm:$0xff] %v15225_v60  ;;  %18761 = vst [vmem:[#allocation101_spill] sm:$0xff] %v15234_v8  ;;  %v5525_v19 = vmul.f32 1.442695, %v5226_v59  ;;  %v15236_v51 = vmul.f32 0.17677669, %v4510_v23  ;;  %v5227_v27 = vsub.f32 %v18763_v18, %v14987_v55  ;;  %v6351_v48 = vpack.c.bf16 %v15184_v37, %v15133_v9  ;;  %v15242_v45 = vpop.eup %10988 }
 0x449   : > { %v15223_v49 = vpop.xlane.xlu1 %4977  ;;  %18759 = vst [vmem:[#allocation102_spill] sm:$0xff] %v15228_v3  ;;  %18764 = vst [vmem:[#allocation104_spill] sm:$0xff] %v15242_v45  ;;  %11008 = vpow2.f32 %v5649_v36  ;;  %v15245_v54 = vmul.f32 0.17677669, %v15100_v43  ;;  %v5228_v20 = vsub.f32 %v18766_v25, %v14987_v55  ;;  %6623 = vmatprep.mubr.bf16.mxu0 %v6352_v62  ;;  %v18767_v32 = vld [vmem:[#allocation19_spill] sm:$0xff]  ;;  %v18768_v59 = vld [vmem:[#allocation69_spill] sm:$0xff]  ;;  %v4229_v12 = vpop.f32.mrf.mxu0 }
 0x44a   : > { %18762 = vst [vmem:[#allocation103_spill] sm:$0xff] %v15236_v51  ;;  %v6071_v23 = vadd.f32 %v18768_v59, %v18767_v32  ;;  %11010 = vpow2.f32 %v5523_v56  ;;  %v5651_v37 = vmul.f32 1.442695, %v5289_v40  ;;  %6624 = vmatmul.mubr.bf16.gmra.mxu0 %v6351_v48  ;;  %v18769_v36 = vld [vmem:[#allocation80_spill] sm:$0xff]  ;;  %v18770_v9 = vld [vmem:[#allocation93_spill] sm:$0xff]  ;;  %v4518_v34 = vpop.f32.mrf.mxu1 }
 0x44b   : > { %18765 = vst [vmem:[#allocation106_spill] sm:$0xff] %v15245_v54  ;;  %v5978_v43 = vadd.f32 %v18770_v9, %v18769_v36  ;;  %v15261_v62 = vmul.f32 0.17677669, %v4514_v11  ;;  %v5653_v32 = vmul.f32 1.442695, %v5290_v31  ;;  %v15265_v59 = vpop.eup %10990  ;;  %11012 = vpow2.f32 %v5525_v19  ;;  %v18774_v9 = vld [vmem:[#allocation118_spill] sm:$0xff] }
 0x44c   : > { %v15251_v61 = vpop.xlane.xlu0 %4980  ;;  %v15263_v25 = vmul.f32 0.17677669, %v4227_v2  ;;  %6072 = vadd.xlane.f32.xlu0 %v6071_v23  ;;  %18773 = vst [vmem:[#allocation108_spill] sm:$0xff] %v15265_v59  ;;  %v5527_v40 = vmul.f32 1.442695, %v5227_v27  ;;  %v5291_v48 = vsub.f32 %v18774_v9, %v15023_v7  ;;  %v15271_v36 = vpop.eup %10992  ;;  %v18777_v31 = vld [vmem:[#allocation117_spill] sm:$0xff]  ;;  %v6384_v19 = vpack.c.bf16 %v15225_v60, %v15174_v15 }
 0x44d   : > { %v15257_v50 = vpop.xlane.xlu1 %4887  ;;  %18771 = vst [vmem:[#allocation105_spill] sm:$0xff] %v15261_v62  ;;  %5979 = vadd.xlane.f32.xlu1 %v5978_v43  ;;  %18775 = vst [vmem:[#allocation110_spill] sm:$0xff] %v15271_v36  ;;  %v5529_v55 = vmul.f32 1.442695, %v5228_v20  ;;  %v15274_v11 = vmul.f32 0.17677669, %v15180_v0  ;;  %v5292_v2 = vsub.f32 %v18777_v31, %v15023_v7  ;;  %v4231_v23 = vpop.f32.mrf.mxu0  ;;  %11014 = vpow2.f32 %v5651_v37 }
 0x44e   : > { %18772 = vst [vmem:[#allocation107_spill] sm:$0xff] %v15263_v25  ;;  %v15282_v27 = vpop.eup %10994  ;;  %v15284_v43 = vmul.f32 0.17677669, %v4516_v58  ;;  %v18780_v9 = vld [vmem:[#allocation120_spill] sm:$0xff]  ;;  %v4520_v56 = vpop.f32.mrf.mxu1  ;;  %v6383_v0 = vpack.c.bf16 %v15217_v42, %v15160_v29  ;;  %11016 = vpow2.f32 %v5653_v32  ;;  %v18782_v60 = vld [vmem:[#allocation119_spill] sm:$0xff]  ;;  %6784 = vmatprep.mubr.bf16.mxu1 %v6384_v19  ;;  %v18783_v58 = vld [vmem:[#allocation13_spill] sm:$0xff] }
 0x44f   : > { %18776 = vst [vmem:[#allocation109_spill] sm:$0xff] %v15274_v11  ;;  %18778 = vst [vmem:[#allocation111_spill] sm:$0xff] %v15282_v27  ;;  %v5230_v20 = vsub.f32 %v18780_v9, %v15036_v1  ;;  %v15292_v7 = vpop.eup %10996  ;;  %v5229_v37 = vsub.f32 %v18782_v60, %v15036_v1  ;;  %v18784_v15 = vld [vmem:[#allocation47_spill] sm:$0xff]  ;;  %v18785_v9 = vld [vmem:[#allocation72_spill] sm:$0xff]  ;;  %11018 = vpow2.f32 %v5527_v40  ;;  %v5655_v29 = vmul.f32 1.442695, %v5291_v48 }
 0x450   : > { %v15280_v18 = vpop.xlane.xlu0 %4890  ;;  %18779 = vst [vmem:[#allocation112_spill] sm:$0xff] %v15284_v43  ;;  %18781 = vst [vmem:[#allocation114_spill] sm:$0xff] %v15292_v7  ;;  %v6074_v24 = vadd.f32 %v18784_v15, %v18783_v58  ;;  %v18786_v3 = vld [vmem:[#allocation84_spill] sm:$0xff]  ;;  %v15303_v42 = vpop.eup %10998  ;;  %v15305_v52 = vmul.f32 0.17677669, %v4231_v23  ;;  %6785 = vmatmul.mubr.bf16.gmra.mxu1 %v6383_v0  ;;  %v18790_v32 = vld [vmem:[#allocation122_spill] sm:$0xff]  ;;  %11020 = vpow2.f32 %v5529_v55 }
 0x451   : > { %v15290_v51 = vpop.xlane.xlu1 %4983  ;;  %v18787_v54 = vmax.f32 %v18785_v9, %v18786_v3  ;;  %18788 = vst [vmem:[#allocation113_spill] sm:$0xff] %v15303_v42  ;;  %v5293_v31 = vsub.f32 %v18790_v32, %v15074_v35  ;;  %v15309_v25 = vpop.eup %11000  ;;  %v15311_v1 = vmul.f32 0.17677669, %v4518_v34  ;;  %v5657_v15 = vmul.f32 1.442695, %v5292_v2  ;;  %v18793_v60 = vld [vmem:[#allocation121_spill] sm:$0xff] }
 0x452   : > { %18789 = vst [vmem:[#allocation115_spill] sm:$0xff] %v15305_v52  ;;  %18791 = vst [vmem:[#allocation116_spill] sm:$0xff] %v15309_v25  ;;  %6075 = vadd.xlane.f32.xlu1 %v6074_v24  ;;  %v15317_v40 = vpop.eup %11002  ;;  %v5533_v48 = vmul.f32 1.442695, %v5230_v20  ;;  %v15319_v23 = vmul.f32 0.17677669, %v4229_v12  ;;  %v4524_v0 = vpop.f32.mrf.mxu1  ;;  %v6354_v34 = vpack.c.bf16 %v15292_v7, %v15242_v45  ;;  %v6353_v12 = vpack.c.bf16 %v15282_v27, %v15234_v8 }
 0x453   : > { %5040 = vmax.xlane.f32.xlu0 %v18787_v54  ;;  %18792 = vst [vmem:[#allocation19_spill] sm:$0xff] %v15311_v1  ;;  %v5294_v54 = vsub.f32 %v18793_v60, %v15074_v35  ;;  %v18795_v58 = vld [vmem:[#allocation123_spill] sm:$0xff]  ;;  %v15327_v24 = vpop.eup %11004  ;;  %v5531_v2 = vmul.f32 1.442695, %v5229_v37  ;;  %v15329_v35 = vmul.f32 0.17677669, %v4520_v56  ;;  %v4235_v20 = vpop.f32.mrf.mxu0  ;;  %11022 = vpow2.f32 %v5655_v29 }
 0x454   : > { %v15315_v19 = vpop.xlane.xlu0 %4986  ;;  %18794 = vst [vmem:[#allocation69_spill] sm:$0xff] %v15319_v23  ;;  %v5231_v32 = vsub.f32 %v18795_v58, %v15062_v39  ;;  %v18797_v60 = vld [vmem:[#allocation124_spill] sm:$0xff]  ;;  %v18798_v9 = vld [vmem:[#allocation15_spill] sm:$0xff]  ;;  %v15338_v17 = vpop.eup %11006  ;;  %v5659_v37 = vmul.f32 1.442695, %v5293_v31  ;;  %6631 = vmatprep.mubr.bf16.mxu0 %v6354_v34  ;;  %11024 = vpow2.f32 %v5657_v15  ;;  %v18803_v27 = vld [vmem:[#allocation30_spill] sm:$0xff] }
 0x455   : > { %v15325_v55 = vpop.xlane.xlu1 %4893  ;;  %18796 = vst [vmem:[#allocation80_spill] sm:$0xff] %v15329_v35  ;;  %v5232_v3 = vsub.f32 %v18797_v60, %v15062_v39  ;;  %v18799_v11 = vld [vmem:[#allocation91_spill] sm:$0xff]  ;;  %18801 = vst [vmem:[#allocation93_spill] sm:$0xff] %v15338_v17  ;;  %v15344_v39 = vmul.f32 0.17677669, %v4524_v0  ;;  %6632 = vmatmul.mubr.bf16.gmra.mxu0 %v6353_v12  ;;  %v18804_v45 = vld [vmem:[#allocation20_spill] sm:$0xff]  ;;  %11026 = vpow2.f32 %v5533_v48  ;;  %v4237_v7 = vpop.f32.mrf.mxu0 }
 0x456   : > { %v18800_v58 = vmax.f32 %v18798_v9, %v18799_v11  ;;  %v5661_v60 = vmul.f32 1.442695, %v5294_v54  ;;  %v18805_v11 = vmax.f32 %v18803_v27, %v18804_v45  ;;  %v15353_v29 = vpop.eup %11008  ;;  %v5535_v56 = vmul.f32 1.442695, %v5231_v32  ;;  %v18808_v31 = vld [vmem:[#allocation126_spill] sm:$0xff]  ;;  %v18809_v0 = vld [vmem:[#allocation128_spill] sm:$0xff]  ;;  %v4526_v45 = vpop.f32.mrf.mxu1 }
 0x457   : > { %18802 = vst [vmem:[#allocation118_spill] sm:$0xff] %v15344_v39  ;;  %18807 = vst [vmem:[#allocation117_spill] sm:$0xff] %v15353_v29  ;;  %v5295_v15 = vsub.f32 %v18808_v31, %v15102_v47  ;;  %v5234_v54 = vsub.f32 %v18809_v0, %v15117_v53  ;;  %v15361_v12 = vpop.eup %11010  ;;  %11028 = vpow2.f32 %v5531_v2  ;;  %v18810_v48 = vld [vmem:[#allocation125_spill] sm:$0xff]  ;;  %v15367_v27 = vmul.f32 0.17677669, %v4235_v20  ;;  %v18815_v52 = vld [vmem:[#allocation16_spill] sm:$0xff] }
 0x458   : > { %5136 = vmax.xlane.f32.xlu0 %v18800_v58  ;;  %5043 = vmax.xlane.f32.xlu1 %v18805_v11  ;;  %v18806_v58 = vld [vmem:[#allocation127_spill] sm:$0xff]  ;;  %v15351_v8 = vpop.xlane.xlu0 %4992  ;;  %v5296_v32 = vsub.f32 %v18810_v48, %v15102_v47  ;;  %11030 = vpow2.f32 %v5659_v37  ;;  %v15371_v0 = vpop.eup %11012  ;;  %v6385_v11 = vpack.c.bf16 %v15303_v42, %v15265_v59  ;;  %v18814_v1 = vld [vmem:[#allocation17_spill] sm:$0xff] }
 0x459   : > { %v5233_v9 = vsub.f32 %v18806_v58, %v15117_v53  ;;  %v15359_v34 = vpop.xlane.xlu1 %4989  ;;  %v5537_v58 = vmul.f32 1.442695, %v5232_v3  ;;  %18811 = vst [vmem:[#allocation120_spill] sm:$0xff] %v15367_v27  ;;  %v6386_v53 = vpack.c.bf16 %v15309_v25, %v15271_v36  ;;  %18812 = vst [vmem:[#allocation119_spill] sm:$0xff] %v15371_v0  ;;  %11032 = vpow2.f32 %v5661_v60  ;;  %v18813_v3 = vld [vmem:[#allocation74_spill] sm:$0xff]  ;;  %v18827_v36 = vld [vmem:[#allocation75_spill] sm:$0xff] }
 0x45a   : > { %v5541_v2 = vmul.f32 1.442695, %v5234_v54  ;;  %v5981_v35 = vadd.f32 %v18813_v3, %v14830_v41  ;;  %v18816_v47 = vmax.f32 %v18814_v1, %v18815_v52  ;;  %11034 = vpow2.f32 %v5535_v56  ;;  %v18818_v60 = vld [vmem:[#allocation130_spill] sm:$0xff]  ;;  %v15388_v25 = vpop.eup %11014  ;;  %v4528_v41 = vpop.f32.mrf.mxu1 }
 0x45b   : > { %v5539_v31 = vmul.f32 1.442695, %v5233_v9  ;;  %v15382_v9 = vmul.f32 0.17677669, %v4237_v7  ;;  %v5663_v37 = vmul.f32 1.442695, %v5295_v15  ;;  %6792 = vmatprep.mubr.bf16.mxu1 %v6386_v53  ;;  %v5297_v54 = vsub.f32 %v18818_v60, %v15158_v14  ;;  %v15394_v15 = vpop.eup %11016 }
 0x45c   : > { %5139 = vmax.xlane.f32.xlu1 %v18816_v47  ;;  %v15380_v20 = vpop.xlane.xlu0 %5088  ;;  %18819 = vst [vmem:[#allocation47_spill] sm:$0xff] %v15388_v25  ;;  %11036 = vpow2.f32 %v5537_v58  ;;  %v5665_v3 = vmul.f32 1.442695, %v5296_v32  ;;  %6793 = vmatmul.mubr.bf16.gmra.mxu1 %v6385_v11  ;;  %v18820_v47 = vld [vmem:[#allocation129_spill] sm:$0xff]  ;;  %v18821_v7 = vld [vmem:[#allocation131_spill] sm:$0xff]  ;;  %18822 = vst [vmem:[#allocation122_spill] sm:$0xff] %v15394_v15  ;;  %v6356_v58 = vpack.c.bf16 %v15371_v0, %v15327_v24  ;;  %v15402_v32 = vpop.eup %11018 }
 0x45d   : > { %18817 = vst [vmem:[#allocation13_spill] sm:$0xff] %v15382_v9  ;;  %v15386_v48 = vpop.xlane.xlu1 %4995  ;;  %5982 = vadd.xlane.f32.xlu0 %v5981_v35  ;;  %v5298_v52 = vsub.f32 %v18820_v47, %v15158_v14  ;;  %v5235_v56 = vsub.f32 %v18821_v7, %v15144_v22  ;;  %v15396_v53 = vmul.f32 0.17677669, %v4526_v45  ;;  %11038 = vpow2.f32 %v5539_v31  ;;  %v18824_v60 = vld [vmem:[#allocation132_spill] sm:$0xff]  ;;  %v4239_v35 = vpop.f32.mrf.mxu0 }
 0x45e   : > { %v5236_v1 = vsub.f32 %v18824_v60, %v15144_v22  ;;  %11040 = vpow2.f32 %v5541_v2  ;;  %v5667_v11 = vmul.f32 1.442695, %v5297_v54  ;;  %v6355_v47 = vpack.c.bf16 %v15361_v12, %v15317_v40  ;;  %v15408_v45 = vpop.eup %11020  ;;  %6639 = vmatprep.mubr.bf16.mxu0 %v6356_v58  ;;  %v18826_v54 = vld [vmem:[#allocation48_spill] sm:$0xff] }
 0x45f   : > { %18823 = vst [vmem:[#allocation121_spill] sm:$0xff] %v15396_v53  ;;  %v5669_v14 = vmul.f32 1.442695, %v5298_v52  ;;  %v15410_v31 = vmul.f32 0.17677669, %v4528_v41  ;;  %11042 = vpow2.f32 %v5663_v37  ;;  %v6077_v60 = vadd.f32 %v14878_v28, %v14868_v38  ;;  %v18828_v37 = vld [vmem:[#allocation134_spill] sm:$0xff] }
 0x460   : > { %v15406_v7 = vpop.xlane.xlu0 %4998  ;;  %v5543_v22 = vmul.f32 1.442695, %v5235_v56  ;;  %11044 = vpow2.f32 %v5665_v3  ;;  %v5545_v2 = vmul.f32 1.442695, %v5236_v1  ;;  %6640 = vmatmul.mubr.bf16.gmra.mxu0 %v6355_v47  ;;  %v5984_v59 = vadd.f32 %v18827_v36, %v18826_v54  ;;  %v18829_v38 = vld [vmem:[#allocation133_spill] sm:$0xff]  ;;  %v15426_v58 = vpop.eup %11022  ;;  %v18831_v36 = vld [vmem:[#allocation135_spill] sm:$0xff] }
 0x461   : > { %18825 = vst [vmem:[#allocation123_spill] sm:$0xff] %v15410_v31  ;;  %v15414_v42 = vpop.xlane.xlu1 %5091  ;;  %11046 = vpow2.f32 %v5669_v14  ;;  %6078 = vadd.xlane.f32.xlu0 %v6077_v60  ;;  %v5299_v56 = vsub.f32 %v18828_v37, %v15182_v26  ;;  %v5300_v28 = vsub.f32 %v18829_v38, %v15182_v26  ;;  %v15428_v52 = vmul.f32 0.17677669, %v4239_v35  ;;  %v4241_v1 = vpop.f32.mrf.mxu0  ;;  %v18832_v47 = vld [vmem:[#allocation136_spill] sm:$0xff] }
 0x462   : > { %11048 = vpow2.f32 %v5667_v11  ;;  %5985 = vadd.xlane.f32.xlu1 %v5984_v59  ;;  %v5237_v3 = vsub.f32 %v18831_v36, %v15191_v63  ;;  %v5238_v14 = vsub.f32 %v18832_v47, %v15191_v63  ;;  %v15436_v54 = vpop.eup %11024  ;;  %v4530_v37 = vpop.f32.mrf.mxu1  ;;  %v6388_v35 = vpack.c.bf16 %v15394_v15, %v15353_v29 }
 0x463   : > { %18830 = vst [vmem:[#allocation124_spill] sm:$0xff] %v15428_v52  ;;  %18833 = vst [vmem:[#allocation127_spill] sm:$0xff] %v15436_v54  ;;  %11050 = vpow2.f32 %v5543_v22  ;;  %v5671_v26 = vmul.f32 1.442695, %v5299_v56  ;;  %v5673_v38 = vmul.f32 1.442695, %v5300_v28  ;;  %v15442_v59 = vpop.eup %11026  ;;  %v6387_v63 = vpack.c.bf16 %v15388_v25, %v15338_v17 }
 0x464   : > { %v15434_v60 = vpop.xlane.xlu0 %5094  ;;  %18834 = vst [vmem:[#allocation126_spill] sm:$0xff] %v15442_v59  ;;  %11052 = vpow2.f32 %v5545_v2  ;;  %v5547_v11 = vmul.f32 1.442695, %v5237_v3  ;;  %v5549_v36 = vmul.f32 1.442695, %v5238_v14  ;;  %v15446_v47 = vpop.eup %11028  ;;  %6800 = vmatprep.mubr.bf16.mxu1 %v6388_v35  ;;  %v6080_v22 = vadd.f32 %v14922_v57, %v14911_v4  ;;  %v18837_v56 = vld [vmem:[#allocation36_spill] sm:$0xff] }
 0x465   : > { %v15440_v41 = vpop.xlane.xlu1 %5001  ;;  %18835 = vst [vmem:[#allocation128_spill] sm:$0xff] %v15446_v47  ;;  %v15448_v0 = vmul.f32 0.17677669, %v4241_v1  ;;  %11054 = vpow2.f32 %v5671_v26  ;;  %v18838_v28 = vld [vmem:[#allocation94_spill] sm:$0xff]  ;;  %v15457_v14 = vpop.eup %11030  ;;  %v15459_v29 = vmul.f32 0.17677669, %v4530_v37  ;;  %6801 = vmatmul.mubr.bf16.gmra.mxu1 %v6387_v63  ;;  %v6358_v37 = vpack.c.bf16 %v15442_v59, %v15408_v45 }
 0x466   : > { %v18839_v15 = vmax.f32 %v18837_v56, %v18838_v28  ;;  %v18840_v2 = vld [vmem:[#allocation138_spill] sm:$0xff]  ;;  %18841 = vst [vmem:[#allocation74_spill] sm:$0xff] %v15457_v14  ;;  %11056 = vpow2.f32 %v5673_v38  ;;  %v18843_v1 = vld [vmem:[#allocation137_spill] sm:$0xff]  ;;  %v18844_v35 = vld [vmem:[#allocation139_spill] sm:$0xff]  ;;  %v15465_v4 = vpop.eup %11032  ;;  %6081 = vadd.xlane.f32.xlu1 %v6080_v22 }
 0x467   : > { %18836 = vst [vmem:[#allocation125_spill] sm:$0xff] %v15448_v0  ;;  %v5301_v3 = vsub.f32 %v18840_v2, %v15223_v49  ;;  %18842 = vst [vmem:[#allocation130_spill] sm:$0xff] %v15459_v29  ;;  %v5302_v26 = vsub.f32 %v18843_v1, %v15223_v49  ;;  %v5239_v25 = vsub.f32 %v18844_v35, %v15215_v33  ;;  %11058 = vpow2.f32 %v5547_v11  ;;  %v15475_v63 = vpop.eup %11034  ;;  %v18849_v35 = vld [vmem:[#allocation76_spill] sm:$0xff]  ;;  %v18851_v56 = vld [vmem:[#allocation142_spill] sm:$0xff] }
 0x468   : > { %5046 = vmax.xlane.f32.xlu0 %v18839_v15  ;;  %18845 = vst [vmem:[#allocation129_spill] sm:$0xff] %v15465_v4  ;;  %v18846_v15 = vld [vmem:[#allocation140_spill] sm:$0xff]  ;;  %v15473_v38 = vpop.xlane.xlu0 %5004  ;;  %11060 = vpow2.f32 %v5549_v36  ;;  %v6357_v11 = vpack.c.bf16 %v15446_v47, %v15402_v32  ;;  %6647 = vmatprep.mubr.bf16.mxu0 %v6358_v37  ;;  %v5303_v59 = vsub.f32 %v18851_v56, %v15251_v61  ;;  %v18852_v17 = vld [vmem:[#allocation141_spill] sm:$0xff]  ;;  %v18857_v56 = vld [vmem:[#allocation7_spill] sm:$0xff] }
 0x469   : > { %v5675_v57 = vmul.f32 1.442695, %v5301_v3  ;;  %v5240_v2 = vsub.f32 %v18846_v15, %v15215_v33  ;;  %v15471_v28 = vpop.xlane.xlu1 %5097  ;;  %v5677_v49 = vmul.f32 1.442695, %v5302_v26  ;;  %v5551_v1 = vmul.f32 1.442695, %v5239_v25  ;;  %v15479_v22 = vpop.eup %11036 }
 0x46a   : > { %18847 = vst [vmem:[#allocation131_spill] sm:$0xff] %v15479_v22  ;;  %v18848_v33 = vld [vmem:[#allocation26_spill] sm:$0xff]  ;;  %v5304_v36 = vsub.f32 %v18852_v17, %v15251_v61  ;;  %v15488_v26 = vpop.eup %11038  ;;  %6648 = vmatmul.mubr.bf16.gmra.mxu0 %v6357_v11  ;;  %v18854_v25 = vld [vmem:[#allocation143_spill] sm:$0xff]  ;;  %v6390_v37 = vpack.c.bf16 %v15465_v4, %v15436_v54  ;;  %v5679_v61 = vmul.f32 1.442695, %v5303_v59  ;;  %v18862_v59 = vld [vmem:[#allocation45_spill] sm:$0xff] }
 0x46b   : > { %11062 = vpow2.f32 %v5675_v57  ;;  %v5553_v3 = vmul.f32 1.442695, %v5240_v2  ;;  %v18850_v15 = vmax.f32 %v18848_v33, %v18849_v35  ;;  %18853 = vst [vmem:[#allocation132_spill] sm:$0xff] %v15488_v26  ;;  %v5241_v47 = vsub.f32 %v18854_v25, %v15257_v50  ;;  %v18855_v57 = vld [vmem:[#allocation144_spill] sm:$0xff] }
 0x46c   : > { %11064 = vpow2.f32 %v5677_v49  ;;  %v5242_v2 = vsub.f32 %v18855_v57, %v15257_v50  ;;  %v18858_v35 = vmax.f32 %v14941_v6, %v18857_v56  ;;  %v5681_v17 = vmul.f32 1.442695, %v5304_v36  ;;  %v15503_v11 = vpop.xlane.xlu0 %5100  ;;  %6808 = vmatprep.mubr.bf16.mxu1 %v6390_v37  ;;  %v18864_v36 = vld [vmem:[#allocation145_spill] sm:$0xff] }
 0x46d   : > { %5142 = vmax.xlane.f32.xlu0 %v18850_v15  ;;  %v15496_v15 = vpop.eup %11040  ;;  %11066 = vpow2.f32 %v5551_v1  ;;  %v6389_v49 = vpack.c.bf16 %v15457_v14, %v15426_v58  ;;  %v15505_v25 = vpop.xlane.xlu1 %5007  ;;  %v5555_v57 = vmul.f32 1.442695, %v5241_v47  ;;  %v18860_v1 = vld [vmem:[#allocation146_spill] sm:$0xff]  ;;  %v5306_v6 = vsub.f32 %v18864_v36, %v15290_v51  ;;  %v18865_v14 = vld [vmem:[#allocation147_spill] sm:$0xff]  ;;  %v18866_v47 = vld [vmem:[#allocation148_spill] sm:$0xff] }
 0x46e   : > { %18856 = vst [vmem:[#allocation48_spill] sm:$0xff] %v15496_v15  ;;  %5049 = vmax.xlane.f32.xlu1 %v18858_v35  ;;  %v15507_v50 = vpop.eup %11042  ;;  %11068 = vpow2.f32 %v5553_v3  ;;  %v5557_v33 = vmul.f32 1.442695, %v5242_v2  ;;  %v5305_v4 = vsub.f32 %v18860_v1, %v15290_v51  ;;  %v18863_v35 = vmax.f32 %v14990_v30, %v18862_v59  ;;  %v18869_v51 = vld [vmem:[#allocation11_spill] sm:$0xff]  ;;  %v18870_v36 = vld [vmem:[#allocation18_spill] sm:$0xff] }
 0x46f   : > { %18859 = vst [vmem:[#allocation75_spill] sm:$0xff] %v15507_v50  ;;  %v15511_v56 = vpop.eup %11044  ;;  %11070 = vpow2.f32 %v5679_v61  ;;  %v5243_v54 = vsub.f32 %v18865_v14, %v15280_v18  ;;  %v5244_v3 = vsub.f32 %v18866_v47, %v15280_v18  ;;  %6809 = vmatmul.mubr.bf16.gmra.mxu1 %v6389_v49  ;;  %v6360_v61 = vpack.c.bf16 %v15496_v15, %v15479_v22  ;;  %v18874_v15 = vld [vmem:[#allocation149_spill] sm:$0xff] }
 0x470   : > { %18861 = vst [vmem:[#allocation134_spill] sm:$0xff] %v15511_v56  ;;  %v15522_v2 = vpop.eup %11046  ;;  %11072 = vpow2.f32 %v5681_v17  ;;  %v5683_v37 = vmul.f32 1.442695, %v5305_v4  ;;  %v6359_v1 = vpack.c.bf16 %v15488_v26, %v15475_v63  ;;  %v18871_v14 = vmax.f32 %v18869_v51, %v18870_v36  ;;  %v15533_v30 = vpop.xlane.xlu0 %5010  ;;  %v18873_v4 = vld [vmem:[#allocation150_spill] sm:$0xff] }
 0x471   : > { %5052 = vmax.xlane.f32.xlu0 %v18863_v35  ;;  %18867 = vst [vmem:[#allocation133_spill] sm:$0xff] %v15522_v2  ;;  %v15528_v35 = vpop.eup %11048  ;;  %11074 = vpow2.f32 %v5555_v57  ;;  %v5685_v59 = vmul.f32 1.442695, %v5306_v6  ;;  %v5559_v18 = vmul.f32 1.442695, %v5243_v54  ;;  %6655 = vmatprep.mubr.bf16.mxu0 %v6360_v61  ;;  %v5307_v49 = vsub.f32 %v18873_v4, %v15315_v19  ;;  %v18875_v57 = vld [vmem:[#allocation151_spill] sm:$0xff]  ;;  %v15543_v36 = vpop.xlane.xlu1 %5103 }
 0x472   : > { %18868 = vst [vmem:[#allocation135_spill] sm:$0xff] %v15528_v35  ;;  %5145 = vmax.xlane.f32.xlu1 %v18871_v14  ;;  %v5561_v47 = vmul.f32 1.442695, %v5244_v3  ;;  %v15535_v17 = vpop.eup %11050  ;;  %11076 = vpow2.f32 %v5557_v33  ;;  %v5308_v26 = vsub.f32 %v18874_v15, %v15315_v19  ;;  %v5245_v22 = vsub.f32 %v18875_v57, %v15325_v55  ;;  %v18878_v3 = vld [vmem:[#allocation152_spill] sm:$0xff]  ;;  %v4534_v14 = vpop.f32.mrf.mxu1  ;;  %6656 = vmatmul.mubr.bf16.gmra.mxu0 %v6359_v1 }
 0x473   : > { %18872 = vst [vmem:[#allocation136_spill] sm:$0xff] %v15535_v17  ;;  %v15545_v6 = vpop.eup %11052  ;;  %11078 = vpow2.f32 %v5683_v37  ;;  %v18877_v33 = vmax.f32 %v14967_v13, %v15010_v21  ;;  %v5246_v61 = vsub.f32 %v18878_v3, %v15325_v55  ;;  %v6392_v19 = vpack.c.bf16 %v15522_v2, %v15511_v56  ;;  %v18880_v21 = vld [vmem:[#allocation52_spill] sm:$0xff]  ;;  %v18882_v3 = vld [vmem:[#allocation154_spill] sm:$0xff] }
 0x474   : > { %18876 = vst [vmem:[#allocation138_spill] sm:$0xff] %v15545_v6  ;;  %v15556_v15 = vpop.eup %11054  ;;  %11080 = vpow2.f32 %v5685_v59  ;;  %v5687_v4 = vmul.f32 1.442695, %v5307_v49  ;;  %v5689_v57 = vmul.f32 1.442695, %v5308_v26  ;;  %v6391_v37 = vpack.c.bf16 %v15528_v35, %v15507_v50  ;;  %v18883_v59 = vld [vmem:[#allocation153_spill] sm:$0xff] }
 0x475   : > { %5148 = vmax.xlane.f32.xlu0 %v18877_v33  ;;  %v15560_v54 = vpop.eup %11056  ;;  %11082 = vpow2.f32 %v5559_v18  ;;  %v18879_v33 = vld [vmem:[#allocation10_spill] sm:$0xff]  ;;  %v5563_v55 = vmul.f32 1.442695, %v5245_v22  ;;  %6816 = vmatprep.mubr.bf16.mxu1 %v6392_v19  ;;  %v5309_v51 = vsub.f32 %v18882_v3, %v15359_v34  ;;  %v5310_v1 = vsub.f32 %v18883_v59, %v15359_v34  ;;  %v18885_v35 = vld [vmem:[#allocation155_spill] sm:$0xff]  ;;  %v18886_v18 = vld [vmem:[#allocation156_spill] sm:$0xff]  ;;  %v4245_v22 = vpop.f32.mrf.mxu0 }
 0x476   : > { %v18881_v13 = vmax.f32 %v18879_v33, %v18880_v21  ;;  %v15569_v49 = vpop.eup %11058  ;;  %11084 = vpow2.f32 %v5561_v47  ;;  %v5565_v26 = vmul.f32 1.442695, %v5246_v61  ;;  %v5311_v2 = vsub.f32 %v18885_v35, %v15351_v8  ;;  %v18889_v19 = vld [vmem:[#allocation53_spill] sm:$0xff]  ;;  %v18890_v3 = vld [vmem:[#allocation55_spill] sm:$0xff]  ;;  %v18892_v47 = vld [vmem:[#allocation158_spill] sm:$0xff]  ;;  %v15584_v59 = vpop.xlane.xlu0 %5106 }
 0x477   : > { %18884 = vst [vmem:[#allocation137_spill] sm:$0xff] %v15569_v49  ;;  %v5312_v56 = vsub.f32 %v18886_v18, %v15351_v8  ;;  %v15575_v21 = vpop.eup %11060  ;;  %11086 = vpow2.f32 %v5687_v4  ;;  %v18891_v33 = vmax.f32 %v18889_v19, %v18890_v3  ;;  %v5691_v34 = vmul.f32 1.442695, %v5309_v51  ;;  %6817 = vmatmul.mubr.bf16.gmra.mxu1 %v6391_v37  ;;  %v15592_v18 = vpop.xlane.xlu1 %5013  ;;  %v18894_v51 = vld [vmem:[#allocation46_spill] sm:$0xff] }
 0x478   : > { %5055 = vmax.xlane.f32.xlu1 %v18881_v13  ;;  %18887 = vst [vmem:[#allocation139_spill] sm:$0xff] %v15575_v21  ;;  %v15577_v13 = vmul.f32 0.17677669, %v4534_v14  ;;  %v5375_v61 = vsub.f32 %v18892_v47, %v15380_v20  ;;  %v15586_v35 = vpop.eup %11062  ;;  %11088 = vpow2.f32 %v5689_v57  ;;  %v5693_v8 = vmul.f32 1.442695, %v5310_v1  ;;  %v18895_v47 = vld [vmem:[#allocation29_spill] sm:$0xff] }
 0x479   : > { %5058 = vmax.xlane.f32.xlu0 %v18891_v33  ;;  %v6362_v14 = vpack.c.bf16 %v15575_v21, %v15545_v6  ;;  %v6361_v4 = vpack.c.bf16 %v15569_v49, %v15535_v17  ;;  %v15594_v33 = vpop.eup %11064  ;;  %11090 = vpow2.f32 %v5563_v55  ;;  %v18896_v3 = vmax.f32 %v18894_v51, %v18895_v47  ;;  %v18897_v57 = vld [vmem:[#allocation157_spill] sm:$0xff]  ;;  %v18898_v1 = vld [vmem:[#allocation159_spill] sm:$0xff]  ;;  %v18899_v6 = vld [vmem:[#allocation160_spill] sm:$0xff] }
 0x47a   : > { %18888 = vst [vmem:[#allocation140_spill] sm:$0xff] %v15577_v13  ;;  %18893 = vst [vmem:[#allocation142_spill] sm:$0xff] %v15594_v33  ;;  %v5695_v19 = vmul.f32 1.442695, %v5311_v2  ;;  %v5376_v37 = vsub.f32 %v18897_v57, %v15380_v20  ;;  %v5313_v50 = vsub.f32 %v18898_v1, %v15386_v48  ;;  %v15603_v21 = vpop.eup %11066  ;;  %11092 = vpow2.f32 %v5565_v26  ;;  %v4247_v20 = vpop.f32.mrf.mxu0  ;;  %v18903_v1 = vld [vmem:[#allocation161_spill] sm:$0xff] }
 0x47b   : > { %v5697_v49 = vmul.f32 1.442695, %v5312_v56  ;;  %6663 = vmatprep.mubr.bf16.mxu0 %v6362_v14  ;;  %v5314_v17 = vsub.f32 %v18899_v6, %v15386_v48  ;;  %v6394_v55 = vpack.c.bf16 %v15594_v33, %v15560_v54  ;;  %v15609_v47 = vpop.eup %11068  ;;  %11094 = vpow2.f32 %v5691_v34  ;;  %v18901_v56 = vld [vmem:[#allocation162_spill] sm:$0xff] }
 0x47c   : > { %5151 = vmax.xlane.f32.xlu1 %v18896_v3  ;;  %v18900_v3 = vmax.f32 %v15067_v5, %v15094_v44  ;;  %v5823_v26 = vmul.f32 1.442695, %v5375_v61  ;;  %v5377_v14 = vsub.f32 %v18901_v56, %v15414_v42  ;;  %v15618_v57 = vpop.eup %11070  ;;  %11096 = vpow2.f32 %v5693_v8  ;;  %6664 = vmatmul.mubr.bf16.gmra.mxu0 %v6361_v4  ;;  %v18907_v8 = vld [vmem:[#allocation163_spill] sm:$0xff]  ;;  %v15641_v5 = vpop.xlane.xlu1 %5109 }
 0x47d   : > { %18902 = vst [vmem:[#allocation141_spill] sm:$0xff] %v15618_v57  ;;  %v5825_v48 = vmul.f32 1.442695, %v5376_v37  ;;  %6824 = vmatprep.mubr.bf16.mxu1 %v6394_v55  ;;  %v6393_v6 = vpack.c.bf16 %v15586_v35, %v15556_v15  ;;  %v5378_v34 = vsub.f32 %v18903_v1, %v15414_v42  ;;  %v15624_v2 = vpop.eup %11072  ;;  %v15626_v44 = vmul.f32 0.17677669, %v4245_v22  ;;  %v15633_v37 = vpop.xlane.xlu0 %5952  ;;  %v18911_v22 = vld [vmem:[#allocation164_spill] sm:$0xff] }
 0x47e   : > { %5154 = vmax.xlane.f32.xlu0 %v18900_v3  ;;  %18904 = vst [vmem:[#allocation143_spill] sm:$0xff] %v15624_v2  ;;  %11098 = vpow2.f32 %v5695_v19  ;;  %v18906_v61 = vmax.f32 %v15149_v46, %v15129_v10  ;;  %v5699_v3 = vmul.f32 1.442695, %v5313_v50  ;;  %v5315_v4 = vsub.f32 %v18907_v8, %v15406_v7  ;;  %18908 = vst [vmem:[#allocation146_spill] sm:$0xff] %v15633_v37  ;;  %v15635_v55 = vpop.eup %11074  ;;  %v4536_v42 = vpop.f32.mrf.mxu1  ;;  %v18913_v50 = vld [vmem:[#allocation65_spill] sm:$0xff] }
 0x47f   : > { %18905 = vst [vmem:[#allocation144_spill] sm:$0xff] %v15626_v44  ;;  %18909 = vst [vmem:[#allocation145_spill] sm:$0xff] %v15635_v55  ;;  %v15637_v56 = vmul.f32 0.17677669, %v4247_v20  ;;  %11100 = vpow2.f32 %v5697_v49  ;;  %v5701_v1 = vmul.f32 1.442695, %v5314_v17  ;;  %v5316_v19 = vsub.f32 %v18911_v22, %v15406_v7  ;;  %v15643_v10 = vpop.eup %11076  ;;  %6825 = vmatmul.mubr.bf16.gmra.mxu1 %v6393_v6 }
 0x480   : > { %5061 = vmax.xlane.f32.xlu1 %v18906_v61  ;;  %18912 = vst [vmem:[#allocation148_spill] sm:$0xff] %v15643_v10  ;;  %11102 = vpow2.f32 %v5823_v26  ;;  %v18914_v61 = vmax.f32 %v15194_v16, %v18913_v50  ;;  %v5827_v8 = vmul.f32 1.442695, %v5377_v14  ;;  %v5829_v46 = vmul.f32 1.442695, %v5378_v34  ;;  %v18915_v20 = vld [vmem:[#allocation166_spill] sm:$0xff]  ;;  %v15650_v37 = vpop.eup %11078 }
 0x481   : > { %18910 = vst [vmem:[#allocation147_spill] sm:$0xff] %v15637_v56  ;;  %v5379_v51 = vsub.f32 %v18915_v20, %v15434_v60  ;;  %18916 = vst [vmem:[#allocation150_spill] sm:$0xff] %v15650_v37  ;;  %11104 = vpow2.f32 %v5825_v48  ;;  %v6364_v7 = vpack.c.bf16 %v15643_v10, %v15609_v47  ;;  %v6363_v17 = vpack.c.bf16 %v15635_v55, %v15603_v21  ;;  %v18917_v49 = vld [vmem:[#allocation165_spill] sm:$0xff]  ;;  %v15658_v22 = vpop.eup %11080  ;;  %v18920_v34 = vld [vmem:[#allocation38_spill] sm:$0xff]  ;;  %v4538_v10 = vpop.f32.mrf.mxu1 }
 0x482   : > { %5064 = vmax.xlane.f32.xlu0 %v18914_v61  ;;  %v5380_v26 = vsub.f32 %v18917_v49, %v15434_v60  ;;  %18918 = vst [vmem:[#allocation149_spill] sm:$0xff] %v15658_v22  ;;  %v15660_v14 = vmul.f32 0.17677669, %v4536_v42  ;;  %11106 = vpow2.f32 %v5699_v3  ;;  %v18921_v61 = vld [vmem:[#allocation58_spill] sm:$0xff]  ;;  %v5703_v48 = vmul.f32 1.442695, %v5315_v4  ;;  %v15667_v16 = vpop.eup %11082 }
 0x483   : > { %v18922_v20 = vmax.f32 %v18920_v34, %v18921_v61  ;;  %v18923_v6 = vld [vmem:[#allocation167_spill] sm:$0xff]  ;;  %11108 = vpow2.f32 %v5701_v1  ;;  %v5705_v55 = vmul.f32 1.442695, %v5316_v19  ;;  %6671 = vmatprep.mubr.bf16.mxu0 %v6364_v7  ;;  %v18924_v60 = vld [vmem:[#allocation168_spill] sm:$0xff]  ;;  %v6396_v3 = vpack.c.bf16 %v15658_v22, %v15624_v2  ;;  %v15673_v42 = vpop.eup %11084  ;;  %v18929_v34 = vld [vmem:[#allocation170_spill] sm:$0xff]  ;;  %v15682_v7 = vpop.xlane.xlu0 %6048 }
 0x484   : > { %18919 = vst [vmem:[#allocation151_spill] sm:$0xff] %v15660_v14  ;;  %v5317_v50 = vsub.f32 %v18923_v6, %v15440_v41  ;;  %v5318_v49 = vsub.f32 %v18924_v60, %v15440_v41  ;;  %18925 = vst [vmem:[#allocation152_spill] sm:$0xff] %v15673_v42  ;;  %11110 = vpow2.f32 %v5827_v8  ;;  %v18927_v4 = vld [vmem:[#allocation99_spill] sm:$0xff]  ;;  %v5831_v6 = vmul.f32 1.442695, %v5379_v51  ;;  %v18930_v1 = vld [vmem:[#allocation169_spill] sm:$0xff]  ;;  %v15684_v41 = vpop.eup %11086  ;;  %6672 = vmatmul.mubr.bf16.gmra.mxu0 %v6363_v17 }
 0x485   : > { %5157 = vmax.xlane.f32.xlu1 %v18922_v20  ;;  %v18926_v20 = vld [vmem:[#allocation67_spill] sm:$0xff]  ;;  %v5381_v33 = vsub.f32 %v18929_v34, %v15471_v28  ;;  %v5382_v19 = vsub.f32 %v18930_v1, %v15471_v28  ;;  %18931 = vst [vmem:[#allocation154_spill] sm:$0xff] %v15682_v7  ;;  %11112 = vpow2.f32 %v5829_v46  ;;  %v5833_v8 = vmul.f32 1.442695, %v5380_v26  ;;  %6832 = vmatprep.mubr.bf16.mxu1 %v6396_v3  ;;  %v15692_v34 = vpop.eup %11088  ;;  %v4249_v28 = vpop.f32.mrf.mxu0  ;;  %v18934_v1 = vld [vmem:[#allocation106_spill] sm:$0xff] }
 0x486   : > { %v18928_v61 = vmax.f32 %v18926_v20, %v18927_v4  ;;  %v6395_v51 = vpack.c.bf16 %v15650_v37, %v15618_v57  ;;  %v15694_v4 = vmul.f32 0.17677669, %v4538_v10  ;;  %11114 = vpow2.f32 %v5703_v48  ;;  %v18935_v20 = vld [vmem:[#allocation102_spill] sm:$0xff]  ;;  %v18937_v46 = vld [vmem:[#allocation171_spill] sm:$0xff]  ;;  %v15701_v26 = vpop.eup %11090  ;;  %v18939_v10 = vld [vmem:[#allocation172_spill] sm:$0xff] }
 0x487   : > { %v18936_v7 = vmax.f32 %v18934_v1, %v18935_v20  ;;  %v5707_v60 = vmul.f32 1.442695, %v5317_v50  ;;  %v5319_v17 = vsub.f32 %v18937_v46, %v15473_v38  ;;  %18938 = vst [vmem:[#allocation156_spill] sm:$0xff] %v15701_v26  ;;  %11116 = vpow2.f32 %v5705_v55  ;;  %v15707_v37 = vpop.eup %11092  ;;  %v18941_v48 = vld [vmem:[#allocation109_spill] sm:$0xff]  ;;  %v18942_v20 = vld [vmem:[#allocation107_spill] sm:$0xff]  ;;  %v18944_v46 = vld [vmem:[#allocation28_spill] sm:$0xff]  ;;  %v15714_v57 = vpop.xlane.xlu0 %5016 }
 0x488   : > { %5160 = vmax.xlane.f32.xlu0 %v18928_v61  ;;  %v15690_v61 = vpop.xlane.xlu1 %5955  ;;  %18933 = vst [vmem:[#allocation155_spill] sm:$0xff] %v15694_v4  ;;  %v5320_v22 = vsub.f32 %v18939_v10, %v15473_v38  ;;  %18940 = vst [vmem:[#allocation158_spill] sm:$0xff] %v15707_v37  ;;  %11118 = vpow2.f32 %v5831_v6  ;;  %v5835_v50 = vmul.f32 1.442695, %v5381_v33  ;;  %v5837_v1 = vmul.f32 1.442695, %v5382_v19  ;;  %v15716_v3 = vpop.eup %11094  ;;  %6833 = vmatmul.mubr.bf16.gmra.mxu1 %v6395_v51 }
 0x489   : > { %18932 = vst [vmem:[#allocation153_spill] sm:$0xff] %v15690_v61  ;;  %5067 = vmax.xlane.f32.xlu1 %v18936_v7  ;;  %v5709_v61 = vmul.f32 1.442695, %v5318_v49  ;;  %v18943_v7 = vmax.f32 %v18941_v48, %v18942_v20  ;;  %v5383_v2 = vsub.f32 %v18944_v46, %v15503_v11  ;;  %11120 = vpow2.f32 %v5833_v8  ;;  %v18945_v49 = vld [vmem:[#allocation173_spill] sm:$0xff]  ;;  %v15724_v33 = vpop.eup %11096  ;;  %v4251_v19 = vpop.f32.mrf.mxu0  ;;  %v18947_v10 = vld [vmem:[#allocation100_spill] sm:$0xff] }
 0x48a   : > { %v6366_v38 = vpack.c.bf16 %v15707_v37, %v15673_v42  ;;  %v6365_v55 = vpack.c.bf16 %v15701_v26, %v15667_v16  ;;  %v5384_v6 = vsub.f32 %v18945_v49, %v15503_v11  ;;  %18946 = vst [vmem:[#allocation157_spill] sm:$0xff] %v15724_v33  ;;  %11122 = vpow2.f32 %v5707_v60  ;;  %v18950_v8 = vld [vmem:[#allocation21_spill] sm:$0xff]  ;;  %v4540_v26 = vpop.f32.mrf.mxu1  ;;  %v18952_v49 = vld [vmem:[#allocation175_spill] sm:$0xff] }
 0x48b   : > { %v5711_v20 = vmul.f32 1.442695, %v5319_v17  ;;  %v5321_v51 = vsub.f32 %v18950_v8, %v15505_v25  ;;  %v18951_v48 = vld [vmem:[#allocation25_spill] sm:$0xff]  ;;  %v15733_v42 = vpop.eup %11098  ;;  %11124 = vpow2.f32 %v5709_v61  ;;  %v5713_v11 = vmul.f32 1.442695, %v5320_v22  ;;  %v18956_v22 = vld [vmem:[#allocation174_spill] sm:$0xff] }
 0x48c   : > { %5070 = vmax.xlane.f32.xlu0 %v18943_v7  ;;  %v18948_v7 = vld [vmem:[#allocation103_spill] sm:$0xff]  ;;  %v5322_v37 = vsub.f32 %v18951_v48, %v15505_v25  ;;  %6679 = vmatprep.mubr.bf16.mxu0 %v6366_v38  ;;  %v6398_v60 = vpack.c.bf16 %v15724_v33, %v15692_v34  ;;  %v15741_v17 = vpop.eup %11100  ;;  %v15743_v8 = vmul.f32 0.17677669, %v4249_v28  ;;  %11126 = vpow2.f32 %v5835_v50 }
 0x48d   : > { %v18949_v46 = vmax.f32 %v18947_v10, %v18948_v7  ;;  %v5385_v7 = vsub.f32 %v18952_v49, %v15543_v36  ;;  %v18955_v25 = vmax.f32 %v15261_v62, %v15284_v43  ;;  %v5839_v61 = vmul.f32 1.442695, %v5383_v2  ;;  %v15750_v38 = vpop.eup %11102  ;;  %6680 = vmatmul.mubr.bf16.gmra.mxu0 %v6365_v55  ;;  %v18959_v2 = vld [vmem:[#allocation115_spill] sm:$0xff]  ;;  %v18963_v43 = vld [vmem:[#allocation177_spill] sm:$0xff] }
 0x48e   : > { %18954 = vst [vmem:[#allocation160_spill] sm:$0xff] %v15743_v8  ;;  %v5386_v48 = vsub.f32 %v18956_v22, %v15543_v36  ;;  %v15752_v10 = vmul.f32 0.17677669, %v4251_v19  ;;  %11128 = vpow2.f32 %v5837_v1  ;;  %v5841_v49 = vmul.f32 1.442695, %v5384_v6  ;;  %6840 = vmatprep.mubr.bf16.mxu1 %v6398_v60  ;;  %v15756_v50 = vpop.eup %11104  ;;  %v15763_v19 = vpop.xlane.xlu0 %5112  ;;  %v18962_v6 = vld [vmem:[#allocation176_spill] sm:$0xff] }
 0x48f   : > { %5163 = vmax.xlane.f32.xlu1 %v18949_v46  ;;  %v15739_v46 = vpop.xlane.xlu1 %6051  ;;  %v6397_v28 = vpack.c.bf16 %v15716_v3, %v15684_v41  ;;  %11130 = vpow2.f32 %v5711_v20  ;;  %v5715_v36 = vmul.f32 1.442695, %v5321_v51  ;;  %v5717_v22 = vmul.f32 1.442695, %v5322_v37  ;;  %v15765_v1 = vpop.eup %11106  ;;  %v18966_v51 = vld [vmem:[#allocation35_spill] sm:$0xff] }
 0x490   : > { %18953 = vst [vmem:[#allocation159_spill] sm:$0xff] %v15739_v46  ;;  %5166 = vmax.xlane.f32.xlu0 %v18955_v25  ;;  %18957 = vst [vmem:[#allocation162_spill] sm:$0xff] %v15752_v10  ;;  %v15758_v46 = vmul.f32 0.17677669, %v4540_v26  ;;  %v18960_v25 = vmax.f32 %v15319_v23, %v18959_v2  ;;  %11132 = vpow2.f32 %v5713_v11  ;;  %v5843_v55 = vmul.f32 1.442695, %v5385_v7  ;;  %v15771_v62 = vpop.eup %11108 }
 0x491   : > { %18961 = vst [vmem:[#allocation163_spill] sm:$0xff] %v15765_v1  ;;  %v5323_v60 = vsub.f32 %v18962_v6, %v15533_v30  ;;  %v5324_v26 = vsub.f32 %v18963_v43, %v15533_v30  ;;  %18964 = vst [vmem:[#allocation164_spill] sm:$0xff] %v15771_v62  ;;  %11134 = vpow2.f32 %v5839_v61  ;;  %v18965_v20 = vmax.f32 %v15367_v27, %v15382_v9  ;;  %v18967_v11 = vld [vmem:[#allocation178_spill] sm:$0xff]  ;;  %v15782_v6 = vpop.eup %11110  ;;  %v18968_v61 = vld [vmem:[#allocation179_spill] sm:$0xff] }
 0x492   : > { %18958 = vst [vmem:[#allocation161_spill] sm:$0xff] %v15758_v46  ;;  %v5845_v37 = vmul.f32 1.442695, %v5386_v48  ;;  %v5388_v7 = vsub.f32 %v18967_v11, %v15584_v59  ;;  %11136 = vpow2.f32 %v5841_v49  ;;  %6841 = vmatmul.mubr.bf16.gmra.mxu1 %v6397_v28  ;;  %v6400_v30 = vpack.c.bf16 %v15771_v62, %v15741_v17  ;;  %v18971_v11 = vld [vmem:[#allocation80_spill] sm:$0xff]  ;;  %v18974_v27 = vld [vmem:[#allocation182_spill] sm:$0xff] }
 0x493   : > { %5073 = vmax.xlane.f32.xlu1 %v18960_v25  ;;  %v5387_v25 = vsub.f32 %v18966_v51, %v15584_v59  ;;  %v15780_v2 = vpop.xlane.xlu1 %5019  ;;  %v6399_v43 = vpack.c.bf16 %v15765_v1, %v15733_v42  ;;  %v5325_v48 = vsub.f32 %v18968_v61, %v15592_v18  ;;  %11138 = vpow2.f32 %v5715_v36  ;;  %v18970_v51 = vld [vmem:[#allocation19_spill] sm:$0xff]  ;;  %v18973_v49 = vld [vmem:[#allocation180_spill] sm:$0xff]  ;;  %v18975_v36 = vld [vmem:[#allocation181_spill] sm:$0xff] }
 0x494   : > { %5076 = vmax.xlane.f32.xlu0 %v18965_v20  ;;  %v15790_v20 = vpop.eup %11112  ;;  %v18972_v9 = vmax.f32 %v18970_v51, %v18971_v11  ;;  %v5326_v28 = vsub.f32 %v18973_v49, %v15592_v18  ;;  %v5389_v23 = vsub.f32 %v18974_v27, %v15641_v5  ;;  %11140 = vpow2.f32 %v5717_v22  ;;  %6881 = vmatprep.mubr.bf16.mxu0 %v6400_v30  ;;  %v18983_v51 = vld [vmem:[#allocation185_spill] sm:$0xff] }
 0x495   : > { %18969 = vst [vmem:[#allocation166_spill] sm:$0xff] %v15790_v20  ;;  %v15801_v62 = vpop.eup %11114  ;;  %v5719_v61 = vmul.f32 1.442695, %v5323_v60  ;;  %v6432_v1 = vpack.c.bf16 %v15790_v20, %v15756_v50  ;;  %v5390_v59 = vsub.f32 %v18975_v36, %v15641_v5  ;;  %11142 = vpow2.f32 %v5843_v55  ;;  %v15814_v60 = vpop.xlane.xlu0 %5958  ;;  %6882 = vmatmul.mubr.bf16.vlgmr.msra.gmra.mxu0 %v6399_v43 }
 0x496   : > { %v15807_v33 = vpop.eup %11116  ;;  %v5721_v18 = vmul.f32 1.442695, %v5324_v26  ;;  %v18976_v27 = vmax.f32 %v15344_v39, %v15396_v53  ;;  %v5847_v22 = vmul.f32 1.442695, %v5387_v25  ;;  %18977 = vst [vmem:[#allocation165_spill] sm:$0xff] %v15814_v60  ;;  %11144 = vpow2.f32 %v5845_v37  ;;  %v18979_v60 = vld [vmem:[#allocation184_spill] sm:$0xff] }
 0x497   : > { %5169 = vmax.xlane.f32.xlu1 %v18972_v9  ;;  %v15816_v30 = vpop.eup %11118  ;;  %v5849_v49 = vmul.f32 1.442695, %v5388_v7  ;;  %v5723_v5 = vmul.f32 1.442695, %v5325_v48  ;;  %7042 = vmatprep.mubr.bf16.mxu1 %v6432_v1  ;;  %v6431_v36 = vpack.c.bf16 %v15782_v6, %v15750_v38  ;;  %v15820_v9 = vpop.xlane.xlu1 %5115  ;;  %v18978_v26 = vmax.f32 %v15428_v52, %v15448_v0  ;;  %v18980_v7 = vld [vmem:[#allocation33_spill] sm:$0xff]  ;;  %v18981_v53 = vld [vmem:[#allocation70_spill] sm:$0xff] }
 0x498   : > { %5172 = vmax.xlane.f32.xlu0 %v18976_v27  ;;  %v15822_v55 = vpop.eup %11120  ;;  %v5725_v25 = vmul.f32 1.442695, %v5326_v28  ;;  %v5851_v27 = vmul.f32 1.442695, %v5389_v23  ;;  %v5327_v37 = vsub.f32 %v18979_v60, %v15714_v57  ;;  %v5328_v43 = vsub.f32 %v18980_v7, %v15714_v57  ;;  %v18982_v39 = vld [vmem:[#allocation14_spill] sm:$0xff]  ;;  %v18985_v28 = vld [vmem:[#allocation89_spill] sm:$0xff] }
 0x499   : > { %v15831_v1 = vpop.eup %11122  ;;  %11146 = vpow2.f32 %v5719_v61  ;;  %v5853_v48 = vmul.f32 1.442695, %v5390_v59  ;;  %v5987_v11 = vadd.f32 %v18982_v39, %v18981_v53  ;;  %v5391_v20 = vsub.f32 %v18983_v51, %v15763_v19  ;;  %v18986_v60 = vld [vmem:[#allocation49_spill] sm:$0xff]  ;;  %v18989_v39 = vld [vmem:[#allocation183_spill] sm:$0xff] }
 0x49a   : > { %v15837_v0 = vpop.eup %11124  ;;  %11148 = vpow2.f32 %v5721_v18  ;;  %v18984_v23 = vmax.f32 %v15626_v44, %v15637_v56  ;;  %v15844_v57 = vadd.f32 %v18986_v60, %v18985_v28  ;;  %v18988_v61 = vld [vmem:[#allocation9_spill] sm:$0xff]  ;;  %v5392_v53 = vsub.f32 %v18989_v39, %v15763_v19  ;;  %7043 = vmatmul.mubr.bf16.vlgmr.msra.gmra.mxu1 %v6431_v36  ;;  %v15860_v60 = vpop.xlane.xlu0 %6054  ;;  %v18994_v39 = vld [vmem:[#allocation188_spill] sm:$0xff] }
 0x49b   : > { %5079 = vmax.xlane.f32.xlu1 %v18978_v26  ;;  %v18987_v26 = vld [vmem:[#allocation31_spill] sm:$0xff]  ;;  %v15852_v7 = vpop.eup %11126  ;;  %11150 = vpow2.f32 %v5847_v22  ;;  %v6402_v51 = vpack.c.bf16 %v15837_v0, %v15807_v33  ;;  %v6401_v18 = vpack.c.bf16 %v15831_v1, %v15801_v62  ;;  %18991 = vst [vmem:[#allocation167_spill] sm:$0xff] %v15860_v60  ;;  %v18993_v22 = vmax.f32 %v15410_v31, %v15459_v29  ;;  %v15872_v44 = vpop.xlane.xlu1 %5961  ;;  %v19000_v31 = vld [vmem:[#allocation60_spill] sm:$0xff] }
 0x49c   : > { %5082 = vmax.xlane.f32.xlu0 %v18984_v23  ;;  %v15848_v59 = vadd.f32 %v18988_v61, %v18987_v26  ;;  %v18990_v23 = vld [vmem:[#allocation187_spill] sm:$0xff]  ;;  %v10770_v26 = vld [vmem:[%s17535_s5 + $0x8] sm:$0xff]   ;;  %v15865_v19 = vpop.eup %11128  ;;  %11152 = vpow2.f32 %v5723_v5  ;;  %v5727_v36 = vmul.f32 1.442695, %v5327_v37  ;;  %v5729_v61 = vmul.f32 1.442695, %v5328_v43 }
 0x49d   : > { %v5329_v28 = vsub.f32 %v18990_v23, %v15780_v2  ;;  %18992 = vst [vmem:[#allocation168_spill] sm:$0xff] %v15865_v19  ;;  %v5330_v56 = vsub.f32 %v18994_v39, %v15780_v2  ;;  %18995 = vst [vmem:[#allocation170_spill] sm:$0xff] %v15872_v44  ;;  %v10771_v23 = vld [vmem:[%s17535_s5 + $0x18] sm:$0xff]   ;;  %v15877_v60 = vpop.eup %11130  ;;  %11154 = vpow2.f32 %v5725_v25  ;;  %6889 = vmatprep.mubr.bf16.mxu0 %v6402_v51  ;;  %v5855_v29 = vmul.f32 1.442695, %v5391_v20  ;;  %v18997_v37 = vld [vmem:[#allocation87_spill] sm:$0xff] }
 0x49e   : > { %v6434_v5 = vpack.c.bf16 %v15865_v19, %v15822_v55  ;;  %10457 = vmatprep.subr.bf16.mxu0 %v10770_v26  ;;  %v15885_v2 = vpop.eup %11132  ;;  %11156 = vpow2.f32 %v5849_v49  ;;  %v18998_v39 = vmax.f32 %v15577_v13, %v15660_v14  ;;  %v18999_v44 = vld [vmem:[#allocation59_spill] sm:$0xff]  ;;  %v19001_v51 = vld [vmem:[#allocation186_spill] sm:$0xff]  ;;  %v19002_v20 = vld [vmem:[#allocation189_spill] sm:$0xff]  ;;  %6890 = vmatmul.mubr.bf16.gmra.mxu0 %v6401_v18  ;;  %v6433_v49 = vpack.c.bf16 %v15852_v7, %v15816_v30  ;;  %v5023_v14 = vpop.xlane.xlu0 %5022 }
 0x49f   : > { %5175 = vmax.xlane.f32.xlu1 %v18993_v22  ;;  %v18996_v22 = vld [vmem:[#allocation88_spill] sm:$0xff]  ;;  %v15892_v25 = vadd.f32 %v19000_v31, %v18999_v44  ;;  %v5393_v52 = vsub.f32 %v19001_v51, %v15820_v9  ;;  %v5394_v19 = vsub.f32 %v19002_v20, %v15820_v9  ;;  %10458 = vmatpush3.bf16.msra.mxu0 %v10770_v26  ;;  %11158 = vpow2.f32 %v5851_v27  ;;  %v19004_v26 = vld [vmem:[#allocation22_spill] sm:$0xff] }
 0x4a0   : > { %v15883_v43 = vadd.f32 %v18997_v37, %v18996_v22  ;;  %5178 = vmax.xlane.f32.xlu0 %v18998_v39  ;;  %v15898_v22 = vpop.eup %11134  ;;  %7050 = vmatprep.mubr.bf16.mxu1 %v6434_v5  ;;  %v5857_v37 = vmul.f32 1.442695, %v5392_v53  ;;  %v5731_v39 = vmul.f32 1.442695, %v5329_v28  ;;  %11160 = vpow2.f32 %v5853_v48  ;;  %v19006_v53 = vld [vmem:[#allocation50_spill] sm:$0xff]  ;;  %v19007_v28 = vld [vmem:[#allocation56_spill] sm:$0xff] }
 0x4a1   : > { %v15902_v44 = vpop.eup %11136  ;;  %v19003_v31 = vmax.f32 %v15743_v8, %v15752_v10  ;;  %v5733_v9 = vmul.f32 1.442695, %v5330_v56  ;;  %v5331_v51 = vsub.f32 %v19004_v26, %v5023_v14  ;;  %v15910_v27 = vadd.f32 %v15327_v24, %v15317_v40  ;;  %10493 = vmatprep.subr.bf16.mxu1 %v10771_v23  ;;  %v19008_v20 = vld [vmem:[#allocation12_spill] sm:$0xff]  ;;  %v15922_v10 = vpop.xlane.xlu1 %6057  ;;  %v19012_v40 = vld [vmem:[#allocation119_spill] sm:$0xff] }
 0x4a2   : > { %v15912_v18 = vpop.eup %11138  ;;  %v15916_v5 = vadd.f32 %v19007_v28, %v19006_v53  ;;  %v19009_v48 = vld [vmem:[#allocation8_spill] sm:$0xff]  ;;  %19010 = vst [vmem:[#allocation171_spill] sm:$0xff] %v15922_v10  ;;  %v15926_v56 = vadd.f32 %v15408_v45, %v15402_v32  ;;  %v15930_v24 = vadd.f32 %v19012_v40, %v15361_v12  ;;  %10494 = vmatpush3.bf16.msra.mxu1 %v10771_v23  ;;  %v5859_v26 = vmul.f32 1.442695, %v5393_v52  ;;  %v19015_v28 = vld [vmem:[#allocation63_spill] sm:$0xff]  ;;  %v5119_v45 = vpop.xlane.xlu0 %5118  ;;  %v19018_v23 = vld [vmem:[#allocation93_spill] sm:$0xff] }
 0x4a3   : > { %5085 = vmax.xlane.f32.xlu1 %v19003_v31  ;;  %19005 = vst [vmem:[#allocation169_spill] sm:$0xff] %v15910_v27  ;;  %v15920_v13 = vadd.f32 %v19009_v48, %v19008_v20  ;;  %v15932_v31 = vpop.eup %11140  ;;  %v5861_v53 = vmul.f32 1.442695, %v5394_v19  ;;  %v19016_v8 = vld [vmem:[#allocation64_spill] sm:$0xff]  ;;  %v19017_v48 = vld [vmem:[#allocation191_spill] sm:$0xff]  ;;  %7051 = vmatmul.mubr.bf16.gmra.mxu1 %v6433_v49  ;;  %v6403_v12 = vpack.c.bf16 %v15912_v18, %v15877_v60  ;;  %v19021_v19 = vld [vmem:[#allocation126_spill] sm:$0xff]  ;;  %11162 = vpow2.f32 %v5727_v36 }
 0x4a4   : > { %19011 = vst [vmem:[#allocation172_spill] sm:$0xff] %v15926_v56  ;;  %19013 = vst [vmem:[#allocation28_spill] sm:$0xff] %v15930_v24  ;;  %5988 = vadd.xlane.f32.xlu0 %v5987_v11  ;;  %v15936_v20 = vadd.f32 %v19016_v8, %v19015_v28  ;;  %v5332_v10 = vsub.f32 %v19017_v48, %v5023_v14  ;;  %v15939_v27 = vpop.eup %11142  ;;  %v6404_v32 = vpack.c.bf16 %v15932_v31, %v15885_v2  ;;  %v19019_v11 = vld [vmem:[#allocation117_spill] sm:$0xff]  ;;  %v19022_v40 = vld [vmem:[#allocation128_spill] sm:$0xff] }
 0x4a5   : > { %19014 = vst [vmem:[#allocation173_spill] sm:$0xff] %v15932_v31  ;;  %v15947_v52 = vadd.f32 %v19019_v11, %v19018_v23  ;;  %v15951_v8 = vadd.f32 %v19022_v40, %v19021_v19  ;;  %v15953_v28 = vpop.eup %11144  ;;  %v19024_v14 = vmax.f32 %v15694_v4, %v15758_v46  ;;  %v19025_v49 = vld [vmem:[#allocation57_spill] sm:$0xff]  ;;  %v19026_v48 = vld [vmem:[#allocation86_spill] sm:$0xff]  ;;  %v15962_v56 = vmul.f32 1.442695, %v5331_v51  ;;  %v19028_v23 = vld [vmem:[#allocation104_spill] sm:$0xff]  ;;  %v5026_v40 = vpop.xlane.xlu1 %5025 }
 0x4a6   : > { %v15960_v24 = vadd.f32 %v19026_v48, %v19025_v49  ;;  %v19027_v31 = vld [vmem:[#allocation101_spill] sm:$0xff]  ;;  %11164 = vpow2.f32 %v5729_v61  ;;  %6897 = vmatprep.mubr.bf16.mxu0 %v6404_v32  ;;  %v6436_v19 = vpack.c.bf16 %v15953_v28, %v15902_v44  ;;  %v19029_v46 = vld [vmem:[#allocation127_spill] sm:$0xff]  ;;  %v19032_v4 = vld [vmem:[#allocation122_spill] sm:$0xff]  ;;  %v15978_v51 = vpop.eup %11146  ;;  %v6435_v61 = vpack.c.bf16 %v15939_v27, %v15898_v22 }
 0x4a7   : > { %19020 = vst [vmem:[#allocation21_spill] sm:$0xff] %v15947_v52  ;;  %19023 = vst [vmem:[#allocation25_spill] sm:$0xff] %v15951_v8  ;;  %5181 = vmax.xlane.f32.xlu1 %v19024_v14  ;;  %v15966_v11 = vadd.f32 %v19028_v23, %v19027_v31  ;;  %v15972_v14 = vadd.f32 %v19029_v46, %v15426_v58  ;;  %v19031_v36 = vld [vmem:[#allocation47_spill] sm:$0xff]  ;;  %11166 = vpow2.f32 %v5855_v29  ;;  %v15983_v31 = vmul.f32 1.442695, %v5332_v10  ;;  %v19034_v32 = vld [vmem:[#allocation190_spill] sm:$0xff]  ;;  %v15986_v23 = vpop.eup %11148 }
 0x4a8   : > { %v15976_v49 = vadd.f32 %v19032_v4, %v19031_v36  ;;  %5994 = vadd.xlane.f32.xlu0 %v15844_v57  ;;  %v5395_v48 = vsub.f32 %v19034_v32, %v5119_v45  ;;  %6898 = vmatmul.mubr.bf16.gmra.mxu0 %v6403_v12  ;;  %11168 = vpow2.f32 %v5857_v37  ;;  %v19035_v58 = vld [vmem:[#allocation82_spill] sm:$0xff]  ;;  %v19036_v46 = vld [vmem:[#allocation131_spill] sm:$0xff]  ;;  %v19039_v29 = vld [vmem:[#allocation129_spill] sm:$0xff] }
 0x4a9   : > { %19030 = vst [vmem:[#allocation175_spill] sm:$0xff] %v15972_v14  ;;  %7058 = vmatprep.mubr.bf16.mxu1 %v6436_v19  ;;  %v5396_v4 = vsub.f32 %v19035_v58, %v5119_v45  ;;  %v15991_v36 = vadd.f32 %v19036_v46, %v15475_v63  ;;  %v19038_v57 = vld [vmem:[#allocation74_spill] sm:$0xff]  ;;  %v15997_v14 = vpop.eup %11150  ;;  %11170 = vpow2.f32 %v5731_v39  ;;  %v19041_v10 = vld [vmem:[#allocation27_spill] sm:$0xff]  ;;  %v19044_v45 = vld [vmem:[#allocation132_spill] sm:$0xff] }
 0x4aa   : > { %19033 = vst [vmem:[#allocation174_spill] sm:$0xff] %v15976_v49  ;;  %v15995_v49 = vadd.f32 %v19039_v29, %v19038_v57  ;;  %v5333_v32 = vsub.f32 %v19041_v10, %v5026_v40  ;;  %v19042_v12 = vld [vmem:[#allocation75_spill] sm:$0xff]  ;;  %v19043_v37 = vld [vmem:[#allocation134_spill] sm:$0xff]  ;;  %v19045_v58 = vld [vmem:[#allocation48_spill] sm:$0xff]  ;;  %v16009_v63 = vpop.eup %11152  ;;  %11172 = vpow2.f32 %v5733_v9  ;;  %v5122_v29 = vpop.xlane.xlu1 %5121 }
 0x4ab   : > { %19037 = vst [vmem:[#allocation176_spill] sm:$0xff] %v15991_v36  ;;  %5991 = vadd.xlane.f32.xlu1 %v15848_v59  ;;  %v16003_v19 = vadd.f32 %v19043_v37, %v19042_v12  ;;  %v16007_v8 = vadd.f32 %v19045_v58, %v19044_v45  ;;  %v19047_v46 = vld [vmem:[#allocation24_spill] sm:$0xff]  ;;  %v19049_v36 = vld [vmem:[#allocation138_spill] sm:$0xff]  ;;  %v19050_v39 = vld [vmem:[#allocation133_spill] sm:$0xff]  ;;  %v16020_v12 = vpop.eup %11154  ;;  %v6405_v37 = vpack.c.bf16 %v16009_v63, %v15978_v51  ;;  %v5863_v45 = vmul.f32 1.442695, %v5395_v48 }
 0x4ac   : > { %19040 = vst [vmem:[#allocation177_spill] sm:$0xff] %v15995_v49  ;;  %v5334_v57 = vsub.f32 %v19047_v46, %v5026_v40  ;;  %v19048_v49 = vld [vmem:[#allocation136_spill] sm:$0xff]  ;;  %v19051_v10 = vld [vmem:[#allocation135_spill] sm:$0xff]  ;;  %6084 = vadd.xlane.f32.xlu0 %v15883_v43  ;;  %7059 = vmatmul.mubr.bf16.gmra.mxu1 %v6435_v61  ;;  %11174 = vpow2.f32 %v5859_v26  ;;  %v19056_v43 = vld [vmem:[#allocation137_spill] sm:$0xff]  ;;  %v5865_v61 = vmul.f32 1.442695, %v5396_v4 }
 0x4ad   : > { %19046 = vst [vmem:[#allocation35_spill] sm:$0xff] %v16007_v8  ;;  %v16014_v59 = vadd.f32 %v19049_v36, %v19048_v49  ;;  %v16018_v52 = vadd.f32 %v19051_v10, %v19050_v39  ;;  %v19053_v9 = vld [vmem:[#allocation192_spill] sm:$0xff]  ;;  %v11157_v8 = vpop.eup %11156  ;;  %v6406_v49 = vpack.c.bf16 %v16020_v12, %v15986_v23  ;;  %v16029_v36 = vpop.xlane.xlu0 %5964  ;;  %v16033_v39 = vadd.f32 %v15560_v54, %v15556_v15  ;;  %v19057_v10 = vld [vmem:[#allocation139_spill] sm:$0xff]  ;;  %v19059_v15 = vld [vmem:[#allocation142_spill] sm:$0xff] }
 0x4ae   : > { %v5397_v58 = vsub.f32 %v19053_v9, %v5122_v29  ;;  %v19054_v40 = vld [vmem:[#allocation40_spill] sm:$0xff]  ;;  %19055 = vst [vmem:[#allocation179_spill] sm:$0xff] %v16029_v36  ;;  %v16039_v48 = vpop.eup %11158  ;;  %11176 = vpow2.f32 %v5861_v53  ;;  %v5739_v26 = vmul.f32 1.442695, %v5333_v32  ;;  %v16048_v36 = vadd.f32 %v19059_v15, %v15586_v35  ;;  %v19062_v4 = vld [vmem:[#allocation145_spill] sm:$0xff] }
 0x4af   : > { %19052 = vst [vmem:[#allocation178_spill] sm:$0xff] %v16018_v52  ;;  %v5398_v46 = vsub.f32 %v19054_v40, %v5122_v29  ;;  %v16037_v52 = vadd.f32 %v19057_v10, %v19056_v43  ;;  %5997 = vadd.xlane.f32.xlu1 %v15892_v25  ;;  %v16044_v29 = vadd.f32 %v15609_v47, %v15603_v21  ;;  %v11161_v9 = vpop.eup %11160  ;;  %v5741_v40 = vmul.f32 1.442695, %v5334_v57  ;;  %v19060_v43 = vld [vmem:[#allocation141_spill] sm:$0xff]  ;;  %v19061_v10 = vld [vmem:[#allocation143_spill] sm:$0xff]  ;;  %v19063_v32 = vld [vmem:[#allocation148_spill] sm:$0xff] }
 0x4b0   : > { %6905 = vmatprep.mubr.bf16.mxu0 %v6406_v49  ;;  %v5867_v54 = vmul.f32 1.442695, %v5397_v58  ;;  %6090 = vadd.xlane.f32.xlu0 %v15916_v5  ;;  %v6438_v25 = vpack.c.bf16 %v11161_v9, %v11157_v8  ;;  %v16057_v21 = vadd.f32 %v19063_v32, %v19062_v4  ;;  %v19064_v47 = vld [vmem:[#allocation152_spill] sm:$0xff]  ;;  %v6437_v35 = vpack.c.bf16 %v16039_v48, %v15997_v14  ;;  %v19065_v58 = vld [vmem:[#allocation150_spill] sm:$0xff]  ;;  %v19066_v49 = vld [vmem:[#allocation149_spill] sm:$0xff] }
 0x4b1   : > { %19058 = vst [vmem:[#allocation180_spill] sm:$0xff] %v16037_v52  ;;  %v16052_v52 = vadd.f32 %v19061_v10, %v19060_v43  ;;  %v5869_v53 = vmul.f32 1.442695, %v5398_v46  ;;  %v16061_v57 = vadd.f32 %v19064_v47, %v15667_v16  ;;  %6906 = vmatmul.mubr.bf16.gmra.mxu0 %v6405_v37  ;;  %v16067_v15 = vadd.f32 %v19066_v49, %v19065_v58  ;;  %v19067_v46 = vld [vmem:[#allocation156_spill] sm:$0xff]  ;;  %v19068_v43 = vld [vmem:[#allocation158_spill] sm:$0xff]  ;;  %v16079_v16 = vpop.xlane.xlu0 %6060  ;;  %v19070_v4 = vld [vmem:[#allocation157_spill] sm:$0xff] }
 0x4b2   : > { %v16071_v5 = vadd.f32 %v15692_v34, %v15684_v41  ;;  %v16075_v10 = vadd.f32 %v19068_v43, %v19067_v46  ;;  %7066 = vmatprep.mubr.bf16.mxu1 %v6438_v25  ;;  %11178 = vpow2.f32 %v15962_v56  ;;  %19069 = vst [vmem:[#allocation182_spill] sm:$0xff] %v16079_v16  ;;  %v16083_v37 = vadd.f32 %v15741_v17, %v15733_v42  ;;  %v11163_v34 = vpop.eup %11162  ;;  %v19071_v56 = vld [vmem:[#allocation163_spill] sm:$0xff]  ;;  %v19072_v25 = vld [vmem:[#allocation164_spill] sm:$0xff]  ;;  %v19082_v49 = vld [vmem:[#allocation62_spill] sm:$0xff] }
 0x4b3   : > { %6087 = vadd.xlane.f32.xlu1 %v15920_v13  ;;  %v16087_v32 = vadd.f32 %v19070_v4, %v15716_v3  ;;  %v16091_v41 = vadd.f32 %v15756_v50, %v15750_v38  ;;  %11180 = vpow2.f32 %v15983_v31  ;;  %v16094_v13 = vpop.xlane.xlu1 %5967  ;;  %v16098_v47 = vadd.f32 %v19072_v25, %v19071_v56  ;;  %v19073_v3 = vld [vmem:[#allocation166_spill] sm:$0xff]  ;;  %v11165_v58 = vpop.eup %11164 }
 0x4b4   : > { %v16102_v42 = vadd.f32 %v15807_v33, %v15801_v62  ;;  %v16106_v17 = vadd.f32 %v19073_v3, %v15782_v6  ;;  %6000 = vadd.xlane.f32.xlu0 %v15936_v20  ;;  %11182 = vpow2.f32 %v5863_v45  ;;  %v16111_v38 = vadd.f32 %v15822_v55, %v15816_v30  ;;  %v11167_v33 = vpop.eup %11166  ;;  %7067 = vmatmul.mubr.bf16.gmra.mxu1 %v6437_v35  ;;  %v19074_v6 = vld [vmem:[#allocation168_spill] sm:$0xff]  ;;  %v19075_v30 = vld [vmem:[#allocation173_spill] sm:$0xff]  ;;  %v19077_v45 = vld [vmem:[#allocation34_spill] sm:$0xff] }
 0x4b5   : > { %v16115_v50 = vadd.f32 %v15837_v0, %v15831_v1  ;;  %v16119_v62 = vadd.f32 %v15885_v2, %v15877_v60  ;;  %11184 = vpow2.f32 %v5865_v61  ;;  %v16123_v31 = vadd.f32 %v19074_v6, %v15852_v7  ;;  %v11169_v0 = vpop.eup %11168  ;;  %v5029_v1 = vpop.xlane.xlu0 %5028  ;;  %v19084_v6 = vld [vmem:[#allocation39_spill] sm:$0xff] }
 0x4b6   : > { %v16127_v20 = vadd.f32 %v15902_v44, %v15898_v22  ;;  %v16131_v55 = vadd.f32 %v19075_v30, %v15912_v18  ;;  %11186 = vpow2.f32 %v5739_v26  ;;  %v16136_v60 = vadd.f32 %v15986_v23, %v15978_v51  ;;  %v11171_v22 = vpop.eup %11170  ;;  %v19076_v44 = vld [vmem:[#allocation95_spill] sm:$0xff]  ;;  %v19078_v51 = vld [vmem:[#allocation68_spill] sm:$0xff]  ;;  %v19079_v23 = vld [vmem:[#allocation66_spill] sm:$0xff] }
 0x4b7   : > { %6093 = vadd.xlane.f32.xlu1 %v15960_v24  ;;  %v16140_v7 = vadd.f32 %v15953_v28, %v15939_v27  ;;  %v16143_v2 = vadd.f32 %v11157_v8, %v15997_v14  ;;  %11188 = vpow2.f32 %v5741_v40  ;;  %v5335_v18 = vsub.f32 %v19076_v44, %v5029_v1  ;;  %v11173_v26 = vpop.eup %11172  ;;  %v16154_v35 = vpop.xlane.xlu1 %6063  ;;  %v19081_v40 = vld [vmem:[#allocation61_spill] sm:$0xff] }
 0x4b8   : > { %v5336_v61 = vsub.f32 %v19077_v45, %v5029_v1  ;;  %v16149_v24 = vadd.f32 %v16020_v12, %v16009_v63  ;;  %6006 = vadd.xlane.f32.xlu0 %v15966_v11  ;;  %v6002_v27 = vadd.f32 %v19079_v23, %v19078_v51  ;;  %v6407_v28 = vpack.c.bf16 %v11171_v22, %v11163_v34 }
 0x4b9   : > { %19080 = vst [vmem:[#allocation181_spill] sm:$0xff] %v16154_v35  ;;  %v16156_v8 = vadd.f32 %v11165_v58, %v11163_v34  ;;  %v16159_v14 = vadd.f32 %v11161_v9, %v16039_v48  ;;  %v6095_v46 = vadd.f32 %v19082_v49, %v19081_v40  ;;  %11190 = vpow2.f32 %v5867_v54  ;;  %v11175_v12 = vpop.eup %11174  ;;  %v5125_v43 = vpop.xlane.xlu0 %5124  ;;  %v19083_v48 = vld [vmem:[#allocation23_spill] sm:$0xff] }
 0x4ba   : > { %v6408_v63 = vpack.c.bf16 %v11173_v26, %v11165_v58  ;;  %11192 = vpow2.f32 %v5869_v53  ;;  %v5743_v11 = vmul.f32 1.442695, %v5335_v18  ;;  %v16163_v4 = vadd.f32 %v11169_v0, %v11167_v33  ;;  %v19085_v54 = vld [vmem:[#allocation111_spill] sm:$0xff]  ;;  %v19086_v58 = vld [vmem:[#allocation114_spill] sm:$0xff] }
 0x4bb   : > { %6003 = vadd.xlane.f32.xlu1 %v6002_v27  ;;  %v16165_v56 = vadd.f32 %v11173_v26, %v11171_v22  ;;  %v11177_v25 = vpop.eup %11176  ;;  %v6439_v34 = vpack.c.bf16 %v11175_v12, %v11167_v33  ;;  %v5745_v3 = vmul.f32 1.442695, %v5336_v61  ;;  %v5399_v9 = vsub.f32 %v19083_v48, %v5125_v43  ;;  %v5032_v44 = vpop.xlane.xlu1 %5031  ;;  %v19087_v26 = vld [vmem:[#allocation97_spill] sm:$0xff]  ;;  %v19088_v33 = vld [vmem:[#allocation108_spill] sm:$0xff]  ;;  %v19089_v61 = vld [vmem:[#allocation110_spill] sm:$0xff] }
 0x4bc   : > { %6913 = vmatprep.mubr.bf16.mxu0 %v6408_v63  ;;  %v5400_v30 = vsub.f32 %v19084_v6, %v5125_v43  ;;  %6096 = vadd.xlane.f32.xlu0 %v6095_v46  ;;  %v6008_v1 = vadd.f32 %v19086_v58, %v19085_v54  ;;  %v6440_v53 = vpack.c.bf16 %v11177_v25, %v11169_v0  ;;  %11194 = vpow2.f32 %v5743_v11  ;;  %v19090_v27 = vld [vmem:[#allocation78_spill] sm:$0xff]  ;;  %v16177_v0 = vpop.f32.mrf.mxu0  ;;  %v19092_v63 = vld [vmem:[#allocation81_spill] sm:$0xff] }
 0x4bd   : > { %6914 = vmatmul.mubr.bf16.gmra.mxu0 %v6407_v28  ;;  %v16171_v18 = vadd.f32 %v11177_v25, %v11175_v12  ;;  %v5871_v45 = vmul.f32 1.442695, %v5399_v9  ;;  %v5337_v51 = vsub.f32 %v19087_v26, %v5032_v44  ;;  %v6101_v23 = vadd.f32 %v19089_v61, %v19088_v33  ;;  %19091 = vst [vmem:[#allocation184_spill] sm:$0xff] %v16177_v0  ;;  %v19093_v12 = vld [vmem:[#allocation42_spill] sm:$0xff]  ;;  %v19094_v6 = vld [vmem:[#allocation37_spill] sm:$0xff] }
 0x4be   : > { %v5873_v22 = vmul.f32 1.442695, %v5400_v30  ;;  %7074 = vmatprep.mubr.bf16.mxu1 %v6440_v53  ;;  %v5338_v40 = vsub.f32 %v19090_v27, %v5032_v44  ;;  %11196 = vpow2.f32 %v5745_v3  ;;  %v6098_v43 = vadd.f32 %v19093_v12, %v19092_v63  ;;  %v19095_v30 = vld [vmem:[#allocation44_spill] sm:$0xff]  ;;  %v16183_v58 = vpop.f32.mrf.mxu0  ;;  %v19099_v33 = vld [vmem:[#allocation169_spill] sm:$0xff]  ;;  %v16196_v63 = vpop.f32.mrf.mxu1  ;;  %v19124_v0 = vld [vmem:[#allocation174_spill] sm:$0xff] }
 0x4bf   : > { %6009 = vadd.xlane.f32.xlu1 %v6008_v1  ;;  %v11179_v49 = vpop.eup %11178  ;;  %7075 = vmatmul.mubr.bf16.gmra.mxu1 %v6439_v34  ;;  %v5747_v28 = vmul.f32 1.442695, %v5337_v51  ;;  %11198 = vpow2.f32 %v5871_v45  ;;  %v5128_v48 = vpop.xlane.xlu1 %5127  ;;  %19096 = vst [vmem:[#allocation33_spill] sm:$0xff] %v16183_v58  ;;  %v19100_v61 = vld [vmem:[#allocation113_spill] sm:$0xff]  ;;  %19102 = vst [vmem:[#allocation185_spill] sm:$0xff] %v16196_v63 }
 0x4c0   : > { %v11181_v46 = vpop.eup %11180  ;;  %6102 = vadd.xlane.f32.xlu0 %v6101_v23  ;;  %v5749_v25 = vmul.f32 1.442695, %v5338_v40  ;;  %11200 = vpow2.f32 %v5873_v22  ;;  %v5401_v11 = vsub.f32 %v19094_v6, %v5128_v48  ;;  %v5402_v54 = vsub.f32 %v19095_v30, %v5128_v48  ;;  %v16187_v1 = vpop.xlane.xlu0 %5970  ;;  %v19101_v23 = vld [vmem:[#allocation116_spill] sm:$0xff] }
 0x4c1   : > { %v11183_v9 = vpop.eup %11182  ;;  %v16185_v34 = vadd.f32 %v11181_v46, %v11179_v49  ;;  %11202 = vpow2.f32 %v5747_v28  ;;  %19097 = vst [vmem:[#allocation70_spill] sm:$0xff] %v16187_v1  ;;  %v16189_v26 = vpop.f32.mrf.mxu0  ;;  %v6104_v27 = vadd.f32 %v19101_v23, %v19100_v61 }
 0x4c2   : > { %v11185_v3 = vpop.eup %11184  ;;  %11204 = vpow2.f32 %v5749_v25  ;;  %v5875_v44 = vmul.f32 1.442695, %v5401_v11  ;;  %v5877_v45 = vmul.f32 1.442695, %v5402_v54  ;;  %19098 = vst [vmem:[#allocation14_spill] sm:$0xff] %v16189_v26  ;;  %v16202_v48 = vpop.f32.mrf.mxu1  ;;  %v19106_v54 = vld [vmem:[#allocation172_spill] sm:$0xff] }
 0x4c3   : > { %6099 = vadd.xlane.f32.xlu1 %v6098_v43  ;;  %v11187_v53 = vpop.eup %11186  ;;  %v16191_v22 = vadd.f32 %v11185_v3, %v11183_v9  ;;  %v16198_v12 = vpop.f32.mrf.mxu0  ;;  %19104 = vst [vmem:[#allocation49_spill] sm:$0xff] %v16202_v48 }
 0x4c4   : > { %v11189_v51 = vpop.eup %11188  ;;  %6012 = vadd.xlane.f32.xlu0 %v19099_v33  ;;  %v6409_v40 = vpack.c.bf16 %v11187_v53, %v11179_v49  ;;  %11206 = vpow2.f32 %v5875_v44  ;;  %19103 = vst [vmem:[#allocation89_spill] sm:$0xff] %v16198_v12  ;;  %v16204_v11 = vpop.xlane.xlu0 %6066  ;;  %v10772_v49 = vld [vmem:[%s17535_s5] sm:$0xff]   ;;  %v19110_v33 = vld [vmem:[#allocation28_spill] sm:$0xff] }
 0x4c5   : > { %v6410_v28 = vpack.c.bf16 %v11189_v51, %v11181_v46  ;;  %v16200_v43 = vadd.f32 %v11189_v51, %v11187_v53  ;;  %11208 = vpow2.f32 %v5877_v45  ;;  %19105 = vst [vmem:[#allocation31_spill] sm:$0xff] %v16204_v11  ;;  %v16210_v46 = vpop.xlane.xlu1 %5973  ;;  %v16212_v44 = vpop.f32.mrf.mxu1  ;;  %10459 = vmatprep.subr.bf16.mxu0 %v10772_v49 }
 0x4c6   : > { %v11191_v25 = vpop.eup %11190  ;;  %19107 = vst [vmem:[#allocation9_spill] sm:$0xff] %v16210_v46  ;;  %19108 = vst [vmem:[#allocation183_spill] sm:$0xff] %v16212_v44  ;;  %v16216_v51 = vpop.f32.mrf.mxu0  ;;  %10460 = vmatpush3.bf16.msra.mxu0 %v10772_v49  ;;  %v19122_v44 = vld [vmem:[#allocation85_spill] sm:$0xff] }
 0x4c7   : > { %6105 = vadd.xlane.f32.xlu1 %v6104_v27  ;;  %v11193_v6 = vpop.eup %11192  ;;  %6921 = vmatprep.mubr.bf16.mxu0 %v6410_v28  ;;  %v6441_v30 = vpack.c.bf16 %v11191_v25, %v11183_v9  ;;  %19109 = vst [vmem:[#allocation187_spill] sm:$0xff] %v16216_v51  ;;  %v16219_v9 = vpop.f32.mrf.mxu1  ;;  %v19113_v28 = vld [vmem:[#allocation21_spill] sm:$0xff] }
 0x4c8   : > { %6018 = vadd.xlane.f32.xlu0 %v19106_v54  ;;  %6922 = vmatmul.mubr.bf16.gmra.mxu0 %v6409_v40  ;;  %v6442_v53 = vpack.c.bf16 %v11193_v6, %v11185_v3  ;;  %v16214_v45 = vadd.f32 %v11193_v6, %v11191_v25  ;;  %19111 = vst [vmem:[#allocation188_spill] sm:$0xff] %v16219_v9  ;;  %v5035_v23 = vpop.xlane.xlu0 %5034  ;;  %v16221_v27 = vpop.f32.mrf.mxu0  ;;  %v10773_v3 = vld [vmem:[%s17535_s5 + $0x10] sm:$0xff]   ;;  %v19114_v25 = vld [vmem:[#allocation41_spill] sm:$0xff] }
 0x4c9   : > { %v11195_v61 = vpop.eup %11194  ;;  %19112 = vst [vmem:[#allocation88_spill] sm:$0xff] %v16221_v27  ;;  %v5339_v6 = vsub.f32 %v19114_v25, %v5035_v23  ;;  %v19115_v54 = vld [vmem:[#allocation43_spill] sm:$0xff]  ;;  %v16229_v11 = vpop.xlane.xlu1 %6069  ;;  %10495 = vmatprep.subr.bf16.mxu1 %v10773_v3  ;;  %v19118_v27 = vld [vmem:[#allocation25_spill] sm:$0xff] }
 0x4ca   : > { %7082 = vmatprep.mubr.bf16.mxu1 %v6442_v53  ;;  %19116 = vst [vmem:[#allocation87_spill] sm:$0xff] %v16229_v11  ;;  %v16231_v51 = vpop.f32.mrf.mxu0  ;;  %10496 = vmatpush3.bf16.msra.mxu1 %v10773_v3  ;;  %v16236_v9 = vpop.f32.mrf.mxu1  ;;  %v19121_v11 = vld [vmem:[#allocation96_spill] sm:$0xff] }
 0x4cb   : > { %6015 = vadd.xlane.f32.xlu1 %v19110_v33  ;;  %7083 = vmatmul.mubr.bf16.gmra.mxu1 %v6441_v30  ;;  %v11197_v40 = vpop.eup %11196  ;;  %v5340_v33 = vsub.f32 %v19115_v54, %v5035_v23  ;;  %19117 = vst [vmem:[#allocation59_spill] sm:$0xff] %v16231_v51  ;;  %v5751_v1 = vmul.f32 1.442695, %v5339_v6  ;;  %19119 = vst [vmem:[#allocation60_spill] sm:$0xff] %v16236_v9  ;;  %v19120_v54 = vld [vmem:[#allocation175_spill] sm:$0xff] }
 0x4cc   : > { %6108 = vadd.xlane.f32.xlu0 %v19113_v28  ;;  %v11199_v53 = vpop.eup %11198  ;;  %v16233_v30 = vadd.f32 %v11197_v40, %v11195_v61  ;;  %v5131_v28 = vpop.xlane.xlu0 %5130 }
 0x4cd   : > { %v11201_v49 = vpop.eup %11200  ;;  %v5753_v46 = vmul.f32 1.442695, %v5340_v33  ;;  %11210 = vpow2.f32 %v5751_v1  ;;  %v5403_v51 = vsub.f32 %v19121_v11, %v5131_v28  ;;  %v5404_v48 = vsub.f32 %v19122_v44, %v5131_v28  ;;  %v16243_v58 = vpop.f32.mrf.mxu0  ;;  %v19125_v1 = vld [vmem:[#allocation71_spill] sm:$0xff]  ;;  %v19126_v11 = vld [vmem:[#allocation92_spill] sm:$0xff] }
 0x4ce   : > { %v11203_v16 = vpop.eup %11202  ;;  %v16238_v25 = vadd.f32 %v11201_v49, %v11199_v53  ;;  %v16245_v6 = vpop.f32.mrf.mxu1 }
 0x4cf   : > { %6021 = vadd.xlane.f32.xlu1 %v19118_v27  ;;  %v11205_v23 = vpop.eup %11204  ;;  %v6411_v63 = vpack.c.bf16 %v11203_v16, %v11195_v61  ;;  %11212 = vpow2.f32 %v5753_v46  ;;  %v5038_v27 = vpop.xlane.xlu1 %5037  ;;  %19123 = vst [vmem:[#allocation186_spill] sm:$0xff] %v16245_v6  ;;  %v5879_v35 = vmul.f32 1.442695, %v5403_v51 }
 0x4d0   : > { %6114 = vadd.xlane.f32.xlu0 %v19120_v54  ;;  %v6412_v3 = vpack.c.bf16 %v11205_v23, %v11197_v40  ;;  %v16247_v33 = vadd.f32 %v11205_v23, %v11203_v16  ;;  %v5881_v54 = vmul.f32 1.442695, %v5404_v48  ;;  %v5341_v12 = vsub.f32 %v19125_v1, %v5038_v27  ;;  %v16252_v28 = vpop.f32.mrf.mxu0  ;;  %v16254_v46 = vpop.f32.mrf.mxu1  ;;  %v19129_v40 = vld [vmem:[#allocation176_spill] sm:$0xff] }
 0x4d1   : > { %v11207_v9 = vpop.eup %11206  ;;  %v5342_v26 = vsub.f32 %v19126_v11, %v5038_v27  ;;  %19127 = vst [vmem:[#allocation189_spill] sm:$0xff] %v16252_v28  ;;  %19128 = vst [vmem:[#allocation22_spill] sm:$0xff] %v16254_v46  ;;  %11214 = vpow2.f32 %v5879_v35  ;;  %v19131_v27 = vld [vmem:[#allocation177_spill] sm:$0xff]  ;;  %v5977_v35 = vpop.xlane.xlu0 %5976 }
 0x4d2   : > { %v11209_v44 = vpop.eup %11208  ;;  %6929 = vmatprep.mubr.bf16.mxu0 %v6412_v3  ;;  %v6443_v61 = vpack.c.bf16 %v11207_v9, %v11199_v53  ;;  %v5755_v16 = vmul.f32 1.442695, %v5341_v12  ;;  %11216 = vpow2.f32 %v5881_v54  ;;  %v16257_v51 = vpop.f32.mrf.mxu1  ;;  %v19132_v53 = vld [vmem:[#allocation79_spill] sm:$0xff]  ;;  %v19133_v11 = vld [vmem:[#allocation77_spill] sm:$0xff] }
 0x4d3   : > { %6111 = vadd.xlane.f32.xlu1 %v19124_v0  ;;  %v5757_v23 = vmul.f32 1.442695, %v5342_v26  ;;  %6930 = vmatmul.mubr.bf16.gmra.mxu0 %v6411_v63  ;;  %v6444_v0 = vpack.c.bf16 %v11209_v44, %v11201_v49  ;;  %v5134_v48 = vpop.xlane.xlu1 %5133  ;;  %19130 = vst [vmem:[#allocation50_spill] sm:$0xff] %v16257_v51  ;;  %v16259_v1 = vadd.f32 %v11209_v44, %v11207_v9  ;;  %v19137_v49 = vld [vmem:[#allocation35_spill] sm:$0xff] }
 0x4d4   : > { %6024 = vadd.xlane.f32.xlu0 %v19129_v40  ;;  %11218 = vpow2.f32 %v5755_v16  ;;  %v5405_v3 = vsub.f32 %v19132_v53, %v5134_v48  ;;  %v5406_v6 = vsub.f32 %v19133_v11, %v5134_v48  ;;  %v16264_v40 = vpop.f32.mrf.mxu0  ;;  %v16269_v9 = vpop.f32.mrf.mxu1 }
 0x4d5   : > { %7090 = vmatprep.mubr.bf16.mxu1 %v6444_v0  ;;  %19134 = vst [vmem:[#allocation56_spill] sm:$0xff] %v16264_v40  ;;  %11220 = vpow2.f32 %v5757_v23  ;;  %19136 = vst [vmem:[#allocation8_spill] sm:$0xff] %v16269_v9  ;;  %v6073_v16 = vpop.xlane.xlu0 %6072  ;;  %v19141_v0 = vld [vmem:[#allocation178_spill] sm:$0xff] }
 0x4d6   : > { %7091 = vmatmul.mubr.bf16.gmra.mxu1 %v6443_v61  ;;  %v5883_v26 = vmul.f32 1.442695, %v5405_v3  ;;  %v5885_v63 = vmul.f32 1.442695, %v5406_v6  ;;  %v16267_v12 = vpop.f32.mrf.mxu0  ;;  %v16274_v44 = vpop.f32.mrf.mxu1 }
 0x4d7   : > { %6117 = vadd.xlane.f32.xlu1 %v19131_v27  ;;  %19135 = vst [vmem:[#allocation12_spill] sm:$0xff] %v16267_v12  ;;  %19139 = vst [vmem:[#allocation63_spill] sm:$0xff] %v16274_v44  ;;  %v5980_v23 = vpop.xlane.xlu1 %5979  ;;  %v19154_v12 = vld [vmem:[#allocation20_spill] sm:$0xff] }
 0x4d8   : > { %6120 = vadd.xlane.f32.xlu0 %v16003_v19  ;;  %11222 = vpow2.f32 %v5883_v26  ;;  %v16272_v54 = vpop.f32.mrf.mxu0  ;;  %v16277_v19 = vpop.f32.mrf.mxu1  ;;  %v19145_v26 = vld [vmem:[#allocation72_spill] sm:$0xff] }
 0x4d9   : > { %19138 = vst [vmem:[#allocation119_spill] sm:$0xff] %v16272_v54  ;;  %11224 = vpow2.f32 %v5885_v63  ;;  %19140 = vst [vmem:[#allocation64_spill] sm:$0xff] %v16277_v19  ;;  %v19147_v19 = vld [vmem:[#allocation180_spill] sm:$0xff] }
 0x4da   : > { %v11211_v61 = vpop.eup %11210  ;;  %v16280_v48 = vpop.f32.mrf.mxu0  ;;  %11226 = vrcp.f32 %v5977_v35  ;;  %v19150_v35 = vld [vmem:[#allocation15_spill] sm:$0xff] }
 0x4db   : > { %6027 = vadd.xlane.f32.xlu1 %v19137_v49  ;;  %19142 = vst [vmem:[#allocation191_spill] sm:$0xff] %v16280_v48  ;;  %v16282_v27 = vpop.f32.mrf.mxu1  ;;  %v19146_v49 = vld [vmem:[#allocation84_spill] sm:$0xff]  ;;  %11228 = vrcp.f32 %v6073_v16 }
 0x4dc   : > { %6030 = vadd.xlane.f32.xlu0 %v16014_v59  ;;  %v11213_v6 = vpop.eup %11212  ;;  %19143 = vst [vmem:[#allocation93_spill] sm:$0xff] %v16282_v27  ;;  %v5041_v3 = vpop.xlane.xlu0 %5040  ;;  %11230 = vrcp.f32 %v5980_v23 }
 0x4dd   : > { %v16284_v53 = vadd.f32 %v11213_v6, %v11211_v61  ;;  %v16287_v11 = vpop.f32.mrf.mxu0  ;;  %v5343_v63 = vsub.f32 %v19145_v26, %v5041_v3  ;;  %v5344_v44 = vsub.f32 %v19146_v49, %v5041_v3  ;;  %v16295_v26 = vpop.f32.mrf.mxu1  ;;  %v19151_v49 = vld [vmem:[#allocation91_spill] sm:$0xff] }
 0x4de   : > { %19144 = vst [vmem:[#allocation117_spill] sm:$0xff] %v16287_v11  ;;  %v11215_v59 = vpop.eup %11214  ;;  %19149 = vst [vmem:[#allocation128_spill] sm:$0xff] %v16295_v26  ;;  %v19153_v26 = vld [vmem:[#allocation30_spill] sm:$0xff] }
 0x4df   : > { %6123 = vadd.xlane.f32.xlu1 %v19141_v0  ;;  %v11217_v9 = vpop.eup %11216  ;;  %v6076_v0 = vpop.xlane.xlu1 %6075  ;;  %v5759_v51 = vmul.f32 1.442695, %v5343_v63  ;;  %v5761_v46 = vmul.f32 1.442695, %v5344_v44 }
 0x4e0   : > { %6126 = vadd.xlane.f32.xlu0 %v16033_v39  ;;  %v16292_v48 = vpop.f32.mrf.mxu0  ;;  %v16297_v3 = vadd.f32 %v11217_v9, %v11215_v59  ;;  %v16304_v16 = vpop.f32.mrf.mxu1 }
 0x4e1   : > { %19148 = vst [vmem:[#allocation126_spill] sm:$0xff] %v16292_v48  ;;  %v11219_v27 = vpop.eup %11218  ;;  %v5137_v11 = vpop.xlane.xlu0 %5136  ;;  %11232 = vpow2.f32 %v5759_v51  ;;  %19152 = vst [vmem:[#allocation57_spill] sm:$0xff] %v16304_v16 }
 0x4e2   : > { %v11221_v39 = vpop.eup %11220  ;;  %v6413_v40 = vpack.c.bf16 %v11219_v27, %v11211_v61  ;;  %v5408_v28 = vsub.f32 %v19151_v49, %v5137_v11  ;;  %v16301_v54 = vpop.f32.mrf.mxu0  ;;  %11234 = vpow2.f32 %v5761_v46 }
 0x4e3   : > { %6033 = vadd.xlane.f32.xlu1 %v19147_v19  ;;  %v5407_v19 = vsub.f32 %v19150_v35, %v5137_v11  ;;  %v6414_v48 = vpack.c.bf16 %v11221_v39, %v11213_v6  ;;  %v5044_v44 = vpop.xlane.xlu1 %5043  ;;  %11236 = vrcp.f32 %v6076_v0  ;;  %v16311_v6 = vpop.f32.mrf.mxu1 }
 0x4e4   : > { %6036 = vadd.xlane.f32.xlu0 %v16044_v29  ;;  %v16306_v29 = vadd.f32 %v11221_v39, %v11219_v27  ;;  %v5889_v63 = vmul.f32 1.442695, %v5408_v28  ;;  %v5345_v51 = vsub.f32 %v19153_v26, %v5044_v44  ;;  %v5346_v35 = vsub.f32 %v19154_v12, %v5044_v44  ;;  %v9401_v46 = vpop.f32.mrf.mxu0  ;;  %19155 = vst [vmem:[#allocation86_spill] sm:$0xff] %v16311_v6 }
 0x4e5   : > { %v11223_v61 = vpop.eup %11222  ;;  %v5887_v23 = vmul.f32 1.442695, %v5407_v19  ;;  %6937 = vmatprep.mubr.bf16.mxu0 %v6414_v48  ;;  %v16314_v26 = vpop.f32.mrf.mxu1  ;;  %v19157_v48 = vld [vmem:[#allocation17_spill] sm:$0xff] }
 0x4e6   : > { %v11225_v11 = vpop.eup %11224  ;;  %6938 = vmatmul.mubr.bf16.gmra.mxu0 %v6413_v40  ;;  %v5763_v27 = vmul.f32 1.442695, %v5345_v51  ;;  %v5765_v39 = vmul.f32 1.442695, %v5346_v35  ;;  %19156 = vst [vmem:[#allocation101_spill] sm:$0xff] %v16314_v26  ;;  %v19158_v40 = vld [vmem:[#allocation16_spill] sm:$0xff]  ;;  %v9402_v0 = vpop.f32.mrf.mxu0 }
 0x4e7   : > { %6129 = vadd.xlane.f32.xlu1 %v16048_v36  ;;  %v6445_v36 = vpack.c.bf16 %v11223_v61, %v11215_v59  ;;  %11238 = vpow2.f32 %v5887_v23  ;;  %v6446_v49 = vpack.c.bf16 %v11225_v11, %v11217_v9  ;;  %v5140_v28 = vpop.xlane.xlu1 %5139  ;;  %v16316_v12 = vadd.f32 %v11225_v11, %v11223_v61  ;;  %v5983_v19 = vpop.xlane.xlu0 %5982 }
 0x4e8   : > { %6132 = vadd.xlane.f32.xlu0 %v16052_v52  ;;  %11240 = vpow2.f32 %v5889_v63  ;;  %v5409_v52 = vsub.f32 %v19157_v48, %v5140_v28  ;;  %v5410_v59 = vsub.f32 %v19158_v40, %v5140_v28  ;;  %v9404_v44 = vpop.f32.mrf.mxu0  ;;  %v9403_v61 = vadd.f32 %v9402_v0, %v9401_v46  ;;  %v9513_v23 = vpop.f32.mrf.mxu1 }
 0x4e9   : > { %11242 = vpow2.f32 %v5763_v27  ;;  %7098 = vmatprep.mubr.bf16.mxu1 %v6446_v49  ;;  %v11227_v63 = vpop.eup %11226 }
 0x4ea   : > { %11244 = vpow2.f32 %v5765_v39  ;;  %7099 = vmatmul.mubr.bf16.gmra.mxu1 %v6445_v36  ;;  %v5891_v9 = vmul.f32 1.442695, %v5409_v52  ;;  %v9405_v51 = vpop.f32.mrf.mxu0  ;;  %v11229_v35 = vpop.eup %11228 }
 0x4eb   : > { %6039 = vadd.xlane.f32.xlu1 %v16057_v21  ;;  %v5893_v21 = vmul.f32 1.442695, %v5410_v59  ;;  %11246 = vrcp.f32 %v5983_v19  ;;  %v9514_v11 = vpop.f32.mrf.mxu1  ;;  %v9406_v27 = vadd.f32 %v9405_v51, %v9404_v44  ;;  %v6079_v39 = vpop.xlane.xlu0 %6078  ;;  %v19161_v19 = vld [vmem:[#allocation146_spill] sm:$0xff] }
 0x4ec   : > { %6042 = vadd.xlane.f32.xlu0 %v16061_v57  ;;  %11248 = vpow2.f32 %v5891_v9  ;;  %v11231_v57 = vpop.eup %11230  ;;  %v5986_v49 = vpop.xlane.xlu1 %5985  ;;  %v9515_v52 = vadd.f32 %v9514_v11, %v9513_v23  ;;  %v19164_v51 = vld [vmem:[#allocation94_spill] sm:$0xff] }
 0x4ed   : > { %11250 = vpow2.f32 %v5893_v21  ;;  %v16328_v46 = vmul.f32 %v11231_v57, %v9406_v27  ;;  %v9516_v28 = vpop.f32.mrf.mxu1  ;;  %v9407_v40 = vpop.f32.mrf.mxu0  ;;  %v19165_v57 = vld [vmem:[#allocation153_spill] sm:$0xff] }
 0x4ee   : > { %v16323_v36 = vpop.eup %11232  ;;  %11252 = vrcp.f32 %v5986_v49 }
 0x4ef   : > { %6135 = vadd.xlane.f32.xlu1 %v16067_v15  ;;  %v16326_v15 = vmul.f32 %v11227_v63, %v9403_v61  ;;  %19160 = vst [vmem:[#allocation127_spill] sm:$0xff] %v16328_v46  ;;  %v11235_v48 = vpop.eup %11234  ;;  %v9517_v59 = vpop.f32.mrf.mxu1  ;;  %11254 = vrcp.f32 %v19161_v19  ;;  %v19162_v63 = vld [vmem:[#allocation154_spill] sm:$0xff] }
 0x4f0   : > { %6138 = vadd.xlane.f32.xlu0 %v16071_v5  ;;  %v16334_v0 = vadd.f32 %v11235_v48, %v16323_v36  ;;  %v9518_v21 = vadd.f32 %v9517_v59, %v9516_v28  ;;  %v9408_v44 = vpop.f32.mrf.mxu0  ;;  %11256 = vrcp.f32 %v19162_v63  ;;  %v6082_v49 = vpop.xlane.xlu1 %6081  ;;  %v16346_v5 = vmul.f32 %v11229_v35, %v9515_v52 }
 0x4f1   : > { %19159 = vst [vmem:[#allocation104_spill] sm:$0xff] %v16326_v15  ;;  %v5047_v9 = vpop.xlane.xlu0 %5046  ;;  %11258 = vrcp.f32 %v19165_v57 }
 0x4f2   : > { %v5348_v11 = vsub.f32 %v19164_v51, %v5047_v9  ;;  %19166 = vst [vmem:[#allocation47_spill] sm:$0xff] %v16346_v5  ;;  %v9410_v28 = vpop.f32.mrf.mxu0  ;;  %11260 = vrcp.f32 %v6079_v39  ;;  %v19171_v5 = vld [vmem:[#allocation73_spill] sm:$0xff] }
 0x4f3   : > { %6045 = vadd.xlane.f32.xlu1 %v16075_v10  ;;  %v11237_v10 = vpop.eup %11236  ;;  %11262 = vrcp.f32 %v6082_v49 }
 0x4f4   : > { %6144 = vadd.xlane.f32.xlu0 %v16083_v37  ;;  %v16337_v61 = vpop.eup %11238  ;;  %v19163_v37 = vld [vmem:[#allocation36_spill] sm:$0xff]  ;;  %v16348_v19 = vmul.f32 %v11237_v10, %v9518_v21  ;;  %v9519_v10 = vpop.f32.mrf.mxu1  ;;  %v19168_v21 = vld [vmem:[#allocation159_spill] sm:$0xff] }
 0x4f5   : > { %v5347_v23 = vsub.f32 %v19163_v37, %v5047_v9  ;;  %v16343_v27 = vpop.eup %11240  ;;  %v5769_v37 = vmul.f32 1.442695, %v5348_v11  ;;  %11264 = vrcp.f32 %v19168_v21  ;;  %v9411_v57 = vpop.f32.mrf.mxu0  ;;  %v19172_v21 = vld [vmem:[#allocation7_spill] sm:$0xff] }
 0x4f6   : > { %19167 = vst [vmem:[#allocation122_spill] sm:$0xff] %v16348_v19  ;;  %v11243_v59 = vpop.eup %11242  ;;  %v16353_v63 = vadd.f32 %v16343_v27, %v16337_v61  ;;  %v5143_v51 = vpop.xlane.xlu0 %5142 }
 0x4f7   : > { %6141 = vadd.xlane.f32.xlu1 %v16087_v32  ;;  %v5767_v15 = vmul.f32 1.442695, %v5347_v23  ;;  %v9409_v32 = vadd.f32 %v9408_v44, %v9407_v40  ;;  %v11245_v9 = vpop.eup %11244  ;;  %v6415_v35 = vpack.c.bf16 %v11243_v59, %v16323_v36  ;;  %v19170_v40 = vld [vmem:[#allocation76_spill] sm:$0xff]  ;;  %v5050_v11 = vpop.xlane.xlu1 %5049 }
 0x4f8   : > { %6240 = vadd.xlane.f32.xlu0 %v16091_v41  ;;  %v19169_v41 = vld [vmem:[#allocation26_spill] sm:$0xff]  ;;  %v5412_v44 = vsub.f32 %v19170_v40, %v5143_v51  ;;  %v6416_v23 = vpack.c.bf16 %v11245_v9, %v11235_v48  ;;  %v11247_v46 = vpop.eup %11246  ;;  %v9520_v49 = vpop.f32.mrf.mxu1  ;;  %v16362_v16 = vadd.f32 %v11245_v9, %v11243_v59  ;;  %v5349_v19 = vsub.f32 %v19171_v5, %v5050_v11  ;;  %v19175_v5 = vld [vmem:[#allocation51_spill] sm:$0xff] }
 0x4f9   : > { %v5411_v39 = vsub.f32 %v19169_v41, %v5143_v51  ;;  %11266 = vpow2.f32 %v5767_v15  ;;  %v11249_v36 = vpop.eup %11248  ;;  %v5350_v6 = vsub.f32 %v19172_v21, %v5050_v11  ;;  %v16367_v51 = vmul.f32 %v11247_v46, %v9409_v32  ;;  %v16370_v9 = vpop.f32.mrf.mxu0 }
 0x4fa   : > { %v5897_v52 = vmul.f32 1.442695, %v5412_v44  ;;  %6945 = vmatprep.mubr.bf16.mxu0 %v6416_v23  ;;  %11268 = vpow2.f32 %v5769_v37  ;;  %v5053_v48 = vpop.xlane.xlu0 %5052  ;;  %v6447_v15 = vpack.c.bf16 %v11249_v36, %v16337_v61  ;;  %v9412_v59 = vadd.f32 %v9411_v57, %v9410_v28  ;;  %19174 = vst [vmem:[#allocation82_spill] sm:$0xff] %v16370_v9  ;;  %v19176_v37 = vld [vmem:[#allocation45_spill] sm:$0xff] }
 0x4fb   : > { %6147 = vadd.xlane.f32.xlu1 %v16098_v47  ;;  %v5895_v26 = vmul.f32 1.442695, %v5411_v39  ;;  %v11251_v47 = vpop.eup %11250  ;;  %6946 = vmatmul.mubr.bf16.gmra.mxu0 %v6415_v35  ;;  %19173 = vst [vmem:[#allocation190_spill] sm:$0xff] %v16367_v51  ;;  %v5771_v41 = vmul.f32 1.442695, %v5349_v19  ;;  %v5351_v40 = vsub.f32 %v19175_v5, %v5053_v48  ;;  %v5146_v44 = vpop.xlane.xlu1 %5145  ;;  %v5352_v23 = vsub.f32 %v19176_v37, %v5053_v48  ;;  %v19182_v5 = vld [vmem:[#allocation32_spill] sm:$0xff] }
 0x4fc   : > { %6150 = vadd.xlane.f32.xlu0 %v16102_v42  ;;  %v5773_v39 = vmul.f32 1.442695, %v5350_v6  ;;  %v9522_v42 = vpop.f32.mrf.mxu1  ;;  %v6448_v46 = vpack.c.bf16 %v11251_v47, %v16343_v27  ;;  %v16376_v32 = vpop.f32.mrf.mxu0  ;;  %v16378_v61 = vadd.f32 %v11251_v47, %v11249_v36  ;;  %v19179_v6 = vld [vmem:[#allocation18_spill] sm:$0xff]  ;;  %v9521_v21 = vadd.f32 %v9520_v49, %v9519_v10  ;;  %v19202_v49 = vld [vmem:[#allocation83_spill] sm:$0xff] }
 0x4fd   : > { %11270 = vpow2.f32 %v5895_v26  ;;  %19177 = vst [vmem:[#allocation131_spill] sm:$0xff] %v16376_v32  ;;  %v11253_v28 = vpop.eup %11252  ;;  %v19178_v26 = vld [vmem:[#allocation11_spill] sm:$0xff]  ;;  %v5414_v35 = vsub.f32 %v19179_v6, %v5146_v44 }
 0x4fe   : > { %11272 = vpow2.f32 %v5897_v52  ;;  %v5413_v19 = vsub.f32 %v19178_v26, %v5146_v44  ;;  %v9523_v57 = vpop.f32.mrf.mxu1  ;;  %v5777_v52 = vmul.f32 1.442695, %v5352_v23  ;;  %v5149_v11 = vpop.xlane.xlu0 %5148  ;;  %7106 = vmatprep.mubr.bf16.mxu1 %v6448_v46  ;;  %v16383_v27 = vmul.f32 %v11253_v28, %v9412_v59  ;;  %v19186_v26 = vld [vmem:[#allocation52_spill] sm:$0xff] }
 0x4ff   : > { %6243 = vadd.xlane.f32.xlu1 %v16106_v17  ;;  %11274 = vpow2.f32 %v5771_v41  ;;  %v5775_v17 = vmul.f32 1.442695, %v5351_v40  ;;  %v16385_v48 = vpop.f32.mrf.mxu0  ;;  %v16387_v36 = vpop.eup %11254  ;;  %v5901_v41 = vmul.f32 1.442695, %v5414_v35  ;;  %v5415_v40 = vsub.f32 %v19182_v5, %v5149_v11  ;;  %7107 = vmatmul.mubr.bf16.gmra.mxu1 %v6447_v15 }
 0x500   : > { %6246 = vadd.xlane.f32.xlu0 %v16111_v38  ;;  %11276 = vpow2.f32 %v5773_v39  ;;  %19180 = vst [vmem:[#allocation74_spill] sm:$0xff] %v16383_v27  ;;  %19181 = vst [vmem:[#allocation129_spill] sm:$0xff] %v16385_v48  ;;  %v5899_v47 = vmul.f32 1.442695, %v5413_v19  ;;  %v16391_v38 = vpop.eup %11256  ;;  %v19183_v39 = vld [vmem:[#allocation5_spill] sm:$0xff]  ;;  %v9524_v59 = vadd.f32 %v9523_v57, %v9522_v42  ;;  %v16396_v37 = vpop.f32.mrf.mxu1 }
 0x501   : > { %11278 = vpow2.f32 %v5775_v17  ;;  %v5416_v44 = vsub.f32 %v19183_v39, %v5149_v11  ;;  %v5056_v10 = vpop.xlane.xlu1 %5055  ;;  %19184 = vst [vmem:[#allocation27_spill] sm:$0xff] %v16396_v37  ;;  %v16398_v23 = vpop.eup %11258  ;;  %v5903_v46 = vmul.f32 1.442695, %v5415_v40 }
 0x502   : > { %11280 = vpow2.f32 %v5777_v52  ;;  %v5354_v15 = vsub.f32 %v19186_v26, %v5056_v10  ;;  %v16403_v19 = vpop.f32.mrf.mxu0  ;;  %v11261_v6 = vpop.eup %11260 }
 0x503   : > { %6153 = vadd.xlane.f32.xlu1 %v16115_v50  ;;  %11282 = vpow2.f32 %v5899_v47  ;;  %v19185_v50 = vld [vmem:[#allocation10_spill] sm:$0xff]  ;;  %19187 = vst [vmem:[#allocation75_spill] sm:$0xff] %v16403_v19  ;;  %v5905_v35 = vmul.f32 1.442695, %v5416_v44  ;;  %v5059_v17 = vpop.xlane.xlu0 %5058  ;;  %v16405_v52 = vpop.f32.mrf.mxu1  ;;  %v19189_v47 = vld [vmem:[#allocation53_spill] sm:$0xff] }
 0x504   : > { %v5353_v28 = vsub.f32 %v19185_v50, %v5056_v10  ;;  %6156 = vadd.xlane.f32.xlu0 %v16119_v62  ;;  %11284 = vpow2.f32 %v5901_v41  ;;  %19188 = vst [vmem:[#allocation134_spill] sm:$0xff] %v16405_v52  ;;  %v11263_v42 = vpop.eup %11262  ;;  %v5781_v11 = vmul.f32 1.442695, %v5354_v15  ;;  %v5355_v5 = vsub.f32 %v19189_v47, %v5059_v17  ;;  %v19191_v10 = vld [vmem:[#allocation55_spill] sm:$0xff] }
 0x505   : > { %11286 = vpow2.f32 %v5903_v46  ;;  %v16409_v40 = vpop.eup %11264  ;;  %v16411_v62 = vmul.f32 %v11261_v6, %v9521_v21  ;;  %v5152_v39 = vpop.xlane.xlu1 %5151  ;;  %v5356_v41 = vsub.f32 %v19191_v10, %v5059_v17  ;;  %v16414_v44 = vmul.f32 %v11263_v42, %v9524_v59  ;;  %v19194_v46 = vld [vmem:[#allocation46_spill] sm:$0xff] }
 0x506   : > { %v5779_v57 = vmul.f32 1.442695, %v5353_v28  ;;  %11288 = vpow2.f32 %v5905_v35  ;;  %v16416_v50 = vpop.f32.mrf.mxu1  ;;  %v16418_v26 = vpop.eup %11266  ;;  %v5417_v28 = vsub.f32 %v19194_v46, %v5152_v39  ;;  %v5783_v47 = vmul.f32 1.442695, %v5355_v5 }
 0x507   : > { %6249 = vadd.xlane.f32.xlu1 %v16123_v31  ;;  %19190 = vst [vmem:[#allocation132_spill] sm:$0xff] %v16411_v62  ;;  %19192 = vst [vmem:[#allocation48_spill] sm:$0xff] %v16414_v44  ;;  %v19195_v31 = vld [vmem:[#allocation29_spill] sm:$0xff]  ;;  %v16423_v35 = vpop.f32.mrf.mxu0  ;;  %v5785_v21 = vmul.f32 1.442695, %v5356_v41  ;;  %v5155_v6 = vpop.xlane.xlu0 %5154 }
 0x508   : > { %19193 = vst [vmem:[#allocation24_spill] sm:$0xff] %v16416_v50  ;;  %11290 = vpow2.f32 %v5779_v57  ;;  %v5418_v15 = vsub.f32 %v19195_v31, %v5152_v39  ;;  %6252 = vadd.xlane.f32.xlu0 %v16127_v20  ;;  %19196 = vst [vmem:[#allocation136_spill] sm:$0xff] %v16423_v35  ;;  %v16427_v17 = vpop.eup %11268  ;;  %v5907_v42 = vmul.f32 1.442695, %v5417_v28  ;;  %v19197_v57 = vld [vmem:[#allocation6_spill] sm:$0xff]  ;;  %v16431_v5 = vpop.f32.mrf.mxu1 }
 0x509   : > { %11292 = vpow2.f32 %v5781_v11  ;;  %v5419_v39 = vsub.f32 %v19197_v57, %v5155_v6  ;;  %19198 = vst [vmem:[#allocation138_spill] sm:$0xff] %v16431_v5  ;;  %v16433_v20 = vpop.f32.mrf.mxu0  ;;  %v19200_v11 = vld [vmem:[#allocation54_spill] sm:$0xff]  ;;  %v5062_v31 = vpop.xlane.xlu1 %5061 }
 0x50a   : > { %v5909_v10 = vmul.f32 1.442695, %v5418_v15  ;;  %11294 = vpow2.f32 %v5783_v47  ;;  %19199 = vst [vmem:[#allocation133_spill] sm:$0xff] %v16433_v20  ;;  %v16435_v46 = vpop.eup %11270  ;;  %v5420_v41 = vsub.f32 %v19200_v11, %v5155_v6  ;;  %v19201_v15 = vld [vmem:[#allocation90_spill] sm:$0xff] }
 0x50b   : > { %6159 = vadd.xlane.f32.xlu1 %v16131_v55  ;;  %11296 = vpow2.f32 %v5785_v21  ;;  %v16438_v59 = vpop.eup %11272  ;;  %v5911_v28 = vmul.f32 1.442695, %v5419_v39  ;;  %v5357_v47 = vsub.f32 %v19201_v15, %v5062_v31  ;;  %v5358_v55 = vsub.f32 %v19202_v49, %v5062_v31  ;;  %v16443_v57 = vpop.f32.mrf.mxu0 }
 0x50c   : > { %11298 = vpow2.f32 %v5907_v42  ;;  %6162 = vadd.xlane.f32.xlu0 %v16136_v60  ;;  %19203 = vst [vmem:[#allocation135_spill] sm:$0xff] %v16443_v57  ;;  %v16445_v62 = vpop.eup %11274  ;;  %v5913_v44 = vmul.f32 1.442695, %v5420_v41  ;;  %v5065_v21 = vpop.xlane.xlu0 %5064  ;;  %v19204_v42 = vld [vmem:[#allocation98_spill] sm:$0xff] }
 0x50d   : > { %11300 = vpow2.f32 %v5909_v10  ;;  %v16447_v20 = vpop.eup %11276  ;;  %v5787_v6 = vmul.f32 1.442695, %v5357_v47  ;;  %v5789_v11 = vmul.f32 1.442695, %v5358_v55  ;;  %v5359_v39 = vsub.f32 %v19204_v42, %v5065_v21  ;;  %v16451_v15 = vpop.f32.mrf.mxu1  ;;  %v19207_v10 = vld [vmem:[#allocation65_spill] sm:$0xff]  ;;  %v19209_v42 = vld [vmem:[#allocation58_spill] sm:$0xff] }
 0x50e   : > { %11302 = vpow2.f32 %v5911_v28  ;;  %19205 = vst [vmem:[#allocation192_spill] sm:$0xff] %v16451_v15  ;;  %v16453_v49 = vpop.f32.mrf.mxu0  ;;  %v16455_v60 = vpop.eup %11278  ;;  %v5360_v41 = vsub.f32 %v19207_v10, %v5065_v21  ;;  %v6418_v35 = vpack.c.bf16 %v16447_v20, %v16427_v17  ;;  %v6417_v28 = vpack.c.bf16 %v16445_v62, %v16418_v26 }
 0x50f   : > { %6255 = vadd.xlane.f32.xlu1 %v16140_v7  ;;  %19206 = vst [vmem:[#allocation40_spill] sm:$0xff] %v16453_v49  ;;  %11304 = vpow2.f32 %v5913_v44  ;;  %v5158_v31 = vpop.xlane.xlu1 %5157  ;;  %v16462_v47 = vpop.eup %11280  ;;  %v19208_v7 = vld [vmem:[#allocation38_spill] sm:$0xff]  ;;  %v5791_v51 = vmul.f32 1.442695, %v5359_v39 }
 0x510   : > { %11306 = vpow2.f32 %v5787_v6  ;;  %v5421_v55 = vsub.f32 %v19208_v7, %v5158_v31  ;;  %v5422_v15 = vsub.f32 %v19209_v42, %v5158_v31  ;;  %6258 = vadd.xlane.f32.xlu0 %v16143_v2  ;;  %v16467_v44 = vpop.f32.mrf.mxu1  ;;  %v16469_v27 = vpop.eup %11282  ;;  %v5793_v21 = vmul.f32 1.442695, %v5360_v41  ;;  %6953 = vmatprep.mubr.bf16.mxu0 %v6418_v35  ;;  %v19211_v6 = vld [vmem:[#allocation67_spill] sm:$0xff] }
 0x511   : > { %19210 = vst [vmem:[#allocation137_spill] sm:$0xff] %v16467_v44  ;;  %11308 = vpow2.f32 %v5789_v11  ;;  %v5161_v10 = vpop.xlane.xlu0 %5160  ;;  %v16471_v49 = vpop.eup %11284  ;;  %6954 = vmatmul.mubr.bf16.gmra.mxu0 %v6417_v28  ;;  %v19214_v11 = vld [vmem:[#allocation99_spill] sm:$0xff]  ;;  %v19215_v28 = vld [vmem:[#allocation106_spill] sm:$0xff] }
 0x512   : > { %v5915_v57 = vmul.f32 1.442695, %v5421_v55  ;;  %v5917_v52 = vmul.f32 1.442695, %v5422_v15  ;;  %11310 = vpow2.f32 %v5791_v51  ;;  %v5423_v39 = vsub.f32 %v19211_v6, %v5161_v10  ;;  %v16475_v31 = vpop.f32.mrf.mxu0  ;;  %v16477_v2 = vpop.f32.mrf.mxu1  ;;  %v19216_v6 = vld [vmem:[#allocation102_spill] sm:$0xff] }
 0x513   : > { %6165 = vadd.xlane.f32.xlu1 %v16149_v24  ;;  %19212 = vst [vmem:[#allocation139_spill] sm:$0xff] %v16475_v31  ;;  %19213 = vst [vmem:[#allocation142_spill] sm:$0xff] %v16477_v2  ;;  %v16479_v7 = vpop.eup %11286  ;;  %11312 = vpow2.f32 %v5793_v21  ;;  %v5424_v35 = vsub.f32 %v19214_v11, %v5161_v10  ;;  %v5068_v41 = vpop.xlane.xlu1 %5067  ;;  %v6450_v55 = vpack.c.bf16 %v16471_v49, %v16438_v59 }
 0x514   : > { %v6449_v51 = vpack.c.bf16 %v16469_v27, %v16435_v46  ;;  %v16486_v15 = vpop.eup %11288  ;;  %11314 = vpow2.f32 %v5915_v57  ;;  %v5919_v24 = vmul.f32 1.442695, %v5423_v39  ;;  %v5361_v42 = vsub.f32 %v19215_v28, %v5068_v41  ;;  %6168 = vadd.xlane.f32.xlu0 %v16156_v8  ;;  %v16491_v21 = vpop.f32.mrf.mxu1 }
 0x515   : > { %v5362_v2 = vsub.f32 %v19216_v6, %v5068_v41  ;;  %19217 = vst [vmem:[#allocation141_spill] sm:$0xff] %v16491_v21  ;;  %v16493_v10 = vpop.f32.mrf.mxu0  ;;  %v16495_v11 = vpop.eup %11290  ;;  %11316 = vpow2.f32 %v5917_v52  ;;  %v5921_v44 = vmul.f32 1.442695, %v5424_v35  ;;  %7114 = vmatprep.mubr.bf16.mxu1 %v6450_v55  ;;  %v19219_v41 = vld [vmem:[#allocation109_spill] sm:$0xff]  ;;  %v19221_v52 = vld [vmem:[#allocation107_spill] sm:$0xff] }
 0x516   : > { %19218 = vst [vmem:[#allocation143_spill] sm:$0xff] %v16493_v10  ;;  %v5071_v31 = vpop.xlane.xlu0 %5070  ;;  %v16497_v37 = vpop.eup %11292  ;;  %11318 = vpow2.f32 %v5919_v24  ;;  %v5795_v57 = vmul.f32 1.442695, %v5361_v42  ;;  %7115 = vmatmul.mubr.bf16.gmra.mxu1 %v6449_v51  ;;  %v6419_v24 = vpack.c.bf16 %v16495_v11, %v16455_v60  ;;  %v19223_v42 = vld [vmem:[#allocation103_spill] sm:$0xff] }
 0x517   : > { %v5797_v39 = vmul.f32 1.442695, %v5362_v2  ;;  %6261 = vadd.xlane.f32.xlu1 %v16159_v14  ;;  %v5363_v8 = vsub.f32 %v19219_v41, %v5071_v31  ;;  %v16501_v28 = vpop.f32.mrf.mxu0  ;;  %v16503_v6 = vpop.eup %11294  ;;  %11320 = vpow2.f32 %v5921_v44  ;;  %v5364_v35 = vsub.f32 %v19221_v52, %v5071_v31  ;;  %v19222_v14 = vld [vmem:[#allocation100_spill] sm:$0xff] }
 0x518   : > { %19220 = vst [vmem:[#allocation145_spill] sm:$0xff] %v16501_v28  ;;  %v5164_v21 = vpop.xlane.xlu1 %5163  ;;  %v6420_v55 = vpack.c.bf16 %v16497_v37, %v16462_v47  ;;  %v16510_v2 = vpop.eup %11296  ;;  %11322 = vpow2.f32 %v5795_v57  ;;  %6264 = vadd.xlane.f32.xlu0 %v16163_v4 }
 0x519   : > { %v5425_v51 = vsub.f32 %v19222_v14, %v5164_v21  ;;  %v5426_v41 = vsub.f32 %v19223_v42, %v5164_v21  ;;  %v5799_v10 = vmul.f32 1.442695, %v5363_v8  ;;  %v16515_v44 = vpop.f32.mrf.mxu1  ;;  %v16517_v28 = vpop.eup %11298  ;;  %11324 = vpow2.f32 %v5797_v39  ;;  %v19226_v21 = vld [vmem:[#allocation105_spill] sm:$0xff]  ;;  %v19228_v39 = vld [vmem:[#allocation112_spill] sm:$0xff] }
 0x51a   : > { %19224 = vst [vmem:[#allocation148_spill] sm:$0xff] %v16515_v44  ;;  %v5801_v31 = vmul.f32 1.442695, %v5364_v35  ;;  %6961 = vmatprep.mubr.bf16.mxu0 %v6420_v55  ;;  %v5167_v52 = vpop.xlane.xlu0 %5166  ;;  %v16519_v5 = vpop.f32.mrf.mxu0 }
 0x51b   : > { %19225 = vst [vmem:[#allocation152_spill] sm:$0xff] %v16519_v5  ;;  %v16521_v50 = vpop.eup %11300  ;;  %v5923_v57 = vmul.f32 1.442695, %v5425_v51  ;;  %v5925_v32 = vmul.f32 1.442695, %v5426_v41  ;;  %11326 = vpow2.f32 %v5799_v10  ;;  %6962 = vmatmul.mubr.bf16.gmra.mxu0 %v6419_v24  ;;  %6171 = vadd.xlane.f32.xlu1 %v16165_v56  ;;  %v5427_v4 = vsub.f32 %v19226_v21, %v5167_v52  ;;  %v16525_v8 = vpop.f32.mrf.mxu1  ;;  %v19229_v24 = vld [vmem:[#allocation69_spill] sm:$0xff] }
 0x51c   : > { %19227 = vst [vmem:[#allocation150_spill] sm:$0xff] %v16525_v8  ;;  %v16527_v14 = vpop.eup %11302  ;;  %11328 = vpow2.f32 %v5801_v31  ;;  %v5428_v35 = vsub.f32 %v19228_v39, %v5167_v52  ;;  %v5074_v55 = vpop.xlane.xlu1 %5073  ;;  %v6452_v42 = vpack.c.bf16 %v16521_v50, %v16486_v15  ;;  %v6451_v51 = vpack.c.bf16 %v16517_v28, %v16479_v7  ;;  %v19230_v21 = vld [vmem:[#allocation115_spill] sm:$0xff]  ;;  %6174 = vadd.xlane.f32.xlu0 %v16185_v34 }
 0x51d   : > { %v16534_v10 = vpop.eup %11304  ;;  %11330 = vpow2.f32 %v5923_v57  ;;  %v5927_v56 = vmul.f32 1.442695, %v5427_v4  ;;  %v5365_v41 = vsub.f32 %v19229_v24, %v5074_v55  ;;  %v5366_v8 = vsub.f32 %v19230_v21, %v5074_v55  ;;  %v16539_v31 = vpop.f32.mrf.mxu1  ;;  %v19235_v55 = vld [vmem:[#allocation120_spill] sm:$0xff] }
 0x51e   : > { %19231 = vst [vmem:[#allocation149_spill] sm:$0xff] %v16539_v31  ;;  %v16541_v52 = vpop.eup %11306  ;;  %11332 = vpow2.f32 %v5925_v32  ;;  %v5929_v39 = vmul.f32 1.442695, %v5428_v35  ;;  %7122 = vmatprep.mubr.bf16.mxu1 %v6452_v42  ;;  %v5077_v44 = vpop.xlane.xlu0 %5076  ;;  %v19237_v35 = vld [vmem:[#allocation13_spill] sm:$0xff] }
 0x51f   : > { %19232 = vst [vmem:[#allocation156_spill] sm:$0xff] %v16541_v52  ;;  %v16543_v5 = vpop.f32.mrf.mxu0  ;;  %v16545_v9 = vpop.eup %11308  ;;  %11334 = vpow2.f32 %v5927_v56  ;;  %v5803_v57 = vmul.f32 1.442695, %v5365_v41  ;;  %v5805_v4 = vmul.f32 1.442695, %v5366_v8  ;;  %7123 = vmatmul.mubr.bf16.gmra.mxu1 %v6451_v51  ;;  %6267 = vadd.xlane.f32.xlu1 %v16171_v18  ;;  %v5367_v34 = vsub.f32 %v19235_v55, %v5077_v44  ;;  %v19240_v18 = vld [vmem:[#allocation19_spill] sm:$0xff] }
 0x520   : > { %19233 = vst [vmem:[#allocation158_spill] sm:$0xff] %v16543_v5  ;;  %19234 = vst [vmem:[#allocation157_spill] sm:$0xff] %v16545_v9  ;;  %v16549_v24 = vpop.f32.mrf.mxu1  ;;  %v16551_v21 = vpop.eup %11310  ;;  %11336 = vpow2.f32 %v5929_v39  ;;  %v5368_v42 = vsub.f32 %v19237_v35, %v5077_v44  ;;  %v6422_v5 = vpack.c.bf16 %v16545_v9, %v16510_v2  ;;  %v6421_v56 = vpack.c.bf16 %v16541_v52, %v16503_v6  ;;  %v19241_v55 = vld [vmem:[#allocation80_spill] sm:$0xff] }
 0x521   : > { %19236 = vst [vmem:[#allocation163_spill] sm:$0xff] %v16549_v24  ;;  %v5170_v32 = vpop.xlane.xlu1 %5169  ;;  %v16558_v8 = vpop.f32.mrf.mxu0  ;;  %11338 = vpow2.f32 %v5803_v57  ;;  %v5807_v31 = vmul.f32 1.442695, %v5367_v34  ;;  %6270 = vadd.xlane.f32.xlu0 %v16191_v22  ;;  %v16577_v57 = vld [vmem:[%s17535_s5 + $0x38] sm:$0xff]  }
 0x522   : > { %19238 = vst [vmem:[#allocation164_spill] sm:$0xff] %v16558_v8  ;;  %v16560_v51 = vpop.eup %11312  ;;  %v5429_v41 = vsub.f32 %v19240_v18, %v5170_v32  ;;  %v5430_v24 = vsub.f32 %v19241_v55, %v5170_v32  ;;  %11340 = vpow2.f32 %v5805_v4  ;;  %6969 = vmatprep.mubr.bf16.mxu0 %v6422_v5  ;;  %v5173_v44 = vpop.xlane.xlu0 %5172  ;;  %v16572_v8 = vld [vmem:[%s17535_s5 + $0x28] sm:$0xff]   ;;  %19244 = vst [vmem:[#allocation95_spill] sm:$0xff] %v16577_v57  ;;  %v5809_v18 = vmul.f32 1.442695, %v5368_v42 }
 0x523   : > { %19239 = vst [vmem:[#allocation166_spill] sm:$0xff] %v16560_v51  ;;  %v16565_v39 = vpop.eup %11314  ;;  %v16567_v35 = vpop.f32.mrf.mxu0  ;;  %6970 = vmatmul.mubr.bf16.gmra.mxu0 %v6421_v56  ;;  %6177 = vadd.xlane.f32.xlu1 %v16200_v43  ;;  %v19246_v5 = vld [vmem:[#allocation118_spill] sm:$0xff]  ;;  %11342 = vpow2.f32 %v5807_v31  ;;  %v19249_v31 = vld [vmem:[#allocation124_spill] sm:$0xff] }
 0x524   : > { %19242 = vst [vmem:[#allocation168_spill] sm:$0xff] %v16565_v39  ;;  %19243 = vst [vmem:[#allocation173_spill] sm:$0xff] %v16567_v35  ;;  %v16579_v34 = vpop.eup %11316  ;;  %v5931_v22 = vmul.f32 1.442695, %v5429_v41  ;;  %v5933_v32 = vmul.f32 1.442695, %v5430_v24  ;;  %v5431_v4 = vsub.f32 %v19246_v5, %v5173_v44  ;;  %v16588_v52 = vpop.f32.mrf.mxu1  ;;  %v6453_v24 = vpack.c.bf16 %v16565_v39, %v16527_v14  ;;  %10529 = vmatprep.subr.bf16.mxu0 %v16572_v8 }
 0x525   : > { %19245 = vst [vmem:[#allocation34_spill] sm:$0xff] %v16579_v34  ;;  %v16583_v55 = vpop.eup %11318  ;;  %v19247_v35 = vld [vmem:[#allocation121_spill] sm:$0xff]  ;;  %v5080_v48 = vpop.xlane.xlu1 %5079  ;;  %v6454_v9 = vpack.c.bf16 %v16579_v34, %v16534_v10  ;;  %19248 = vst [vmem:[#allocation68_spill] sm:$0xff] %v16588_v52  ;;  %10565 = vmatprep.subr.bf16.mxu1 %v16577_v57  ;;  %6180 = vadd.xlane.f32.xlu0 %v16233_v30 }
 0x526   : > { %v5432_v19 = vsub.f32 %v19247_v35, %v5173_v44  ;;  %v16594_v43 = vpop.eup %11320  ;;  %11344 = vpow2.f32 %v5931_v22  ;;  %v5935_v42 = vmul.f32 1.442695, %v5431_v4  ;;  %v5369_v56 = vsub.f32 %v19249_v31, %v5080_v48  ;;  %v19250_v41 = vld [vmem:[#allocation125_spill] sm:$0xff]  ;;  %v16599_v35 = vpop.f32.mrf.mxu0  ;;  %v19255_v31 = vld [vmem:[#allocation144_spill] sm:$0xff] }
 0x527   : > { %v5370_v44 = vsub.f32 %v19250_v41, %v5080_v48  ;;  %19251 = vst [vmem:[#allocation66_spill] sm:$0xff] %v16599_v35  ;;  %v16601_v5 = vpop.eup %11322  ;;  %11346 = vpow2.f32 %v5933_v32  ;;  %7130 = vmatprep.mubr.bf16.mxu1 %v6454_v9  ;;  %v16603_v52 = vpop.f32.mrf.mxu1  ;;  %6273 = vadd.xlane.f32.xlu1 %v16214_v45  ;;  %v19256_v32 = vld [vmem:[#allocation147_spill] sm:$0xff] }
 0x528   : > { %19252 = vst [vmem:[#allocation61_spill] sm:$0xff] %v16601_v5  ;;  %19253 = vst [vmem:[#allocation62_spill] sm:$0xff] %v16603_v52  ;;  %v5083_v34 = vpop.xlane.xlu0 %5082  ;;  %v16605_v39 = vpop.eup %11324  ;;  %11348 = vpow2.f32 %v5809_v18  ;;  %v5937_v22 = vmul.f32 1.442695, %v5432_v19  ;;  %v5811_v4 = vmul.f32 1.442695, %v5369_v56  ;;  %7131 = vmatmul.mubr.bf16.gmra.mxu1 %v6453_v24 }
 0x529   : > { %19254 = vst [vmem:[#allocation23_spill] sm:$0xff] %v16605_v39  ;;  %v5813_v57 = vmul.f32 1.442695, %v5370_v44  ;;  %v16608_v48 = vpop.eup %11326  ;;  %11350 = vpow2.f32 %v5935_v42  ;;  %v5176_v30 = vpop.xlane.xlu1 %5175  ;;  %v5371_v41 = vsub.f32 %v19255_v31, %v5083_v34  ;;  %v5372_v9 = vsub.f32 %v19256_v32, %v5083_v34  ;;  %v19258_v19 = vld [vmem:[#allocation123_spill] sm:$0xff]  ;;  %v19259_v56 = vld [vmem:[#allocation130_spill] sm:$0xff]  ;;  %6276 = vadd.xlane.f32.xlu0 %v16238_v25 }
 0x52a   : > { %v6424_v52 = vpack.c.bf16 %v16605_v39, %v16560_v51  ;;  %v16614_v35 = vpop.f32.mrf.mxu0  ;;  %v16616_v18 = vpop.eup %11328  ;;  %11352 = vpow2.f32 %v5811_v4  ;;  %v5433_v24 = vsub.f32 %v19258_v19, %v5176_v30  ;;  %v5434_v45 = vsub.f32 %v19259_v56, %v5176_v30  ;;  %v19263_v56 = vld [vmem:[#allocation140_spill] sm:$0xff] }
 0x52b   : > { %19257 = vst [vmem:[#allocation39_spill] sm:$0xff] %v16614_v35  ;;  %v16620_v44 = vpop.f32.mrf.mxu1  ;;  %v6423_v42 = vpack.c.bf16 %v16601_v5, %v16551_v21  ;;  %v16625_v34 = vpop.eup %11330  ;;  %11354 = vpow2.f32 %v5813_v57  ;;  %v5815_v39 = vmul.f32 1.442695, %v5371_v41  ;;  %6183 = vadd.xlane.f32.xlu1 %v16247_v33  ;;  %v5817_v57 = vmul.f32 1.442695, %v5372_v9 }
 0x52c   : > { %19260 = vst [vmem:[#allocation111_spill] sm:$0xff] %v16620_v44  ;;  %6977 = vmatprep.mubr.bf16.mxu0 %v6424_v52  ;;  %v5179_v31 = vpop.xlane.xlu0 %5178  ;;  %v16627_v32 = vpop.f32.mrf.mxu0  ;;  %v5939_v4 = vmul.f32 1.442695, %v5433_v24  ;;  %v5941_v19 = vmul.f32 1.442695, %v5434_v45  ;;  %11356 = vpow2.f32 %v5937_v22  ;;  %v19264_v52 = vld [vmem:[#allocation151_spill] sm:$0xff] }
 0x52d   : > { %19261 = vst [vmem:[#allocation114_spill] sm:$0xff] %v16627_v32  ;;  %v16629_v35 = vpop.eup %11332  ;;  %6978 = vmatmul.mubr.bf16.gmra.mxu0 %v6423_v42  ;;  %v16632_v30 = vpop.f32.mrf.mxu1  ;;  %v5435_v44 = vsub.f32 %v19263_v56, %v5179_v31  ;;  %v5436_v5 = vsub.f32 %v19264_v52, %v5179_v31  ;;  %v19266_v45 = vld [vmem:[#allocation160_spill] sm:$0xff]  ;;  %6186 = vadd.xlane.f32.xlu0 %v16284_v53  ;;  %v19268_v22 = vld [vmem:[#allocation162_spill] sm:$0xff] }
 0x52e   : > { %19262 = vst [vmem:[#allocation97_spill] sm:$0xff] %v16632_v30  ;;  %v16635_v25 = vpop.eup %11334  ;;  %v5086_v51 = vpop.xlane.xlu1 %5085  ;;  %v6456_v32 = vpack.c.bf16 %v16629_v35, %v16594_v43  ;;  %11358 = vpow2.f32 %v5939_v4  ;;  %v6455_v52 = vpack.c.bf16 %v16625_v34, %v16583_v55 }
 0x52f   : > { %v16640_v24 = vpop.f32.mrf.mxu0  ;;  %v16642_v41 = vpop.eup %11336  ;;  %v5943_v33 = vmul.f32 1.442695, %v5435_v44  ;;  %v5373_v42 = vsub.f32 %v19266_v45, %v5086_v51  ;;  %11360 = vpow2.f32 %v5941_v19  ;;  %v5374_v9 = vsub.f32 %v19268_v22, %v5086_v51  ;;  %6279 = vadd.xlane.f32.xlu1 %v16259_v1 }
 0x530   : > { %19265 = vst [vmem:[#allocation108_spill] sm:$0xff] %v16640_v24  ;;  %v16646_v56 = vpop.eup %11338  ;;  %7138 = vmatprep.mubr.bf16.mxu1 %v6456_v32  ;;  %v16649_v31 = vpop.f32.mrf.mxu1  ;;  %11362 = vpow2.f32 %v5815_v39  ;;  %v5945_v51 = vmul.f32 1.442695, %v5436_v5  ;;  %v19272_v39 = vld [vmem:[#allocation155_spill] sm:$0xff] }
 0x531   : > { %19267 = vst [vmem:[#allocation110_spill] sm:$0xff] %v16646_v56  ;;  %19269 = vst [vmem:[#allocation78_spill] sm:$0xff] %v16649_v31  ;;  %v16653_v30 = vpop.xlane.xlu0 %5988  ;;  %v16655_v24 = vpop.eup %11340  ;;  %v5819_v44 = vmul.f32 1.442695, %v5373_v42  ;;  %v6425_v4 = vpack.c.bf16 %v16646_v56, %v16608_v48  ;;  %11364 = vpow2.f32 %v5817_v57  ;;  %v5821_v32 = vmul.f32 1.442695, %v5374_v9  ;;  %7139 = vmatmul.mubr.bf16.gmra.mxu1 %v6455_v52  ;;  %6282 = vadd.xlane.f32.xlu0 %v16297_v3 }
 0x532   : > { %v16658_v53 = vpop.f32.mrf.mxu0  ;;  %v16662_v19 = vpop.f32.mrf.mxu1  ;;  %v6426_v22 = vpack.c.bf16 %v16655_v24, %v16616_v18  ;;  %11366 = vpow2.f32 %v5943_v33  ;;  %v19273_v42 = vld [vmem:[#allocation161_spill] sm:$0xff] }
 0x533   : > { %19270 = vst [vmem:[#allocation81_spill] sm:$0xff] %v16658_v53  ;;  %19271 = vst [vmem:[#allocation42_spill] sm:$0xff] %v16662_v19  ;;  %v5182_v45 = vpop.xlane.xlu1 %5181  ;;  %v16666_v31 = vpop.eup %11342  ;;  %11368 = vpow2.f32 %v5819_v44  ;;  %6189 = vadd.xlane.f32.xlu1 %v16306_v29 }
 0x534   : > { %v5437_v1 = vsub.f32 %v19272_v39, %v5182_v45  ;;  %v5438_v53 = vsub.f32 %v19273_v42, %v5182_v45  ;;  %v16671_v56 = vpop.eup %11344  ;;  %6985 = vmatprep.mubr.bf16.mxu0 %v6426_v22  ;;  %v16673_v5 = vpop.f32.mrf.mxu0  ;;  %11370 = vpow2.f32 %v5821_v32 }
 0x535   : > { %19274 = vst [vmem:[#allocation37_spill] sm:$0xff] %v16671_v56  ;;  %19275 = vst [vmem:[#allocation44_spill] sm:$0xff] %v16673_v5  ;;  %v16675_v57 = vpop.f32.mrf.mxu1  ;;  %v16677_v9 = vpop.eup %11346  ;;  %6986 = vmatmul.mubr.bf16.gmra.mxu0 %v6425_v4  ;;  %11372 = vpow2.f32 %v5945_v51  ;;  %v6457_v32 = vpack.c.bf16 %v16671_v56, %v16635_v25  ;;  %6192 = vadd.xlane.f32.xlu0 %v16334_v0  ;;  %v19308_v56 = vld [vmem:[#allocation188_spill] sm:$0xff] }
 0x536   : > { %19276 = vst [vmem:[#allocation169_spill] sm:$0xff] %v16675_v57  ;;  %19277 = vst [vmem:[#allocation113_spill] sm:$0xff] %v16677_v9  ;;  %v5947_v52 = vmul.f32 1.442695, %v5437_v1  ;;  %v5949_v19 = vmul.f32 1.442695, %v5438_v53  ;;  %v16680_v33 = vpop.xlane.xlu0 %5994  ;;  %v16682_v45 = vpop.eup %11348  ;;  %v6458_v22 = vpack.c.bf16 %v16677_v9, %v16642_v41 }
 0x537   : > { %19278 = vst [vmem:[#allocation116_spill] sm:$0xff] %v16682_v45  ;;  %v16684_v3 = vpop.f32.mrf.mxu1  ;;  %v16686_v44 = vpop.f32.mrf.mxu0  ;;  %6285 = vadd.xlane.f32.xlu1 %v16316_v12  ;;  %v19297_v57 = vld [vmem:[#allocation89_spill] sm:$0xff] }
 0x538   : > { %19279 = vst [vmem:[#allocation172_spill] sm:$0xff] %v16684_v3  ;;  %19280 = vst [vmem:[#allocation28_spill] sm:$0xff] %v16686_v44  ;;  %v16692_v39 = vpop.eup %11350  ;;  %11374 = vpow2.f32 %v5947_v52  ;;  %v16694_v53 = vpop.xlane.xlu1 %5991  ;;  %7146 = vmatprep.mubr.bf16.mxu1 %v6458_v22  ;;  %v19286_v44 = vld [vmem:[#allocation170_spill] sm:$0xff]  ;;  %v19306_v9 = vld [vmem:[#allocation49_spill] sm:$0xff] }
 0x539   : > { %19281 = vst [vmem:[#allocation21_spill] sm:$0xff] %v16692_v39  ;;  %v16697_v29 = vpop.eup %11352  ;;  %11376 = vpow2.f32 %v5949_v19  ;;  %v16699_v4 = vpop.f32.mrf.mxu0  ;;  %7147 = vmatmul.mubr.bf16.gmra.mxu1 %v6457_v32  ;;  %6288 = vadd.xlane.f32.xlu0 %v16353_v63  ;;  %v19296_v3 = vld [vmem:[#allocation14_spill] sm:$0xff] }
 0x53a   : > { %19282 = vst [vmem:[#allocation41_spill] sm:$0xff] %v16697_v29  ;;  %19283 = vst [vmem:[#allocation43_spill] sm:$0xff] %v16699_v4  ;;  %v16701_v51 = vpop.f32.mrf.mxu1  ;;  %v16703_v1 = vpop.eup %11354  ;;  %v6427_v52 = vpack.c.bf16 %v16697_v29, %v16666_v31  ;;  %11378 = vrcp.f32 %v19286_v44  ;;  %v19291_v4 = vld [vmem:[#allocation165_spill] sm:$0xff] }
 0x53b   : > { %19284 = vst [vmem:[#allocation25_spill] sm:$0xff] %v16701_v51  ;;  %19285 = vst [vmem:[#allocation175_spill] sm:$0xff] %v16703_v1  ;;  %v16706_v42 = vpop.xlane.xlu0 %6084  ;;  %v16713_v19 = vpop.f32.mrf.mxu0  ;;  %v6428_v22 = vpack.c.bf16 %v16703_v1, %v16682_v45  ;;  %11380 = vrcp.f32 %v16094_v13  ;;  %v9382_v13 = vadd.f32 %v19297_v57, %v19296_v3  ;;  %6195 = vadd.xlane.f32.xlu1 %v16362_v16  ;;  %v19301_v3 = vld [vmem:[#allocation181_spill] sm:$0xff] }
 0x53c   : > { %v16711_v0 = vpop.f32.mrf.mxu1  ;;  %19288 = vst [vmem:[#allocation85_spill] sm:$0xff] %v16713_v19  ;;  %v16717_v51 = vpop.eup %11356  ;;  %11382 = vrcp.f32 %v19291_v4  ;;  %v19295_v19 = vld [vmem:[#allocation179_spill] sm:$0xff]  ;;  %v6197_v4 = vadd.f32 %v16427_v17, %v16418_v26  ;;  %v19303_v26 = vld [vmem:[#allocation33_spill] sm:$0xff] }
 0x53d   : > { %19287 = vst [vmem:[#allocation96_spill] sm:$0xff] %v16711_v0  ;;  %19289 = vst [vmem:[#allocation174_spill] sm:$0xff] %v16717_v51  ;;  %v16720_v12 = vpop.xlane.xlu1 %5997  ;;  %v16723_v5 = vpop.eup %11358  ;;  %6993 = vmatprep.mubr.bf16.mxu0 %v6428_v22  ;;  %11384 = vrcp.f32 %v19295_v19 }
 0x53e   : > { %19290 = vst [vmem:[#allocation71_spill] sm:$0xff] %v16723_v5  ;;  %v16726_v44 = vpop.f32.mrf.mxu0  ;;  %v16728_v32 = vpop.f32.mrf.mxu1  ;;  %6994 = vmatmul.mubr.bf16.gmra.mxu0 %v6427_v52  ;;  %v6459_v57 = vpack.c.bf16 %v16723_v5, %v16692_v39  ;;  %v19302_v52 = vld [vmem:[#allocation184_spill] sm:$0xff]  ;;  %6198 = vadd.xlane.f32.xlu0 %v6197_v4  ;;  %v7300_v4 = vmul.f32 %v16398_v23, %v9382_v13 }
 0x53f   : > { %19292 = vst [vmem:[#allocation92_spill] sm:$0xff] %v16726_v44  ;;  %19293 = vst [vmem:[#allocation176_spill] sm:$0xff] %v16728_v32  ;;  %v16730_v0 = vpop.eup %11360  ;;  %v16736_v63 = vpop.xlane.xlu0 %6090  ;;  %v19298_v44 = vld [vmem:[#allocation171_spill] sm:$0xff]  ;;  %v9379_v17 = vadd.f32 %v19303_v26, %v19302_v52  ;;  %v19312_v52 = vld [vmem:[#allocation182_spill] sm:$0xff]  ;;  %6291 = vadd.xlane.f32.xlu1 %v16378_v61 }
 0x540   : > { %19294 = vst [vmem:[#allocation177_spill] sm:$0xff] %v16730_v0  ;;  %v16740_v22 = vpop.eup %11362  ;;  %11386 = vrcp.f32 %v19298_v44  ;;  %v16743_v32 = vpop.f32.mrf.mxu1  ;;  %v6460_v19 = vpack.c.bf16 %v16730_v0, %v16717_v51  ;;  %v19307_v51 = vld [vmem:[#allocation183_spill] sm:$0xff] }
 0x541   : > { %19299 = vst [vmem:[#allocation79_spill] sm:$0xff] %v16743_v32  ;;  %v16745_v1 = vpop.f32.mrf.mxu0  ;;  %v16751_v16 = vpop.eup %11364  ;;  %11388 = vrcp.f32 %v19301_v3  ;;  %v19304_v32 = vld [vmem:[#allocation167_spill] sm:$0xff]  ;;  %v9494_v5 = vadd.f32 %v19308_v56, %v19307_v51  ;;  %v19314_v56 = vld [vmem:[#allocation9_spill] sm:$0xff]  ;;  %v7299_v61 = vmul.f32 %v16387_v36, %v9379_v17 }
 0x542   : > { %19300 = vst [vmem:[#allocation77_spill] sm:$0xff] %v16745_v1  ;;  %v16756_v29 = vpop.xlane.xlu1 %6087  ;;  %v16758_v44 = vpop.eup %11366  ;;  %11390 = vrcp.f32 %v19304_v32  ;;  %v19305_v1 = vld [vmem:[#allocation185_spill] sm:$0xff]  ;;  %7154 = vmatprep.mubr.bf16.mxu1 %v6460_v19 }
 0x543   : > { %v9491_v0 = vadd.f32 %v19306_v9, %v19305_v1  ;;  %v16765_v39 = vpop.f32.mrf.mxu0  ;;  %v16767_v3 = vpop.f32.mrf.mxu1  ;;  %11392 = vrcp.f32 %v19312_v52  ;;  %v6293_v9 = vadd.f32 %v16438_v59, %v16435_v46  ;;  %7155 = vmatmul.mubr.bf16.gmra.mxu1 %v6459_v57  ;;  %v6200_v46 = vadd.f32 %v16447_v20, %v16445_v62  ;;  %v19318_v52 = vld [vmem:[#allocation70_spill] sm:$0xff]  ;;  %v19324_v62 = vld [vmem:[#allocation119_spill] sm:$0xff] }
 0x544   : > { %19309 = vst [vmem:[#allocation35_spill] sm:$0xff] %v16765_v39  ;;  %19310 = vst [vmem:[#allocation178_spill] sm:$0xff] %v16767_v3  ;;  %v16769_v45 = vpop.eup %11368  ;;  %v16774_v32 = vpop.xlane.xlu0 %6000  ;;  %11394 = vrcp.f32 %v19314_v56  ;;  %v19319_v3 = vld [vmem:[#allocation59_spill] sm:$0xff] }
 0x545   : > { %19311 = vst [vmem:[#allocation72_spill] sm:$0xff] %v16769_v45  ;;  %v16778_v1 = vpop.eup %11370  ;;  %v16781_v51 = vpop.f32.mrf.mxu1  ;;  %v6429_v26 = vpack.c.bf16 %v16769_v45, %v16740_v22  ;;  %6294 = vadd.xlane.f32.xlu0 %v6293_v9  ;;  %11396 = vrcp.f32 %v19318_v52  ;;  %v7331_v56 = vmul.f32 %v16391_v38, %v9491_v0  ;;  %v9388_v36 = vadd.f32 %v16243_v58, %v19319_v3  ;;  %v19326_v58 = vld [vmem:[#allocation187_spill] sm:$0xff] }
 0x546   : > { %19313 = vst [vmem:[#allocation84_spill] sm:$0xff] %v16778_v1  ;;  %19315 = vst [vmem:[#allocation180_spill] sm:$0xff] %v16781_v51  ;;  %v16783_v19 = vpop.f32.mrf.mxu0  ;;  %v16787_v23 = vpop.eup %11372  ;;  %v6430_v59 = vpack.c.bf16 %v16778_v1, %v16751_v16  ;;  %v7332_v51 = vmul.f32 %v16409_v40, %v9494_v5  ;;  %v7427_v9 = vpack.c.bf16 %v7300_v4, %v7299_v61  ;;  %v19323_v1 = vld [vmem:[#allocation12_spill] sm:$0xff]  ;;  %6201 = vadd.xlane.f32.xlu1 %v6200_v46  ;;  %v19325_v40 = vld [vmem:[#allocation87_spill] sm:$0xff] }
 0x547   : > { %19316 = vst [vmem:[#allocation15_spill] sm:$0xff] %v16783_v19  ;;  %v16790_v13 = vpop.xlane.xlu1 %6093  ;;  %v16796_v57 = vpop.eup %11374  ;;  %v9394_v20 = vadd.f32 %v19324_v62, %v19323_v1  ;;  %v6203_v38 = vadd.f32 %v16462_v47, %v16455_v60  ;;  %11398 = vrcp.f32 %v19325_v40  ;;  %v19327_v5 = vld [vmem:[#allocation88_spill] sm:$0xff]  ;;  %v19332_v40 = vld [vmem:[#allocation31_spill] sm:$0xff] }
 0x548   : > { %19317 = vst [vmem:[#allocation91_spill] sm:$0xff] %v16796_v57  ;;  %v16803_v17 = vpop.f32.mrf.mxu0  ;;  %v16805_v19 = vpop.f32.mrf.mxu1  ;;  %7001 = vmatprep.mubr.bf16.mxu0 %v6430_v59  ;;  %v9385_v0 = vadd.f32 %v19327_v5, %v19326_v58  ;;  %v6461_v1 = vpack.c.bf16 %v16796_v57, %v16758_v44  ;;  %v19330_v59 = vld [vmem:[#allocation189_spill] sm:$0xff]  ;;  %v19331_v46 = vld [vmem:[#allocation56_spill] sm:$0xff]  ;;  %11400 = vrcp.f32 %v19332_v40  ;;  %v7443_v58 = vpack.c.bf16 %v7332_v51, %v7331_v56 }
 0x549   : > { %19320 = vst [vmem:[#allocation30_spill] sm:$0xff] %v16803_v17  ;;  %19321 = vst [vmem:[#allocation20_spill] sm:$0xff] %v16805_v19  ;;  %v16807_v39 = vpop.eup %11376  ;;  %v16811_v52 = vpop.xlane.xlu0 %6006  ;;  %7002 = vmatmul.mubr.bf16.gmra.mxu0 %v6429_v26  ;;  %v9391_v60 = vadd.f32 %v19331_v46, %v19330_v59  ;;  %6204 = vadd.xlane.f32.xlu0 %v6203_v38  ;;  %v6296_v26 = vadd.f32 %v16471_v49, %v16469_v27  ;;  %v19335_v57 = vld [vmem:[#allocation64_spill] sm:$0xff]  ;;  %v19336_v38 = vld [vmem:[#allocation93_spill] sm:$0xff]  ;;  %11402 = vrcp.f32 %v16694_v53 }
 0x54a   : > { %19322 = vst [vmem:[#allocation17_spill] sm:$0xff] %v16807_v39  ;;  %v16818_v3 = vpop.f32.mrf.mxu1  ;;  %v16820_v17 = vpop.f32.mrf.mxu0  ;;  %v6462_v4 = vpack.c.bf16 %v16807_v39, %v16787_v23  ;;  %10461 = vmatprep.mubr.msk.bf16.mxu0 %vm3386_vm0, %v7427_v9  ;;  %v9506_v45 = vadd.f32 %v19336_v38, %v19335_v57  ;;  %v6299_v49 = vadd.f32 %v16486_v15, %v16479_v7  ;;  %v19340_v53 = vld [vmem:[#allocation63_spill] sm:$0xff]  ;;  %11404 = vrcp.f32 %v16653_v30 }
 0x54b   : > { %19328 = vst [vmem:[#allocation16_spill] sm:$0xff] %v16818_v3  ;;  %19329 = vst [vmem:[#allocation146_spill] sm:$0xff] %v16820_v17  ;;  %v11379_v61 = vpop.eup %11378  ;;  %v16829_v47 = vpop.xlane.xlu1 %6003  ;;  %v19333_v17 = vld [vmem:[#allocation22_spill] sm:$0xff]  ;;  %6297 = vadd.xlane.f32.xlu1 %v6296_v26  ;;  %v6206_v15 = vadd.f32 %v16497_v37, %v16495_v11  ;;  %11406 = vrcp.f32 %v16756_v29  ;;  %v6209_v37 = vadd.f32 %v16510_v2, %v16503_v6  ;;  %v10775_v11 = vld [vmem:[%s17535_s5 + $0x20] sm:$0xff]  }
 0x54c   : > { %v11381_v62 = vpop.eup %11380  ;;  %v7302_v5 = vmul.f32 %v11379_v61, %v9388_v36  ;;  %v19334_v3 = vld [vmem:[#allocation50_spill] sm:$0xff]  ;;  %7162 = vmatprep.mubr.bf16.mxu1 %v6462_v4  ;;  %v16836_v39 = vpop.f32.mrf.mxu0  ;;  %v19337_v36 = vld [vmem:[#allocation60_spill] sm:$0xff]  ;;  %11408 = vrcp.f32 %v16706_v42  ;;  %v6302_v2 = vadd.f32 %v16521_v50, %v16517_v28  ;;  %v6305_v50 = vadd.f32 %v16534_v10, %v16527_v14  ;;  %v10777_v28 = vld [vmem:[%s17535_s5 + $0x30] sm:$0xff]  }
 0x54d   : > { %v9500_v19 = vadd.f32 %v19334_v3, %v19333_v17  ;;  %v16838_v59 = vpop.f32.mrf.mxu1  ;;  %v11383_v9 = vpop.eup %11382  ;;  %v7304_v46 = vmul.f32 %v11381_v62, %v9394_v20  ;;  %v19338_v17 = vld [vmem:[#allocation186_spill] sm:$0xff]  ;;  %7163 = vmatmul.mubr.bf16.gmra.mxu1 %v6461_v1  ;;  %v19339_v62 = vld [vmem:[#allocation8_spill] sm:$0xff]  ;;  %6300 = vadd.xlane.f32.xlu0 %v6299_v49  ;;  %v19343_v49 = vld [vmem:[#allocation117_spill] sm:$0xff]  ;;  %11410 = vrcp.f32 %v16720_v12 }
 0x54e   : > { %v16843_v27 = vpop.xlane.xlu0 %6096  ;;  %v11385_v51 = vpop.eup %11384  ;;  %v7301_v56 = vmul.f32 %v11383_v9, %v9385_v0  ;;  %v9497_v3 = vadd.f32 %v19338_v17, %v19337_v36  ;;  %v9503_v26 = vadd.f32 %v19340_v53, %v19339_v62  ;;  %10497 = vmatprep.mubr.msk.bf16.mxu1 %vm3386_vm0, %v7443_v58  ;;  %v19341_v9 = vld [vmem:[#allocation126_spill] sm:$0xff]  ;;  %v19345_v53 = vld [vmem:[#allocation101_spill] sm:$0xff]  ;;  %11412 = vrcp.f32 %v16829_v47  ;;  %v19348_v10 = vld [vmem:[#allocation156_spill] sm:$0xff] }
 0x54f   : > { %v16849_v4 = vpop.f32.mrf.mxu1  ;;  %v16851_v20 = vpop.f32.mrf.mxu0  ;;  %v7303_v57 = vmul.f32 %v11385_v51, %v9391_v60  ;;  %v9400_v38 = vadd.f32 %v16301_v54, %v19341_v9  ;;  %6207 = vadd.xlane.f32.xlu1 %v6206_v15  ;;  %v19344_v62 = vld [vmem:[#allocation86_spill] sm:$0xff]  ;;  %11414 = vrcp.f32 %v16680_v33 }
 0x550   : > { %v11387_v61 = vpop.eup %11386  ;;  %v16857_v7 = vpop.xlane.xlu1 %6009  ;;  %v7428_v1 = vpack.c.bf16 %v7302_v5, %v7301_v56  ;;  %v19342_v5 = vld [vmem:[#allocation191_spill] sm:$0xff]  ;;  %v9512_v15 = vadd.f32 %v19345_v53, %v19344_v62  ;;  %11416 = vrcp.f32 %v16774_v32 }
 0x551   : > { %v11389_v0 = vpop.eup %11388  ;;  %v7334_v40 = vmul.f32 %v11387_v61, %v9500_v19  ;;  %v16863_v60 = vpop.f32.mrf.mxu0  ;;  %v7429_v30 = vpack.c.bf16 %v7304_v46, %v7303_v57  ;;  %v9397_v56 = vadd.f32 %v19343_v49, %v19342_v5  ;;  %6210 = vadd.xlane.f32.xlu0 %v6209_v37  ;;  %11418 = vrcp.f32 %v16790_v13  ;;  %v19350_v49 = vld [vmem:[#allocation95_spill] sm:$0xff] }
 0x552   : > { %v16865_v51 = vpop.f32.mrf.mxu1  ;;  %v11391_v36 = vpop.eup %11390  ;;  %v7336_v17 = vmul.f32 %v11389_v0, %v9506_v45  ;;  %10462 = vmatmul.mubr.msk.bf16.vlgmr.msra.gmra.mxu0 %vm3386_vm0, %v7428_v1  ;;  %v19353_v62 = vld [vmem:[#allocation75_spill] sm:$0xff] }
 0x553   : > { %v16868_v58 = vpop.xlane.xlu0 %6102  ;;  %v11393_v54 = vpop.eup %11392  ;;  %v7333_v19 = vmul.f32 %v11391_v36, %v9497_v3  ;;  %10465 = vmatprep.mubr.msk.bf16.mxu0 %vm3386_vm0, %v7429_v30  ;;  %10530 = vmatpush3.bf16.msra.mxu0 %v16572_v8  ;;  %v19354_v53 = vld [vmem:[#allocation127_spill] sm:$0xff] }
 0x554   : > { %v16878_v45 = vpop.f32.mrf.mxu1  ;;  %v16880_v29 = vpop.f32.mrf.mxu0  ;;  %v7335_v61 = vmul.f32 %v11393_v54, %v9503_v26  ;;  %6303 = vadd.xlane.f32.xlu1 %v6302_v2  ;;  %10531 = vmatprep.subr.bf16.mxu0 %v10775_v11 }
 0x555   : > { %v11395_v46 = vpop.eup %11394  ;;  %v6100_v6 = vpop.xlane.xlu1 %6099  ;;  %v7444_v3 = vpack.c.bf16 %v7334_v40, %v7333_v19  ;;  %v19346_v40 = vld [vmem:[#allocation128_spill] sm:$0xff]  ;;  %6306 = vadd.xlane.f32.xlu0 %v6305_v50 }
 0x556   : > { %v7306_v57 = vmul.f32 %v11395_v46, %v9400_v38  ;;  %v16889_v0 = vpop.f32.mrf.mxu0  ;;  %v16891_v1 = vpop.f32.mrf.mxu1  ;;  %v7445_v26 = vpack.c.bf16 %v7336_v17, %v7335_v61  ;;  %v19347_v38 = vld [vmem:[#allocation57_spill] sm:$0xff]  ;;  %11420 = vrcp.f32 %v6100_v6  ;;  %v19351_v46 = vld [vmem:[#allocation166_spill] sm:$0xff] }
 0x557   : > { %v11397_v42 = vpop.eup %11396  ;;  %v6013_v9 = vpop.xlane.xlu0 %6012  ;;  %v9509_v36 = vadd.f32 %v19347_v38, %v19346_v40  ;;  %10498 = vmatmul.mubr.msk.bf16.vlgmr.msra.gmra.mxu1 %vm3386_vm0, %v7444_v3  ;;  %v19349_v17 = vld [vmem:[#allocation157_spill] sm:$0xff]  ;;  %10532 = vmatpush3.bf16.msra.mxu0 %v10775_v11  ;;  %v6215_v61 = vadd.f32 %v19351_v46, %v16551_v21  ;;  %11422 = vrcp.f32 %v16736_v63  ;;  %v19358_v63 = vld [vmem:[#allocation34_spill] sm:$0xff] }
 0x558   : > { %v7305_v12 = vmul.f32 %v11397_v42, %v9397_v56  ;;  %v16904_v8 = vpop.f32.mrf.mxu1  ;;  %v16906_v47 = vpop.f32.mrf.mxu0  ;;  %10501 = vmatprep.mubr.msk.bf16.mxu1 %vm3386_vm0, %v7445_v26  ;;  %v6212_v37 = vadd.f32 %v19349_v17, %v19348_v10  ;;  %10566 = vmatpush3.bf16.msra.mxu1 %v19350_v49  ;;  %11424 = vrcp.f32 %v16843_v27  ;;  %v19357_v26 = vld [vmem:[#allocation168_spill] sm:$0xff]  ;;  %v19359_v27 = vld [vmem:[#allocation82_spill] sm:$0xff] }
 0x559   : > { %v11399_v30 = vpop.eup %11398  ;;  %v6106_v14 = vpop.xlane.xlu1 %6105  ;;  %10567 = vmatprep.subr.bf16.mxu1 %v10777_v28  ;;  %6216 = vadd.xlane.f32.xlu0 %v6215_v61  ;;  %v6308_v50 = vadd.f32 %v19358_v63, %v19357_v26  ;;  %11426 = vrcp.f32 %v16857_v7  ;;  %v19363_v61 = vld [vmem:[#allocation122_spill] sm:$0xff] }
 0x55a   : > { %v7430_v54 = vpack.c.bf16 %v7306_v57, %v7305_v12  ;;  %v7338_v19 = vmul.f32 %v11399_v30, %v9512_v15  ;;  %v16913_v33 = vpop.f32.mrf.mxu0  ;;  %v16915_v5 = vpop.f32.mrf.mxu1  ;;  %6213 = vadd.xlane.f32.xlu1 %v6212_v37  ;;  %v19352_v57 = vld [vmem:[#allocation129_spill] sm:$0xff]  ;;  %v19355_v15 = vld [vmem:[#allocation104_spill] sm:$0xff]  ;;  %v19360_v30 = vld [vmem:[#allocation131_spill] sm:$0xff]  ;;  %v6311_v37 = vadd.f32 %v16594_v43, %v16583_v55 }
 0x55b   : > { %v11401_v56 = vpop.eup %11400  ;;  %v16918_v32 = vpop.xlane.xlu0 %6018  ;;  %v9418_v6 = vadd.f32 %v19353_v62, %v19352_v57  ;;  %v19356_v42 = vpack.c.bf16 %v19354_v53, %v19355_v15  ;;  %v9415_v10 = vadd.f32 %v19360_v30, %v19359_v27  ;;  %v19366_v43 = vld [vmem:[#allocation61_spill] sm:$0xff]  ;;  %v19368_v53 = vld [vmem:[#allocation27_spill] sm:$0xff]  ;;  %v19369_v15 = vld [vmem:[#allocation134_spill] sm:$0xff] }
 0x55c   : > { %v11403_v2 = vpop.eup %11402  ;;  %v7337_v3 = vmul.f32 %v11401_v56, %v9509_v36  ;;  %10466 = vmatmul.mubr.msk.bf16.gmra.mxu0 %vm3386_vm0, %v7430_v54  ;;  %v16924_v13 = vpop.f32.mrf.mxu1  ;;  %10568 = vmatpush3.bf16.msra.mxu1 %v10777_v28  ;;  %v19361_v28 = vld [vmem:[#allocation24_spill] sm:$0xff]  ;;  %v19362_v56 = vld [vmem:[#allocation138_spill] sm:$0xff]  ;;  %v19370_v30 = vld [vmem:[#allocation135_spill] sm:$0xff] }
 0x55d   : > { %v16926_v11 = vpop.f32.mrf.mxu0  ;;  %10469 = vmatprep.mubr.msk.bf16.mxu0 %vm3386_vm0, %v19356_v42  ;;  %v6016_v21 = vpop.xlane.xlu1 %6015  ;;  %v7312_v54 = vmul.f32 %v11403_v2, %v9418_v6  ;;  %v9530_v46 = vadd.f32 %v19362_v56, %v19361_v28  ;;  %6312 = vadd.xlane.f32.xlu0 %v6311_v37  ;;  %v19367_v2 = vld [vmem:[#allocation23_spill] sm:$0xff]  ;;  %v9527_v42 = vadd.f32 %v19369_v15, %v19368_v53  ;;  %v19373_v28 = vld [vmem:[#allocation190_spill] sm:$0xff] }
 0x55e   : > { %v11405_v12 = vpop.eup %11404  ;;  %v7446_v40 = vpack.c.bf16 %v7338_v19, %v7337_v3  ;;  %v16940_v36 = vpop.f32.mrf.mxu1  ;;  %11428 = vrcp.f32 %v6016_v21  ;;  %6309 = vadd.xlane.f32.xlu1 %v6308_v50  ;;  %v19364_v3 = vld [vmem:[#allocation47_spill] sm:$0xff] }
 0x55f   : > { %v16938_v38 = vpop.f32.mrf.mxu0  ;;  %v6109_v17 = vpop.xlane.xlu0 %6108  ;;  %11430 = vrcp.f32 %v16811_v52  ;;  %v19365_v57 = vpack.c.bf16 %v19363_v61, %v19364_v3  ;;  %v6218_v52 = vadd.f32 %v19367_v2, %v19366_v43  ;;  %v7311_v62 = vmul.f32 %v11405_v12, %v9415_v10  ;;  %v19371_v10 = vld [vmem:[#allocation40_spill] sm:$0xff]  ;;  %v19375_v3 = vld [vmem:[#allocation145_spill] sm:$0xff] }
 0x560   : > { %v11407_v49 = vpop.eup %11406  ;;  %10502 = vmatmul.mubr.msk.bf16.gmra.mxu1 %vm3386_vm0, %v7446_v40  ;;  %v16948_v7 = vpop.f32.mrf.mxu1  ;;  %11432 = vrcp.f32 %v6013_v9  ;;  %v6221_v40 = vadd.f32 %v16616_v18, %v16608_v48  ;;  %v9424_v37 = vadd.f32 %v19371_v10, %v19370_v30  ;;  %v6314_v18 = vadd.f32 %v16629_v35, %v16625_v34  ;;  %v19378_v2 = vld [vmem:[#allocation133_spill] sm:$0xff]  ;;  %v19380_v10 = vld [vmem:[#allocation143_spill] sm:$0xff] }
 0x561   : > { %v16950_v19 = vpop.f32.mrf.mxu0  ;;  %10505 = vmatprep.mubr.msk.bf16.mxu1 %vm3386_vm0, %v19365_v57  ;;  %v6022_v55 = vpop.xlane.xlu1 %6021  ;;  %11434 = vrcp.f32 %v6106_v14  ;;  %v7433_v63 = vpack.c.bf16 %v7312_v54, %v7311_v62  ;;  %v7344_v27 = vmul.f32 %v11407_v49, %v9530_v46  ;;  %v19372_v14 = vld [vmem:[#allocation74_spill] sm:$0xff]  ;;  %v19376_v57 = vld [vmem:[#allocation152_spill] sm:$0xff]  ;;  %v6317_v35 = vadd.f32 %v16642_v41, %v16635_v25 }
 0x562   : > { %v11409_v6 = vpop.eup %11408  ;;  %v16962_v21 = vpop.f32.mrf.mxu1  ;;  %11436 = vrcp.f32 %v16868_v58  ;;  %6219 = vadd.xlane.f32.xlu1 %v6218_v52  ;;  %v19374_v56 = vpack.c.bf16 %v19372_v14, %v19373_v28  ;;  %v9430_v43 = vadd.f32 %v19376_v57, %v19375_v3  ;;  %6222 = vadd.xlane.f32.xlu0 %v6221_v40  ;;  %v19377_v46 = vld [vmem:[#allocation136_spill] sm:$0xff]  ;;  %v19382_v28 = vld [vmem:[#allocation137_spill] sm:$0xff]  ;;  %v19383_v3 = vld [vmem:[#allocation142_spill] sm:$0xff] }
 0x563   : > { %v16964_v26 = vpop.f32.mrf.mxu0  ;;  %v11411_v9 = vpop.eup %11410  ;;  %11438 = vrcp.f32 %v6109_v17  ;;  %v7343_v17 = vmul.f32 %v11409_v6, %v9527_v42  ;;  %v9421_v52 = vadd.f32 %v19378_v2, %v19377_v46  ;;  %v19381_v42 = vld [vmem:[#allocation192_spill] sm:$0xff]  ;;  %v19384_v57 = vld [vmem:[#allocation141_spill] sm:$0xff] }
 0x564   : > { %v6115_v50 = vpop.xlane.xlu0 %6114  ;;  %v11413_v12 = vpop.eup %11412  ;;  %10470 = vmatmul.mubr.msk.bf16.gmra.mxu0 %vm3386_vm0, %v19374_v56  ;;  %11440 = vrcp.f32 %v6022_v55  ;;  %v7314_v15 = vmul.f32 %v11411_v9, %v9424_v37  ;;  %v19379_v55 = vld [vmem:[#allocation139_spill] sm:$0xff]  ;;  %v9533_v56 = vadd.f32 %v19382_v28, %v19381_v42  ;;  %v19385_v9 = vld [vmem:[#allocation48_spill] sm:$0xff] }
 0x565   : > { %v16975_v61 = vpop.f32.mrf.mxu1  ;;  %v16977_v58 = vpop.f32.mrf.mxu0  ;;  %10473 = vmatprep.mubr.msk.bf16.mxu0 %vm3386_vm0, %v7433_v63  ;;  %v9427_v63 = vadd.f32 %v19380_v10, %v19379_v55  ;;  %v7449_v40 = vpack.c.bf16 %v7344_v27, %v7343_v17  ;;  %v7316_v34 = vmul.f32 %v11413_v12, %v9430_v43  ;;  %v19386_v37 = vld [vmem:[#allocation132_spill] sm:$0xff]  ;;  %v19388_v12 = vld [vmem:[#allocation149_spill] sm:$0xff]  ;;  %v19389_v43 = vld [vmem:[#allocation163_spill] sm:$0xff] }
 0x566   : > { %v11415_v54 = vpop.eup %11414  ;;  %v6112_v48 = vpop.xlane.xlu1 %6111  ;;  %6315 = vadd.xlane.f32.xlu1 %v6314_v18  ;;  %v19387_v46 = vpack.c.bf16 %v19385_v9, %v19386_v37  ;;  %v9542_v17 = vadd.f32 %v19389_v43, %v19388_v12  ;;  %6318 = vadd.xlane.f32.xlu0 %v6317_v35  ;;  %v19390_v55 = vld [vmem:[#allocation110_spill] sm:$0xff]  ;;  %v19391_v28 = vld [vmem:[#allocation148_spill] sm:$0xff]  ;;  %v19396_v43 = vld [vmem:[#allocation173_spill] sm:$0xff] }
 0x567   : > { %v11417_v49 = vpop.eup %11416  ;;  %11442 = vrcp.f32 %v6112_v48  ;;  %v16986_v62 = vpop.f32.mrf.mxu0  ;;  %v9536_v48 = vadd.f32 %v19384_v57, %v19383_v3  ;;  %v7313_v25 = vmul.f32 %v11415_v54, %v9421_v52  ;;  %v19392_v3 = vld [vmem:[#allocation150_spill] sm:$0xff]  ;;  %v19395_v12 = vld [vmem:[#allocation116_spill] sm:$0xff] }
 0x568   : > { %v16988_v53 = vpop.f32.mrf.mxu1  ;;  %v11419_v30 = vpop.eup %11418  ;;  %11444 = vrcp.f32 %v16918_v32  ;;  %10506 = vmatmul.mubr.msk.bf16.gmra.mxu1 %vm3386_vm0, %v19387_v46  ;;  %v6224_v32 = vadd.f32 %v16655_v24, %v19390_v55  ;;  %v7315_v10 = vmul.f32 %v11417_v49, %v9427_v63  ;;  %v9539_v57 = vadd.f32 %v19392_v3, %v19391_v28  ;;  %v19397_v55 = vld [vmem:[#allocation66_spill] sm:$0xff] }
 0x569   : > { %v6025_v14 = vpop.xlane.xlu0 %6024  ;;  %v11421_v6 = vpop.eup %11420  ;;  %10509 = vmatprep.mubr.msk.bf16.mxu1 %vm3386_vm0, %v7449_v40  ;;  %v7434_v52 = vpack.c.bf16 %v7314_v15, %v7313_v25  ;;  %v7346_v37 = vmul.f32 %v11419_v30, %v9536_v48  ;;  %v6227_v24 = vadd.f32 %v19395_v12, %v16666_v31  ;;  %v9436_v28 = vadd.f32 %v19397_v55, %v19396_v43  ;;  %v19400_v48 = vld [vmem:[#allocation108_spill] sm:$0xff]  ;;  %v19404_v3 = vld [vmem:[#allocation158_spill] sm:$0xff] }
 0x56a   : > { %v17003_v27 = vpop.f32.mrf.mxu1  ;;  %v17005_v18 = vpop.f32.mrf.mxu0  ;;  %6225 = vadd.xlane.f32.xlu1 %v6224_v32  ;;  %v7435_v40 = vpack.c.bf16 %v7316_v34, %v7315_v10  ;;  %v7348_v49 = vmul.f32 %v11421_v6, %v9542_v17  ;;  %v19401_v34 = vld [vmem:[#allocation81_spill] sm:$0xff] }
 0x56b   : > { %v11423_v41 = vpop.eup %11422  ;;  %v6118_v2 = vpop.xlane.xlu1 %6117  ;;  %v9442_v25 = vadd.f32 %v19401_v34, %v19400_v48  ;;  %6228 = vadd.xlane.f32.xlu0 %v6227_v24  ;;  %v19402_v6 = vld [vmem:[#allocation37_spill] sm:$0xff]  ;;  %v19408_v34 = vld [vmem:[#allocation39_spill] sm:$0xff] }
 0x56c   : > { %v11425_v42 = vpop.eup %11424  ;;  %11446 = vrcp.f32 %v6118_v2  ;;  %v17014_v9 = vpop.f32.mrf.mxu0  ;;  %10474 = vmatmul.mubr.msk.bf16.gmra.mxu0 %vm3386_vm0, %v7434_v52  ;;  %v7345_v30 = vmul.f32 %v11423_v41, %v9533_v56  ;;  %v19403_v17 = vld [vmem:[#allocation113_spill] sm:$0xff]  ;;  %v19405_v52 = vld [vmem:[#allocation164_spill] sm:$0xff] }
 0x56d   : > { %19393 = vst [vmem:[#allocation154_spill] sm:$0xff] %v17014_v9  ;;  %v17016_v54 = vpop.f32.mrf.mxu1  ;;  %v11427_v46 = vpop.eup %11426  ;;  %11448 = vrcp.f32 %v6115_v50  ;;  %10477 = vmatprep.mubr.msk.bf16.mxu0 %vm3386_vm0, %v7435_v40  ;;  %v6320_v32 = vadd.f32 %v19403_v17, %v19402_v6  ;;  %v7347_v10 = vmul.f32 %v11425_v42, %v9539_v57  ;;  %v9433_v12 = vadd.f32 %v19405_v52, %v19404_v3  ;;  %v19409_v40 = vld [vmem:[#allocation114_spill] sm:$0xff]  ;;  %v19410_v6 = vld [vmem:[#allocation21_spill] sm:$0xff]  ;;  %v19412_v3 = vld [vmem:[#allocation68_spill] sm:$0xff] }
 0x56e   : > { %19394 = vst [vmem:[#allocation36_spill] sm:$0xff] %v17016_v54  ;;  %v6121_v35 = vpop.xlane.xlu0 %6120  ;;  %v11429_v63 = vpop.eup %11428  ;;  %11450 = vrcp.f32 %v6025_v14  ;;  %v7450_v41 = vpack.c.bf16 %v7346_v37, %v7345_v30  ;;  %v7318_v55 = vmul.f32 %v11427_v46, %v9436_v28  ;;  %v19411_v42 = vld [vmem:[#allocation174_spill] sm:$0xff]  ;;  %v19415_v54 = vld [vmem:[#allocation97_spill] sm:$0xff] }
 0x56f   : > { %v17023_v2 = vpop.f32.mrf.mxu1  ;;  %v17025_v15 = vpop.f32.mrf.mxu0  ;;  %6321 = vadd.xlane.f32.xlu1 %v6320_v32  ;;  %v7451_v24 = vpack.c.bf16 %v7348_v49, %v7347_v10  ;;  %v6323_v57 = vadd.f32 %v19411_v42, %v19410_v6  ;;  %v7320_v17 = vmul.f32 %v11429_v63, %v9442_v25  ;;  %v19416_v49 = vld [vmem:[#allocation78_spill] sm:$0xff]  ;;  %v19418_v10 = vld [vmem:[#allocation41_spill] sm:$0xff] }
 0x570   : > { %19398 = vst [vmem:[#allocation94_spill] sm:$0xff] %v17023_v2  ;;  %19399 = vst [vmem:[#allocation153_spill] sm:$0xff] %v17025_v15  ;;  %v11431_v50 = vpop.eup %11430  ;;  %v6028_v31 = vpop.xlane.xlu1 %6027  ;;  %v9439_v15 = vadd.f32 %v19409_v40, %v19408_v34  ;;  %10510 = vmatmul.mubr.msk.bf16.gmra.mxu1 %vm3386_vm0, %v7450_v41  ;;  %v19417_v30 = vld [vmem:[#allocation42_spill] sm:$0xff]  ;;  %v19419_v34 = vld [vmem:[#allocation175_spill] sm:$0xff] }
 0x571   : > { %v11433_v14 = vpop.eup %11432  ;;  %11452 = vrcp.f32 %v6028_v31  ;;  %v17034_v43 = vpop.f32.mrf.mxu0  ;;  %v19413_v31 = vld [vmem:[#allocation62_spill] sm:$0xff]  ;;  %v7317_v46 = vmul.f32 %v11431_v50, %v9433_v12  ;;  %v9551_v32 = vadd.f32 %v19417_v30, %v19416_v49  ;;  %10513 = vmatprep.mubr.msk.bf16.mxu1 %vm3386_vm0, %v7451_v24  ;;  %6324 = vadd.xlane.f32.xlu0 %v6323_v57  ;;  %v6230_v40 = vadd.f32 %v19419_v34, %v19418_v10  ;;  %v19421_v41 = vld [vmem:[#allocation172_spill] sm:$0xff]  ;;  %v19423_v24 = vld [vmem:[#allocation85_spill] sm:$0xff] }
 0x572   : > { %19406 = vst [vmem:[#allocation159_spill] sm:$0xff] %v17034_v43  ;;  %v17036_v56 = vpop.f32.mrf.mxu1  ;;  %v11435_v48 = vpop.eup %11434  ;;  %v9545_v52 = vadd.f32 %v19413_v31, %v19412_v3  ;;  %v19414_v43 = vld [vmem:[#allocation111_spill] sm:$0xff]  ;;  %11454 = vrcp.f32 %v6121_v35  ;;  %v6233_v10 = vadd.f32 %v16751_v16, %v16740_v22  ;;  %v19427_v22 = vld [vmem:[#allocation177_spill] sm:$0xff] }
 0x573   : > { %19407 = vst [vmem:[#allocation26_spill] sm:$0xff] %v17036_v56  ;;  %v6031_v9 = vpop.xlane.xlu0 %6030  ;;  %v11437_v2 = vpop.eup %11436  ;;  %v9548_v56 = vadd.f32 %v19415_v54, %v19414_v43  ;;  %v7319_v54 = vmul.f32 %v11433_v14, %v9439_v15  ;;  %v19420_v43 = vld [vmem:[#allocation169_spill] sm:$0xff]  ;;  %v7436_v12 = vpack.c.bf16 %v7318_v55, %v7317_v46  ;;  %v19422_v31 = vld [vmem:[#allocation43_spill] sm:$0xff]  ;;  %6231 = vadd.xlane.f32.xlu1 %v6230_v40 }
 0x574   : > { %v17047_v37 = vpop.f32.mrf.mxu1  ;;  %v11439_v28 = vpop.eup %11438  ;;  %v9554_v6 = vadd.f32 %v19421_v41, %v19420_v43  ;;  %v9448_v49 = vadd.f32 %v19423_v24, %v19422_v31  ;;  %v7349_v14 = vmul.f32 %v11437_v2, %v9545_v52  ;;  %v19426_v40 = vld [vmem:[#allocation71_spill] sm:$0xff] }
 0x575   : > { %v17052_v63 = vpop.f32.mrf.mxu0  ;;  %v6124_v25 = vpop.xlane.xlu1 %6123  ;;  %v7350_v42 = vmul.f32 %v11435_v48, %v9548_v56  ;;  %v7437_v30 = vpack.c.bf16 %v7320_v17, %v7319_v54  ;;  %10478 = vmatmul.mubr.msk.bf16.gmra.mxu0 %vm3386_vm0, %v7436_v12  ;;  %v19424_v56 = vld [vmem:[#allocation44_spill] sm:$0xff]  ;;  %6234 = vadd.xlane.f32.xlu0 %v6233_v10  ;;  %v6326_v16 = vadd.f32 %v19427_v22, %v19426_v40  ;;  %v19429_v12 = vld [vmem:[#allocation79_spill] sm:$0xff] }
 0x576   : > { %v11441_v35 = vpop.eup %11440  ;;  %11456 = vrcp.f32 %v6124_v25  ;;  %v17058_v50 = vpop.f32.mrf.mxu1  ;;  %v7351_v25 = vmul.f32 %v11439_v28, %v9551_v32  ;;  %v19425_v48 = vld [vmem:[#allocation28_spill] sm:$0xff]  ;;  %v6329_v28 = vadd.f32 %v16787_v23, %v16758_v44 }
 0x577   : > { %v11443_v3 = vpop.eup %11442  ;;  %v6127_v57 = vpop.xlane.xlu0 %6126  ;;  %11458 = vrcp.f32 %v6031_v9  ;;  %v9445_v46 = vadd.f32 %v19425_v48, %v19424_v56  ;;  %10481 = vmatprep.mubr.msk.bf16.mxu0 %vm3386_vm0, %v7437_v30  ;;  %v7452_v9 = vpack.c.bf16 %v7350_v42, %v7349_v14  ;;  %v7322_v41 = vmul.f32 %v11441_v35, %v9448_v49  ;;  %6327 = vadd.xlane.f32.xlu1 %v6326_v16  ;;  %v19430_v42 = vld [vmem:[#allocation25_spill] sm:$0xff]  ;;  %v19431_v10 = vld [vmem:[#allocation96_spill] sm:$0xff]  ;;  %v19436_v48 = vld [vmem:[#allocation35_spill] sm:$0xff] }
 0x578   : > { %v17065_v15 = vpop.f32.mrf.mxu1  ;;  %v7352_v34 = vmul.f32 %v11443_v3, %v9554_v6  ;;  %v11445_v55 = vpop.eup %11444  ;;  %v19428_v6 = vld [vmem:[#allocation176_spill] sm:$0xff]  ;;  %v9557_v35 = vadd.f32 %v19431_v10, %v19430_v42  ;;  %v19433_v14 = vld [vmem:[#allocation77_spill] sm:$0xff]  ;;  %v19438_v42 = vld [vmem:[#allocation178_spill] sm:$0xff] }
 0x579   : > { %v17069_v43 = vpop.f32.mrf.mxu0  ;;  %v6034_v17 = vpop.xlane.xlu1 %6033  ;;  %v9560_v3 = vadd.f32 %v19429_v12, %v19428_v6  ;;  %10514 = vmatmul.mubr.msk.bf16.gmra.mxu1 %vm3386_vm0, %v7452_v9  ;;  %v7321_v24 = vmul.f32 %v11445_v55, %v9445_v46  ;;  %v19432_v49 = vld [vmem:[#allocation92_spill] sm:$0xff]  ;;  %6330 = vadd.xlane.f32.xlu0 %v6329_v28 }
 0x57a   : > { %11460 = vrcp.f32 %v6034_v17  ;;  %v7453_v54 = vpack.c.bf16 %v7352_v34, %v7351_v25  ;;  %v11447_v2 = vpop.eup %11446  ;;  %v17078_v31 = vpop.f32.mrf.mxu1  ;;  %v9451_v25 = vadd.f32 %v19433_v14, %v19432_v49  ;;  %v19434_v23 = vld [vmem:[#allocation72_spill] sm:$0xff]  ;;  %v19437_v17 = vld [vmem:[#allocation15_spill] sm:$0xff] }
 0x57b   : > { %v6037_v52 = vpop.xlane.xlu0 %6036  ;;  %v11449_v32 = vpop.eup %11448  ;;  %11462 = vrcp.f32 %v6127_v57  ;;  %v19435_v57 = vld [vmem:[#allocation84_spill] sm:$0xff]  ;;  %v9454_v40 = vadd.f32 %v19437_v17, %v19436_v48  ;;  %v7438_v55 = vpack.c.bf16 %v7322_v41, %v7321_v24  ;;  %v7354_v46 = vmul.f32 %v11447_v2, %v9560_v3  ;;  %v19440_v41 = vld [vmem:[#allocation91_spill] sm:$0xff]  ;;  %v19441_v2 = vld [vmem:[#allocation17_spill] sm:$0xff] }
 0x57c   : > { %v11451_v30 = vpop.eup %11450  ;;  %v17085_v34 = vpop.f32.mrf.mxu0  ;;  %10517 = vmatprep.mubr.msk.bf16.mxu1 %vm3386_vm0, %v7453_v54  ;;  %v6236_v56 = vadd.f32 %v19435_v57, %v19434_v23  ;;  %v7353_v54 = vmul.f32 %v11449_v32, %v9557_v35  ;;  %v19439_v10 = vld [vmem:[#allocation180_spill] sm:$0xff]  ;;  %v6332_v3 = vadd.f32 %v19441_v2, %v19440_v41 }
 0x57d   : > { %v6130_v44 = vpop.xlane.xlu1 %6129  ;;  %v17092_v9 = vpop.f32.mrf.mxu1  ;;  %10482 = vmatmul.mubr.msk.bf16.gmra.mxu0 %vm3386_vm0, %v7438_v55  ;;  %v7323_v6 = vmul.f32 %v11451_v30, %v9451_v25  ;;  %v9563_v49 = vadd.f32 %v19439_v10, %v19438_v42  ;;  %v19442_v24 = vld [vmem:[#allocation20_spill] sm:$0xff]  ;;  %v19445_v42 = vld [vmem:[#allocation146_spill] sm:$0xff] }
 0x57e   : > { %11464 = vrcp.f32 %v6130_v44  ;;  %v11453_v22 = vpop.eup %11452  ;;  %6237 = vadd.xlane.f32.xlu1 %v6236_v56  ;;  %v17097_v14 = vpop.f32.mrf.mxu0  ;;  %v19443_v23 = vld [vmem:[#allocation16_spill] sm:$0xff] }
 0x57f   : > { %v6133_v16 = vpop.xlane.xlu0 %6132  ;;  %11466 = vrcp.f32 %v6037_v52  ;;  %v7324_v28 = vmul.f32 %v11453_v22, %v9454_v40  ;;  %v11455_v12 = vpop.eup %11454  ;;  %v9566_v57 = vadd.f32 %v19443_v23, %v19442_v24  ;;  %v7454_v52 = vpack.c.bf16 %v7354_v46, %v7353_v54  ;;  %v19444_v22 = vld [vmem:[#allocation30_spill] sm:$0xff] }
 0x580   : > { %v17103_v30 = vpop.f32.mrf.mxu1  ;;  %v7355_v35 = vmul.f32 %v11455_v12, %v9563_v49  ;;  %v17107_v40 = vpop.f32.mrf.mxu0  ;;  %v9457_v46 = vadd.f32 %v19445_v42, %v19444_v22  ;;  %v9460_v54 = vadd.f32 %v16851_v20, %v16836_v39  ;;  %v9572_v39 = vadd.f32 %v16878_v45, %v16865_v51 }
 0x581   : > { %v6040_v44 = vpop.xlane.xlu1 %6039  ;;  %v7439_v56 = vpack.c.bf16 %v7324_v28, %v7323_v6  ;;  %10518 = vmatmul.mubr.msk.bf16.gmra.mxu1 %vm3386_vm0, %v7454_v52 }
 0x582   : > { %11468 = vrcp.f32 %v6040_v44  ;;  %6333 = vadd.xlane.f32.xlu1 %v6332_v3  ;;  %v17113_v10 = vpop.f32.mrf.mxu1  ;;  %v17116_v41 = vpop.f32.mrf.mxu0  ;;  %v9569_v3 = vadd.f32 %v16849_v4, %v16838_v59  ;;  %v9463_v59 = vadd.f32 %v16880_v29, %v16863_v60  ;;  %v9466_v4 = vadd.f32 %v16906_v47, %v16889_v0 }
 0x583   : > { %v11457_v48 = vpop.eup %11456  ;;  %v6043_v32 = vpop.xlane.xlu0 %6042  ;;  %11470 = vrcp.f32 %v6133_v16  ;;  %10485 = vmatprep.mubr.msk.bf16.mxu0 %vm3386_vm0, %v7439_v56  ;;  %v9575_v60 = vadd.f32 %v16904_v8, %v16891_v1  ;;  %v9578_v29 = vadd.f32 %v16924_v13, %v16915_v5  ;;  %v9469_v1 = vadd.f32 %v16926_v11, %v16913_v33 }
 0x584   : > { %v7356_v25 = vmul.f32 %v11457_v48, %v9566_v57  ;;  %v11459_v17 = vpop.eup %11458  ;;  %v17122_v57 = vpop.f32.mrf.mxu1  ;;  %v9472_v8 = vadd.f32 %v16950_v19, %v16938_v38  ;;  %v9581_v33 = vadd.f32 %v16948_v7, %v16940_v36  ;;  %v9584_v11 = vadd.f32 %v16975_v61, %v16962_v21 }
 0x585   : > { %v6136_v55 = vpop.xlane.xlu1 %6135  ;;  %v7325_v12 = vmul.f32 %v11459_v17, %v9457_v46  ;;  %v9603_v36 = vadd.f32 %v16977_v58, %v16964_v26  ;;  %v9606_v7 = vadd.f32 %v17005_v18, %v16986_v62  ;;  %v9715_v26 = vadd.f32 %v17003_v27, %v16988_v53  ;;  %v19446_v58 = vld [vmem:[#allocation36_spill] sm:$0xff]  ;;  %v19447_v62 = vld [vmem:[#allocation94_spill] sm:$0xff] }
 0x586   : > { %11472 = vrcp.f32 %v6136_v55  ;;  %v7455_v6 = vpack.c.bf16 %v7356_v25, %v7355_v35  ;;  %v17131_v17 = vpop.f32.mrf.mxu1  ;;  %v9718_v18 = vadd.f32 %v19447_v62, %v19446_v58  ;;  %v19448_v27 = vld [vmem:[#allocation154_spill] sm:$0xff] }
 0x587   : > { %v11461_v28 = vpop.eup %11460  ;;  %v6139_v16 = vpop.xlane.xlu0 %6138  ;;  %11474 = vrcp.f32 %v6043_v32 }
 0x588   : > { %10521 = vmatprep.mubr.msk.bf16.mxu1 %vm3386_vm0, %v7455_v6  ;;  %v7326_v49 = vmul.f32 %v11461_v28, %v9460_v54  ;;  %v11463_v44 = vpop.eup %11462  ;;  %v17125_v32 = vpop.f32.mrf.mxu0 }
 0x589   : > { %v6046_v2 = vpop.xlane.xlu1 %6045  ;;  %v7357_v52 = vmul.f32 %v11463_v44, %v9569_v3  ;;  %v17140_v28 = vpop.f32.mrf.mxu1 }
 0x58a   : > { %11476 = vrcp.f32 %v6046_v2  ;;  %v7440_v20 = vpack.c.bf16 %v7326_v49, %v7325_v12  ;;  %v17134_v46 = vpop.f32.mrf.mxu0 }
 0x58b   : > { %v11465_v24 = vpop.eup %11464  ;;  %v6145_v23 = vpop.xlane.xlu0 %6144  ;;  %11478 = vrcp.f32 %v6139_v16 }
 0x58c   : > { %10486 = vmatmul.mubr.msk.bf16.gmra.mxu0 %vm3386_vm0, %v7440_v20  ;;  %v7358_v56 = vmul.f32 %v11465_v24, %v9572_v39  ;;  %v11467_v48 = vpop.eup %11466  ;;  %v17143_v44 = vpop.f32.mrf.mxu0 }
 0x58d   : > { %v6142_v35 = vpop.xlane.xlu1 %6141  ;;  %v7327_v55 = vmul.f32 %v11467_v48, %v9463_v59  ;;  %v17151_v20 = vpop.f32.mrf.mxu1 }
 0x58e   : > { %11480 = vrcp.f32 %v6142_v35  ;;  %v7456_v51 = vpack.c.bf16 %v7358_v56, %v7357_v52  ;;  %v17149_v3 = vpop.f32.mrf.mxu0 }
 0x58f   : > { %v11469_v45 = vpop.eup %11468  ;;  %v6241_v25 = vpop.xlane.xlu0 %6240  ;;  %11482 = vrcp.f32 %v6145_v23 }
 0x590   : > { %10522 = vmatmul.mubr.msk.bf16.gmra.mxu1 %vm3386_vm0, %v7456_v51  ;;  %v7328_v22 = vmul.f32 %v11469_v45, %v9466_v4  ;;  %v11471_v42 = vpop.eup %11470  ;;  %v17158_v38 = vpop.f32.mrf.mxu1 }
 0x591   : > { %v6148_v54 = vpop.xlane.xlu1 %6147  ;;  %v7359_v16 = vmul.f32 %v11471_v42, %v9575_v60  ;;  %v17160_v35 = vpop.f32.mrf.mxu0 }
 0x592   : > { %11484 = vrcp.f32 %v6148_v54  ;;  %v7441_v0 = vpack.c.bf16 %v7328_v22, %v7327_v55  ;;  %v17167_v21 = vpop.f32.mrf.mxu1 }
 0x593   : > { %v11473_v47 = vpop.eup %11472  ;;  %v6151_v6 = vpop.xlane.xlu0 %6150  ;;  %11486 = vrcp.f32 %v6241_v25 }
 0x594   : > { %10489 = vmatprep.mubr.msk.bf16.mxu0 %vm3386_vm0, %v7441_v0  ;;  %v7360_v12 = vmul.f32 %v11473_v47, %v9578_v29  ;;  %v11475_v49 = vpop.eup %11474  ;;  %v17169_v22 = vpop.f32.mrf.mxu0 }
 0x595   : > { %v6244_v2 = vpop.xlane.xlu1 %6243  ;;  %v7329_v24 = vmul.f32 %v11475_v49, %v9469_v1  ;;  %v17176_v47 = vpop.f32.mrf.mxu1 }
 0x596   : > { %11488 = vrcp.f32 %v6244_v2  ;;  %v7457_v5 = vpack.c.bf16 %v7360_v12, %v7359_v16  ;;  %v17178_v12 = vpop.f32.mrf.mxu0 }
 0x597   : > { %v11477_v13 = vpop.eup %11476  ;;  %v6247_v39 = vpop.xlane.xlu0 %6246  ;;  %11490 = vrcp.f32 %v6151_v6 }
 0x598   : > { %10525 = vmatprep.mubr.msk.bf16.mxu1 %vm3386_vm0, %v7457_v5  ;;  %v7330_v23 = vmul.f32 %v11477_v13, %v9472_v8  ;;  %v11479_v52 = vpop.eup %11478  ;;  %v17181_v5 = vpop.f32.mrf.mxu0  ;;  %v19449_v13 = vld [vmem:[#allocation153_spill] sm:$0xff] }
 0x599   : > { %v6154_v56 = vpop.xlane.xlu1 %6153  ;;  %v7361_v4 = vmul.f32 %v11479_v52, %v9581_v33  ;;  %v17187_v52 = vpop.f32.mrf.mxu1 }
 0x59a   : > { %11492 = vrcp.f32 %v6154_v56  ;;  %v7442_v19 = vpack.c.bf16 %v7330_v23, %v7329_v24  ;;  %v19450_v24 = vld [vmem:[#allocation159_spill] sm:$0xff] }
 0x59b   : > { %v11481_v48 = vpop.eup %11480  ;;  %v6157_v59 = vpop.xlane.xlu0 %6156  ;;  %11494 = vrcp.f32 %v6247_v39  ;;  %v9609_v39 = vadd.f32 %v19449_v13, %v19448_v27  ;;  %v9612_v23 = vadd.f32 %v17052_v63, %v19450_v24 }
 0x59c   : > { %10490 = vmatmul.mubr.msk.bf16.gmra.mxu0 %vm3386_vm0, %v7442_v19  ;;  %v7362_v51 = vmul.f32 %v11481_v48, %v9584_v11  ;;  %v11483_v45 = vpop.eup %11482 }
 0x59d   : > { %v6250_v25 = vpop.xlane.xlu1 %6249  ;;  %v7363_v54 = vmul.f32 %v11483_v45, %v9603_v36  ;;  %v9724_v36 = vadd.f32 %v17065_v15, %v17058_v50  ;;  %v9618_v50 = vadd.f32 %v17107_v40, %v17097_v14 }
 0x59e   : > { %11496 = vrcp.f32 %v6250_v25  ;;  %v7458_v61 = vpack.c.bf16 %v7362_v51, %v7361_v4  ;;  %v17192_v51 = vpop.f32.mrf.mxu0  ;;  %v19451_v25 = vld [vmem:[#allocation26_spill] sm:$0xff] }
 0x59f   : > { %v11485_v55 = vpop.eup %11484  ;;  %v6253_v42 = vpop.xlane.xlu0 %6252  ;;  %11498 = vrcp.f32 %v6157_v59  ;;  %v9721_v63 = vadd.f32 %v17047_v37, %v19451_v25  ;;  %v9615_v37 = vadd.f32 %v17085_v34, %v17069_v43  ;;  %v9727_v43 = vadd.f32 %v17092_v9, %v17078_v31 }
 0x5a0   : > { %10526 = vmatmul.mubr.msk.bf16.gmra.mxu1 %vm3386_vm0, %v7458_v61  ;;  %v7364_v60 = vmul.f32 %v11485_v55, %v9606_v7  ;;  %v11487_v29 = vpop.eup %11486  ;;  %v17189_v59 = vpop.f32.mrf.mxu1  ;;  %v9730_v34 = vadd.f32 %v17113_v10, %v17103_v30  ;;  %v9621_v31 = vadd.f32 %v17125_v32, %v17116_v41  ;;  %v9624_v9 = vadd.f32 %v17143_v44, %v17134_v46 }
 0x5a1   : > { %v6160_v0 = vpop.xlane.xlu1 %6159  ;;  %v7395_v2 = vmul.f32 %v11487_v29, %v9715_v26  ;;  %v9733_v41 = vadd.f32 %v17131_v17, %v17122_v57  ;;  %v9736_v32 = vadd.f32 %v17151_v20, %v17140_v28  ;;  %v9627_v57 = vadd.f32 %v17160_v35, %v17149_v3 }
 0x5a2   : > { %11500 = vrcp.f32 %v6160_v0  ;;  %v7459_v6 = vpack.c.bf16 %v7364_v60, %v7363_v54  ;;  %v17198_v60 = vpop.f32.mrf.mxu1  ;;  %v17201_v0 = vpop.f32.mrf.mxu0  ;;  %v9630_v17 = vadd.f32 %v17178_v12, %v17169_v22  ;;  %v9739_v3 = vadd.f32 %v17167_v21, %v17158_v38 }
 0x5a3   : > { %v11489_v16 = vpop.eup %11488  ;;  %v6163_v49 = vpop.xlane.xlu0 %6162  ;;  %11502 = vrcp.f32 %v6253_v42  ;;  %v9742_v35 = vadd.f32 %v17187_v52, %v17176_v47  ;;  %v9633_v38 = vadd.f32 %v17192_v51, %v17181_v5  ;;  %v9745_v5 = vadd.f32 %v17198_v60, %v17189_v59 }
 0x5a4   : > { %10533 = vmatprep.mubr.msk.bf16.mxu0 %vm3386_vm0, %v7459_v6  ;;  %v7396_v1 = vmul.f32 %v11489_v16, %v9718_v18  ;;  %v11491_v8 = vpop.eup %11490  ;;  %v17207_v18 = vpop.f32.mrf.mxu1 }
 0x5a5   : > { %v6256_v53 = vpop.xlane.xlu1 %6255  ;;  %v7365_v19 = vmul.f32 %v11491_v8, %v9609_v39 }
 0x5a6   : > { %11504 = vrcp.f32 %v6256_v53  ;;  %v7475_v56 = vpack.c.bf16 %v7396_v1, %v7395_v2  ;;  %v17210_v2 = vpop.f32.mrf.mxu0  ;;  %v17218_v27 = vpop.f32.mrf.mxu1 }
 0x5a7   : > { %v11493_v33 = vpop.eup %11492  ;;  %v6259_v11 = vpop.xlane.xlu0 %6258  ;;  %11506 = vrcp.f32 %v6163_v49  ;;  %v9636_v21 = vadd.f32 %v17210_v2, %v17201_v0  ;;  %v9748_v51 = vadd.f32 %v17218_v27, %v17207_v18 }
 0x5a8   : > { %v7366_v48 = vmul.f32 %v11493_v33, %v9612_v23  ;;  %10569 = vmatprep.mubr.msk.bf16.mxu1 %vm3386_vm0, %v7475_v56  ;;  %v11495_v4 = vpop.eup %11494  ;;  %v17216_v8 = vpop.f32.mrf.mxu0 }
 0x5a9   : > { %v6166_v45 = vpop.xlane.xlu1 %6165  ;;  %v7397_v42 = vmul.f32 %v11495_v4, %v9721_v63  ;;  %v17225_v30 = vpop.f32.mrf.mxu1 }
 0x5aa   : > { %v7460_v7 = vpack.c.bf16 %v7366_v48, %v7365_v19  ;;  %11508 = vrcp.f32 %v6166_v45  ;;  %v17227_v33 = vpop.f32.mrf.mxu0 }
 0x5ab   : > { %v11497_v61 = vpop.eup %11496  ;;  %v6169_v55 = vpop.xlane.xlu0 %6168  ;;  %11510 = vrcp.f32 %v6259_v11 }
 0x5ac   : > { %v7398_v54 = vmul.f32 %v11497_v61, %v9724_v36  ;;  %10534 = vmatmul.mubr.msk.bf16.vlgmr.msra.gmra.mxu0 %vm3386_vm0, %v7460_v7  ;;  %v11499_v29 = vpop.eup %11498  ;;  %v17234_v46 = vpop.f32.mrf.mxu1 }
 0x5ad   : > { %v6262_v26 = vpop.xlane.xlu1 %6261  ;;  %v7367_v6 = vmul.f32 %v11499_v29, %v9615_v37  ;;  %v17236_v63 = vpop.f32.mrf.mxu0 }
 0x5ae   : > { %v7476_v15 = vpack.c.bf16 %v7398_v54, %v7397_v42  ;;  %11512 = vrcp.f32 %v6262_v26  ;;  %v17243_v28 = vpop.f32.mrf.mxu1 }
 0x5af   : > { %v11501_v58 = vpop.eup %11500  ;;  %v6265_v62 = vpop.xlane.xlu0 %6264  ;;  %11514 = vrcp.f32 %v6169_v55 }
 0x5b0   : > { %10570 = vmatmul.mubr.msk.bf16.vlgmr.msra.gmra.mxu1 %vm3386_vm0, %v7476_v15  ;;  %v7368_v16 = vmul.f32 %v11501_v58, %v9618_v50  ;;  %v11503_v49 = vpop.eup %11502  ;;  %v9641_v29 = vpop.f32.mrf.mxu0 }
 0x5b1   : > { %v6172_v1 = vpop.xlane.xlu1 %6171  ;;  %v7399_v13 = vmul.f32 %v11503_v49, %v9727_v43  ;;  %v9753_v22 = vpop.f32.mrf.mxu1  ;;  %v9642_v59 = vadd.f32 %v9641_v29, %v17236_v63 }
 0x5b2   : > { %11516 = vrcp.f32 %v6172_v1  ;;  %v7461_v14 = vpack.c.bf16 %v7368_v16, %v7367_v6  ;;  %v17246_v58 = vpop.f32.mrf.mxu0 }
 0x5b3   : > { %v11505_v40 = vpop.eup %11504  ;;  %v6175_v53 = vpop.xlane.xlu0 %6174  ;;  %11518 = vrcp.f32 %v6265_v62 }
 0x5b4   : > { %10537 = vmatprep.mubr.msk.bf16.mxu0 %vm3386_vm0, %v7461_v14  ;;  %v7400_v39 = vmul.f32 %v11505_v40, %v9730_v34  ;;  %v11507_v24 = vpop.eup %11506  ;;  %v17252_v49 = vpop.f32.mrf.mxu1 }
 0x5b5   : > { %v6268_v23 = vpop.xlane.xlu1 %6267  ;;  %v7369_v19 = vmul.f32 %v11507_v24, %v9621_v31  ;;  %v9644_v14 = vpop.f32.mrf.mxu0 }
 0x5b6   : > { %11520 = vrcp.f32 %v6268_v23  ;;  %v7477_v10 = vpack.c.bf16 %v7400_v39, %v7399_v13  ;;  %v17259_v13 = vpop.f32.mrf.mxu1 }
 0x5b7   : > { %v11509_v56 = vpop.eup %11508  ;;  %v6271_v11 = vpop.xlane.xlu0 %6270  ;;  %11522 = vrcp.f32 %v6175_v53 }
 0x5b8   : > { %10573 = vmatprep.mubr.msk.bf16.mxu1 %vm3386_vm0, %v7477_v10  ;;  %v7370_v48 = vmul.f32 %v11509_v56, %v9624_v9  ;;  %v11511_v4 = vpop.eup %11510  ;;  %v9646_v31 = vpop.f32.mrf.mxu0 }
 0x5b9   : > { %v6178_v45 = vpop.xlane.xlu1 %6177  ;;  %v7401_v7 = vmul.f32 %v11511_v4, %v9733_v41  ;;  %v9758_v56 = vpop.f32.mrf.mxu1  ;;  %v9639_v41 = vadd.f32 %v17227_v33, %v17216_v8  ;;  %v9754_v8 = vadd.f32 %v9753_v22, %v17243_v28 }
 0x5ba   : > { %11524 = vrcp.f32 %v6178_v45  ;;  %v7462_v44 = vpack.c.bf16 %v7370_v48, %v7369_v19  ;;  %v9647_v4 = vpop.f32.mrf.mxu0 }
 0x5bb   : > { %v11513_v25 = vpop.eup %11512  ;;  %v6181_v36 = vpop.xlane.xlu0 %6180  ;;  %11526 = vrcp.f32 %v6271_v11 }
 0x5bc   : > { %10538 = vmatmul.mubr.msk.bf16.gmra.mxu0 %vm3386_vm0, %v7462_v44  ;;  %v7402_v61 = vmul.f32 %v11513_v25, %v9736_v32  ;;  %v11515_v55 = vpop.eup %11514  ;;  %v9649_v27 = vpop.f32.mrf.mxu0 }
 0x5bd   : > { %v6274_v42 = vpop.xlane.xlu1 %6273  ;;  %v7371_v37 = vmul.f32 %v11515_v55, %v9627_v57  ;;  %v9759_v44 = vpop.f32.mrf.mxu1  ;;  %v9751_v55 = vadd.f32 %v17234_v46, %v17225_v30 }
 0x5be   : > { %11528 = vrcp.f32 %v6274_v42  ;;  %v7478_v20 = vpack.c.bf16 %v7402_v61, %v7401_v7  ;;  %v9650_v57 = vpop.f32.mrf.mxu0 }
 0x5bf   : > { %v11517_v54 = vpop.eup %11516  ;;  %v6277_v26 = vpop.xlane.xlu0 %6276  ;;  %11530 = vrcp.f32 %v6181_v36 }
 0x5c0   : > { %10574 = vmatmul.mubr.msk.bf16.gmra.mxu1 %vm3386_vm0, %v7478_v20  ;;  %v7372_v50 = vmul.f32 %v11517_v54, %v9630_v17  ;;  %v11519_v15 = vpop.eup %11518  ;;  %v9761_v33 = vpop.f32.mrf.mxu1 }
 0x5c1   : > { %v6184_v62 = vpop.xlane.xlu1 %6183  ;;  %v7403_v1 = vmul.f32 %v11519_v15, %v9739_v3  ;;  %v9652_v28 = vpop.f32.mrf.mxu0 }
 0x5c2   : > { %11532 = vrcp.f32 %v6184_v62  ;;  %v7463_v12 = vpack.c.bf16 %v7372_v50, %v7371_v37  ;;  %v9645_v37 = vadd.f32 %v9644_v14, %v17246_v58  ;;  %v9648_v50 = vadd.f32 %v9647_v4, %v9646_v31  ;;  %v9762_v15 = vpop.f32.mrf.mxu1 }
 0x5c3   : > { %v11521_v6 = vpop.eup %11520  ;;  %v6187_v16 = vpop.xlane.xlu0 %6186  ;;  %11534 = vrcp.f32 %v6277_v26 }
 0x5c4   : > { %10541 = vmatprep.mubr.msk.bf16.mxu0 %vm3386_vm0, %v7463_v12  ;;  %v7404_v43 = vmul.f32 %v11521_v6, %v9742_v35  ;;  %v11523_v34 = vpop.eup %11522  ;;  %v9757_v6 = vadd.f32 %v17259_v13, %v17252_v49 }
 0x5c5   : > { %v6280_v40 = vpop.xlane.xlu1 %6279  ;;  %v7373_v39 = vmul.f32 %v11523_v34, %v9633_v38  ;;  %v9653_v34 = vpop.f32.mrf.mxu0 }
 0x5c6   : > { %11536 = vrcp.f32 %v6280_v40  ;;  %v7479_v47 = vpack.c.bf16 %v7404_v43, %v7403_v1  ;;  %v9764_v1 = vpop.f32.mrf.mxu1 }
 0x5c7   : > { %v11525_v52 = vpop.eup %11524  ;;  %v6283_v53 = vpop.xlane.xlu0 %6282  ;;  %11538 = vrcp.f32 %v6187_v16  ;;  %v9760_v16 = vadd.f32 %v9759_v44, %v9758_v56 }
 0x5c8   : > { %10577 = vmatprep.mubr.msk.bf16.mxu1 %vm3386_vm0, %v7479_v47  ;;  %v7374_v24 = vmul.f32 %v11525_v52, %v9636_v21  ;;  %v11527_v23 = vpop.eup %11526  ;;  %v9651_v52 = vadd.f32 %v9650_v57, %v9649_v27 }
 0x5c9   : > { %v6190_v9 = vpop.xlane.xlu1 %6189  ;;  %v7405_v11 = vmul.f32 %v11527_v23, %v9745_v5 }
 0x5ca   : > { %11540 = vrcp.f32 %v6190_v9  ;;  %v7464_v0 = vpack.c.bf16 %v7374_v24, %v7373_v39  ;;  %v9765_v39 = vpop.f32.mrf.mxu1 }
 0x5cb   : > { %v11529_v2 = vpop.eup %11528  ;;  %v6193_v10 = vpop.xlane.xlu0 %6192  ;;  %11542 = vrcp.f32 %v6283_v53  ;;  %v9654_v53 = vadd.f32 %v9653_v34, %v9652_v28  ;;  %v9766_v56 = vadd.f32 %v9765_v39, %v9764_v1 }
 0x5cc   : > { %10542 = vmatmul.mubr.msk.bf16.gmra.mxu0 %vm3386_vm0, %v7464_v0  ;;  %v7406_v19 = vmul.f32 %v11529_v2, %v9748_v51  ;;  %v11531_v48 = vpop.eup %11530  ;;  %v9763_v2 = vadd.f32 %v9762_v15, %v9761_v33 }
 0x5cd   : > { %v6286_v45 = vpop.xlane.xlu1 %6285  ;;  %v7375_v25 = vmul.f32 %v11531_v48, %v9639_v41 }
 0x5ce   : > { %11544 = vrcp.f32 %v6286_v45  ;;  %v7480_v60 = vpack.c.bf16 %v7406_v19, %v7405_v11 }
 0x5cf   : > { %v11533_v18 = vpop.eup %11532  ;;  %v6289_v32 = vpop.xlane.xlu0 %6288  ;;  %11546 = vrcp.f32 %v6193_v10 }
 0x5d0   : > { %10578 = vmatmul.mubr.msk.bf16.gmra.mxu1 %vm3386_vm0, %v7480_v60  ;;  %v7376_v36 = vmul.f32 %v11533_v18, %v9642_v59  ;;  %v11535_v7 = vpop.eup %11534 }
 0x5d1   : > { %v6196_v61 = vpop.xlane.xlu1 %6195  ;;  %v7407_v20 = vmul.f32 %v11535_v7, %v9751_v55  ;;  %v9655_v13 = vpop.f32.mrf.mxu0 }
 0x5d2   : > { %11548 = vrcp.f32 %v6196_v61  ;;  %v7465_v63 = vpack.c.bf16 %v7376_v36, %v7375_v25 }
 0x5d3   : > { %v11537_v42 = vpop.eup %11536  ;;  %v6199_v17 = vpop.xlane.xlu0 %6198  ;;  %11550 = vrcp.f32 %v6289_v32 }
 0x5d4   : > { %10545 = vmatprep.mubr.msk.bf16.mxu0 %vm3386_vm0, %v7465_v63  ;;  %v7408_v54 = vmul.f32 %v11537_v42, %v9754_v8  ;;  %v11539_v29 = vpop.eup %11538  ;;  %v9656_v51 = vpop.f32.mrf.mxu0 }
 0x5d5   : > { %v6292_v26 = vpop.xlane.xlu1 %6291  ;;  %v7377_v3 = vmul.f32 %v11539_v29, %v9645_v37  ;;  %v9657_v41 = vadd.f32 %v9656_v51, %v9655_v13 }
 0x5d6   : > { %11552 = vrcp.f32 %v6292_v26  ;;  %v7481_v30 = vpack.c.bf16 %v7408_v54, %v7407_v20  ;;  %v9658_v19 = vpop.f32.mrf.mxu0  ;;  %v9767_v48 = vpop.f32.mrf.mxu1 }
 0x5d7   : > { %v11541_v46 = vpop.eup %11540  ;;  %v6295_v62 = vpop.xlane.xlu0 %6294  ;;  %11554 = vrcp.f32 %v6199_v17 }
 0x5d8   : > { %10581 = vmatprep.mubr.msk.bf16.mxu1 %vm3386_vm0, %v7481_v30  ;;  %v7378_v35 = vmul.f32 %v11541_v46, %v9648_v50  ;;  %v11543_v22 = vpop.eup %11542  ;;  %v9768_v18 = vpop.f32.mrf.mxu1 }
 0x5d9   : > { %v6202_v12 = vpop.xlane.xlu1 %6201  ;;  %v7409_v40 = vmul.f32 %v11543_v22, %v9757_v6  ;;  %v9659_v27 = vpop.f32.mrf.mxu0  ;;  %v9769_v8 = vadd.f32 %v9768_v18, %v9767_v48 }
 0x5da   : > { %11556 = vrcp.f32 %v6202_v12  ;;  %v7466_v58 = vpack.c.bf16 %v7378_v35, %v7377_v3  ;;  %v9660_v44 = vadd.f32 %v9659_v27, %v9658_v19  ;;  %v9770_v61 = vpop.f32.mrf.mxu1 }
 0x5db   : > { %v11545_v43 = vpop.eup %11544  ;;  %v6205_v14 = vpop.xlane.xlu0 %6204  ;;  %11558 = vrcp.f32 %v6295_v62 }
 0x5dc   : > { %10546 = vmatmul.mubr.msk.bf16.gmra.mxu0 %vm3386_vm0, %v7466_v58  ;;  %v7410_v38 = vmul.f32 %v11545_v43, %v9760_v16  ;;  %v11547_v21 = vpop.eup %11546  ;;  %v9661_v7 = vpop.f32.mrf.mxu0 }
 0x5dd   : > { %v6298_v47 = vpop.xlane.xlu1 %6297  ;;  %v7379_v31 = vmul.f32 %v11547_v21, %v9651_v52  ;;  %v9771_v57 = vpop.f32.mrf.mxu1 }
 0x5de   : > { %11560 = vrcp.f32 %v6298_v47  ;;  %v7482_v24 = vpack.c.bf16 %v7410_v38, %v7409_v40  ;;  %v9662_v17 = vpop.f32.mrf.mxu0  ;;  %v9772_v54 = vadd.f32 %v9771_v57, %v9770_v61 }
 0x5df   : > { %v11549_v49 = vpop.eup %11548  ;;  %v6301_v23 = vpop.xlane.xlu0 %6300  ;;  %11562 = vrcp.f32 %v6205_v14  ;;  %v9663_v46 = vadd.f32 %v9662_v17, %v9661_v7 }
 0x5e0   : > { %v7380_v9 = vmul.f32 %v11549_v49, %v9654_v53  ;;  %10582 = vmatmul.mubr.msk.bf16.gmra.mxu1 %vm3386_vm0, %v7482_v24  ;;  %v11551_v5 = vpop.eup %11550  ;;  %v9664_v37 = vpop.f32.mrf.mxu0 }
 0x5e1   : > { %v6208_v0 = vpop.xlane.xlu1 %6207  ;;  %v7411_v4 = vmul.f32 %v11551_v5, %v9763_v2  ;;  %v9773_v50 = vpop.f32.mrf.mxu1 }
 0x5e2   : > { %v7467_v10 = vpack.c.bf16 %v7380_v9, %v7379_v31  ;;  %11564 = vrcp.f32 %v6208_v0  ;;  %v9665_v35 = vpop.f32.mrf.mxu0 }
 0x5e3   : > { %v11553_v11 = vpop.eup %11552  ;;  %v6211_v59 = vpop.xlane.xlu0 %6210  ;;  %11566 = vrcp.f32 %v6301_v23  ;;  %v9666_v12 = vadd.f32 %v9665_v35, %v9664_v37 }
 0x5e4   : > { %v7412_v45 = vmul.f32 %v11553_v11, %v9766_v56  ;;  %10549 = vmatprep.mubr.msk.bf16.mxu0 %vm3386_vm0, %v7467_v10  ;;  %v11555_v60 = vpop.eup %11554  ;;  %v9774_v3 = vpop.f32.mrf.mxu1 }
 0x5e5   : > { %v6304_v25 = vpop.xlane.xlu1 %6303  ;;  %v7381_v55 = vmul.f32 %v11555_v60, %v9657_v41  ;;  %v9667_v1 = vpop.f32.mrf.mxu0  ;;  %v9775_v40 = vadd.f32 %v9774_v3, %v9773_v50 }
 0x5e6   : > { %v7483_v32 = vpack.c.bf16 %v7412_v45, %v7411_v4  ;;  %11568 = vrcp.f32 %v6304_v25  ;;  %v9776_v58 = vpop.f32.mrf.mxu1 }
 0x5e7   : > { %v11557_v36 = vpop.eup %11556  ;;  %v6307_v63 = vpop.xlane.xlu0 %6306  ;;  %11570 = vrcp.f32 %v6211_v59 }
 0x5e8   : > { %v7382_v33 = vmul.f32 %v11557_v36, %v9660_v44  ;;  %10585 = vmatprep.mubr.msk.bf16.mxu1 %vm3386_vm0, %v7483_v32  ;;  %v11559_v42 = vpop.eup %11558  ;;  %v9777_v38 = vpop.f32.mrf.mxu1 }
 0x5e9   : > { %v6214_v29 = vpop.xlane.xlu1 %6213  ;;  %v7413_v15 = vmul.f32 %v11559_v42, %v9769_v8  ;;  %v9668_v21 = vpop.f32.mrf.mxu0  ;;  %v9778_v53 = vadd.f32 %v9777_v38, %v9776_v58 }
 0x5ea   : > { %v7468_v20 = vpack.c.bf16 %v7382_v33, %v7381_v55  ;;  %11572 = vrcp.f32 %v6214_v29  ;;  %v9779_v49 = vpop.f32.mrf.mxu1  ;;  %v9669_v5 = vadd.f32 %v9668_v21, %v9667_v1 }
 0x5eb   : > { %v11561_v26 = vpop.eup %11560  ;;  %v6217_v28 = vpop.xlane.xlu0 %6216  ;;  %11574 = vrcp.f32 %v6307_v63 }
 0x5ec   : > { %v7414_v30 = vmul.f32 %v11561_v26, %v9772_v54  ;;  %10550 = vmatmul.mubr.msk.bf16.gmra.mxu0 %vm3386_vm0, %v7468_v20  ;;  %v11563_v62 = vpop.eup %11562  ;;  %v9670_v24 = vpop.f32.mrf.mxu0 }
 0x5ed   : > { %v6310_v6 = vpop.xlane.xlu1 %6309  ;;  %v7383_v43 = vmul.f32 %v11563_v62, %v9663_v46  ;;  %v9780_v51 = vpop.f32.mrf.mxu1 }
 0x5ee   : > { %v7484_v22 = vpack.c.bf16 %v7414_v30, %v7413_v15  ;;  %11576 = vrcp.f32 %v6310_v6  ;;  %v9671_v0 = vpop.f32.mrf.mxu0  ;;  %v9781_v59 = vadd.f32 %v9780_v51, %v9779_v49 }
 0x5ef   : > { %v11565_v16 = vpop.eup %11564  ;;  %v6313_v14 = vpop.xlane.xlu0 %6312  ;;  %11578 = vrcp.f32 %v6217_v28  ;;  %v9672_v10 = vadd.f32 %v9671_v0, %v9670_v24 }
 0x5f0   : > { %v7384_v34 = vmul.f32 %v11565_v16, %v9666_v12  ;;  %10586 = vmatmul.mubr.msk.bf16.gmra.mxu1 %vm3386_vm0, %v7484_v22  ;;  %v11567_v47 = vpop.eup %11566  ;;  %v9673_v19 = vpop.f32.mrf.mxu0 }
 0x5f1   : > { %v6220_v39 = vpop.xlane.xlu1 %6219  ;;  %v7415_v31 = vmul.f32 %v11567_v47, %v9775_v40  ;;  %v9782_v48 = vpop.f32.mrf.mxu1 }
 0x5f2   : > { %v7469_v52 = vpack.c.bf16 %v7384_v34, %v7383_v43  ;;  %11580 = vrcp.f32 %v6220_v39  ;;  %v9674_v27 = vpop.f32.mrf.mxu0 }
 0x5f3   : > { %v11569_v13 = vpop.eup %11568  ;;  %v6223_v23 = vpop.xlane.xlu0 %6222  ;;  %11582 = vrcp.f32 %v6313_v14  ;;  %v9675_v42 = vadd.f32 %v9674_v27, %v9673_v19 }
 0x5f4   : > { %10553 = vmatprep.mubr.msk.bf16.mxu0 %vm3386_vm0, %v7469_v52  ;;  %v7416_v9 = vmul.f32 %v11569_v13, %v9778_v53  ;;  %v11571_v2 = vpop.eup %11570  ;;  %v9783_v18 = vpop.f32.mrf.mxu1 }
 0x5f5   : > { %v6316_v56 = vpop.xlane.xlu1 %6315  ;;  %v7385_v41 = vmul.f32 %v11571_v2, %v9669_v5  ;;  %v9784_v44 = vadd.f32 %v9783_v18, %v9782_v48  ;;  %v9676_v7 = vpop.f32.mrf.mxu0 }
 0x5f6   : > { %v7485_v11 = vpack.c.bf16 %v7416_v9, %v7415_v31  ;;  %11584 = vrcp.f32 %v6316_v56  ;;  %v9785_v55 = vpop.f32.mrf.mxu1 }
 0x5f7   : > { %v11573_v4 = vpop.eup %11572  ;;  %v6319_v45 = vpop.xlane.xlu0 %6318  ;;  %11586 = vrcp.f32 %v6223_v23 }
 0x5f8   : > { %v7386_v60 = vmul.f32 %v11573_v4, %v9672_v10  ;;  %10589 = vmatprep.mubr.msk.bf16.mxu1 %vm3386_vm0, %v7485_v11  ;;  %v11575_v32 = vpop.eup %11574  ;;  %v9677_v57 = vpop.f32.mrf.mxu0 }
 0x5f9   : > { %v6226_v25 = vpop.xlane.xlu1 %6225  ;;  %v7417_v33 = vmul.f32 %v11575_v32, %v9781_v59  ;;  %v9786_v20 = vpop.f32.mrf.mxu1  ;;  %v9678_v54 = vadd.f32 %v9677_v57, %v9676_v7 }
 0x5fa   : > { %v7470_v36 = vpack.c.bf16 %v7386_v60, %v7385_v41  ;;  %11588 = vrcp.f32 %v6226_v25  ;;  %v9679_v37 = vpop.f32.mrf.mxu0  ;;  %v9787_v28 = vadd.f32 %v9786_v20, %v9785_v55 }
 0x5fb   : > { %v11577_v61 = vpop.eup %11576  ;;  %v6229_v8 = vpop.xlane.xlu0 %6228  ;;  %11590 = vrcp.f32 %v6319_v45 }
 0x5fc   : > { %v7418_v63 = vmul.f32 %v11577_v61, %v9784_v44  ;;  %10554 = vmatmul.mubr.msk.bf16.gmra.mxu0 %vm3386_vm0, %v7470_v36  ;;  %v11579_v17 = vpop.eup %11578  ;;  %v9788_v15 = vpop.f32.mrf.mxu1 }
 0x5fd   : > { %v6322_v29 = vpop.xlane.xlu1 %6321  ;;  %v7387_v46 = vmul.f32 %v11579_v17, %v9675_v42  ;;  %v9680_v3 = vpop.f32.mrf.mxu0 }
 0x5fe   : > { %v7486_v26 = vpack.c.bf16 %v7418_v63, %v7417_v33  ;;  %11592 = vrcp.f32 %v6322_v29  ;;  %v9789_v22 = vpop.f32.mrf.mxu1  ;;  %v9681_v38 = vadd.f32 %v9680_v3, %v9679_v37 }
 0x5ff   : > { %v11581_v50 = vpop.eup %11580  ;;  %v6325_v30 = vpop.xlane.xlu0 %6324  ;;  %11594 = vrcp.f32 %v6229_v8  ;;  %v9790_v16 = vadd.f32 %v9789_v22, %v9788_v15 }
 0x600   : > { %v7388_v62 = vmul.f32 %v11581_v50, %v9678_v54  ;;  %10590 = vmatmul.mubr.msk.bf16.gmra.mxu1 %vm3386_vm0, %v7486_v26  ;;  %v11583_v35 = vpop.eup %11582  ;;  %v9682_v1 = vpop.f32.mrf.mxu0 }
 0x601   : > { %v6232_v12 = vpop.xlane.xlu1 %6231  ;;  %v9791_v43 = vpop.f32.mrf.mxu1  ;;  %v7419_v14 = vmul.f32 %v11583_v35, %v9787_v28 }
 0x602   : > { %v7471_v6 = vpack.c.bf16 %v7388_v62, %v7387_v46  ;;  %11596 = vrcp.f32 %v6232_v12  ;;  %v9683_v21 = vpop.f32.mrf.mxu0 }
 0x603   : > { %v11585_v58 = vpop.eup %11584  ;;  %v6235_v34 = vpop.xlane.xlu0 %6234  ;;  %11598 = vrcp.f32 %v6325_v30  ;;  %v9684_v53 = vadd.f32 %v9683_v21, %v9682_v1 }
 0x604   : > { %v7420_v40 = vmul.f32 %v11585_v58, %v9790_v16  ;;  %10557 = vmatprep.mubr.msk.bf16.mxu0 %vm3386_vm0, %v7471_v6  ;;  %v11587_v47 = vpop.eup %11586  ;;  %v9792_v52 = vpop.f32.mrf.mxu1 }
 0x605   : > { %v6328_v39 = vpop.xlane.xlu1 %6327  ;;  %v9685_v49 = vpop.f32.mrf.mxu0  ;;  %v7389_v31 = vmul.f32 %v11587_v47, %v9681_v38  ;;  %v9793_v9 = vadd.f32 %v9792_v52, %v9791_v43 }
 0x606   : > { %v7487_v24 = vpack.c.bf16 %v7420_v40, %v7419_v14  ;;  %11600 = vrcp.f32 %v6328_v39  ;;  %v9794_v23 = vpop.f32.mrf.mxu1 }
 0x607   : > { %v11589_v13 = vpop.eup %11588  ;;  %11602 = vrcp.f32 %v6235_v34  ;;  %v6331_v51 = vpop.xlane.xlu0 %6330 }
 0x608   : > { %v7390_v5 = vmul.f32 %v11589_v13, %v9684_v53  ;;  %10593 = vmatprep.mubr.msk.bf16.mxu1 %vm3386_vm0, %v7487_v24  ;;  %v9686_v0 = vpop.f32.mrf.mxu0  ;;  %v11591_v2 = vpop.eup %11590 }
 0x609   : > { %v9795_v10 = vpop.f32.mrf.mxu1  ;;  %v6238_v56 = vpop.xlane.xlu1 %6237  ;;  %v7421_v41 = vmul.f32 %v11591_v2, %v9793_v9  ;;  %v9687_v60 = vadd.f32 %v9686_v0, %v9685_v49 }
 0x60a   : > { %v7472_v11 = vpack.c.bf16 %v7390_v5, %v7389_v31  ;;  %v9796_v19 = vadd.f32 %v9795_v10, %v9794_v23  ;;  %11604 = vrcp.f32 %v6238_v56  ;;  %v9688_v48 = vpop.f32.mrf.mxu0 }
 0x60b   : > { %v11593_v4 = vpop.eup %11592  ;;  %v9797_v45 = vpop.f32.mrf.mxu1  ;;  %11606 = vrcp.f32 %v6331_v51 }
 0x60c   : > { %v7422_v59 = vmul.f32 %v11593_v4, %v9796_v19  ;;  %10558 = vmatmul.mubr.msk.bf16.gmra.mxu0 %vm3386_vm0, %v7472_v11  ;;  %v9689_v18 = vpop.f32.mrf.mxu0  ;;  %v11595_v27 = vpop.eup %11594 }
 0x60d   : > { %v9690_v32 = vadd.f32 %v9689_v18, %v9688_v48  ;;  %v9798_v44 = vpop.f32.mrf.mxu1  ;;  %v6334_v25 = vpop.xlane.xlu1 %6333  ;;  %v7391_v8 = vmul.f32 %v11595_v27, %v9687_v60 }
 0x60e   : > { %v7488_v36 = vpack.c.bf16 %v7422_v59, %v7421_v41  ;;  %11608 = vrcp.f32 %v6334_v25  ;;  %v9691_v61 = vpop.f32.mrf.mxu0  ;;  %v9799_v63 = vadd.f32 %v9798_v44, %v9797_v45 }
 0x60f   : > { %v11597_v7 = vpop.eup %11596  ;;  %v9800_v55 = vpop.f32.mrf.mxu1 }
 0x610   : > { %v7392_v33 = vmul.f32 %v11597_v7, %v9690_v32  ;;  %10594 = vmatmul.mubr.msk.bf16.gmra.mxu1 %vm3386_vm0, %v7488_v36  ;;  %v11599_v42 = vpop.eup %11598  ;;  %v9692_v57 = vpop.f32.mrf.mxu0 }
 0x611   : > { %v9801_v17 = vpop.f32.mrf.mxu1  ;;  %v7423_v50 = vmul.f32 %v11599_v42, %v9799_v63  ;;  %v9693_v15 = vadd.f32 %v9692_v57, %v9691_v61 }
 0x612   : > { %v7473_v20 = vpack.c.bf16 %v7392_v33, %v7391_v8  ;;  %v9802_v54 = vadd.f32 %v9801_v17, %v9800_v55  ;;  %v9694_v26 = vpop.f32.mrf.mxu0 }
 0x613   : > { %v11601_v29 = vpop.eup %11600  ;;  %v9803_v37 = vpop.f32.mrf.mxu1 }
 0x614   : > { %v7424_v30 = vmul.f32 %v11601_v29, %v9802_v54  ;;  %10561 = vmatprep.mubr.msk.bf16.mxu0 %vm3386_vm0, %v7473_v20  ;;  %v11603_v46 = vpop.eup %11602  ;;  %v9695_v28 = vpop.f32.mrf.mxu0 }
 0x615   : > { %v9804_v62 = vpop.f32.mrf.mxu1  ;;  %v9696_v35 = vadd.f32 %v9695_v28, %v9694_v26  ;;  %v7393_v16 = vmul.f32 %v11603_v46, %v9693_v15 }
 0x616   : > { %v7489_v3 = vpack.c.bf16 %v7424_v30, %v7423_v50  ;;  %v17294_v6 = vpop.f32.mrf.mxu0  ;;  %v9805_v58 = vadd.f32 %v9804_v62, %v9803_v37 }
 0x617   : > { %v11605_v22 = vpop.eup %11604  ;;  %v9806_v12 = vpop.f32.mrf.mxu1 }
 0x618   : > { %v7394_v1 = vmul.f32 %v11605_v22, %v9696_v35  ;;  %10597 = vmatprep.mubr.msk.bf16.mxu1 %vm3386_vm0, %v7489_v3  ;;  %v11607_v43 = vpop.eup %11606  ;;  %v17297_v14 = vpop.f32.mrf.mxu0 }
 0x619   : > { %v9807_v34 = vpop.f32.mrf.mxu1  ;;  %v7425_v53 = vmul.f32 %v11607_v43, %v9805_v58 }
 0x61a   : > { %v7474_v40 = vpack.c.bf16 %v7394_v1, %v7393_v16  ;;  %v9808_v38 = vadd.f32 %v9807_v34, %v9806_v12  ;;  %v17299_v47 = vpop.f32.mrf.mxu0 }
 0x61b   : > { %v11609_v21 = vpop.eup %11608  ;;  %v17301_v52 = vpop.f32.mrf.mxu1 }
 0x61c   : > { %v7426_v39 = vmul.f32 %v11609_v21, %v9808_v38  ;;  %10562 = vmatmul.mubr.msk.bf16.gmra.mxu0 %vm3386_vm0, %v7474_v40  ;;  %v17304_v24 = vpop.f32.mrf.mxu0 }
 0x61d   : > { %v17306_v49 = vpop.f32.mrf.mxu1 }
 0x61e   : > { %v7490_v13 = vpack.c.bf16 %v7426_v39, %v7425_v53  ;;  %v10467_v23 = vpop.f32.mrf.mxu0 }
 0x61f   : > { %v17308_v31 = vpop.f32.mrf.mxu1 }
 0x620   : > { %10598 = vmatmul.mubr.msk.bf16.gmra.mxu1 %vm3386_vm0, %v7490_v13  ;;  %v7617_v9 = vpop.f32.mrf.mxu0 }
 0x621   : > { %v17311_v5 = vpop.f32.mrf.mxu1 }
 0x622   : > { %v10468_v51 = vpop.f32.mrf.mxu0 }
 0x623   : > { %v10503_v0 = vpop.f32.mrf.mxu1 }
 0x624   : > { %v17313_v2 = vadd.f32 %v10503_v0, %v10467_v23  ;;  %v7620_v10 = vpop.f32.mrf.mxu0 }
 0x625   : > { %v7838_v56 = vpop.f32.mrf.mxu1 }
 0x626   : > { %v17315_v11 = vadd.f32 %v7838_v56, %v7617_v9  ;;  %v10471_v19 = vpop.f32.mrf.mxu0 }
 0x627   : > { %v10504_v48 = vpop.f32.mrf.mxu1 }
 0x628   : > { %v17317_v4 = vadd.f32 %v10504_v48, %v10468_v51  ;;  %v7633_v45 = vpop.f32.mrf.mxu0 }
 0x629   : > { %v7841_v41 = vpop.f32.mrf.mxu1 }
 0x62a   : > { %v17319_v59 = vadd.f32 %v7841_v41, %v7620_v10  ;;  %v10472_v60 = vpop.f32.mrf.mxu0 }
 0x62b   : > { %v10507_v18 = vpop.f32.mrf.mxu1 }
 0x62c   : > { %v17321_v27 = vadd.f32 %v10507_v18, %v10471_v19  ;;  %v7636_v32 = vpop.f32.mrf.mxu0 }
 0x62d   : > { %v7854_v44 = vpop.f32.mrf.mxu1 }
 0x62e   : > { %v17323_v25 = vadd.f32 %v7854_v44, %v7633_v45  ;;  %v10475_v36 = vpop.f32.mrf.mxu0 }
 0x62f   : > { %v10508_v7 = vpop.f32.mrf.mxu1 }
 0x630   : > { %v17325_v61 = vadd.f32 %v10508_v7, %v10472_v60  ;;  %v7649_v55 = vpop.f32.mrf.mxu0 }
 0x631   : > { %v7857_v8 = vpop.f32.mrf.mxu1 }
 0x632   : > { %v17327_v33 = vadd.f32 %v7857_v8, %v7636_v32  ;;  %v10476_v63 = vpop.f32.mrf.mxu0 }
 0x633   : > { %v10511_v42 = vpop.f32.mrf.mxu1 }
 0x634   : > { %v17329_v57 = vadd.f32 %v10511_v42, %v10475_v36  ;;  %v7652_v17 = vpop.f32.mrf.mxu0 }
 0x635   : > { %v7870_v20 = vpop.f32.mrf.mxu1 }
 0x636   : > { %v17331_v54 = vadd.f32 %v7870_v20, %v7649_v55  ;;  %v10479_v29 = vpop.f32.mrf.mxu0 }
 0x637   : > { %v10512_v26 = vpop.f32.mrf.mxu1 }
 0x638   : > { %v17333_v37 = vadd.f32 %v10512_v26, %v10476_v63  ;;  %v7665_v50 = vpop.f32.mrf.mxu0 }
 0x639   : > { %v7873_v15 = vpop.f32.mrf.mxu1 }
 0x63a   : > { %v17335_v30 = vadd.f32 %v7873_v15, %v7652_v17  ;;  %v10480_v46 = vpop.f32.mrf.mxu0 }
 0x63b   : > { %v10515_v28 = vpop.f32.mrf.mxu1 }
 0x63c   : > { %v17337_v62 = vadd.f32 %v10515_v28, %v10479_v29  ;;  %v7668_v3 = vpop.f32.mrf.mxu0 }
 0x63d   : > { %v7886_v35 = vpop.f32.mrf.mxu1 }
 0x63e   : > { %v17339_v22 = vadd.f32 %v7886_v35, %v7665_v50  ;;  %v10483_v12 = vpop.f32.mrf.mxu0  ;;  %v8397_v35 = vadd.f32 %v17301_v52, %v17294_v6 }
 0x63f   : > { %v10516_v16 = vpop.f32.mrf.mxu1 }
 0x640   : > { %v17341_v1 = vadd.f32 %v10516_v16, %v10480_v46  ;;  %v7681_v58 = vpop.f32.mrf.mxu0  ;;  %v8391_v16 = vadd.f32 %v17306_v49, %v17297_v14  ;;  %v8394_v14 = vadd.f32 %v17311_v5, %v17304_v24 }
 0x641   : > { %v7889_v43 = vpop.f32.mrf.mxu1 }
 0x642   : > { %v17343_v34 = vadd.f32 %v7889_v43, %v7668_v3  ;;  %v10484_v21 = vpop.f32.mrf.mxu0 }
 0x643   : > { %v10519_v40 = vpop.f32.mrf.mxu1 }
 0x644   : > { %v17345_v38 = vadd.f32 %v10519_v40, %v10483_v12  ;;  %v7684_v9 = vpop.f32.mrf.mxu0 }
 0x645   : > { %v7902_v53 = vpop.f32.mrf.mxu1 }
 0x646   : > { %v17347_v39 = vadd.f32 %v7902_v53, %v7681_v58  ;;  %v8400_v53 = vadd.f32 %v17308_v31, %v17299_v47 }
 0x647   : > { %v10520_v13 = vpop.f32.mrf.mxu1 }
 0x648   : > { %v17349_v23 = vadd.f32 %v10520_v13, %v10484_v21  ;;  %v17379_v21 = vld [vmem:[%s17536_s6] ss:$0 sm:$0xff] }
 0x649   : > { %v7905_v51 = vpop.f32.mrf.mxu1 }
 0x64a   : > { %v17351_v0 = vadd.f32 %v7905_v51, %v7684_v9 }
 0x64c   : > { %v10487_v10 = vpop.f32.mrf.mxu0 }
 0x64e   : > { %v7697_v56 = vpop.f32.mrf.mxu0 }
 0x650   : > { %v10523_v19 = vpop.f32.mrf.mxu1  ;;  %v10488_v45 = vpop.f32.mrf.mxu0 }
 0x651   : > { %v17353_v48 = vadd.f32 %v10523_v19, %v10487_v10 }
 0x652   : > { %v7918_v41 = vpop.f32.mrf.mxu1  ;;  %v7700_v44 = vpop.f32.mrf.mxu0 }
 0x653   : > { %v17355_v60 = vadd.f32 %v7918_v41, %v7697_v56 }
 0x654   : > { %v10524_v18 = vpop.f32.mrf.mxu1 }
 0x655   : > { %v17357_v32 = vadd.f32 %v10524_v18, %v10488_v45 }
 0x656   : > { %v7921_v36 = vpop.f32.mrf.mxu1 }
 0x657   : > { %v17359_v7 = vadd.f32 %v7921_v36, %v7700_v44 }
 0x65c   : > { %v10491_v55 = vpop.f32.mrf.mxu0 }
 0x65e   : > { %v7713_v8 = vpop.f32.mrf.mxu0 }
 0x660   : > { %v10527_v63 = vpop.f32.mrf.mxu1  ;;  %v10492_v17 = vpop.f32.mrf.mxu0 }
 0x661   : > { %v17361_v42 = vadd.f32 %v10527_v63, %v10491_v55 }
 0x662   : > { %v7934_v20 = vpop.f32.mrf.mxu1  ;;  %v7716_v15 = vpop.f32.mrf.mxu0 }
 0x663   : > { %v17363_v29 = vadd.f32 %v7934_v20, %v7713_v8 }
 0x664   : > { %v10528_v26 = vpop.f32.mrf.mxu1 }
 0x665   : > { %v17365_v50 = vadd.f32 %v10528_v26, %v10492_v17 }
 0x666   : > { %v7937_v46 = vpop.f32.mrf.mxu1 }
 0x667   : > { %v17367_v28 = vadd.f32 %v7937_v46, %v7716_v15 }
 0x66c   : > { %v10535_v3 = vpop.f32.mrf.mxu0 }
 0x66d   : > { %v8398_v58 = vadd.f32 %v10535_v3, %v8397_v35 }
 0x66e   : > { %v8043_v12 = vpop.f32.mrf.mxu0 }
 0x66f   : > { %v8392_v13 = vadd.f32 %v8391_v16, %v8043_v12 }
 0x670   : > { %v10536_v43 = vpop.f32.mrf.mxu0  ;;  %v10571_v40 = vpop.f32.mrf.mxu1 }
 0x671   : > { %v8399_v9 = vadd.f32 %v10571_v40, %v8398_v58  ;;  %v8401_v49 = vadd.f32 %v10536_v43, %v8400_v53 }
 0x672   : > { %v8046_v6 = vpop.f32.mrf.mxu0  ;;  %v8264_v52 = vpop.f32.mrf.mxu1 }
 0x673   : > { %v8496_v51 = vadd.f32 %v17379_v21, %v8399_v9  ;;  %v8393_v10 = vadd.f32 %v8392_v13, %v8264_v52  ;;  %v8395_v47 = vadd.f32 %v8394_v14, %v8046_v6 }
 0x674   : > { %v10572_v56 = vpop.f32.mrf.mxu1 }
 0x675   : > { %8528 = vst [vmem:[%s17386_s23 + $0x10] sm:$0xff] %v8496_v51  ;;  %v8494_v31 = vadd.f32 %v17379_v21, %v8393_v10  ;;  %v8402_v19 = vadd.f32 %v10572_v56, %v8401_v49 }
 0x676   : > { %v8267_v45 = vpop.f32.mrf.mxu1 }
 0x677   : > { %8526 = vst [vmem:[%s17386_s23] sm:$0xff] %v8494_v31  ;;  %v8497_v24 = vadd.f32 %v17379_v21, %v8402_v19  ;;  %v8396_v5 = vadd.f32 %v8395_v47, %v8267_v45 }
 0x679   : > { %8529 = vst [vmem:[%s17386_s23 + $0x18] sm:$0xff] %v8497_v24  ;;  %v8495_v41 = vadd.f32 %v17379_v21, %v8396_v5 }
 0x67b   : > { %8527 = vst [vmem:[%s17386_s23 + $0x8] sm:$0xff] %v8495_v41 }
 0x67c   : > { %v10539_v18 = vpop.f32.mrf.mxu0 }
 0x67d   : > { %v8410_v36 = vadd.f32 %v10539_v18, %v17313_v2 }
 0x67e   : > { %v8059_v44 = vpop.f32.mrf.mxu0 }
 0x67f   : > { %v8404_v63 = vadd.f32 %v17315_v11, %v8059_v44 }
 0x680   : > { %v10540_v55 = vpop.f32.mrf.mxu0  ;;  %v10575_v8 = vpop.f32.mrf.mxu1 }
 0x681   : > { %v8411_v17 = vadd.f32 %v10575_v8, %v8410_v36  ;;  %v8413_v15 = vadd.f32 %v10540_v55, %v17317_v4 }
 0x682   : > { %v8062_v20 = vpop.f32.mrf.mxu0  ;;  %v8280_v26 = vpop.f32.mrf.mxu1 }
 0x683   : > { %v8500_v46 = vadd.f32 %v17379_v21, %v8411_v17  ;;  %v8405_v3 = vadd.f32 %v8404_v63, %v8280_v26  ;;  %v8407_v12 = vadd.f32 %v17319_v59, %v8062_v20 }
 0x684   : > { %v10576_v35 = vpop.f32.mrf.mxu1 }
 0x685   : > { %8532 = vst [vmem:[%s17386_s23 + $0x30] sm:$0xff] %v8500_v46  ;;  %v8498_v2 = vadd.f32 %v17379_v21, %v8405_v3  ;;  %v8414_v16 = vadd.f32 %v10576_v35, %v8413_v15 }
 0x686   : > { %v8283_v58 = vpop.f32.mrf.mxu1 }
 0x687   : > { %8530 = vst [vmem:[%s17386_s23 + $0x20] sm:$0xff] %v8498_v2  ;;  %v8501_v11 = vadd.f32 %v17379_v21, %v8414_v16  ;;  %v8408_v43 = vadd.f32 %v8407_v12, %v8283_v58 }
 0x689   : > { %8533 = vst [vmem:[%s17386_s23 + $0x38] sm:$0xff] %v8501_v11  ;;  %v8499_v40 = vadd.f32 %v17379_v21, %v8408_v43 }
 0x68b   : > { %8531 = vst [vmem:[%s17386_s23 + $0x28] sm:$0xff] %v8499_v40 }
 0x68c   : > { %v10543_v4 = vpop.f32.mrf.mxu0 }
 0x68d   : > { %v8422_v13 = vadd.f32 %v10543_v4, %v17321_v27 }
 0x68e   : > { %v8075_v53 = vpop.f32.mrf.mxu0 }
 0x68f   : > { %v8416_v6 = vadd.f32 %v17323_v25, %v8075_v53 }
 0x690   : > { %v10544_v9 = vpop.f32.mrf.mxu0  ;;  %v10579_v59 = vpop.f32.mrf.mxu1 }
 0x691   : > { %v8423_v52 = vadd.f32 %v10579_v59, %v8422_v13  ;;  %v8425_v51 = vadd.f32 %v10544_v9, %v17325_v61 }
 0x692   : > { %v8078_v14 = vpop.f32.mrf.mxu0  ;;  %v8296_v49 = vpop.f32.mrf.mxu1 }
 0x693   : > { %v8504_v10 = vadd.f32 %v17379_v21, %v8423_v52  ;;  %v8417_v56 = vadd.f32 %v8416_v6, %v8296_v49  ;;  %v8419_v31 = vadd.f32 %v17327_v33, %v8078_v14 }
 0x694   : > { %v10580_v47 = vpop.f32.mrf.mxu1 }
 0x695   : > { %8536 = vst [vmem:[%s17386_s23 + $0x50] sm:$0xff] %v8504_v10  ;;  %v8502_v27 = vadd.f32 %v17379_v21, %v8417_v56  ;;  %v8426_v19 = vadd.f32 %v10580_v47, %v8425_v51 }
 0x696   : > { %v8299_v45 = vpop.f32.mrf.mxu1 }
 0x697   : > { %8534 = vst [vmem:[%s17386_s23 + $0x40] sm:$0xff] %v8502_v27  ;;  %v8505_v25 = vadd.f32 %v17379_v21, %v8426_v19  ;;  %v8420_v24 = vadd.f32 %v8419_v31, %v8299_v45 }
 0x699   : > { %8537 = vst [vmem:[%s17386_s23 + $0x58] sm:$0xff] %v8505_v25  ;;  %v8503_v5 = vadd.f32 %v17379_v21, %v8420_v24 }
 0x69b   : > { %8535 = vst [vmem:[%s17386_s23 + $0x48] sm:$0xff] %v8503_v5 }
 0x69c   : > { %v10547_v61 = vpop.f32.mrf.mxu0 }
 0x69d   : > { %v8434_v18 = vadd.f32 %v10547_v61, %v17329_v57 }
 0x69e   : > { %v8091_v41 = vpop.f32.mrf.mxu0 }
 0x69f   : > { %v8428_v36 = vadd.f32 %v17331_v54, %v8091_v41 }
 0x6a0   : > { %v10548_v44 = vpop.f32.mrf.mxu0  ;;  %v10583_v33 = vpop.f32.mrf.mxu1 }
 0x6a1   : > { %v8435_v55 = vadd.f32 %v10583_v33, %v8434_v18  ;;  %v8437_v17 = vadd.f32 %v10548_v44, %v17333_v37 }
 0x6a2   : > { %v8094_v8 = vpop.f32.mrf.mxu0  ;;  %v8312_v63 = vpop.f32.mrf.mxu1 }
 0x6a3   : > { %v8508_v20 = vadd.f32 %v17379_v21, %v8435_v55  ;;  %v8429_v26 = vadd.f32 %v8428_v36, %v8312_v63  ;;  %v8431_v46 = vadd.f32 %v17335_v30, %v8094_v8 }
 0x6a4   : > { %v10584_v15 = vpop.f32.mrf.mxu1 }
 0x6a5   : > { %8540 = vst [vmem:[%s17386_s23 + $0x70] sm:$0xff] %v8508_v20  ;;  %v8506_v57 = vadd.f32 %v17379_v21, %v8429_v26  ;;  %v8438_v3 = vadd.f32 %v10584_v15, %v8437_v17 }
 0x6a6   : > { %v8315_v35 = vpop.f32.mrf.mxu1 }
 0x6a7   : > { %8538 = vst [vmem:[%s17386_s23 + $0x60] sm:$0xff] %v8506_v57  ;;  %v8509_v54 = vadd.f32 %v17379_v21, %v8438_v3  ;;  %v8432_v12 = vadd.f32 %v8431_v46, %v8315_v35 }
 0x6a9   : > { %8541 = vst [vmem:[%s17386_s23 + $0x78] sm:$0xff] %v8509_v54  ;;  %v8507_v2 = vadd.f32 %v17379_v21, %v8432_v12 }
 0x6ab   : > { %8539 = vst [vmem:[%s17386_s23 + $0x68] sm:$0xff] %v8507_v2 }
 0x6ac   : > { %v10551_v37 = vpop.f32.mrf.mxu0 }
 0x6ad   : > { %v8446_v58 = vadd.f32 %v10551_v37, %v17337_v62 }
 0x6ae   : > { %v8107_v16 = vpop.f32.mrf.mxu0 }
 0x6af   : > { %v8440_v43 = vadd.f32 %v17339_v22, %v8107_v16 }
 0x6b0   : > { %v10552_v11 = vpop.f32.mrf.mxu0  ;;  %v10587_v30 = vpop.f32.mrf.mxu1 }
 0x6b1   : > { %v8447_v40 = vadd.f32 %v10587_v30, %v8446_v58  ;;  %v8449_v13 = vadd.f32 %v10552_v11, %v17341_v1 }
 0x6b2   : > { %v8110_v4 = vpop.f32.mrf.mxu0  ;;  %v8328_v53 = vpop.f32.mrf.mxu1 }
 0x6b3   : > { %v8512_v9 = vadd.f32 %v17379_v21, %v8447_v40  ;;  %v8441_v59 = vadd.f32 %v8440_v43, %v8328_v53  ;;  %v8443_v52 = vadd.f32 %v17343_v34, %v8110_v4 }
 0x6b4   : > { %v10588_v6 = vpop.f32.mrf.mxu1 }
 0x6b5   : > { %8544 = vst [vmem:[%s17386_s23 + $0x90] sm:$0xff] %v8512_v9  ;;  %v8510_v62 = vadd.f32 %v17379_v21, %v8441_v59  ;;  %v8450_v14 = vadd.f32 %v10588_v6, %v8449_v13 }
 0x6b6   : > { %v8331_v49 = vpop.f32.mrf.mxu1 }
 0x6b7   : > { %8542 = vst [vmem:[%s17386_s23 + $0x80] sm:$0xff] %v8510_v62  ;;  %v8513_v22 = vadd.f32 %v17379_v21, %v8450_v14  ;;  %v8444_v51 = vadd.f32 %v8443_v52, %v8331_v49 }
 0x6b9   : > { %8545 = vst [vmem:[%s17386_s23 + $0x98] sm:$0xff] %v8513_v22  ;;  %v8511_v10 = vadd.f32 %v17379_v21, %v8444_v51 }
 0x6bb   : > { %8543 = vst [vmem:[%s17386_s23 + $0x88] sm:$0xff] %v8511_v10 }
 0x6bc   : > { %v10555_v1 = vpop.f32.mrf.mxu0 }
 0x6bd   : > { %v8458_v47 = vadd.f32 %v10555_v1, %v17345_v38 }
 0x6be   : > { %v8123_v56 = vpop.f32.mrf.mxu0 }
 0x6bf   : > { %v8452_v27 = vadd.f32 %v17347_v39, %v8123_v56 }
 0x6c0   : > { %v10556_v31 = vpop.f32.mrf.mxu0  ;;  %v10591_v34 = vpop.f32.mrf.mxu1 }
 0x6c1   : > { %v8459_v19 = vadd.f32 %v10591_v34, %v8458_v47  ;;  %v8461_v24 = vadd.f32 %v10556_v31, %v17349_v23 }
 0x6c2   : > { %v8126_v45 = vpop.f32.mrf.mxu0  ;;  %v8344_v25 = vpop.f32.mrf.mxu1 }
 0x6c3   : > { %v8516_v5 = vadd.f32 %v17379_v21, %v8459_v19  ;;  %v8453_v61 = vadd.f32 %v8452_v27, %v8344_v25  ;;  %v8455_v18 = vadd.f32 %v17351_v0, %v8126_v45 }
 0x6c4   : > { %v10592_v41 = vpop.f32.mrf.mxu1 }
 0x6c5   : > { %8548 = vst [vmem:[%s17386_s23 + $0xb0] sm:$0xff] %v8516_v5  ;;  %v8514_v38 = vadd.f32 %v17379_v21, %v8453_v61  ;;  %v8462_v44 = vadd.f32 %v10592_v41, %v8461_v24 }
 0x6c6   : > { %v8347_v33 = vpop.f32.mrf.mxu1 }
 0x6c7   : > { %8546 = vst [vmem:[%s17386_s23 + $0xa0] sm:$0xff] %v8514_v38  ;;  %v8517_v39 = vadd.f32 %v17379_v21, %v8462_v44  ;;  %v8456_v36 = vadd.f32 %v8455_v18, %v8347_v33 }
 0x6c9   : > { %8549 = vst [vmem:[%s17386_s23 + $0xb8] sm:$0xff] %v8517_v39  ;;  %v8515_v55 = vadd.f32 %v17379_v21, %v8456_v36 }
 0x6cb   : > { %8547 = vst [vmem:[%s17386_s23 + $0xa8] sm:$0xff] %v8515_v55 }
 0x6cc   : > { %v10559_v23 = vpop.f32.mrf.mxu0 }
 0x6cd   : > { %v8470_v63 = vadd.f32 %v10559_v23, %v17353_v48 }
 0x6ce   : > { %v8139_v8 = vpop.f32.mrf.mxu0 }
 0x6cf   : > { %v8464_v20 = vadd.f32 %v17355_v60, %v8139_v8 }
 0x6d0   : > { %v10560_v17 = vpop.f32.mrf.mxu0  ;;  %v10595_v0 = vpop.f32.mrf.mxu1 }
 0x6d1   : > { %v8471_v26 = vadd.f32 %v10595_v0, %v8470_v63  ;;  %v8473_v57 = vadd.f32 %v10560_v17, %v17357_v32 }
 0x6d2   : > { %v8142_v15 = vpop.f32.mrf.mxu0  ;;  %v8360_v46 = vpop.f32.mrf.mxu1 }
 0x6d3   : > { %v8520_v3 = vadd.f32 %v17379_v21, %v8471_v26  ;;  %v8465_v35 = vadd.f32 %v8464_v20, %v8360_v46  ;;  %v8467_v12 = vadd.f32 %v17359_v7, %v8142_v15 }
 0x6d4   : > { %v10596_v54 = vpop.f32.mrf.mxu1 }
 0x6d5   : > { %8552 = vst [vmem:[%s17386_s23 + $0xd0] sm:$0xff] %v8520_v3  ;;  %v8518_v48 = vadd.f32 %v17379_v21, %v8465_v35  ;;  %v8474_v2 = vadd.f32 %v10596_v54, %v8473_v57 }
 0x6d6   : > { %v8363_v37 = vpop.f32.mrf.mxu1 }
 0x6d7   : > { %8550 = vst [vmem:[%s17386_s23 + $0xc0] sm:$0xff] %v8518_v48  ;;  %v8521_v60 = vadd.f32 %v17379_v21, %v8474_v2  ;;  %v8468_v16 = vadd.f32 %v8467_v12, %v8363_v37 }
 0x6d9   : > { %8553 = vst [vmem:[%s17386_s23 + $0xd8] sm:$0xff] %v8521_v60  ;;  %v8519_v58 = vadd.f32 %v17379_v21, %v8468_v16 }
 0x6db   : > { %8551 = vst [vmem:[%s17386_s23 + $0xc8] sm:$0xff] %v8519_v58 }
 0x6dc   : > { %v10563_v32 = vpop.f32.mrf.mxu0 }
 0x6dd   : > { %v8482_v30 = vadd.f32 %v10563_v32, %v17361_v42 }
 0x6de   : > { %v8155_v11 = vpop.f32.mrf.mxu0 }
 0x6df   : > { %v8476_v40 = vadd.f32 %v17363_v29, %v8155_v11 }
 0x6e0   : > { %v10564_v7 = vpop.f32.mrf.mxu0  ;;  %v10599_v43 = vpop.f32.mrf.mxu1 }
 0x6e1   : > { %v8483_v4 = vadd.f32 %v10599_v43, %v8482_v30  ;;  %v8485_v9 = vadd.f32 %v10564_v7, %v17365_v50 }
 0x6e2   : > { %v8158_v53 = vpop.f32.mrf.mxu0  ;;  %v8376_v13 = vpop.f32.mrf.mxu1 }
 0x6e3   : > { %v8524_v59 = vadd.f32 %v17379_v21, %v8483_v4  ;;  %v8477_v6 = vadd.f32 %v8476_v40, %v8376_v13  ;;  %v8479_v42 = vadd.f32 %v17367_v28, %v8158_v53 }
 0x6e4   : > { %v10600_v52 = vpop.f32.mrf.mxu1 }
 0x6e5   : > { %8556 = vst [vmem:[%s17386_s23 + $0xf0] sm:$0xff] %v8524_v59  ;;  %v8522_v62 = vadd.f32 %v17379_v21, %v8477_v6  ;;  %v8486_v14 = vadd.f32 %v10600_v52, %v8485_v9 }
 0x6e6   : > { %v8379_v29 = vpop.f32.mrf.mxu1 }
 0x6e7   : > { %8554 = vst [vmem:[%s17386_s23 + $0xe0] sm:$0xff] %v8522_v62  ;;  %v8525_v50 = vadd.f32 %v17379_v21, %v8486_v14  ;;  %v8480_v49 = vadd.f32 %v8479_v42, %v8379_v29 }
 0x6e9   : > { %8557 = vst [vmem:[%s17386_s23 + $0xf8] sm:$0xff] %v8525_v50  ;;  %v8523_v28 = vadd.f32 %v17379_v21, %v8480_v49 }
 0x6eb   : > { %8555 = vst [vmem:[%s17386_s23 + $0xe8] sm:$0xff] %v8523_v28 }
 0x6ec   : > { %11623 = shalt.err (!%p11620_p3)
}
 0x6ed   : > { %s11624_s19 = scalar_lea.hbm %s17481_s14, 4096  ;;  %s11628_s22 = scalar_lea.hbm %s17537_s7, 8192 }
 0x6ee   : > { %p11625_p4 = scmp.ne.s32.totalorder %s17481_s14, %s11624_s19  ;;  %p11629_p9 = scmp.lt.s32.totalorder %s17481_s14, %s17537_s7 }
 0x6ef   : > { %p11630_p10 = scmp.lt.s32.totalorder %s11628_s22, %s11624_s19 }
 0x6f0   : > { %p11626_p7 = pnand %p11625_p4, %p11753_p5 }
 0x6f1   : > { %p11631_p11 = por %p11630_p10, %p11629_p9 }
 0x6f2   : > { %p11627_p8 = pneg %p11626_p7 }
 0x6f4   : > { %p11632_p12 = pnand %p11631_p11, %p11627_p8 }
 0x6f6   : > { %11635 = shalt.err (!%p11632_p12)
}
 0x6f7   : > { %s11673_s9 = smov 128   ;;  %s11674_s13 = smov 8  }
 0x6f8   : > { %10633 = dma.vmem_to_hbm [thread:$0]  (%p11753_p5), %s17483_s8, 4096, %s17481_s14, %s17490_s28, %s11673_s9, %s11673_s9, %s11674_s13  }
 0x6f9 PF: > { %p10639_p13 = scmp.ge.s32.totalorder %s11670_s27, 2  ;;  %s8587_s15 = sand.u32 1, %s11658_s24  }
 0x6fa   : > { %s8588_s16 = scalar_lea.sflag [#allocation3], %s8587_s15 }
 0x6fb   : > { %p10636_p0 = pnand %p10639_p13, %p11757_p6 }
 0x6fd   : > { %p10637_p1 = pneg %p10636_p0 }
 0x6ff   : > { %11653 = dma.done.wait (%p10637_p1), %s8588_s16, 4096  }
 0x700   : > { %11655 = vsyncadd (%p10637_p1), %s8588_s16, 4294963200  ;;  %p17_p2 = scmp.ge.s32.totalorder %s11740_s30, 4   ;;  %s19452_s24 = smov %s11662_s25 }
 0x701   : > { %s19453_s25 = smov %s11666_s26  ;;  %s19454_s26 = smov %s11751_s10 }
 0x702   : > { %s19455_s27 = smov %s11740_s30  ;;  %19 = sbr.rel (!%p17_p2) target bundleno = 3 (0x3), region = 83 }
 0x707   :  { %8593 = vsyncpa [#allocation3], 1 }
 0x708   :  { %8595 = vsyncpa [#allocation3 + $0x1], 1 }

</bundles_post_ra>
